<compile_context>
chip_gen: v5e
topology: v5e:2x2
jax: 0.10.0
libtpu: 0.0.40
codegen_flags: <defaults>
</compile_context>

<pallas_src>
import jax
import jax.numpy as jnp
from jax.experimental import pallas as pl
from jax.experimental.pallas import tpu as pltpu

N_INPUT = 4 * 8 * 8      # C*H*W of the example feature map
HIDDEN = 1024
N_CLASSES = 10
PADDED_CLASSES = 128     # lane-dense class dimension inside the kernel
TM_MAX = 1024            # largest batch tile (rows) per grid step


def dann_classifier_kernel(x_ref, w1_ref, b1_ref, w2_ref, b2_ref,
                           w3_ref, b3_ref, out_ref):
    # x: (TM, n_input) bf16; weights bf16; biases f32; matmuls accumulate in f32.
    x = x_ref[...]

    # fc1: Linear + ReLU (+ Dropout == identity at inference)
    h1 = jnp.dot(x, w1_ref[...], preferred_element_type=jnp.float32) + b1_ref[...]
    h1 = jnp.maximum(h1, 0.0).astype(jnp.bfloat16)

    # fc2: Linear + ReLU (+ Dropout == identity at inference)
    h2 = jnp.dot(h1, w2_ref[...], preferred_element_type=jnp.float32) + b2_ref[...]
    h2 = jnp.maximum(h2, 0.0).astype(jnp.bfloat16)

    # fc3: Linear -> logits (TM, 128).  Padded classes have zero weights and a
    # bias of -1e30, so they contribute exp(~-inf) == 0 to the logsumexp.
    logits = jnp.dot(h2, w3_ref[...], preferred_element_type=jnp.float32) + b3_ref[...]

    # numerically-stable log_softmax over the (padded) class axis
    m = jnp.max(logits, axis=-1, keepdims=True)
    z = logits - m
    lse = jnp.log(jnp.sum(jnp.exp(z), axis=-1, keepdims=True))
    out_ref[...] = (z - lse).astype(out_ref.dtype)


def _round_up(x, m):
    return ((x + m - 1) // m) * m


def _build_call(tm, bp, n_input, single_buffer_weights):
    """Build the pallas_call for a (bp, n_input) padded batch with tile tm."""

    def resident(shape):
        # Operand identical for every grid step -> constant block index.
        index_map = lambda i, _n=len(shape): (0,) * _n
        if single_buffer_weights:
            # Single buffer: the block is fetched once and stays resident,
            # so a second buffer would only waste VMEM.
            return pl.BlockSpec(shape, index_map, pipeline_mode=pl.Buffered(1))
        return pl.BlockSpec(shape, index_map)

    cost = pl.CostEstimate(
        flops=2 * bp * (n_input * HIDDEN + HIDDEN * HIDDEN + HIDDEN * PADDED_CLASSES),
        transcendentals=bp * PADDED_CLASSES,
        bytes_accessed=(
            (n_input * HIDDEN + HIDDEN * HIDDEN + HIDDEN * PADDED_CLASSES) * 2  # bf16 weights
            + (2 * HIDDEN + PADDED_CLASSES) * 4                                 # f32 biases
            + bp * n_input * 2                                                  # bf16 x
            + bp * PADDED_CLASSES * 4                                           # f32 out
        ),
    )

    return pl.pallas_call(
        dann_classifier_kernel,
        out_shape=jax.ShapeDtypeStruct((bp, PADDED_CLASSES), jnp.float32),
        grid=(bp // tm,),
        in_specs=[
            # x: streamed per batch tile (default double-buffering is enough).
            pl.BlockSpec((tm, n_input), lambda i: (i, 0)),
            # Weights / biases: resident in VMEM across all grid steps.
            resident((n_input, HIDDEN)),
            resident((1, HIDDEN)),
            resident((HIDDEN, HIDDEN)),
            resident((1, HIDDEN)),
            resident((HIDDEN, PADDED_CLASSES)),
            resident((1, PADDED_CLASSES)),
        ],
        out_specs=pl.BlockSpec((tm, PADDED_CLASSES), lambda i: (i, 0)),
        compiler_params=pltpu.CompilerParams(
            dimension_semantics=("parallel",),
            # Safe everywhere (<= physical VMEM on v5e/v6e/v7x); lifts v5e's
            # 16 MiB default scoped limit so TM up to 1024 never spills.
            vmem_limit_bytes=32 * 1024 * 1024,
        ),
        cost_estimate=cost,
    )


def dann_classifier_forward(feature, params):
    """feature: (B, C, H, W) float32 (NCHW, like PyTorch). Returns (B, 10) log-probs."""
    b = feature.shape[0]
    x = feature.reshape(b, -1).astype(jnp.bfloat16)   # same as feature.view(b, -1)
    n_input = x.shape[1]
    w1, b1, w2, b2, w3, b3 = params

    # Pad the class dimension to 128 lanes (zero weights, -1e30 bias).
    w3p = jnp.zeros((HIDDEN, PADDED_CLASSES), w3.dtype).at[:, :N_CLASSES].set(w3)
    b3p = jnp.full((1, PADDED_CLASSES), -1e30, jnp.float32).at[:, :N_CLASSES].set(
        b3.astype(jnp.float32))

    # Batch tile: as large as VMEM comfortably allows (<= 1024 rows), but split
    # so the grid has >= 2 steps whenever B > 16 (keeps both v7x TensorCores
    # busy).  Multiple of 16 so bf16 rows fill whole sublane groups.
    tm = min(TM_MAX, max(16, _round_up(pl.cdiv(b, 2), 16)))
    bp = _round_up(b, tm)
    if bp != b:
        x = jnp.pad(x, ((0, bp - b), (0, 0)))

    args = (x, w1, b1, w2, b2, w3p, b3p)
    try:
        out = _build_call(tm, bp, n_input, single_buffer_weights=True)(*args)
    except Exception:
        # Fallback for JAX versions where pipeline_mode=pl.Buffered(1) is not
        # accepted on a top-level BlockSpec: default double-buffering (costs
        # ~2.75 MiB of VMEM, still well within the 32 MiB limit above).
        out = _build_call(tm, bp, n_input, single_buffer_weights=False)(*args)

    return out[:b, :N_CLASSES]


def init_params(key, n_input):
    """Deterministic init (uniform, like PyTorch Linear's bound = 1/sqrt(fan_in)).

    Weights are stored in bfloat16 (f32 accumulation in the kernel); biases in f32.
    """
    ks = jax.random.split(key, 6)

    def linear(kw, kb, fan_in, fan_out):
        bound = 1.0 / jnp.sqrt(fan_in)
        # stored as (in, out) so the kernel does x @ W + b
        w = jax.random.uniform(kw, (fan_in, fan_out), jnp.float32, -bound, bound)
        b = jax.random.uniform(kb, (1, fan_out), jnp.float32, -bound, bound)
        return w.astype(jnp.bfloat16), b

    w1, b1 = linear(ks[0], ks[1], n_input, HIDDEN)
    w2, b2 = linear(ks[2], ks[3], HIDDEN, HIDDEN)
    w3, b3 = linear(ks[4], ks[5], HIDDEN, N_CLASSES)
    return (w1, b1, w2, b2, w3, b3)


def reference_forward(feature, params):
    """Pure-JAX reference with the same bf16 weight/activation rounding."""
    b = feature.shape[0]
    x = feature.reshape(b, -1).astype(jnp.bfloat16)
    w1, b1, w2, b2, w3, b3 = params
    h = jnp.maximum(jnp.dot(x, w1, preferred_element_type=jnp.float32) + b1, 0.0)
    h = h.astype(jnp.bfloat16)
    h = jnp.maximum(jnp.dot(h, w2, preferred_element_type=jnp.float32) + b2, 0.0)
    h = h.astype(jnp.bfloat16)
    logits = jnp.dot(h, w3, preferred_element_type=jnp.float32) + b3
    return jax.nn.log_softmax(logits, axis=1)


if __name__ == "__main__":
    key = jax.random.PRNGKey(0)
    k_feat, k_params = jax.random.split(key)

    # small feature map: batch=2, channels=4, spatial=8x8 -> n_input = 256
    feature = jax.random.normal(k_feat, (2, 4, 8, 8), dtype=jnp.float32)
    params = init_params(k_params, N_INPUT)

    out = dann_classifier_forward(feature, params)
    out = jax.block_until_ready(out)

    ref = reference_forward(feature, params)
    assert out.shape == (2, N_CLASSES)
    assert jnp.allclose(out, ref, atol=2e-3, rtol=2e-3), "mismatch vs JAX reference"

    print("KERNEL_OK")
</pallas_src>

<mosaic_0001>
module attributes {stable_mosaic.version = 11 : i64} {
  func.func @dann_classifier_kernel(%arg0: i32, %arg1: memref<16x256xbf16, #tpu.memory_space<vmem>>, %arg2: memref<256x1024xbf16, #tpu.memory_space<vmem>>, %arg3: memref<1x1024xf32, #tpu.memory_space<vmem>>, %arg4: memref<1024x1024xbf16, #tpu.memory_space<vmem>>, %arg5: memref<1x1024xf32, #tpu.memory_space<vmem>>, %arg6: memref<1024x128xbf16, #tpu.memory_space<vmem>>, %arg7: memref<1x128xf32, #tpu.memory_space<vmem>>, %arg8: memref<16x128xf32, #tpu.memory_space<vmem>>) attributes {dimension_semantics = [#tpu.dimension_semantics<parallel>], iteration_bounds = array<i64: 1>, scalar_prefetch = 0 : i64, scratch_operands = 0 : i64, tpu.core_type = #tpu.core_type<tc>, window_params = [{transform_indices = @transform_0, window_bounds = array<i64: 16, 256>}, {pipeline_mode = #tpu.pipeline_mode<synchronous>, transform_indices = @transform_1, window_bounds = array<i64: 256, 1024>}, {pipeline_mode = #tpu.pipeline_mode<synchronous>, transform_indices = @transform_2, window_bounds = array<i64: 1, 1024>}, {pipeline_mode = #tpu.pipeline_mode<synchronous>, transform_indices = @transform_3, window_bounds = array<i64: 1024, 1024>}, {pipeline_mode = #tpu.pipeline_mode<synchronous>, transform_indices = @transform_4, window_bounds = array<i64: 1, 1024>}, {pipeline_mode = #tpu.pipeline_mode<synchronous>, transform_indices = @transform_5, window_bounds = array<i64: 1024, 128>}, {pipeline_mode = #tpu.pipeline_mode<synchronous>, transform_indices = @transform_6, window_bounds = array<i64: 1, 128>}, {transform_indices = @transform_7, window_bounds = array<i64: 16, 128>}]} {
    %c0 = arith.constant 0 : index
    %c0_0 = arith.constant 0 : index
    %0 = vector.load %arg1[%c0, %c0_0] : memref<16x256xbf16, #tpu.memory_space<vmem>>, vector<16x256xbf16>
    %c0_1 = arith.constant 0 : index
    %c0_2 = arith.constant 0 : index
    %1 = vector.load %arg2[%c0_1, %c0_2] : memref<256x1024xbf16, #tpu.memory_space<vmem>>, vector<256x1024xbf16>
    %cst = arith.constant dense<0.000000e+00> : vector<16x1024xf32>
    %2 = tpu.matmul %0, %1, %cst {dimension_numbers = #tpu.dot_dimension_numbers<[1], [0], [0], [1], [0, 0, 1, 1], [], []>} : vector<16x256xbf16>, vector<256x1024xbf16>, vector<16x1024xf32> -> vector<16x1024xf32>
    %c0_3 = arith.constant 0 : index
    %c0_4 = arith.constant 0 : index
    %3 = vector.load %arg3[%c0_3, %c0_4] : memref<1x1024xf32, #tpu.memory_space<vmem>>, vector<1x1024xf32>
    %4 = vector.broadcast %3 : vector<1x1024xf32> to vector<16x1024xf32>
    %5 = arith.addf %2, %4 : vector<16x1024xf32>
    %cst_5 = arith.constant 0.000000e+00 : f32
    %6 = vector.broadcast %cst_5 : f32 to vector<16x1024xf32>
    %7 = arith.maximumf %5, %6 : vector<16x1024xf32>
    %8 = arith.truncf %7 : vector<16x1024xf32> to vector<16x1024xbf16>
    %c0_6 = arith.constant 0 : index
    %c0_7 = arith.constant 0 : index
    %9 = vector.load %arg4[%c0_6, %c0_7] : memref<1024x1024xbf16, #tpu.memory_space<vmem>>, vector<1024x1024xbf16>
    %cst_8 = arith.constant dense<0.000000e+00> : vector<16x1024xf32>
    %10 = tpu.matmul %8, %9, %cst_8 {dimension_numbers = #tpu.dot_dimension_numbers<[1], [0], [0], [1], [0, 0, 1, 1], [], []>} : vector<16x1024xbf16>, vector<1024x1024xbf16>, vector<16x1024xf32> -> vector<16x1024xf32>
    %c0_9 = arith.constant 0 : index
    %c0_10 = arith.constant 0 : index
    %11 = vector.load %arg5[%c0_9, %c0_10] : memref<1x1024xf32, #tpu.memory_space<vmem>>, vector<1x1024xf32>
    %12 = vector.broadcast %11 : vector<1x1024xf32> to vector<16x1024xf32>
    %13 = arith.addf %10, %12 : vector<16x1024xf32>
    %cst_11 = arith.constant 0.000000e+00 : f32
    %14 = vector.broadcast %cst_11 : f32 to vector<16x1024xf32>
    %15 = arith.maximumf %13, %14 : vector<16x1024xf32>
    %16 = arith.truncf %15 : vector<16x1024xf32> to vector<16x1024xbf16>
    %c0_12 = arith.constant 0 : index
    %c0_13 = arith.constant 0 : index
    %17 = vector.load %arg6[%c0_12, %c0_13] : memref<1024x128xbf16, #tpu.memory_space<vmem>>, vector<1024x128xbf16>
    %cst_14 = arith.constant dense<0.000000e+00> : vector<16x128xf32>
    %18 = tpu.matmul %16, %17, %cst_14 {dimension_numbers = #tpu.dot_dimension_numbers<[1], [0], [0], [1], [0, 0, 1, 1], [], []>} : vector<16x1024xbf16>, vector<1024x128xbf16>, vector<16x128xf32> -> vector<16x128xf32>
    %c0_15 = arith.constant 0 : index
    %c0_16 = arith.constant 0 : index
    %19 = vector.load %arg7[%c0_15, %c0_16] : memref<1x128xf32, #tpu.memory_space<vmem>>, vector<1x128xf32>
    %20 = vector.broadcast %19 : vector<1x128xf32> to vector<16x128xf32>
    %21 = arith.addf %18, %20 : vector<16x128xf32>
    %cst_17 = arith.constant dense<0xFF800000> : vector<16xf32>
    %22 = vector.multi_reduction <maximumf>, %21, %cst_17 [1] : vector<16x128xf32> to vector<16xf32>
    %23 = vector.shape_cast %22 : vector<16xf32> to vector<16x1xf32>
    %24 = vector.broadcast %23 : vector<16x1xf32> to vector<16x128xf32>
    %25 = arith.subf %21, %24 : vector<16x128xf32>
    %26 = math.exp %25 : vector<16x128xf32>
    %cst_18 = arith.constant dense<0.000000e+00> : vector<16xf32>
    %27 = vector.multi_reduction <add>, %26, %cst_18 [1] : vector<16x128xf32> to vector<16xf32>
    %28 = vector.shape_cast %27 : vector<16xf32> to vector<16x1xf32>
    %29 = math.log %28 : vector<16x1xf32>
    %30 = vector.broadcast %29 : vector<16x1xf32> to vector<16x128xf32>
    %31 = arith.subf %25, %30 : vector<16x128xf32>
    %c0_19 = arith.constant 0 : index
    %c0_20 = arith.constant 0 : index
    %32 = vector.load %arg8[%c0_19, %c0_20] : memref<16x128xf32, #tpu.memory_space<vmem>>, vector<16x128xf32>
    tpu.vector_store %arg8[%c0_19, %c0_20], %31 {strides = array<i32>} : memref<16x128xf32, #tpu.memory_space<vmem>>, vector<16x128xf32>,
    return
  }
  func.func @transform_0(%arg0: i32) -> (i32, i32) {
    %c0_i32 = arith.constant 0 : i32
    %c0_i32_0 = arith.constant 0 : i32
    return %arg0, %c0_i32 : i32, i32
  }
  func.func @transform_1(%arg0: i32) -> (i32, i32) {
    %c0_i32 = arith.constant 0 : i32
    %c0_i32_0 = arith.constant 0 : i32
    %c0_i32_1 = arith.constant 0 : i32
    return %c0_i32, %c0_i32_0 : i32, i32
  }
  func.func @transform_2(%arg0: i32) -> (i32, i32) {
    %c0_i32 = arith.constant 0 : i32
    %c0_i32_0 = arith.constant 0 : i32
    %c0_i32_1 = arith.constant 0 : i32
    return %c0_i32, %c0_i32_0 : i32, i32
  }
  func.func @transform_3(%arg0: i32) -> (i32, i32) {
    %c0_i32 = arith.constant 0 : i32
    %c0_i32_0 = arith.constant 0 : i32
    %c0_i32_1 = arith.constant 0 : i32
    return %c0_i32, %c0_i32_0 : i32, i32
  }
  func.func @transform_4(%arg0: i32) -> (i32, i32) {
    %c0_i32 = arith.constant 0 : i32
    %c0_i32_0 = arith.constant 0 : i32
    %c0_i32_1 = arith.constant 0 : i32
    return %c0_i32, %c0_i32_0 : i32, i32
  }
  func.func @transform_5(%arg0: i32) -> (i32, i32) {
    %c0_i32 = arith.constant 0 : i32
    %c0_i32_0 = arith.constant 0 : i32
    %c0_i32_1 = arith.constant 0 : i32
    return %c0_i32, %c0_i32_0 : i32, i32
  }
  func.func @transform_6(%arg0: i32) -> (i32, i32) {
    %c0_i32 = arith.constant 0 : i32
    %c0_i32_0 = arith.constant 0 : i32
    %c0_i32_1 = arith.constant 0 : i32
    return %c0_i32, %c0_i32_0 : i32, i32
  }
  func.func @transform_7(%arg0: i32) -> (i32, i32) {
    %c0_i32 = arith.constant 0 : i32
    %c0_i32_0 = arith.constant 0 : i32
    return %arg0, %c0_i32 : i32, i32
  }
}

module attributes {stable_mosaic.version = 11 : i64} {
  func.func @dann_classifier_kernel(%arg0: i32, %arg1: memref<16x256xbf16, #tpu.memory_space<vmem>>, %arg2: memref<256x1024xbf16, #tpu.memory_space<vmem>>, %arg3: memref<1x1024xf32, #tpu.memory_space<vmem>>, %arg4: memref<1024x1024xbf16, #tpu.memory_space<vmem>>, %arg5: memref<1x1024xf32, #tpu.memory_space<vmem>>, %arg6: memref<1024x128xbf16, #tpu.memory_space<vmem>>, %arg7: memref<1x128xf32, #tpu.memory_space<vmem>>, %arg8: memref<16x128xf32, #tpu.memory_space<vmem>>) attributes {dimension_semantics = [#tpu.dimension_semantics<parallel>], iteration_bounds = array<i64: 1>, scalar_prefetch = 0 : i64, scratch_operands = 0 : i64, tpu.core_type = #tpu.core_type<tc>, window_params = [{transform_indices = @transform_0, window_bounds = array<i64: 16, 256>}, {pipeline_mode = #tpu.pipeline_mode<synchronous>, transform_indices = @transform_1, window_bounds = array<i64: 256, 1024>}, {pipeline_mode = #tpu.pipeline_mode<synchronous>, transform_indices = @transform_2, window_bounds = array<i64: 1, 1024>}, {pipeline_mode = #tpu.pipeline_mode<synchronous>, transform_indices = @transform_3, window_bounds = array<i64: 1024, 1024>}, {pipeline_mode = #tpu.pipeline_mode<synchronous>, transform_indices = @transform_4, window_bounds = array<i64: 1, 1024>}, {pipeline_mode = #tpu.pipeline_mode<synchronous>, transform_indices = @transform_5, window_bounds = array<i64: 1024, 128>}, {pipeline_mode = #tpu.pipeline_mode<synchronous>, transform_indices = @transform_6, window_bounds = array<i64: 1, 128>}, {transform_indices = @transform_7, window_bounds = array<i64: 16, 128>}]} {
    %c0 = arith.constant 0 : index
    %c0_0 = arith.constant 0 : index
    %0 = vector.load %arg1[%c0, %c0_0] : memref<16x256xbf16, #tpu.memory_space<vmem>>, vector<16x256xbf16>
    %c0_1 = arith.constant 0 : index
    %c0_2 = arith.constant 0 : index
    %1 = vector.load %arg2[%c0_1, %c0_2] : memref<256x1024xbf16, #tpu.memory_space<vmem>>, vector<256x1024xbf16>
    %cst = arith.constant dense<0.000000e+00> : vector<16x1024xf32>
    %2 = tpu.matmul %0, %1, %cst {dimension_numbers = #tpu.dot_dimension_numbers<[1], [0], [0], [1], [0, 0, 1, 1], [], []>} : vector<16x256xbf16>, vector<256x1024xbf16>, vector<16x1024xf32> -> vector<16x1024xf32>
    %c0_3 = arith.constant 0 : index
    %c0_4 = arith.constant 0 : index
    %3 = vector.load %arg3[%c0_3, %c0_4] : memref<1x1024xf32, #tpu.memory_space<vmem>>, vector<1x1024xf32>
    %4 = vector.broadcast %3 : vector<1x1024xf32> to vector<16x1024xf32>
    %5 = arith.addf %2, %4 : vector<16x1024xf32>
    %cst_5 = arith.constant 0.000000e+00 : f32
    %6 = vector.broadcast %cst_5 : f32 to vector<16x1024xf32>
    %7 = arith.maximumf %5, %6 : vector<16x1024xf32>
    %8 = arith.truncf %7 : vector<16x1024xf32> to vector<16x1024xbf16>
    %c0_6 = arith.constant 0 : index
    %c0_7 = arith.constant 0 : index
    %9 = vector.load %arg4[%c0_6, %c0_7] : memref<1024x1024xbf16, #tpu.memory_space<vmem>>, vector<1024x1024xbf16>
    %cst_8 = arith.constant dense<0.000000e+00> : vector<16x1024xf32>
    %10 = tpu.matmul %8, %9, %cst_8 {dimension_numbers = #tpu.dot_dimension_numbers<[1], [0], [0], [1], [0, 0, 1, 1], [], []>} : vector<16x1024xbf16>, vector<1024x1024xbf16>, vector<16x1024xf32> -> vector<16x1024xf32>
    %c0_9 = arith.constant 0 : index
    %c0_10 = arith.constant 0 : index
    %11 = vector.load %arg5[%c0_9, %c0_10] : memref<1x1024xf32, #tpu.memory_space<vmem>>, vector<1x1024xf32>
    %12 = vector.broadcast %11 : vector<1x1024xf32> to vector<16x1024xf32>
    %13 = arith.addf %10, %12 : vector<16x1024xf32>
    %cst_11 = arith.constant 0.000000e+00 : f32
    %14 = vector.broadcast %cst_11 : f32 to vector<16x1024xf32>
    %15 = arith.maximumf %13, %14 : vector<16x1024xf32>
    %16 = arith.truncf %15 : vector<16x1024xf32> to vector<16x1024xbf16>
    %c0_12 = arith.constant 0 : index
    %c0_13 = arith.constant 0 : index
    %17 = vector.load %arg6[%c0_12, %c0_13] : memref<1024x128xbf16, #tpu.memory_space<vmem>>, vector<1024x128xbf16>
    %cst_14 = arith.constant dense<0.000000e+00> : vector<16x128xf32>
    %18 = tpu.matmul %16, %17, %cst_14 {dimension_numbers = #tpu.dot_dimension_numbers<[1], [0], [0], [1], [0, 0, 1, 1], [], []>} : vector<16x1024xbf16>, vector<1024x128xbf16>, vector<16x128xf32> -> vector<16x128xf32>
    %c0_15 = arith.constant 0 : index
    %c0_16 = arith.constant 0 : index
    %19 = vector.load %arg7[%c0_15, %c0_16] : memref<1x128xf32, #tpu.memory_space<vmem>>, vector<1x128xf32>
    %20 = vector.broadcast %19 : vector<1x128xf32> to vector<16x128xf32>
    %21 = arith.addf %18, %20 : vector<16x128xf32>
    %cst_17 = arith.constant dense<0xFF800000> : vector<16xf32>
    %22 = vector.multi_reduction <maximumf>, %21, %cst_17 [1] : vector<16x128xf32> to vector<16xf32>
    %23 = vector.shape_cast %22 : vector<16xf32> to vector<16x1xf32>
    %24 = vector.broadcast %23 : vector<16x1xf32> to vector<16x128xf32>
    %25 = arith.subf %21, %24 : vector<16x128xf32>
    %26 = math.exp %25 : vector<16x128xf32>
    %cst_18 = arith.constant dense<0.000000e+00> : vector<16xf32>
    %27 = vector.multi_reduction <add>, %26, %cst_18 [1] : vector<16x128xf32> to vector<16xf32>
    %28 = vector.shape_cast %27 : vector<16xf32> to vector<16x1xf32>
    %29 = math.log %28 : vector<16x1xf32>
    %30 = vector.broadcast %29 : vector<16x1xf32> to vector<16x128xf32>
    %31 = arith.subf %25, %30 : vector<16x128xf32>
    %c0_19 = arith.constant 0 : index
    %c0_20 = arith.constant 0 : index
    %32 = vector.load %arg8[%c0_19, %c0_20] : memref<16x128xf32, #tpu.memory_space<vmem>>, vector<16x128xf32>
    tpu.vector_store %arg8[%c0_19, %c0_20], %31 {strides = array<i32>} : memref<16x128xf32, #tpu.memory_space<vmem>>, vector<16x128xf32>,
    return
  }
  func.func @transform_0(%arg0: i32) -> (i32, i32) {
    %c0_i32 = arith.constant 0 : i32
    %c0_i32_0 = arith.constant 0 : i32
    return %arg0, %c0_i32 : i32, i32
  }
  func.func @transform_1(%arg0: i32) -> (i32, i32) {
    %c0_i32 = arith.constant 0 : i32
    %c0_i32_0 = arith.constant 0 : i32
    %c0_i32_1 = arith.constant 0 : i32
    return %c0_i32, %c0_i32_0 : i32, i32
  }
  func.func @transform_2(%arg0: i32) -> (i32, i32) {
    %c0_i32 = arith.constant 0 : i32
    %c0_i32_0 = arith.constant 0 : i32
    %c0_i32_1 = arith.constant 0 : i32
    return %c0_i32, %c0_i32_0 : i32, i32
  }
  func.func @transform_3(%arg0: i32) -> (i32, i32) {
    %c0_i32 = arith.constant 0 : i32
    %c0_i32_0 = arith.constant 0 : i32
    %c0_i32_1 = arith.constant 0 : i32
    return %c0_i32, %c0_i32_0 : i32, i32
  }
  func.func @transform_4(%arg0: i32) -> (i32, i32) {
    %c0_i32 = arith.constant 0 : i32
    %c0_i32_0 = arith.constant 0 : i32
    %c0_i32_1 = arith.constant 0 : i32
    return %c0_i32, %c0_i32_0 : i32, i32
  }
  func.func @transform_5(%arg0: i32) -> (i32, i32) {
    %c0_i32 = arith.constant 0 : i32
    %c0_i32_0 = arith.constant 0 : i32
    %c0_i32_1 = arith.constant 0 : i32
    return %c0_i32, %c0_i32_0 : i32, i32
  }
  func.func @transform_6(%arg0: i32) -> (i32, i32) {
    %c0_i32 = arith.constant 0 : i32
    %c0_i32_0 = arith.constant 0 : i32
    %c0_i32_1 = arith.constant 0 : i32
    return %c0_i32, %c0_i32_0 : i32, i32
  }
  func.func @transform_7(%arg0: i32) -> (i32, i32) {
    %c0_i32 = arith.constant 0 : i32
    %c0_i32_0 = arith.constant 0 : i32
    return %arg0, %c0_i32 : i32, i32
  }
}

</mosaic_0001>

<bundles_post_ra>
// kernel: tpu_custom_call.1
= control target key start
LH: loop header
LB: loop body
LE: loop exit
PB: predicated region body
PF: predicated region fallthrough
CT: control target
= control target key end

     0   :  { %12 = vsyncpa [#allocation3], 0  ;;  %s10015_s0 = inlined_call_operand.hbm [shape: bf16[16,256], index: 0, kind: input, shape index: {}]   ;;  %s10016_s1 = inlined_call_operand.hbm [shape: bf16[256,1024], index: 1, kind: input, shape index: {}]   ;;  %s10017_s2 = inlined_call_operand.hbm [shape: f32[1,1024], index: 2, kind: input, shape index: {}]   ;;  %s10018_s3 = inlined_call_operand.hbm [shape: bf16[1024,1024], index: 3, kind: input, shape index: {}]   ;;  %s10019_s4 = inlined_call_operand.hbm [shape: f32[1,1024], index: 4, kind: input, shape index: {}]   ;;  %s10020_s5 = inlined_call_operand.hbm [shape: bf16[1024,128], index: 5, kind: input, shape index: {}]   ;;  %s10021_s6 = inlined_call_operand.hbm [shape: f32[1,128], index: 6, kind: input, shape index: {}]   ;;  %s10022_s7 = inlined_call_operand.hbm [shape: f32[16,128], index: 7, kind: output, shape index: {}]  }
   0x1   :  { %13 = vsyncpa [#allocation6], 0 }
   0x2   :  { %14 = vsyncpa [#allocation9], 0 }
   0x3   :  { %15 = vsyncpa [#allocation12], 0  ;;  %s34_s26 = sshll.u32 %s10016_s1, 4  ;;  %s35_s26 = int_to_ptr.hbm [resolvable:$true] %s34_s26 }
   0x4   :  { %16 = vsyncpa [#allocation4], 0  ;;  %s9615_s27 = smov [#allocation5]   ;;  %s58_s8 = sshll.u32 %s10018_s3, 4  ;;  %s59_s8 = int_to_ptr.hbm [resolvable:$true] %s58_s8 }
   0x5   :  { %s36_s28 = sshll.u32 %s9615_s27, 4  ;;  %s9616_s9 = smov 512   ;;  %s37_s28 = int_to_ptr.vmem [resolvable:$true] %s36_s28 }
   0x6   :  { %s9617_s10 = smov 32   ;;  %s9618_s11 = smov [#allocation8]  }
   0x7   :  { %42 = dma.hbm_to_vmem [thread:$0]  %s35_s26, 16384, %s37_s28, [#allocation6], %s9616_s9, %s9616_s9, %s9617_s10  }
   0x8   :  { %s60_s12 = sshll.u32 %s9618_s11, 4  ;;  %s82_s15 = sshll.u32 %s10020_s5, 4  ;;  %s61_s12 = int_to_ptr.vmem [resolvable:$true] %s60_s12  ;;  %s83_s15 = int_to_ptr.hbm [resolvable:$true] %s82_s15 }
   0x9   :  { %66 = dma.hbm_to_vmem [thread:$0]  %s59_s8, 65536, %s61_s12, [#allocation9], %s9616_s9, %s9616_s9, %s9617_s10  }
   0xa   :  { %s9619_s1 = smov [#allocation11]   ;;  %s21_s3 = sshll.u32 %s10015_s0, 4  ;;  %s22_s3 = int_to_ptr.hbm [resolvable:$true] %s21_s3 }
   0xb   :  { %s84_s16 = sshll.u32 %s9619_s1, 4  ;;  %s9620_s19 = smov 64   ;;  %s85_s16 = int_to_ptr.vmem [resolvable:$true] %s84_s16 }
   0xc   :  { %s9621_s20 = smov 4   ;;  %s9622_s21 = smov [#allocation2]  }
   0xd   :  { %90 = dma.hbm_to_vmem [thread:$0]  %s83_s15, 8192, %s85_s16, [#allocation12], %s9620_s19, %s9620_s19, %s9621_s20  }
   0xe   :  { %s23_s22 = sshll.u32 %s9622_s21, 4  ;;  %s9623_s23 = smov 128   ;;  %s24_s22 = int_to_ptr.vmem [resolvable:$true] %s23_s22 }
   0xf   :  { %s9624_s24 = smov 8   ;;  %s48_s26 = sshll.u32 %s10017_s2, 4  ;;  %s49_s26 = int_to_ptr.hbm [resolvable:$true] %s48_s26 }
  0x10   :  { %29 = dma.hbm_to_vmem [thread:$0]  %s22_s3, 256, %s24_s22, [#allocation3], %s9623_s23, %s9623_s23, %s9624_s24  }
  0x11   :  { %s9625_s27 = smov [#allocation7]   ;;  %s72_s30 = sshll.u32 %s10019_s4, 4  ;;  %s73_s30 = int_to_ptr.hbm [resolvable:$true] %s72_s30 }
  0x12   :  { %s50_s0 = sshll.u32 %s9625_s27, 4  ;;  %s9626_s8 = smov [#allocation10]   ;;  %s51_s0 = int_to_ptr.vmem [resolvable:$true] %s50_s0 }
  0x13   :  { %53 = dma.hbm_to_vmem [thread:$0]  %s49_s26, 128, %s51_s0, [#allocation6]  }
  0x14   :  { %s74_s9 = sshll.u32 %s9626_s8, 4  ;;  %s96_s12 = sshll.u32 %s10021_s6, 4  ;;  %s75_s9 = int_to_ptr.vmem [resolvable:$true] %s74_s9  ;;  %s97_s12 = int_to_ptr.hbm [resolvable:$true] %s96_s12 }
  0x15   :  { %77 = dma.hbm_to_vmem [thread:$0]  %s73_s30, 128, %s75_s9, [#allocation9]  }
  0x16   :  { %s9627_s2 = smov [#allocation13]  }
  0x17   :  { %s98_s13 = sshll.u32 %s9627_s2, 4  ;;  %s99_s13 = int_to_ptr.vmem [resolvable:$true] %s98_s13 }
  0x18   :  { %101 = dma.hbm_to_vmem [thread:$0]  %s97_s12, 16, %s99_s13, [#allocation12]  }
  0x19   :  { %9605 = dma.done.wait [#allocation3], 256  }
  0x1a   :  { %9606 = vsyncadd [#allocation3], 4294967040 }
  0x1b   :  { %9607 = dma.done.wait [#allocation6], 16512  }
  0x1c   :  { %9608 = vsyncadd [#allocation6], 4294950784 }
  0x1d   :  { %9609 = dma.done.wait [#allocation9], 65664  }
  0x1e   :  { %9610 = vsyncadd [#allocation9], 4294901632 }
  0x1f   :  { %9611 = dma.done.wait [#allocation12], 8208  }
  0x20   :  { %9612 = vsyncadd [#allocation12], 4294959088  ;;  %v6092_v0 = vld [vmem:[#allocation5 + $0x1c0] sm:$0xf]  ;;  %v8740_v5 = vld [vmem:[#allocation5 + $0x1c4] sm:$0xf] }
  0x21   :  { %v8744_v1 = vld [vmem:[#allocation5 + $0x1dc] sm:$0xf0]  ;;  %v6094_v6 = vld [vmem:[#allocation5 + $0x1e0] sm:$0xf0]  ;;  %s9628_s4 = smov [#allocation14]   ;;  %s5842_s1 = sshll.u32 %s10022_s7, 4  ;;  %s5843_s1 = int_to_ptr.hbm [resolvable:$true] %s5842_s1 }
  0x22   :  { %v6348_v2 = vld [vmem:[#allocation5 + $0x3c0] sm:$0xf]  ;;  %v6093_v3 = vor.u32 %v8744_v1, %v6092_v0  ;;  %v6097_v8 = vor.u32 %v8740_v5, %v6094_v6  ;;  %v8804_v9 = vld [vmem:[#allocation5 + $0x3c4] sm:$0xf]  ;;  %s5840_s6 = sshll.u32 %s9628_s4, 4  ;;  %s5841_s6 = int_to_ptr.vmem [resolvable:$true] %s5840_s6 }
  0x23   :  { %v8808_v4 = vld [vmem:[#allocation5 + $0x3dc] sm:$0xf0]  ;;  %v6350_v10 = vld [vmem:[#allocation5 + $0x3e0] sm:$0xf0] }
  0x24   :  { %v6349_v7 = vor.u32 %v8808_v4, %v6348_v2  ;;  %v6060_v11 = vld [vmem:[#allocation5 + $0x180] sm:$0xf]  ;;  %928 = vmatpush.bf16.msra.mxu0 %v6093_v3  ;;  %v6353_v12 = vor.u32 %v8804_v9, %v6350_v10  ;;  %956 = vmatpush.bf16.msra.mxu2 %v6097_v8  ;;  %v8732_v18 = vld [vmem:[#allocation5 + $0x184] sm:$0xf] }
  0x25   :  { %v8736_v13 = vld [vmem:[#allocation5 + $0x19c] sm:$0xf0]  ;;  %v6062_v19 = vld [vmem:[#allocation5 + $0x1a0] sm:$0xf0] }
  0x26   :  { %v6316_v14 = vld [vmem:[#allocation5 + $0x380] sm:$0xf]  ;;  %942 = vmatpush.bf16.msra.mxu1 %v6349_v7  ;;  %v6061_v16 = vor.u32 %v8736_v13, %v6060_v11  ;;  %v8796_v20 = vld [vmem:[#allocation5 + $0x384] sm:$0xf]  ;;  %970 = vmatpush.bf16.msra.mxu3 %v6353_v12  ;;  %v6065_v21 = vor.u32 %v8732_v18, %v6062_v19 }
  0x27   :  { %v8800_v15 = vld [vmem:[#allocation5 + $0x39c] sm:$0xf0]  ;;  %v6318_v22 = vld [vmem:[#allocation5 + $0x3a0] sm:$0xf0] }
  0x28   :  { %v6317_v17 = vor.u32 %v8800_v15, %v6316_v14  ;;  %v6028_v23 = vld [vmem:[#allocation5 + $0x140] sm:$0xf]  ;;  %v6321_v25 = vor.u32 %v8796_v20, %v6318_v22  ;;  %v8724_v28 = vld [vmem:[#allocation5 + $0x144] sm:$0xf]  ;;  %929 = vmatpush.bf16.msra.mxu0 %v6061_v16  ;;  %957 = vmatpush.bf16.msra.mxu2 %v6065_v21 }
  0x29   :  { %v8728_v24 = vld [vmem:[#allocation5 + $0x15c] sm:$0xf0]  ;;  %v6030_v30 = vld [vmem:[#allocation5 + $0x160] sm:$0xf0] }
  0x2a   :  { %v6284_v26 = vld [vmem:[#allocation5 + $0x340] sm:$0xf]  ;;  %v6029_v29 = vor.u32 %v8728_v24, %v6028_v23  ;;  %v8788_v31 = vld [vmem:[#allocation5 + $0x344] sm:$0xf]  ;;  %943 = vmatpush.bf16.msra.mxu1 %v6317_v17  ;;  %v6033_v34 = vor.u32 %v8724_v28, %v6030_v30  ;;  %971 = vmatpush.bf16.msra.mxu3 %v6321_v25  ;;  %v6100_v28 = vld [vmem:[#allocation5 + $0x1c8] sm:$0xf] }
  0x2b   :  { %v8792_v27 = vld [vmem:[#allocation5 + $0x35c] sm:$0xf0]  ;;  %v6286_v32 = vld [vmem:[#allocation5 + $0x360] sm:$0xf0]  ;;  %v6356_v30 = vld [vmem:[#allocation5 + $0x3c8] sm:$0xf] }
  0x2c   :  { %v6285_v33 = vor.u32 %v8792_v27, %v6284_v26  ;;  %v5996_v35 = vld [vmem:[#allocation5 + $0x100] sm:$0xf]  ;;  %v6289_v38 = vor.u32 %v8788_v31, %v6286_v32  ;;  %v8716_v40 = vld [vmem:[#allocation5 + $0x104] sm:$0xf]  ;;  %930 = vmatpush.bf16.msra.mxu0 %v6029_v29  ;;  %958 = vmatpush.bf16.msra.mxu2 %v6033_v34  ;;  %v8745_v29 = vld [vmem:[#allocation5 + $0x1e4] sm:$0xf0] }
  0x2d   :  { %v8720_v36 = vld [vmem:[#allocation5 + $0x11c] sm:$0xf0]  ;;  %v5998_v41 = vld [vmem:[#allocation5 + $0x120] sm:$0xf0]  ;;  %v8809_v32 = vld [vmem:[#allocation5 + $0x3e4] sm:$0xf0] }
  0x2e   :  { %v6252_v37 = vld [vmem:[#allocation5 + $0x300] sm:$0xf]  ;;  %v8780_v42 = vld [vmem:[#allocation5 + $0x304] sm:$0xf]  ;;  %v5997_v44 = vor.u32 %v8720_v36, %v5996_v35  ;;  %944 = vmatpush.bf16.msra.mxu1 %v6285_v33  ;;  %v6001_v46 = vor.u32 %v8716_v40, %v5998_v41  ;;  %972 = vmatpush.bf16.msra.mxu3 %v6289_v38  ;;  %v8741_v33 = vld [vmem:[#allocation5 + $0x1cc] sm:$0xf]  ;;  %v6101_v40 = vor.u32 %v8745_v29, %v6100_v28 }
  0x2f   :  { %v8784_v39 = vld [vmem:[#allocation5 + $0x31c] sm:$0xf0]  ;;  %v6254_v43 = vld [vmem:[#allocation5 + $0x320] sm:$0xf0]  ;;  %v6102_v34 = vld [vmem:[#allocation5 + $0x1e8] sm:$0xf0] }
  0x30   :  { %v6253_v45 = vor.u32 %v8784_v39, %v6252_v37  ;;  %v5964_v47 = vld [vmem:[#allocation5 + $0xc0] sm:$0xf]  ;;  %v6257_v50 = vor.u32 %v8780_v42, %v6254_v43  ;;  %v8708_v52 = vld [vmem:[#allocation5 + $0xc4] sm:$0xf]  ;;  %931 = vmatpush.bf16.msra.mxu0 %v5997_v44  ;;  %959 = vmatpush.bf16.msra.mxu2 %v6001_v46  ;;  %v8805_v37 = vld [vmem:[#allocation5 + $0x3cc] sm:$0xf]  ;;  %v6357_v43 = vor.u32 %v8809_v32, %v6356_v30 }
  0x31   :  { %v8712_v48 = vld [vmem:[#allocation5 + $0xdc] sm:$0xf0]  ;;  %v5966_v53 = vld [vmem:[#allocation5 + $0xe0] sm:$0xf0]  ;;  %v6358_v38 = vld [vmem:[#allocation5 + $0x3e8] sm:$0xf0]  ;;  %v6105_v44 = vor.u32 %v8741_v33, %v6102_v34 }
  0x32   :  { %v6220_v49 = vld [vmem:[#allocation5 + $0x2c0] sm:$0xf]  ;;  %v8772_v54 = vld [vmem:[#allocation5 + $0x2c4] sm:$0xf]  ;;  %v5965_v56 = vor.u32 %v8712_v48, %v5964_v47  ;;  %945 = vmatpush.bf16.msra.mxu1 %v6253_v45  ;;  %v5969_v58 = vor.u32 %v8708_v52, %v5966_v53  ;;  %973 = vmatpush.bf16.msra.mxu3 %v6257_v50  ;;  %v6068_v41 = vld [vmem:[#allocation5 + $0x188] sm:$0xf]  ;;  %v6361_v48 = vor.u32 %v8805_v37, %v6358_v38 }
  0x33   :  { %v8776_v51 = vld [vmem:[#allocation5 + $0x2dc] sm:$0xf0]  ;;  %v6222_v55 = vld [vmem:[#allocation5 + $0x2e0] sm:$0xf0]  ;;  %v8737_v42 = vld [vmem:[#allocation5 + $0x1a4] sm:$0xf0] }
  0x34   :  { %v6221_v57 = vor.u32 %v8776_v51, %v6220_v49  ;;  %v5932_v59 = vld [vmem:[#allocation5 + $0x80] sm:$0xf]  ;;  %v6225_v62 = vor.u32 %v8772_v54, %v6222_v55  ;;  %v8700_v0 = vld [vmem:[#allocation5 + $0x84] sm:$0xf]  ;;  %932 = vmatpush.bf16.msra.mxu0 %v5965_v56  ;;  %960 = vmatpush.bf16.msra.mxu2 %v5969_v58  ;;  %v6324_v45 = vld [vmem:[#allocation5 + $0x388] sm:$0xf]  ;;  %v6069_v55 = vor.u32 %v8737_v42, %v6068_v41 }
  0x35   :  { %v8704_v60 = vld [vmem:[#allocation5 + $0x9c] sm:$0xf0]  ;;  %v5934_v1 = vld [vmem:[#allocation5 + $0xa0] sm:$0xf0]  ;;  %v8801_v46 = vld [vmem:[#allocation5 + $0x3a4] sm:$0xf0] }
  0x36   :  { %v6188_v61 = vld [vmem:[#allocation5 + $0x280] sm:$0xf]  ;;  %v8764_v2 = vld [vmem:[#allocation5 + $0x284] sm:$0xf]  ;;  %v5933_v4 = vor.u32 %v8704_v60, %v5932_v59  ;;  %946 = vmatpush.bf16.msra.mxu1 %v6221_v57  ;;  %v5937_v6 = vor.u32 %v8700_v0, %v5934_v1  ;;  %974 = vmatpush.bf16.msra.mxu3 %v6225_v62  ;;  %v8733_v47 = vld [vmem:[#allocation5 + $0x18c] sm:$0xf]  ;;  %v6325_v58 = vor.u32 %v8801_v46, %v6324_v45 }
  0x37   :  { %v8768_v63 = vld [vmem:[#allocation5 + $0x29c] sm:$0xf0]  ;;  %v6190_v3 = vld [vmem:[#allocation5 + $0x2a0] sm:$0xf0]  ;;  %v6070_v49 = vld [vmem:[#allocation5 + $0x1a8] sm:$0xf0] }
  0x38   :  { %v6189_v5 = vor.u32 %v8768_v63, %v6188_v61  ;;  %v5900_v7 = vld [vmem:[#allocation5 + $0x40] sm:$0xf]  ;;  %v6193_v10 = vor.u32 %v8764_v2, %v6190_v3  ;;  %v8692_v12 = vld [vmem:[#allocation5 + $0x44] sm:$0xf]  ;;  %933 = vmatpush.bf16.msra.mxu0 %v5933_v4  ;;  %961 = vmatpush.bf16.msra.mxu2 %v5937_v6  ;;  %v8797_v50 = vld [vmem:[#allocation5 + $0x38c] sm:$0xf]  ;;  %v6073_v59 = vor.u32 %v8733_v47, %v6070_v49 }
  0x39   :  { %v8696_v8 = vld [vmem:[#allocation5 + $0x5c] sm:$0xf0]  ;;  %v5902_v13 = vld [vmem:[#allocation5 + $0x60] sm:$0xf0]  ;;  %v6326_v51 = vld [vmem:[#allocation5 + $0x3a8] sm:$0xf0] }
  0x3a   :  { %v6156_v9 = vld [vmem:[#allocation5 + $0x240] sm:$0xf]  ;;  %v8756_v14 = vld [vmem:[#allocation5 + $0x244] sm:$0xf]  ;;  %v5901_v16 = vor.u32 %v8696_v8, %v5900_v7  ;;  %947 = vmatpush.bf16.msra.mxu1 %v6189_v5  ;;  %v5905_v20 = vor.u32 %v8692_v12, %v5902_v13  ;;  %975 = vmatpush.bf16.msra.mxu3 %v6193_v10  ;;  %v5860_v52 = vld [vmem:[#allocation2] sm:$0xf]  ;;  %v6329_v0 = vor.u32 %v8797_v50, %v6326_v51 }
  0x3b   :  { %v8760_v11 = vld [vmem:[#allocation5 + $0x25c] sm:$0xf0]  ;;  %v6158_v15 = vld [vmem:[#allocation5 + $0x260] sm:$0xf0]  ;;  %v8683_v53 = vld [vmem:[#allocation2 + $0x4] sm:$0xf0] }
  0x3c   :  { %v5868_v17 = vld [vmem:[#allocation5] sm:$0xf]  ;;  %v6157_v19 = vor.u32 %v8760_v11, %v6156_v9  ;;  %v8684_v23 = vld [vmem:[#allocation5 + $0x4] sm:$0xf]  ;;  %v6161_v24 = vor.u32 %v8756_v14, %v6158_v15  ;;  %934 = vmatpush.bf16.msra.mxu0 %v5901_v16  ;;  %962 = vmatpush.bf16.msra.mxu2 %v5905_v20  ;;  %v8682_v54 = vld [vmem:[#allocation2 + $0x4] sm:$0xf]  ;;  %v9693_v56 = vor.u32 %v8683_v53, %v5860_v52 }
  0x3d   :  { %v8688_v18 = vld [vmem:[#allocation5 + $0x1c] sm:$0xf0]  ;;  %v5870_v25 = vld [vmem:[#allocation5 + $0x20] sm:$0xf0]  ;;  %v5862_v57 = vld [vmem:[#allocation2 + $0x8] sm:$0xf0] }
  0x3e   :  { %v6124_v21 = vld [vmem:[#allocation5 + $0x200] sm:$0xf]  ;;  %v8748_v26 = vld [vmem:[#allocation5 + $0x204] sm:$0xf]  ;;  %v5869_v31 = vor.u32 %v8688_v18, %v5868_v17  ;;  %948 = vmatpush.bf16.msra.mxu1 %v6157_v19  ;;  %v5873_v36 = vor.u32 %v8684_v23, %v5870_v25  ;;  %976 = vmatpush.bf16.msra.mxu3 %v6161_v24  ;;  %v6036_v60 = vld [vmem:[#allocation5 + $0x148] sm:$0xf]  ;;  %v9695_v63 = vor.u32 %v8682_v54, %v5862_v57 }
  0x3f   :  { %v8752_v22 = vld [vmem:[#allocation5 + $0x21c] sm:$0xf0]  ;;  %v6126_v27 = vld [vmem:[#allocation5 + $0x220] sm:$0xf0]  ;;  %v8729_v61 = vld [vmem:[#allocation5 + $0x164] sm:$0xf0] }
  0x40   :  { %v6125_v35 = vor.u32 %v8752_v22, %v6124_v21  ;;  %v6129_v39 = vor.u32 %v8748_v26, %v6126_v27  ;;  %935 = vmatpush.bf16.msra.mxu0 %v5869_v31  ;;  %963 = vmatpush.bf16.msra.mxu2 %v5873_v36  ;;  %v6292_v62 = vld [vmem:[#allocation5 + $0x348] sm:$0xf]  ;;  %v8725_v2 = vld [vmem:[#allocation5 + $0x14c] sm:$0xf]  ;;  %v6037_v6 = vor.u32 %v8729_v61, %v6036_v60 }
  0x41   :  { %v8793_v1 = vld [vmem:[#allocation5 + $0x364] sm:$0xf0]  ;;  %v6038_v3 = vld [vmem:[#allocation5 + $0x168] sm:$0xf0] }
  0x42   :  { %949 = vmatpush.bf16.msra.mxu1 %v6125_v35  ;;  %977 = vmatpush.bf16.msra.mxu3 %v6129_v39  ;;  %v8789_v4 = vld [vmem:[#allocation5 + $0x34c] sm:$0xf]  ;;  %v6293_v7 = vor.u32 %v8793_v1, %v6292_v62  ;;  %v6041_v8 = vor.u32 %v8725_v2, %v6038_v3  ;;  %v6004_v9 = vld [vmem:[#allocation5 + $0x108] sm:$0xf] }
  0x43   :  { %964 = vmatmul.bf16.vlgmr.msra.gmra.mxu2 %v9693_v56  ;;  %v6294_v5 = vld [vmem:[#allocation5 + $0x368] sm:$0xf0]  ;;  %936 = vmatmul.bf16.vlgmr.msra.gmra.mxu0 %v9693_v56  ;;  %v8721_v10 = vld [vmem:[#allocation5 + $0x124] sm:$0xf0] }
  0x44   :  { %984 = vmatpush.bf16.msrb.mxu0 %v6101_v40  ;;  %1012 = vmatpush.bf16.msrb.mxu2 %v6105_v44  ;;  %v6260_v11 = vld [vmem:[#allocation5 + $0x308] sm:$0xf]  ;;  %v6297_v12 = vor.u32 %v8789_v4, %v6294_v5  ;;  %v8717_v14 = vld [vmem:[#allocation5 + $0x10c] sm:$0xf]  ;;  %v6005_v18 = vor.u32 %v8721_v10, %v6004_v9  ;;  %v6108_v4 = vld [vmem:[#allocation5 + $0x1d0] sm:$0xf] }
  0x45   :  { %978 = vmatmul.bf16.vlgmr.msra.gmra.mxu3 %v9695_v63  ;;  %950 = vmatmul.bf16.vlgmr.msra.gmra.mxu1 %v9695_v63  ;;  %v8785_v13 = vld [vmem:[#allocation5 + $0x324] sm:$0xf0]  ;;  %v6006_v15 = vld [vmem:[#allocation5 + $0x128] sm:$0xf0]  ;;  %v8746_v5 = vld [vmem:[#allocation5 + $0x1ec] sm:$0xf0] }
  0x46   :  { %998 = vmatpush.bf16.msrb.mxu1 %v6357_v43  ;;  %1026 = vmatpush.bf16.msrb.mxu3 %v6361_v48  ;;  %v8781_v16 = vld [vmem:[#allocation5 + $0x30c] sm:$0xf]  ;;  %v6261_v19 = vor.u32 %v8785_v13, %v6260_v11  ;;  %v6009_v20 = vor.u32 %v8717_v14, %v6006_v15  ;;  %v5972_v21 = vld [vmem:[#allocation5 + $0xc8] sm:$0xf]  ;;  %v8742_v9 = vld [vmem:[#allocation5 + $0x1d4] sm:$0xf] }
  0x47   :  { %v6262_v17 = vld [vmem:[#allocation5 + $0x328] sm:$0xf0]  ;;  %v8713_v22 = vld [vmem:[#allocation5 + $0xe4] sm:$0xf0]  ;;  %v6110_v10 = vld [vmem:[#allocation5 + $0x1f0] sm:$0xf0] }
  0x48   :  { %985 = vmatpush.bf16.msrb.mxu0 %v6069_v55  ;;  %1013 = vmatpush.bf16.msrb.mxu2 %v6073_v59  ;;  %v6228_v23 = vld [vmem:[#allocation5 + $0x2c8] sm:$0xf]  ;;  %v6265_v24 = vor.u32 %v8781_v16, %v6262_v17  ;;  %v8709_v26 = vld [vmem:[#allocation5 + $0xcc] sm:$0xf]  ;;  %v5973_v30 = vor.u32 %v8713_v22, %v5972_v21  ;;  %v8806_v13 = vld [vmem:[#allocation5 + $0x3d4] sm:$0xf]  ;;  %v6109_v16 = vor.u32 %v8746_v5, %v6108_v4 }
  0x49   :  { %v8777_v25 = vld [vmem:[#allocation5 + $0x2e4] sm:$0xf0]  ;;  %v5974_v27 = vld [vmem:[#allocation5 + $0xe8] sm:$0xf0]  ;;  %v6366_v14 = vld [vmem:[#allocation5 + $0x3f0] sm:$0xf0] }
  0x4a   :  { %999 = vmatpush.bf16.msrb.mxu1 %v6325_v58  ;;  %1027 = vmatpush.bf16.msrb.mxu3 %v6329_v0  ;;  %v8773_v28 = vld [vmem:[#allocation5 + $0x2cc] sm:$0xf]  ;;  %v6229_v31 = vor.u32 %v8777_v25, %v6228_v23  ;;  %v5977_v32 = vor.u32 %v8709_v26, %v5974_v27  ;;  %v5940_v33 = vld [vmem:[#allocation5 + $0x88] sm:$0xf]  ;;  %v6332_v21 = vld [vmem:[#allocation5 + $0x390] sm:$0xf]  ;;  %v6369_v22 = vor.u32 %v8806_v13, %v6366_v14 }
  0x4b   :  { %v6230_v29 = vld [vmem:[#allocation5 + $0x2e8] sm:$0xf0]  ;;  %v8705_v34 = vld [vmem:[#allocation5 + $0xa4] sm:$0xf0]  ;;  %v8802_v23 = vld [vmem:[#allocation5 + $0x3ac] sm:$0xf0] }
  0x4c   :  { %986 = vmatpush.bf16.msrb.mxu0 %v6037_v6  ;;  %1014 = vmatpush.bf16.msrb.mxu2 %v6041_v8  ;;  %v6196_v35 = vld [vmem:[#allocation5 + $0x288] sm:$0xf]  ;;  %v6233_v36 = vor.u32 %v8773_v28, %v6230_v29  ;;  %v8701_v38 = vld [vmem:[#allocation5 + $0x8c] sm:$0xf]  ;;  %v5941_v42 = vor.u32 %v8705_v34, %v5940_v33  ;;  %v6364_v6 = vld [vmem:[#allocation5 + $0x3d0] sm:$0xf]  ;;  %v6333_v29 = vor.u32 %v8802_v23, %v6332_v21 }
  0x4d   :  { %v8769_v37 = vld [vmem:[#allocation5 + $0x2a4] sm:$0xf0]  ;;  %v5942_v39 = vld [vmem:[#allocation5 + $0xa8] sm:$0xf0]  ;;  %v8810_v8 = vld [vmem:[#allocation5 + $0x3ec] sm:$0xf0] }
  0x4e   :  { %1000 = vmatpush.bf16.msrb.mxu1 %v6293_v7  ;;  %1028 = vmatpush.bf16.msrb.mxu3 %v6297_v12  ;;  %v8765_v40 = vld [vmem:[#allocation5 + $0x28c] sm:$0xf]  ;;  %v6197_v43 = vor.u32 %v8769_v37, %v6196_v35  ;;  %v5945_v44 = vor.u32 %v8701_v38, %v5942_v39  ;;  %v5908_v45 = vld [vmem:[#allocation5 + $0x48] sm:$0xf]  ;;  %v6365_v17 = vor.u32 %v8810_v8, %v6364_v6  ;;  %v6078_v25 = vld [vmem:[#allocation5 + $0x1b0] sm:$0xf0] }
  0x4f   :  { %v6198_v41 = vld [vmem:[#allocation5 + $0x2a8] sm:$0xf0]  ;;  %v8697_v46 = vld [vmem:[#allocation5 + $0x64] sm:$0xf0]  ;;  %v8798_v26 = vld [vmem:[#allocation5 + $0x394] sm:$0xf] }
  0x50   :  { %987 = vmatpush.bf16.msrb.mxu0 %v6005_v18  ;;  %1015 = vmatpush.bf16.msrb.mxu2 %v6009_v20  ;;  %v6164_v47 = vld [vmem:[#allocation5 + $0x248] sm:$0xf]  ;;  %v6201_v48 = vor.u32 %v8765_v40, %v6198_v41  ;;  %v8693_v50 = vld [vmem:[#allocation5 + $0x4c] sm:$0xf]  ;;  %v5909_v54 = vor.u32 %v8697_v46, %v5908_v45  ;;  %v6113_v18 = vor.u32 %v8742_v9, %v6110_v10  ;;  %v8738_v20 = vld [vmem:[#allocation5 + $0x1ac] sm:$0xf0] }
  0x51   :  { %v8761_v49 = vld [vmem:[#allocation5 + $0x264] sm:$0xf0]  ;;  %v5910_v51 = vld [vmem:[#allocation5 + $0x68] sm:$0xf0]  ;;  %v6334_v27 = vld [vmem:[#allocation5 + $0x3b0] sm:$0xf0] }
  0x52   :  { %1001 = vmatpush.bf16.msrb.mxu1 %v6261_v19  ;;  %1029 = vmatpush.bf16.msrb.mxu3 %v6265_v24  ;;  %v8757_v52 = vld [vmem:[#allocation5 + $0x24c] sm:$0xf]  ;;  %v5876_v55 = vld [vmem:[#allocation5 + $0x8] sm:$0xf]  ;;  %v6165_v58 = vor.u32 %v8761_v49, %v6164_v47  ;;  %v5913_v59 = vor.u32 %v8693_v50, %v5910_v51  ;;  %v6076_v19 = vld [vmem:[#allocation5 + $0x190] sm:$0xf]  ;;  %v6337_v34 = vor.u32 %v8798_v26, %v6334_v27 }
  0x53   :  { %v6166_v53 = vld [vmem:[#allocation5 + $0x268] sm:$0xf0]  ;;  %v8689_v57 = vld [vmem:[#allocation5 + $0x24] sm:$0xf0]  ;;  %v8734_v24 = vld [vmem:[#allocation5 + $0x194] sm:$0xf]  ;;  %v6077_v28 = vor.u32 %v8738_v20, %v6076_v19 }
  0x54   :  { %988 = vmatpush.bf16.msrb.mxu0 %v5973_v30  ;;  %1016 = vmatpush.bf16.msrb.mxu2 %v5977_v32  ;;  %v6132_v60 = vld [vmem:[#allocation5 + $0x208] sm:$0xf]  ;;  %v8685_v62 = vld [vmem:[#allocation5 + $0xc] sm:$0xf]  ;;  %v6169_v0 = vor.u32 %v8757_v52, %v6166_v53  ;;  %v5877_v7 = vor.u32 %v8689_v57, %v5876_v55  ;;  %v6081_v30 = vor.u32 %v8734_v24, %v6078_v25  ;;  %v8730_v32 = vld [vmem:[#allocation5 + $0x16c] sm:$0xf0] }
  0x55   :  { %v8753_v61 = vld [vmem:[#allocation5 + $0x224] sm:$0xf0]  ;;  %v5878_v1 = vld [vmem:[#allocation5 + $0x28] sm:$0xf0]  ;;  %v6300_v33 = vld [vmem:[#allocation5 + $0x350] sm:$0xf] }
  0x56   :  { %1002 = vmatpush.bf16.msrb.mxu1 %v6229_v31  ;;  %1030 = vmatpush.bf16.msrb.mxu3 %v6233_v36  ;;  %v8749_v2 = vld [vmem:[#allocation5 + $0x20c] sm:$0xf]  ;;  %v6133_v11 = vor.u32 %v8753_v61, %v6132_v60  ;;  %v5881_v12 = vor.u32 %v8685_v62, %v5878_v1  ;;  %v6044_v31 = vld [vmem:[#allocation5 + $0x150] sm:$0xf]  ;;  %v8726_v36 = vld [vmem:[#allocation5 + $0x154] sm:$0xf] }
  0x57   :  { %v6134_v3 = vld [vmem:[#allocation5 + $0x228] sm:$0xf0]  ;;  %v8794_v35 = vld [vmem:[#allocation5 + $0x36c] sm:$0xf0]  ;;  %v6046_v37 = vld [vmem:[#allocation5 + $0x170] sm:$0xf0]  ;;  %v6045_v40 = vor.u32 %v8730_v32, %v6044_v31 }
  0x58   :  { %989 = vmatpush.bf16.msrb.mxu0 %v5941_v42  ;;  %1017 = vmatpush.bf16.msrb.mxu2 %v5945_v44  ;;  %v6137_v15 = vor.u32 %v8749_v2, %v6134_v3  ;;  %v8790_v38 = vld [vmem:[#allocation5 + $0x354] sm:$0xf]  ;;  %v6301_v41 = vor.u32 %v8794_v35, %v6300_v33  ;;  %v6049_v42 = vor.u32 %v8726_v36, %v6046_v37  ;;  %v8722_v44 = vld [vmem:[#allocation5 + $0x12c] sm:$0xf0] }
  0x59   :  { %v6302_v39 = vld [vmem:[#allocation5 + $0x370] sm:$0xf0]  ;;  %v6268_v45 = vld [vmem:[#allocation5 + $0x310] sm:$0xf] }
  0x5a   :  { %1003 = vmatpush.bf16.msrb.mxu1 %v6197_v43  ;;  %1031 = vmatpush.bf16.msrb.mxu3 %v6201_v48  ;;  %v6012_v43 = vld [vmem:[#allocation5 + $0x110] sm:$0xf]  ;;  %v6305_v46 = vor.u32 %v8790_v38, %v6302_v39  ;;  %v8718_v48 = vld [vmem:[#allocation5 + $0x114] sm:$0xf]  ;;  %v6116_v38 = vld [vmem:[#allocation5 + $0x1d8] sm:$0xf] }
  0x5b   :  { %v8786_v47 = vld [vmem:[#allocation5 + $0x32c] sm:$0xf0]  ;;  %v6014_v49 = vld [vmem:[#allocation5 + $0x130] sm:$0xf0]  ;;  %v6013_v52 = vor.u32 %v8722_v44, %v6012_v43  ;;  %v8747_v39 = vld [vmem:[#allocation5 + $0x1f4] sm:$0xf0] }
  0x5c   :  { %990 = vmatpush.bf16.msrb.mxu0 %v5909_v54  ;;  %1018 = vmatpush.bf16.msrb.mxu2 %v5913_v59  ;;  %v8782_v50 = vld [vmem:[#allocation5 + $0x314] sm:$0xf]  ;;  %v6269_v53 = vor.u32 %v8786_v47, %v6268_v45  ;;  %v6017_v54 = vor.u32 %v8718_v48, %v6014_v49  ;;  %v5980_v55 = vld [vmem:[#allocation5 + $0xd0] sm:$0xf]  ;;  %v8743_v43 = vld [vmem:[#allocation5 + $0x1dc] sm:$0xf] }
  0x5d   :  { %v6270_v51 = vld [vmem:[#allocation5 + $0x330] sm:$0xf0]  ;;  %v8714_v57 = vld [vmem:[#allocation5 + $0xec] sm:$0xf0]  ;;  %v6118_v44 = vld [vmem:[#allocation5 + $0x1f8] sm:$0xf0] }
  0x5e   :  { %1004 = vmatpush.bf16.msrb.mxu1 %v6165_v58  ;;  %1032 = vmatpush.bf16.msrb.mxu3 %v6169_v0  ;;  %v6236_v58 = vld [vmem:[#allocation5 + $0x2d0] sm:$0xf]  ;;  %v6273_v59 = vor.u32 %v8782_v50, %v6270_v51  ;;  %v8710_v61 = vld [vmem:[#allocation5 + $0xd4] sm:$0xf]  ;;  %v5981_v2 = vor.u32 %v8714_v57, %v5980_v55  ;;  %v8807_v47 = vld [vmem:[#allocation5 + $0x3dc] sm:$0xf]  ;;  %v6117_v50 = vor.u32 %v8747_v39, %v6116_v38 }
  0x5f   :  { %v8778_v60 = vld [vmem:[#allocation5 + $0x2ec] sm:$0xf0]  ;;  %v5982_v62 = vld [vmem:[#allocation5 + $0xf0] sm:$0xf0]  ;;  %v6374_v48 = vld [vmem:[#allocation5 + $0x3f8] sm:$0xf0] }
  0x60   :  { %991 = vmatpush.bf16.msrb.mxu0 %v5877_v7  ;;  %1019 = vmatpush.bf16.msrb.mxu2 %v5881_v12  ;;  %v8774_v0 = vld [vmem:[#allocation5 + $0x2d4] sm:$0xf]  ;;  %v6237_v3 = vor.u32 %v8778_v60, %v6236_v58  ;;  %v5985_v4 = vor.u32 %v8710_v61, %v5982_v62  ;;  %v5948_v5 = vld [vmem:[#allocation5 + $0x90] sm:$0xf]  ;;  %v6340_v55 = vld [vmem:[#allocation5 + $0x398] sm:$0xf]  ;;  %v6377_v57 = vor.u32 %v8807_v47, %v6374_v48 }
  0x61   :  { %v6238_v1 = vld [vmem:[#allocation5 + $0x2f0] sm:$0xf0]  ;;  %v8706_v6 = vld [vmem:[#allocation5 + $0xac] sm:$0xf0]  ;;  %v8803_v58 = vld [vmem:[#allocation5 + $0x3b4] sm:$0xf0] }
  0x62   :  { %1005 = vmatpush.bf16.msrb.mxu1 %v6133_v11  ;;  %1033 = vmatpush.bf16.msrb.mxu3 %v6137_v15  ;;  %v6204_v7 = vld [vmem:[#allocation5 + $0x290] sm:$0xf]  ;;  %v6241_v8 = vor.u32 %v8774_v0, %v6238_v1  ;;  %v8702_v10 = vld [vmem:[#allocation5 + $0x94] sm:$0xf]  ;;  %v5949_v14 = vor.u32 %v8706_v6, %v5948_v5  ;;  %v6086_v60 = vld [vmem:[#allocation5 + $0x1b8] sm:$0xf0]  ;;  %v6341_v1 = vor.u32 %v8803_v58, %v6340_v55 }
  0x63   :  { %992 = vmatmul.bf16.vlgmr.msrb.gmra.mxu0 %v9693_v56  ;;  %1020 = vmatmul.bf16.vlgmr.msrb.gmra.mxu2 %v9693_v56  ;;  %v8770_v9 = vld [vmem:[#allocation5 + $0x2ac] sm:$0xf0]  ;;  %v5950_v11 = vld [vmem:[#allocation5 + $0xb0] sm:$0xf0]  ;;  %v8799_v61 = vld [vmem:[#allocation5 + $0x39c] sm:$0xf] }
  0x64   :  { %1040 = vmatpush.bf16.msra.mxu0 %v6109_v16  ;;  %1068 = vmatpush.bf16.msra.mxu2 %v6113_v18  ;;  %v8766_v12 = vld [vmem:[#allocation5 + $0x294] sm:$0xf]  ;;  %v6205_v15 = vor.u32 %v8770_v9, %v6204_v7  ;;  %v5953_v16 = vor.u32 %v8702_v10, %v5950_v11  ;;  %v8698_v18 = vld [vmem:[#allocation5 + $0x6c] sm:$0xf0]  ;;  %v6342_v62 = vld [vmem:[#allocation5 + $0x3b8] sm:$0xf0] }
  0x65   :  { %1006 = vmatmul.bf16.vlgmr.msrb.gmra.mxu1 %v9695_v63  ;;  %1034 = vmatmul.bf16.vlgmr.msrb.gmra.mxu3 %v9695_v63  ;;  %v6206_v13 = vld [vmem:[#allocation5 + $0x2b0] sm:$0xf0]  ;;  %v6172_v19 = vld [vmem:[#allocation5 + $0x250] sm:$0xf]  ;;  %v6308_v5 = vld [vmem:[#allocation5 + $0x358] sm:$0xf]  ;;  %v6345_v6 = vor.u32 %v8799_v61, %v6342_v62 }
  0x66   :  { %1054 = vmatpush.bf16.msra.mxu1 %v6365_v17  ;;  %1082 = vmatpush.bf16.msra.mxu3 %v6369_v22  ;;  %v5916_v17 = vld [vmem:[#allocation5 + $0x50] sm:$0xf]  ;;  %v6209_v20 = vor.u32 %v8766_v12, %v6206_v13  ;;  %v8694_v22 = vld [vmem:[#allocation5 + $0x54] sm:$0xf]  ;;  %v8795_v7 = vld [vmem:[#allocation5 + $0x374] sm:$0xf0] }
  0x67   :  { %v8762_v21 = vld [vmem:[#allocation5 + $0x26c] sm:$0xf0]  ;;  %v5918_v23 = vld [vmem:[#allocation5 + $0x70] sm:$0xf0]  ;;  %v5917_v26 = vor.u32 %v8698_v18, %v5916_v17  ;;  %v6054_v9 = vld [vmem:[#allocation5 + $0x178] sm:$0xf0]  ;;  %v6309_v13 = vor.u32 %v8795_v7, %v6308_v5 }
  0x68   :  { %1041 = vmatpush.bf16.msra.mxu0 %v6077_v28  ;;  %1069 = vmatpush.bf16.msra.mxu2 %v6081_v30  ;;  %v8758_v24 = vld [vmem:[#allocation5 + $0x254] sm:$0xf]  ;;  %v5884_v27 = vld [vmem:[#allocation5 + $0x10] sm:$0xf]  ;;  %v5921_v30 = vor.u32 %v8694_v22, %v5918_v23  ;;  %v8791_v10 = vld [vmem:[#allocation5 + $0x35c] sm:$0xf] }
  0x69   :  { %v6174_v25 = vld [vmem:[#allocation5 + $0x270] sm:$0xf0]  ;;  %v8690_v28 = vld [vmem:[#allocation5 + $0x2c] sm:$0xf0]  ;;  %v6310_v11 = vld [vmem:[#allocation5 + $0x378] sm:$0xf0] }
  0x6a   :  { %1055 = vmatpush.bf16.msra.mxu1 %v6333_v29  ;;  %1083 = vmatpush.bf16.msra.mxu3 %v6337_v34  ;;  %v6173_v29 = vor.u32 %v8762_v21, %v6172_v19  ;;  %v6140_v31 = vld [vmem:[#allocation5 + $0x210] sm:$0xf]  ;;  %v8686_v33 = vld [vmem:[#allocation5 + $0x14] sm:$0xf]  ;;  %v6177_v34 = vor.u32 %v8758_v24, %v6174_v25  ;;  %v6276_v17 = vld [vmem:[#allocation5 + $0x318] sm:$0xf]  ;;  %v6313_v18 = vor.u32 %v8791_v10, %v6310_v11 }
  0x6b   :  { %v8754_v32 = vld [vmem:[#allocation5 + $0x22c] sm:$0xf0]  ;;  %v5886_v35 = vld [vmem:[#allocation5 + $0x30] sm:$0xf0]  ;;  %v8787_v19 = vld [vmem:[#allocation5 + $0x334] sm:$0xf0] }
  0x6c   :  { %1042 = vmatpush.bf16.msra.mxu0 %v6045_v40  ;;  %1070 = vmatpush.bf16.msra.mxu2 %v6049_v42  ;;  %v8750_v36 = vld [vmem:[#allocation5 + $0x214] sm:$0xf]  ;;  %v6372_v40 = vld [vmem:[#allocation5 + $0x3d8] sm:$0xf]  ;;  %v6141_v45 = vor.u32 %v8754_v32, %v6140_v31  ;;  %v6022_v21 = vld [vmem:[#allocation5 + $0x138] sm:$0xf0]  ;;  %v6277_v25 = vor.u32 %v8787_v19, %v6276_v17 }
  0x6d   :  { %v6142_v37 = vld [vmem:[#allocation5 + $0x230] sm:$0xf0]  ;;  %v8811_v42 = vld [vmem:[#allocation5 + $0x3f4] sm:$0xf0]  ;;  %v8783_v22 = vld [vmem:[#allocation5 + $0x31c] sm:$0xf] }
  0x6e   :  { %1056 = vmatpush.bf16.msra.mxu1 %v6301_v41  ;;  %1084 = vmatpush.bf16.msra.mxu3 %v6305_v46  ;;  %v5885_v41 = vor.u32 %v8690_v28, %v5884_v27  ;;  %v5889_v46 = vor.u32 %v8686_v33, %v5886_v35  ;;  %v6145_v49 = vor.u32 %v8750_v36, %v6142_v37  ;;  %v6278_v23 = vld [vmem:[#allocation5 + $0x338] sm:$0xf0]  ;;  %v5988_v27 = vld [vmem:[#allocation5 + $0xd8] sm:$0xf]  ;;  %v6604_v10 = vld [vmem:[#allocation8 + $0x1c0] sm:$0xf] }
  0x6f   :  { %v6373_v51 = vor.u32 %v8811_v42, %v6372_v40  ;;  %v8715_v28 = vld [vmem:[#allocation5 + $0xf4] sm:$0xf0]  ;;  %v8711_v32 = vld [vmem:[#allocation5 + $0xdc] sm:$0xf]  ;;  %v8872_v11 = vld [vmem:[#allocation8 + $0x1dc] sm:$0xf0] }
  0x70   :  { %1043 = vmatpush.bf16.msra.mxu0 %v6013_v52  ;;  %1071 = vmatpush.bf16.msra.mxu2 %v6017_v54  ;;  %v6121_v52 = vor.u32 %v8743_v43, %v6118_v44  ;;  %v8739_v54 = vld [vmem:[#allocation5 + $0x1b4] sm:$0xf0]  ;;  %v5990_v33 = vld [vmem:[#allocation5 + $0xf8] sm:$0xf0]  ;;  %v5989_v36 = vor.u32 %v8715_v28, %v5988_v27  ;;  %v6572_v19 = vld [vmem:[#allocation8 + $0x180] sm:$0xf] }
  0x71   :  { %v8779_v31 = vld [vmem:[#allocation5 + $0x2f4] sm:$0xf0]  ;;  %v6246_v35 = vld [vmem:[#allocation5 + $0x2f8] sm:$0xf0]  ;;  %v5993_v38 = vor.u32 %v8711_v32, %v5990_v33  ;;  %v6796_v28 = vld [vmem:[#allocation8 + $0x340] sm:$0xf] }
  0x72   :  { %1057 = vmatpush.bf16.msra.mxu1 %v6269_v53  ;;  %1085 = vmatpush.bf16.msra.mxu3 %v6273_v59  ;;  %v6084_v53 = vld [vmem:[#allocation5 + $0x198] sm:$0xf]  ;;  %v8735_v59 = vld [vmem:[#allocation5 + $0x19c] sm:$0xf]  ;;  %v8848_v32 = vld [vmem:[#allocation8 + $0x11c] sm:$0xf0] }
  0x73   :  { %v6085_v0 = vor.u32 %v8739_v54, %v6084_v53  ;;  %v5956_v39 = vld [vmem:[#allocation5 + $0x98] sm:$0xf]  ;;  %v8703_v44 = vld [vmem:[#allocation5 + $0x9c] sm:$0xf] }
  0x74   :  { %1044 = vmatpush.bf16.msra.mxu0 %v5981_v2  ;;  %1072 = vmatpush.bf16.msra.mxu2 %v5985_v4  ;;  %v6089_v2 = vor.u32 %v8735_v59, %v6086_v60  ;;  %v8731_v4 = vld [vmem:[#allocation5 + $0x174] sm:$0xf0]  ;;  %v6214_v47 = vld [vmem:[#allocation5 + $0x2b8] sm:$0xf0] }
  0x75   :  { %v8707_v40 = vld [vmem:[#allocation5 + $0xb4] sm:$0xf0]  ;;  %v5926_v58 = vld [vmem:[#allocation5 + $0x78] sm:$0xf0] }
  0x76   :  { %1058 = vmatpush.bf16.msra.mxu1 %v6237_v3  ;;  %1086 = vmatpush.bf16.msra.mxu3 %v6241_v8  ;;  %v6052_v3 = vld [vmem:[#allocation5 + $0x158] sm:$0xf]  ;;  %v8727_v8 = vld [vmem:[#allocation5 + $0x15c] sm:$0xf]  ;;  %v5957_v48 = vor.u32 %v8707_v40, %v5956_v39  ;;  %v6732_v40 = vld [vmem:[#allocation8 + $0x2c0] sm:$0xf] }
  0x77   :  { %v6053_v12 = vor.u32 %v8731_v4, %v6052_v3  ;;  %v8771_v43 = vld [vmem:[#allocation5 + $0x2b4] sm:$0xf0]  ;;  %v8759_v59 = vld [vmem:[#allocation5 + $0x25c] sm:$0xf] }
  0x78   :  { %1045 = vmatpush.bf16.msra.mxu0 %v5949_v14  ;;  %1073 = vmatpush.bf16.msra.mxu2 %v5953_v16  ;;  %v6057_v14 = vor.u32 %v8727_v8, %v6054_v9  ;;  %v8723_v16 = vld [vmem:[#allocation5 + $0x134] sm:$0xf0]  ;;  %v6182_v60 = vld [vmem:[#allocation5 + $0x278] sm:$0xf0] }
  0x79   :  { %v6180_v53 = vld [vmem:[#allocation5 + $0x258] sm:$0xf]  ;;  %v6185_v5 = vor.u32 %v8759_v59, %v6182_v60  ;;  %v5894_v7 = vld [vmem:[#allocation5 + $0x38] sm:$0xf0]  ;;  %v6668_v59 = vld [vmem:[#allocation8 + $0x240] sm:$0xf] }
  0x7a   :  { %1059 = vmatpush.bf16.msra.mxu1 %v6205_v15  ;;  %1087 = vmatpush.bf16.msra.mxu3 %v6209_v20  ;;  %v6020_v15 = vld [vmem:[#allocation5 + $0x118] sm:$0xf]  ;;  %v8719_v20 = vld [vmem:[#allocation5 + $0x11c] sm:$0xf]  ;;  %v8888_v60 = vld [vmem:[#allocation8 + $0x25c] sm:$0xf0] }
  0x7b   :  { %v6021_v24 = vor.u32 %v8723_v16, %v6020_v15  ;;  %v8763_v55 = vld [vmem:[#allocation5 + $0x274] sm:$0xf0]  ;;  %v8751_v8 = vld [vmem:[#allocation5 + $0x21c] sm:$0xf] }
  0x7c   :  { %1046 = vmatpush.bf16.msra.mxu0 %v5917_v26  ;;  %1074 = vmatpush.bf16.msra.mxu2 %v5921_v30  ;;  %v6025_v26 = vor.u32 %v8719_v20, %v6022_v21  ;;  %v6281_v30 = vor.u32 %v8783_v22, %v6278_v23  ;;  %v5892_v62 = vld [vmem:[#allocation5 + $0x18] sm:$0xf]  ;;  %v6150_v9 = vld [vmem:[#allocation5 + $0x238] sm:$0xf0]  ;;  %v8864_v20 = vld [vmem:[#allocation8 + $0x19c] sm:$0xf0] }
  0x7d   :  { %v6148_v3 = vld [vmem:[#allocation5 + $0x218] sm:$0xf]  ;;  %v6153_v17 = vor.u32 %v8751_v8, %v6150_v9  ;;  %v6828_v22 = vld [vmem:[#allocation8 + $0x380] sm:$0xf] }
  0x7e   :  { %1060 = vmatpush.bf16.msra.mxu1 %v6173_v29  ;;  %1088 = vmatpush.bf16.msra.mxu3 %v6177_v34  ;;  %v6244_v29 = vld [vmem:[#allocation5 + $0x2d8] sm:$0xf]  ;;  %v8775_v34 = vld [vmem:[#allocation5 + $0x2dc] sm:$0xf]  ;;  %v8928_v23 = vld [vmem:[#allocation8 + $0x39c] sm:$0xf0] }
  0x7f   :  { %v6245_v37 = vor.u32 %v8779_v31, %v6244_v29  ;;  %v6249_v42 = vor.u32 %v8775_v34, %v6246_v35  ;;  %v8755_v4 = vld [vmem:[#allocation5 + $0x234] sm:$0xf0]  ;;  %v6829_v27 = vor.u32 %v8928_v23, %v6828_v22  ;;  %v8920_v29 = vld [vmem:[#allocation8 + $0x35c] sm:$0xf0] }
  0x80   :  { %1047 = vmatpush.bf16.msra.mxu0 %v5885_v41  ;;  %1075 = vmatpush.bf16.msra.mxu2 %v5889_v46  ;;  %v6212_v41 = vld [vmem:[#allocation5 + $0x298] sm:$0xf]  ;;  %v8767_v46 = vld [vmem:[#allocation5 + $0x29c] sm:$0xf]  ;;  %v6149_v15 = vor.u32 %v8755_v4, %v6148_v3  ;;  %v6508_v31 = vld [vmem:[#allocation8 + $0x100] sm:$0xf]  ;;  %v6797_v33 = vor.u32 %v8920_v29, %v6796_v28  ;;  %v6669_v4 = vor.u32 %v8888_v60, %v6668_v59 }
  0x81   :  { %v6217_v54 = vor.u32 %v8767_v46, %v6214_v47  ;;  %v6764_v34 = vld [vmem:[#allocation8 + $0x300] sm:$0xf] }
  0x82   :  { %1061 = vmatpush.bf16.msra.mxu1 %v6141_v45  ;;  %1089 = vmatpush.bf16.msra.mxu3 %v6145_v49  ;;  %v5958_v45 = vld [vmem:[#allocation5 + $0xb8] sm:$0xf0]  ;;  %v6213_v49 = vor.u32 %v8771_v43, %v6212_v41  ;;  %v8912_v35 = vld [vmem:[#allocation8 + $0x31c] sm:$0xf0] }
  0x83   :  { %1048 = vmatmul.bf16.vlgmr.msra.gmra.mxu0 %v9693_v56  ;;  %1076 = vmatmul.bf16.vlgmr.msra.gmra.mxu2 %v9693_v56  ;;  %v6765_v39 = vor.u32 %v8912_v35, %v6764_v34  ;;  %v7116_v41 = vld [vmem:[#allocation8 + $0x5c0] sm:$0xf] }
  0x84   :  { %1096 = vmatpush.bf16.msrb.mxu0 %v6117_v50  ;;  %1124 = vmatpush.bf16.msrb.mxu2 %v6121_v52  ;;  %v5961_v50 = vor.u32 %v8703_v44, %v5958_v45  ;;  %v8699_v52 = vld [vmem:[#allocation5 + $0x74] sm:$0xf0]  ;;  %v6444_v44 = vld [vmem:[#allocation8 + $0x80] sm:$0xf] }
  0x85   :  { %1062 = vmatmul.bf16.vlgmr.msra.gmra.mxu1 %v9695_v63  ;;  %1090 = vmatmul.bf16.vlgmr.msra.gmra.mxu3 %v9695_v63  ;;  %v8832_v45 = vld [vmem:[#allocation8 + $0x9c] sm:$0xf0] }
  0x86   :  { %1110 = vmatpush.bf16.msrb.mxu1 %v6373_v51  ;;  %1138 = vmatpush.bf16.msrb.mxu3 %v6377_v57  ;;  %v5924_v51 = vld [vmem:[#allocation5 + $0x58] sm:$0xf]  ;;  %v8695_v57 = vld [vmem:[#allocation5 + $0x5c] sm:$0xf]  ;;  %v6700_v47 = vld [vmem:[#allocation8 + $0x280] sm:$0xf] }
  0x87   :  { %v5925_v61 = vor.u32 %v8699_v52, %v5924_v51  ;;  %v8992_v51 = vld [vmem:[#allocation8 + $0x59c] sm:$0xf0] }
  0x88   :  { %1097 = vmatpush.bf16.msrb.mxu0 %v6085_v0  ;;  %1125 = vmatpush.bf16.msrb.mxu2 %v6089_v2  ;;  %v6181_v0 = vor.u32 %v8763_v55, %v6180_v53  ;;  %v8691_v2 = vld [vmem:[#allocation5 + $0x34] sm:$0xf0]  ;;  %v7372_v52 = vld [vmem:[#allocation8 + $0x7c0] sm:$0xf] }
  0x89   :  { %v6412_v53 = vld [vmem:[#allocation8 + $0x40] sm:$0xf] }
  0x8a   :  { %1111 = vmatpush.bf16.msrb.mxu1 %v6341_v1  ;;  %1139 = vmatpush.bf16.msrb.mxu3 %v6345_v6  ;;  %v5929_v1 = vor.u32 %v8695_v57, %v5926_v58  ;;  %v8687_v6 = vld [vmem:[#allocation5 + $0x1c] sm:$0xf]  ;;  %v9064_v58 = vld [vmem:[#allocation8 + $0x7dc] sm:$0xf0] }
  0x8b   :  { %v5897_v16 = vor.u32 %v8687_v6, %v5894_v7  ;;  %v9128_v3 = vld [vmem:[#allocation8 + $0x9dc] sm:$0xf0] }
  0x8c   :  { %1098 = vmatpush.bf16.msrb.mxu0 %v6053_v12  ;;  %1126 = vmatpush.bf16.msrb.mxu2 %v6057_v14  ;;  %v5893_v12 = vor.u32 %v8691_v2, %v5892_v62  ;;  %v8936_v14 = vld [vmem:[#allocation8 + $0x3dc] sm:$0xf0] }
  0x8d   :  { %v6380_v62 = vld [vmem:[#allocation8] sm:$0xf] }
  0x8e   :  { %1112 = vmatpush.bf16.msrb.mxu1 %v6309_v13  ;;  %1140 = vmatpush.bf16.msrb.mxu3 %v6313_v18  ;;  %v6860_v13 = vld [vmem:[#allocation8 + $0x3c0] sm:$0xf]  ;;  %v6605_v18 = vor.u32 %v8872_v11, %v6604_v10 }
  0x8f   :  { %v6861_v21 = vor.u32 %v8936_v14, %v6860_v13  ;;  %v7628_v2 = vld [vmem:[#allocation8 + $0x9c0] sm:$0xf] }
  0x90   :  { %1099 = vmatpush.bf16.msrb.mxu0 %v6021_v24  ;;  %1127 = vmatpush.bf16.msrb.mxu2 %v6025_v26  ;;  %v6573_v24 = vor.u32 %v8864_v20, %v6572_v19  ;;  %v8856_v26 = vld [vmem:[#allocation8 + $0x15c] sm:$0xf0] }
  0x91   :  { %v7052_v6 = vld [vmem:[#allocation8 + $0x540] sm:$0xf] }
  0x92   :  { %1113 = vmatpush.bf16.msrb.mxu1 %v6277_v25  ;;  %1141 = vmatpush.bf16.msrb.mxu3 %v6281_v30  ;;  %v6540_v25 = vld [vmem:[#allocation8 + $0x140] sm:$0xf] }
  0x93   :  { %v6541_v30 = vor.u32 %v8856_v26, %v6540_v25  ;;  %v8984_v7 = vld [vmem:[#allocation8 + $0x55c] sm:$0xf0] }
  0x94   :  { %1100 = vmatpush.bf16.msrb.mxu0 %v5989_v36  ;;  %1128 = vmatpush.bf16.msrb.mxu2 %v5993_v38  ;;  %v6509_v36 = vor.u32 %v8848_v32, %v6508_v31  ;;  %v8840_v38 = vld [vmem:[#allocation8 + $0xdc] sm:$0xf0]  ;;  %v7053_v9 = vor.u32 %v8984_v7, %v7052_v6 }
  0x95   :  { %v8880_v8 = vld [vmem:[#allocation8 + $0x21c] sm:$0xf0] }
  0x96   :  { %1114 = vmatpush.bf16.msrb.mxu1 %v6245_v37  ;;  %1142 = vmatpush.bf16.msrb.mxu3 %v6249_v42  ;;  %v6476_v37 = vld [vmem:[#allocation8 + $0xc0] sm:$0xf] }
  0x97   :  { %v9000_v42 = vld [vmem:[#allocation8 + $0x5dc] sm:$0xf0] }
  0x98   :  { %1101 = vmatpush.bf16.msrb.mxu0 %v5957_v48  ;;  %1129 = vmatpush.bf16.msrb.mxu2 %v5961_v50  ;;  %v7117_v43 = vor.u32 %v9000_v42, %v7116_v41  ;;  %v8896_v48 = vld [vmem:[#allocation8 + $0x29c] sm:$0xf0] }
  0x99   :  { %v7084_v50 = vld [vmem:[#allocation8 + $0x580] sm:$0xf]  ;;  %v6701_v55 = vor.u32 %v8896_v48, %v6700_v47 }
  0x9a   :  { %1115 = vmatpush.bf16.msrb.mxu1 %v6213_v49  ;;  %1143 = vmatpush.bf16.msrb.mxu3 %v6217_v54  ;;  %v6445_v49 = vor.u32 %v8832_v45, %v6444_v44  ;;  %v8824_v54 = vld [vmem:[#allocation8 + $0x5c] sm:$0xf0]  ;;  %v7085_v57 = vor.u32 %v8992_v51, %v7084_v50 }
  0x9b   :  { %v7340_v10 = vld [vmem:[#allocation8 + $0x780] sm:$0xf] }
  0x9c   :  { %1102 = vmatpush.bf16.msrb.mxu0 %v5925_v61  ;;  %1130 = vmatpush.bf16.msrb.mxu2 %v5929_v1  ;;  %v7373_v61 = vor.u32 %v9064_v58, %v7372_v52  ;;  %v8816_v1 = vld [vmem:[#allocation8 + $0x1c] sm:$0xf0] }
  0x9d   :  { %v9056_v11 = vld [vmem:[#allocation8 + $0x79c] sm:$0xf0] }
  0x9e   :  { %1116 = vmatpush.bf16.msrb.mxu1 %v6181_v0  ;;  %1144 = vmatpush.bf16.msrb.mxu3 %v6185_v5  ;;  %v6413_v0 = vor.u32 %v8824_v54, %v6412_v53  ;;  %v6636_v5 = vld [vmem:[#allocation8 + $0x200] sm:$0xf]  ;;  %v7341_v14 = vor.u32 %v9056_v11, %v7340_v10 }
  0x9f   :  { %v9192_v13 = vld [vmem:[#allocation8 + $0xbdc] sm:$0xf0] }
  0xa0   :  { %1103 = vmatpush.bf16.msrb.mxu0 %v5893_v12  ;;  %1131 = vmatpush.bf16.msrb.mxu2 %v5897_v16  ;;  %v7884_v12 = vld [vmem:[#allocation8 + $0xbc0] sm:$0xf]  ;;  %v7629_v16 = vor.u32 %v9128_v3, %v7628_v2 }
  0xa1   :  { %v9120_v19 = vld [vmem:[#allocation8 + $0x99c] sm:$0xf0]  ;;  %v7885_v20 = vor.u32 %v9192_v13, %v7884_v12 }
  0xa2   :  { %1117 = vmatpush.bf16.msrb.mxu1 %v6149_v15  ;;  %1145 = vmatpush.bf16.msrb.mxu3 %v6153_v17  ;;  %v6381_v15 = vor.u32 %v8816_v1, %v6380_v62  ;;  %v7596_v17 = vld [vmem:[#allocation8 + $0x980] sm:$0xf] }
  0xa3   :  { %1104 = vmatmul.bf16.vlgmr.msrb.gmra.mxu0 %v9693_v56  ;;  %1132 = vmatmul.bf16.vlgmr.msrb.gmra.mxu2 %v9693_v56  ;;  %v8904_v56 = vld [vmem:[#allocation8 + $0x2dc] sm:$0xf0]  ;;  %v7597_v26 = vor.u32 %v9120_v19, %v7596_v17 }
  0xa4   :  { %4266 = vmatpush.bf16.msra.mxu0 %v6605_v18  ;;  %v6733_v46 = vor.u32 %v8904_v56, %v6732_v40  ;;  %4294 = vmatpush.bf16.msra.mxu2 %v7117_v43  ;;  %v6637_v18 = vor.u32 %v8880_v8, %v6636_v5  ;;  %v8976_v22 = vld [vmem:[#allocation8 + $0x51c] sm:$0xf0] }
  0xa5   :  { %1118 = vmatmul.bf16.vlgmr.msrb.gmra.mxu1 %v9695_v63  ;;  %1146 = vmatmul.bf16.vlgmr.msrb.gmra.mxu3 %v9695_v63  ;;  %v6477_v63 = vor.u32 %v8840_v38, %v6476_v37  ;;  %v9184_v25 = vld [vmem:[#allocation8 + $0xb9c] sm:$0xf0] }
  0xa6   :  { %4280 = vmatpush.bf16.msra.mxu1 %v6861_v21  ;;  %4308 = vmatpush.bf16.msra.mxu3 %v7373_v61  ;;  %v7020_v21 = vld [vmem:[#allocation8 + $0x500] sm:$0xf] }
  0xa7   :  { %v7021_v23 = vor.u32 %v8976_v22, %v7020_v21  ;;  %v9112_v28 = vld [vmem:[#allocation8 + $0x95c] sm:$0xf0] }
  0xa8   :  { %4267 = vmatpush.bf16.msra.mxu0 %v6573_v24  ;;  %4295 = vmatpush.bf16.msra.mxu2 %v7085_v57  ;;  %v7852_v24 = vld [vmem:[#allocation8 + $0xb80] sm:$0xf] }
  0xa9   :  { %v7853_v29 = vor.u32 %v9184_v25, %v7852_v24  ;;  %v7308_v32 = vld [vmem:[#allocation8 + $0x740] sm:$0xf] }
  0xaa   :  { %4281 = vmatpush.bf16.msra.mxu1 %v6829_v27  ;;  %4309 = vmatpush.bf16.msra.mxu3 %v7341_v14  ;;  %v7564_v27 = vld [vmem:[#allocation8 + $0x940] sm:$0xf] }
  0xab   :  { %v7565_v31 = vor.u32 %v9112_v28, %v7564_v27  ;;  %v7532_v34 = vld [vmem:[#allocation8 + $0x900] sm:$0xf] }
  0xac   :  { %4268 = vmatpush.bf16.msra.mxu0 %v6541_v30  ;;  %4296 = vmatpush.bf16.msra.mxu2 %v7053_v9  ;;  %v9713_v30 = vld [vmem:[#allocation7] sm:$0xff]  ;;  %v9104_v37 = vld [vmem:[#allocation8 + $0x91c] sm:$0xf0] }
  0xad   :  { %v262_v35 = vperm.slane %v9713_v30, 0  ;;  %v7533_v38 = vor.u32 %v9104_v37, %v7532_v34  ;;  %v8968_v40 = vld [vmem:[#allocation8 + $0x4dc] sm:$0xf0] }
  0xae   :  { %4282 = vmatpush.bf16.msra.mxu1 %v6797_v33  ;;  %v9048_v33 = vld [vmem:[#allocation8 + $0x75c] sm:$0xf0] }
  0xaf   :  { %v7820_v56 = vld [vmem:[#allocation8 + $0xb40] sm:$0xf] }
  0xb0   :  { %4269 = vmatpush.bf16.msra.mxu0 %v6509_v36  ;;  %4297 = vmatpush.bf16.msra.mxu2 %v7021_v23  ;;  %v7309_v36 = vor.u32 %v9048_v33, %v7308_v32  ;;  %v7276_v45 = vld [vmem:[#allocation8 + $0x700] sm:$0xf] }
  0xb1   :  { %v7500_v47 = vld [vmem:[#allocation8 + $0x8c0] sm:$0xf] }
  0xb2   :  { %4283 = vmatpush.bf16.msra.mxu1 %v6765_v39  ;;  %v6988_v39 = vld [vmem:[#allocation8 + $0x4c0] sm:$0xf]  ;;  %4310 = vmatpush.bf16.msra.mxu3 %v7309_v36 }
  0xb3   :  { %v6989_v42 = vor.u32 %v8968_v40, %v6988_v39  ;;  %v9096_v50 = vld [vmem:[#allocation8 + $0x8dc] sm:$0xf0] }
  0xb4   :  { %4270 = vmatpush.bf16.msra.mxu0 %v6477_v63  ;;  %v9176_v63 = vld [vmem:[#allocation8 + $0xb5c] sm:$0xf0]  ;;  %v7501_v51 = vor.u32 %v9096_v50, %v7500_v47 }
  0xb5   :  { %v7821_v44 = vor.u32 %v9176_v63, %v7820_v56  ;;  %4298 = vmatpush.bf16.msra.mxu2 %v6989_v42  ;;  %v6956_v52 = vld [vmem:[#allocation8 + $0x480] sm:$0xf] }
  0xb6   :  { %4284 = vmatpush.bf16.msra.mxu1 %v6733_v46  ;;  %v9040_v46 = vld [vmem:[#allocation8 + $0x71c] sm:$0xf0] }
  0xb7   :  { %v8960_v53 = vld [vmem:[#allocation8 + $0x49c] sm:$0xf0] }
  0xb8   :  { %4271 = vmatpush.bf16.msra.mxu0 %v6445_v49  ;;  %v7277_v49 = vor.u32 %v9040_v46, %v7276_v45  ;;  %v7788_v54 = vld [vmem:[#allocation8 + $0xb00] sm:$0xf]  ;;  %v6957_v57 = vor.u32 %v8960_v53, %v6956_v52 }
  0xb9   :  { %v9168_v58 = vld [vmem:[#allocation8 + $0xb1c] sm:$0xf0] }
  0xba   :  { %4285 = vmatpush.bf16.msra.mxu1 %v6701_v55  ;;  %v263_v55 = vperm.slane %v9713_v30, 1  ;;  %4311 = vmatpush.bf16.msra.mxu3 %v7277_v49  ;;  %v7789_v60 = vor.u32 %v9168_v58, %v7788_v54  ;;  %v7244_v61 = vld [vmem:[#allocation8 + $0x6c0] sm:$0xf] }
  0xbb   :  { %v9032_v62 = vld [vmem:[#allocation8 + $0x6dc] sm:$0xf0]  ;;  %4299 = vmatpush.bf16.msra.mxu2 %v6957_v57 }
  0xbc   :  { %4272 = vmatpush.bf16.msra.mxu0 %v6413_v0  ;;  %v7245_v2 = vor.u32 %v9032_v62, %v7244_v61  ;;  %v7468_v3 = vld [vmem:[#allocation8 + $0x880] sm:$0xf]  ;;  %v6574_v61 = vld [vmem:[#allocation8 + $0x1a0] sm:$0xf0] }
  0xbd   :  { %v6924_v6 = vld [vmem:[#allocation8 + $0x440] sm:$0xf] }
  0xbe   :  { %4286 = vmatpush.bf16.msra.mxu1 %v6669_v4  ;;  %v9088_v4 = vld [vmem:[#allocation8 + $0x89c] sm:$0xf0]  ;;  %4312 = vmatpush.bf16.msra.mxu3 %v7245_v2 }
  0xbf   :  { %v7469_v5 = vor.u32 %v9088_v4, %v7468_v3  ;;  %v8952_v7 = vld [vmem:[#allocation8 + $0x45c] sm:$0xf0] }
  0xc0   :  { %4273 = vmatpush.bf16.msra.mxu0 %v6381_v15  ;;  %v937_v41 = vpop.f32.mrf.mxu0  ;;  %v7756_v8 = vld [vmem:[#allocation8 + $0xac0] sm:$0xf]  ;;  %v6925_v11 = vor.u32 %v8952_v7, %v6924_v6  ;;  %v8932_v7 = vld [vmem:[#allocation8 + $0x3c4] sm:$0xf] }
  0xc1   :  { %v938_v48 = vadd.f32 %v937_v41, %v262_v35  ;;  %v9160_v12 = vld [vmem:[#allocation8 + $0xadc] sm:$0xf0] }
  0xc2   :  { %4287 = vmatpush.bf16.msra.mxu1 %v6637_v18  ;;  %v951_v43 = vpop.f32.mrf.mxu1  ;;  %v7757_v14 = vor.u32 %v9160_v12, %v7756_v8  ;;  %v7212_v15 = vld [vmem:[#allocation8 + $0x680] sm:$0xf]  ;;  %4300 = vmatpush.bf16.msra.mxu2 %v6925_v11  ;;  %v6862_v8 = vld [vmem:[#allocation8 + $0x3e0] sm:$0xf0] }
  0xc3   :  { %v952_v0 = vadd.f32 %v951_v43, %v938_v48  ;;  %v7436_v17 = vld [vmem:[#allocation8 + $0x840] sm:$0xf]  ;;  %v8868_v43 = vld [vmem:[#allocation8 + $0x1c4] sm:$0xf] }
  0xc4   :  { %4322 = vmatpush.bf16.msrb.mxu0 %v7629_v16  ;;  %v9024_v16 = vld [vmem:[#allocation8 + $0x69c] sm:$0xf0]  ;;  %v8852_v12 = vld [vmem:[#allocation8 + $0x144] sm:$0xf] }
  0xc5   :  { %v1152_v18 = vmax.f32 %v952_v0, 0.0  ;;  %v9080_v21 = vld [vmem:[#allocation8 + $0x85c] sm:$0xf0] }
  0xc6   :  { %4336 = vmatpush.bf16.msrb.mxu1 %v7885_v20  ;;  %v965_v59 = vpop.f32.mrf.mxu2  ;;  %v7213_v20 = vor.u32 %v9024_v16, %v7212_v15  ;;  %v7437_v23 = vor.u32 %v9080_v21, %v7436_v17  ;;  %v6892_v24 = vld [vmem:[#allocation8 + $0x400] sm:$0xf]  ;;  %v8924_v17 = vld [vmem:[#allocation8 + $0x384] sm:$0xf] }
  0xc7   :  { %v966_v9 = vadd.f32 %v965_v59, %v263_v55  ;;  %v8944_v25 = vld [vmem:[#allocation8 + $0x41c] sm:$0xf0] }
  0xc8   :  { %4323 = vmatpush.bf16.msrb.mxu0 %v7597_v26  ;;  %v979_v1 = vpop.f32.mrf.mxu3  ;;  %v939_v10 = vpop.f32.mrf.mxu0  ;;  %v7724_v26 = vld [vmem:[#allocation8 + $0xa80] sm:$0xf]  ;;  %4313 = vmatpush.bf16.msra.mxu3 %v7213_v20  ;;  %v6893_v28 = vor.u32 %v8944_v25, %v6892_v24  ;;  %v6830_v20 = vld [vmem:[#allocation8 + $0x3a0] sm:$0xf0]  ;;  %v264_v25 = vperm.slane %v9713_v30, 2 }
  0xc9   :  { %v940_v13 = vadd.f32 %v939_v10, %v262_v35  ;;  %v980_v27 = vadd.f32 %v979_v1, %v966_v9  ;;  %v7180_v34 = vld [vmem:[#allocation8 + $0x640] sm:$0xf]  ;;  %v6865_v10 = vor.u32 %v8932_v7, %v6862_v8  ;;  %v6833_v21 = vor.u32 %v8924_v17, %v6830_v20  ;;  %v8844_v24 = vld [vmem:[#allocation8 + $0x104] sm:$0xf] }
  0xca   :  { %4337 = vmatpush.bf16.msrb.mxu1 %v7853_v29  ;;  %v953_v19 = vpop.f32.mrf.mxu1  ;;  %v9152_v29 = vld [vmem:[#allocation8 + $0xa9c] sm:$0xf0]  ;;  %4301 = vmatpush.bf16.msra.mxu2 %v6893_v28 }
  0xcb   :  { %v954_v22 = vadd.f32 %v953_v19, %v940_v13  ;;  %v7725_v33 = vor.u32 %v9152_v29, %v7724_v26  ;;  %v9016_v35 = vld [vmem:[#allocation8 + $0x65c] sm:$0xf0]  ;;  %v1153_v45 = vmax.f32 %v980_v27, 0.0  ;;  %v6542_v13 = vld [vmem:[#allocation8 + $0x160] sm:$0xf0] }
  0xcc   :  { %4324 = vmatpush.bf16.msrb.mxu0 %v7565_v31  ;;  %v7404_v39 = vld [vmem:[#allocation8 + $0x800] sm:$0xf]  ;;  %v6510_v27 = vld [vmem:[#allocation8 + $0x120] sm:$0xf0] }
  0xcd   :  { %v1160_v31 = vmax.f32 %v954_v22, 0.0  ;;  %v9072_v40 = vld [vmem:[#allocation8 + $0x81c] sm:$0xf0]  ;;  %v6513_v28 = vor.u32 %v8844_v24, %v6510_v27 }
  0xce   :  { %4338 = vmatpush.bf16.msrb.mxu1 %v7821_v44  ;;  %v967_v32 = vpop.f32.mrf.mxu2  ;;  %v8140_v56 = vld [vmem:[#allocation8 + $0xdc0] sm:$0xf]  ;;  %v7405_v42 = vor.u32 %v9072_v40, %v7404_v39  ;;  %v6606_v44 = vld [vmem:[#allocation8 + $0x1e0] sm:$0xf0] }
  0xcf   :  { %v968_v36 = vadd.f32 %v967_v32, %v263_v55  ;;  %v9717_v41 = vpack.c.bf16 %v1160_v31, %v1152_v18  ;;  %v9256_v63 = vld [vmem:[#allocation8 + $0xddc] sm:$0xf0]  ;;  %v6609_v48 = vor.u32 %v8868_v43, %v6606_v44  ;;  %v6545_v18 = vor.u32 %v8852_v12, %v6542_v13  ;;  %v8916_v32 = vld [vmem:[#allocation8 + $0x344] sm:$0xf] }
  0xd0   :  { %4325 = vmatpush.bf16.msrb.mxu0 %v7533_v38  ;;  %v981_v37 = vpop.f32.mrf.mxu3  ;;  %v7181_v38 = vor.u32 %v9016_v35, %v7180_v34  ;;  %v8141_v47 = vor.u32 %v9256_v63, %v8140_v56  ;;  %v7692_v49 = vld [vmem:[#allocation8 + $0xa40] sm:$0xf]  ;;  %v6798_v35 = vld [vmem:[#allocation8 + $0x360] sm:$0xf0] }
  0xd1   :  { %v982_v46 = vadd.f32 %v981_v37, %v968_v36  ;;  %v9144_v50 = vld [vmem:[#allocation8 + $0xa5c] sm:$0xf0]  ;;  %4274 = vmatmul.bf16.vlgmr.msra.gmra.mxu0 %v9717_v41  ;;  %v6801_v37 = vor.u32 %v8916_v32, %v6798_v35  ;;  %v8836_v40 = vld [vmem:[#allocation8 + $0xc4] sm:$0xf] }
  0xd2   :  { %4339 = vmatpush.bf16.msrb.mxu1 %v7789_v60  ;;  %4314 = vmatpush.bf16.msra.mxu3 %v7181_v38  ;;  %v7148_v52 = vld [vmem:[#allocation8 + $0x600] sm:$0xf]  ;;  %v8860_v60 = vld [vmem:[#allocation8 + $0x184] sm:$0xf] }
  0xd3   :  { %v9008_v53 = vld [vmem:[#allocation8 + $0x61c] sm:$0xf0]  ;;  %v1161_v54 = vmax.f32 %v982_v46, 0.0  ;;  %4350 = vmatpush.bf16.msrb.mxu2 %v8141_v47  ;;  %v6577_v1 = vor.u32 %v8860_v60, %v6574_v61  ;;  %v6478_v63 = vld [vmem:[#allocation8 + $0xe0] sm:$0xf0] }
  0xd4   :  { %4326 = vmatpush.bf16.msrb.mxu0 %v7501_v51  ;;  %v7693_v51 = vor.u32 %v9144_v50, %v7692_v49  ;;  %v7149_v55 = vor.u32 %v9008_v53, %v7148_v52  ;;  %v8108_v57 = vld [vmem:[#allocation8 + $0xd80] sm:$0xf]  ;;  %v6481_v43 = vor.u32 %v8836_v40, %v6478_v63  ;;  %v8908_v47 = vld [vmem:[#allocation8 + $0x304] sm:$0xf]  ;;  %v265_v53 = vperm.slane %v9713_v30, 3 }
  0xd5   :  { %v9248_v58 = vld [vmem:[#allocation8 + $0xd9c] sm:$0xf0]  ;;  %v9720_v0 = vpack.c.bf16 %v1161_v54, %v1153_v45  ;;  %v7118_v35 = vld [vmem:[#allocation8 + $0x5e0] sm:$0xf0] }
  0xd6   :  { %4340 = vmatpush.bf16.msrb.mxu1 %v7757_v14  ;;  %v8109_v59 = vor.u32 %v9248_v58, %v8108_v57  ;;  %v7660_v62 = vld [vmem:[#allocation8 + $0xa00] sm:$0xf]  ;;  %4315 = vmatpush.bf16.msra.mxu3 %v7149_v55  ;;  %v8828_v55 = vld [vmem:[#allocation8 + $0x84] sm:$0xf] }
  0xd7   :  { %v9136_v2 = vld [vmem:[#allocation8 + $0xa1c] sm:$0xf0]  ;;  %4288 = vmatmul.bf16.vlgmr.msra.gmra.mxu1 %v9720_v0  ;;  %v6446_v57 = vld [vmem:[#allocation8 + $0xa0] sm:$0xf0] }
  0xd8   :  { %4327 = vmatpush.bf16.msrb.mxu0 %v7469_v5  ;;  %v8396_v3 = vld [vmem:[#allocation8 + $0xfc0] sm:$0xf]  ;;  %v7661_v5 = vor.u32 %v9136_v2, %v7660_v62  ;;  %4351 = vmatpush.bf16.msrb.mxu2 %v8109_v59  ;;  %v6449_v59 = vor.u32 %v8828_v55, %v6446_v57  ;;  %v8900_v62 = vld [vmem:[#allocation8 + $0x2c4] sm:$0xf] }
  0xd9   :  { %v9320_v4 = vld [vmem:[#allocation8 + $0xfdc] sm:$0xf0]  ;;  %v6670_v63 = vld [vmem:[#allocation8 + $0x260] sm:$0xf0] }
  0xda   :  { %4341 = vmatpush.bf16.msrb.mxu1 %v7725_v33  ;;  %v8397_v6 = vor.u32 %v9320_v4, %v8396_v3  ;;  %v8076_v9 = vld [vmem:[#allocation8 + $0xd40] sm:$0xf]  ;;  %v6734_v4 = vld [vmem:[#allocation8 + $0x2e0] sm:$0xf0] }
  0xdb   :  { %v9240_v11 = vld [vmem:[#allocation8 + $0xd5c] sm:$0xf0]  ;;  %v6737_v7 = vor.u32 %v8900_v62, %v6734_v4  ;;  %v9060_v57 = vld [vmem:[#allocation8 + $0x7c4] sm:$0xf] }
  0xdc   :  { %4328 = vmatpush.bf16.msrb.mxu0 %v7437_v23  ;;  %4364 = vmatpush.bf16.msrb.mxu3 %v8397_v6  ;;  %v8077_v14 = vor.u32 %v9240_v11, %v8076_v9  ;;  %v8364_v15 = vld [vmem:[#allocation8 + $0xf80] sm:$0xf]  ;;  %v7054_v62 = vld [vmem:[#allocation8 + $0x560] sm:$0xf0] }
  0xdd   :  { %v9312_v16 = vld [vmem:[#allocation8 + $0xf9c] sm:$0xf0] }
  0xde   :  { %4342 = vmatpush.bf16.msrb.mxu1 %v7693_v51  ;;  %v8365_v19 = vor.u32 %v9312_v16, %v8364_v15  ;;  %4352 = vmatpush.bf16.msrb.mxu2 %v8077_v14  ;;  %v8044_v22 = vld [vmem:[#allocation8 + $0xd00] sm:$0xf]  ;;  %v6414_v14 = vld [vmem:[#allocation8 + $0x60] sm:$0xf0] }
  0xdf   :  { %v9232_v23 = vld [vmem:[#allocation8 + $0xd1c] sm:$0xf0] }
  0xe0   :  { %4329 = vmatpush.bf16.msrb.mxu0 %v7405_v42  ;;  %4365 = vmatpush.bf16.msrb.mxu3 %v8365_v19  ;;  %v8045_v26 = vor.u32 %v9232_v23, %v8044_v22  ;;  %v8332_v29 = vld [vmem:[#allocation8 + $0xf40] sm:$0xf]  ;;  %v993_v33 = vpop.f32.mrf.mxu0  ;;  %v8892_v19 = vld [vmem:[#allocation8 + $0x284] sm:$0xf] }
  0xe1   :  { %v9304_v31 = vld [vmem:[#allocation8 + $0xf5c] sm:$0xf0]  ;;  %v994_v56 = vadd.f32 %v993_v33, %v264_v25 }
  0xe2   :  { %4343 = vmatpush.bf16.msrb.mxu1 %v7661_v5  ;;  %v8333_v34 = vor.u32 %v9304_v31, %v8332_v29  ;;  %v1007_v36 = vpop.f32.mrf.mxu1  ;;  %4353 = vmatpush.bf16.msrb.mxu2 %v8045_v26  ;;  %v8012_v38 = vld [vmem:[#allocation8 + $0xcc0] sm:$0xf]  ;;  %v6382_v29 = vld [vmem:[#allocation8 + $0x20] sm:$0xf0] }
  0xe3   :  { %v9224_v39 = vld [vmem:[#allocation8 + $0xcdc] sm:$0xf0]  ;;  %v1008_v52 = vadd.f32 %v1007_v36, %v994_v56  ;;  %v8996_v31 = vld [vmem:[#allocation8 + $0x5c4] sm:$0xf] }
  0xe4   :  { %4378 = vmatpush.bf16.msra.mxu0 %v6609_v48  ;;  %4366 = vmatpush.bf16.msrb.mxu3 %v8333_v34  ;;  %v8013_v42 = vor.u32 %v9224_v39, %v8012_v38  ;;  %v8300_v44 = vld [vmem:[#allocation8 + $0xf00] sm:$0xf]  ;;  %v6766_v48 = vld [vmem:[#allocation8 + $0x320] sm:$0xf0]  ;;  %v7121_v38 = vor.u32 %v8996_v31, %v7118_v35 }
  0xe5   :  { %v9296_v45 = vld [vmem:[#allocation8 + $0xf1c] sm:$0xf0]  ;;  %v6769_v49 = vor.u32 %v8908_v47, %v6766_v48  ;;  %v1154_v11 = vmax.f32 %v1008_v52, 0.0  ;;  %v8884_v56 = vld [vmem:[#allocation8 + $0x244] sm:$0xf] }
  0xe6   :  { %4392 = vmatpush.bf16.msra.mxu1 %v6865_v10  ;;  %v8301_v46 = vor.u32 %v9296_v45, %v8300_v44  ;;  %4354 = vmatpush.bf16.msrb.mxu2 %v8013_v42  ;;  %v7980_v50 = vld [vmem:[#allocation8 + $0xc80] sm:$0xf]  ;;  %v1021_v58 = vpop.f32.mrf.mxu2  ;;  %v8820_v10 = vld [vmem:[#allocation8 + $0x44] sm:$0xf]  ;;  %v6673_v45 = vor.u32 %v8884_v56, %v6670_v63 }
  0xe7   :  { %v9216_v51 = vld [vmem:[#allocation8 + $0xc9c] sm:$0xf0]  ;;  %v1022_v12 = vadd.f32 %v1021_v58, %v265_v53  ;;  %v6417_v16 = vor.u32 %v8820_v10, %v6414_v14  ;;  %v7086_v47 = vld [vmem:[#allocation8 + $0x5a0] sm:$0xf0]  ;;  %v266_v10 = vperm.slane %v9713_v30, 4 }
  0xe8   :  { %4379 = vmatpush.bf16.msra.mxu0 %v6577_v1  ;;  %4367 = vmatpush.bf16.msrb.mxu3 %v8301_v46  ;;  %v7981_v54 = vor.u32 %v9216_v51, %v7980_v50  ;;  %v8268_v60 = vld [vmem:[#allocation8 + $0xec0] sm:$0xf]  ;;  %v995_v1 = vpop.f32.mrf.mxu0  ;;  %v1035_v2 = vpop.f32.mrf.mxu3  ;;  %v8988_v46 = vld [vmem:[#allocation8 + $0x584] sm:$0xf] }
  0xe9   :  { %v9288_v61 = vld [vmem:[#allocation8 + $0xedc] sm:$0xf0]  ;;  %v996_v5 = vadd.f32 %v995_v1, %v264_v25  ;;  %v1036_v26 = vadd.f32 %v1035_v2, %v1022_v12  ;;  %v7089_v48 = vor.u32 %v8988_v46, %v7086_v47  ;;  %v8876_v52 = vld [vmem:[#allocation8 + $0x204] sm:$0xf] }
  0xea   :  { %4393 = vmatpush.bf16.msra.mxu1 %v6833_v21  ;;  %v8269_v3 = vor.u32 %v9288_v61, %v8268_v60  ;;  %v1009_v6 = vpop.f32.mrf.mxu1  ;;  %4355 = vmatpush.bf16.msrb.mxu2 %v7981_v54  ;;  %v7948_v8 = vld [vmem:[#allocation8 + $0xc40] sm:$0xf]  ;;  %v6702_v21 = vld [vmem:[#allocation8 + $0x2a0] sm:$0xf0] }
  0xeb   :  { %v9208_v9 = vld [vmem:[#allocation8 + $0xc5c] sm:$0xf0]  ;;  %v1010_v15 = vadd.f32 %v1009_v6, %v996_v5  ;;  %v6705_v23 = vor.u32 %v8892_v19, %v6702_v21  ;;  %v7374_v58 = vld [vmem:[#allocation8 + $0x7e0] sm:$0xf0] }
  0xec   :  { %4380 = vmatpush.bf16.msra.mxu0 %v6545_v18  ;;  %4368 = vmatpush.bf16.msrb.mxu3 %v8269_v3  ;;  %v7949_v13 = vor.u32 %v9208_v9, %v7948_v8  ;;  %v8236_v17 = vld [vmem:[#allocation8 + $0xe80] sm:$0xf]  ;;  %v7377_v60 = vor.u32 %v9060_v57, %v7374_v58  ;;  %v8980_v61 = vld [vmem:[#allocation8 + $0x544] sm:$0xf] }
  0xed   :  { %v9280_v18 = vld [vmem:[#allocation8 + $0xe9c] sm:$0xf0]  ;;  %v1162_v22 = vmax.f32 %v1010_v15, 0.0  ;;  %v7057_v1 = vor.u32 %v8980_v61, %v7054_v62  ;;  %v9052_v2 = vld [vmem:[#allocation8 + $0x784] sm:$0xf] }
  0xee   :  { %4394 = vmatpush.bf16.msra.mxu1 %v6801_v37  ;;  %v8237_v20 = vor.u32 %v9280_v18, %v8236_v17  ;;  %4356 = vmatpush.bf16.msrb.mxu2 %v7949_v13  ;;  %v7916_v24 = vld [vmem:[#allocation8 + $0xc00] sm:$0xf]  ;;  %v1023_v33 = vpop.f32.mrf.mxu2  ;;  %v7342_v3 = vld [vmem:[#allocation8 + $0x7a0] sm:$0xf0] }
  0xef   :  { %v9200_v25 = vld [vmem:[#allocation8 + $0xc1c] sm:$0xf0]  ;;  %v9725_v32 = vpack.c.bf16 %v1162_v22, %v1154_v11  ;;  %v1024_v36 = vadd.f32 %v1023_v33, %v265_v53  ;;  %v6638_v53 = vld [vmem:[#allocation8 + $0x220] sm:$0xf0]  ;;  %v7345_v4 = vor.u32 %v9052_v2, %v7342_v3 }
  0xf0   :  { %4381 = vmatpush.bf16.msra.mxu0 %v6513_v28  ;;  %4369 = vmatpush.bf16.msrb.mxu3 %v8237_v20  ;;  %v7917_v27 = vor.u32 %v9200_v25, %v7916_v24  ;;  %v8812_v28 = vld [vmem:[#allocation8 + $0x4] sm:$0xf]  ;;  %v1037_v37 = vpop.f32.mrf.mxu3  ;;  %v8204_v39 = vld [vmem:[#allocation8 + $0xe40] sm:$0xf]  ;;  %v6641_v55 = vor.u32 %v8876_v52, %v6638_v53  ;;  %v267_v24 = vperm.slane %v9713_v30, 5 }
  0xf1   :  { %v6385_v34 = vor.u32 %v8812_v28, %v6382_v29  ;;  %v9272_v40 = vld [vmem:[#allocation8 + $0xe5c] sm:$0xf0]  ;;  %4302 = vmatmul.bf16.vlgmr.msra.gmra.mxu2 %v9725_v32  ;;  %v1038_v44 = vadd.f32 %v1037_v37, %v1024_v36  ;;  %v8972_v5 = vld [vmem:[#allocation8 + $0x504] sm:$0xf] }
  0xf2   :  { %4395 = vmatpush.bf16.msra.mxu1 %v6769_v49  ;;  %v8205_v42 = vor.u32 %v9272_v40, %v8204_v39  ;;  %4357 = vmatpush.bf16.msrb.mxu2 %v7917_v27  ;;  %v8172_v49 = vld [vmem:[#allocation8 + $0xe00] sm:$0xf]  ;;  %v7022_v6 = vld [vmem:[#allocation8 + $0x520] sm:$0xf0] }
  0xf3   :  { %v9264_v50 = vld [vmem:[#allocation8 + $0xe1c] sm:$0xf0]  ;;  %v1163_v51 = vmax.f32 %v1038_v44, 0.0  ;;  %v9044_v8 = vld [vmem:[#allocation8 + $0x744] sm:$0xf] }
  0xf4   :  { %4382 = vmatpush.bf16.msra.mxu0 %v6481_v43  ;;  %v1155_v43 = vmax.f32 %v1036_v26, 0.0  ;;  %4370 = vmatpush.bf16.msrb.mxu3 %v8205_v42  ;;  %v8173_v54 = vor.u32 %v9264_v50, %v8172_v49  ;;  %v7310_v9 = vld [vmem:[#allocation8 + $0x760] sm:$0xf0] }
  0xf5   :  { %v7313_v12 = vor.u32 %v9044_v8, %v7310_v9  ;;  %v8964_v13 = vld [vmem:[#allocation8 + $0x4c4] sm:$0xf] }
  0xf6   :  { %4396 = vmatpush.bf16.msra.mxu1 %v6737_v7  ;;  %4406 = vmatpush.bf16.msra.mxu2 %v7121_v38  ;;  %v7025_v7 = vor.u32 %v8972_v5, %v7022_v6  ;;  %v6990_v14 = vld [vmem:[#allocation8 + $0x4e0] sm:$0xf0] }
  0xf7   :  { %v9036_v17 = vld [vmem:[#allocation8 + $0x704] sm:$0xf] }
  0xf8   :  { %4383 = vmatpush.bf16.msra.mxu0 %v6449_v59  ;;  %v9728_v59 = vpack.c.bf16 %v1163_v51, %v1155_v43  ;;  %4371 = vmatpush.bf16.msrb.mxu3 %v8173_v54  ;;  %v7278_v18 = vld [vmem:[#allocation8 + $0x720] sm:$0xf0] }
  0xf9   :  { %v7281_v20 = vor.u32 %v9036_v17, %v7278_v18  ;;  %v8956_v21 = vld [vmem:[#allocation8 + $0x484] sm:$0xf] }
  0xfa   :  { %4397 = vmatpush.bf16.msra.mxu1 %v6705_v23  ;;  %4407 = vmatpush.bf16.msra.mxu2 %v7089_v48  ;;  %v6958_v22 = vld [vmem:[#allocation8 + $0x4a0] sm:$0xf0] }
  0xfb   :  { %4316 = vmatmul.bf16.vlgmr.msra.gmra.mxu3 %v9728_v59  ;;  %v6961_v23 = vor.u32 %v8956_v21, %v6958_v22  ;;  %v9028_v25 = vld [vmem:[#allocation8 + $0x6c4] sm:$0xf] }
  0xfc   :  { %4384 = vmatpush.bf16.msra.mxu0 %v6417_v16  ;;  %4420 = vmatpush.bf16.msra.mxu3 %v7377_v60  ;;  %v6993_v16 = vor.u32 %v8964_v13, %v6990_v14  ;;  %v7246_v26 = vld [vmem:[#allocation8 + $0x6e0] sm:$0xf0] }
  0xfd   :  { %v7249_v33 = vor.u32 %v9028_v25, %v7246_v26  ;;  %v6926_v35 = vld [vmem:[#allocation8 + $0x460] sm:$0xf0] }
  0xfe   :  { %4398 = vmatpush.bf16.msra.mxu1 %v6673_v45  ;;  %4408 = vmatpush.bf16.msra.mxu2 %v7057_v1  ;;  %v9020_v40 = vld [vmem:[#allocation8 + $0x684] sm:$0xf] }
  0xff   :  { %v7214_v56 = vld [vmem:[#allocation8 + $0x6a0] sm:$0xf0] }
 0x100   :  { %4385 = vmatpush.bf16.msra.mxu0 %v6385_v34  ;;  %v1049_v11 = vpop.f32.mrf.mxu0  ;;  %4421 = vmatpush.bf16.msra.mxu3 %v7345_v4  ;;  %v8948_v34 = vld [vmem:[#allocation8 + $0x444] sm:$0xf]  ;;  %v7217_v45 = vor.u32 %v9020_v40, %v7214_v56 }
 0x101   :  { %v1050_v19 = vadd.f32 %v1049_v11, %v266_v10  ;;  %v6929_v38 = vor.u32 %v8948_v34, %v6926_v35  ;;  %v9124_v43 = vld [vmem:[#allocation8 + $0x9c4] sm:$0xf] }
 0x102   :  { %4399 = vmatpush.bf16.msra.mxu1 %v6641_v55  ;;  %v1063_v15 = vpop.f32.mrf.mxu1  ;;  %4409 = vmatpush.bf16.msra.mxu2 %v7025_v7  ;;  %v7630_v44 = vld [vmem:[#allocation8 + $0x9e0] sm:$0xf0] }
 0x103   :  { %v1064_v27 = vadd.f32 %v1063_v15, %v1050_v19  ;;  %v8940_v46 = vld [vmem:[#allocation8 + $0x404] sm:$0xf]  ;;  %v7633_v51 = vor.u32 %v9124_v43, %v7630_v44  ;;  %v269_v43 = vperm.slane %v9713_v30, 7 }
 0x104   :  { %4422 = vmatpush.bf16.msra.mxu3 %v7313_v12  ;;  %v6894_v47 = vld [vmem:[#allocation8 + $0x420] sm:$0xf0] }
 0x105   :  { %v1156_v42 = vmax.f32 %v1064_v27, 0.0  ;;  %v6897_v49 = vor.u32 %v8940_v46, %v6894_v47  ;;  %v9116_v52 = vld [vmem:[#allocation8 + $0x984] sm:$0xf]  ;;  %v268_v27 = vperm.slane %v9713_v30, 6  ;;  %v8873_v30 = vld [vmem:[#allocation8 + $0x1e4] sm:$0xf0] }
 0x106   :  { %4410 = vmatpush.bf16.msra.mxu2 %v6993_v16  ;;  %v1077_v28 = vpop.f32.mrf.mxu2  ;;  %v7598_v55 = vld [vmem:[#allocation8 + $0x9a0] sm:$0xf0] }
 0x107   :  { %v1078_v39 = vadd.f32 %v1077_v28, %v267_v24  ;;  %v9012_v57 = vld [vmem:[#allocation8 + $0x644] sm:$0xf]  ;;  %v7601_v5 = vor.u32 %v9116_v52, %v7598_v55 }
 0x108   :  { %v1051_v29 = vpop.f32.mrf.mxu0  ;;  %v1091_v31 = vpop.f32.mrf.mxu3  ;;  %4423 = vmatpush.bf16.msra.mxu3 %v7281_v20  ;;  %v7182_v58 = vld [vmem:[#allocation8 + $0x660] sm:$0xf0] }
 0x109   :  { %v1052_v36 = vadd.f32 %v1051_v29, %v266_v10  ;;  %v1092_v50 = vadd.f32 %v1091_v31, %v1078_v39  ;;  %v7185_v62 = vor.u32 %v9012_v57, %v7182_v58  ;;  %v9188_v1 = vld [vmem:[#allocation8 + $0xbc4] sm:$0xf] }
 0x10a   :  { %v1065_v37 = vpop.f32.mrf.mxu1  ;;  %4411 = vmatpush.bf16.msra.mxu2 %v6961_v23  ;;  %v7886_v2 = vld [vmem:[#allocation8 + $0xbe0] sm:$0xf0] }
 0x10b   :  { %v1066_v63 = vadd.f32 %v1065_v37, %v1052_v36  ;;  %v1157_v3 = vmax.f32 %v1092_v50, 0.0  ;;  %v9004_v6 = vld [vmem:[#allocation8 + $0x604] sm:$0xf]  ;;  %v7889_v12 = vor.u32 %v9188_v1, %v7886_v2 }
 0x10c   :  { %4424 = vmatpush.bf16.msra.mxu3 %v7249_v33  ;;  %v7150_v7 = vld [vmem:[#allocation8 + $0x620] sm:$0xf0] }
 0x10d   :  { %v1164_v48 = vmax.f32 %v1066_v63, 0.0  ;;  %v9108_v8 = vld [vmem:[#allocation8 + $0x944] sm:$0xf]  ;;  %v7153_v11 = vor.u32 %v9004_v6, %v7150_v7 }
 0x10e   :  { %4412 = vmatpush.bf16.msra.mxu2 %v6929_v38  ;;  %v1079_v54 = vpop.f32.mrf.mxu2  ;;  %v7566_v9 = vld [vmem:[#allocation8 + $0x960] sm:$0xf0] }
 0x10f   :  { %v9733_v53 = vpack.c.bf16 %v1164_v48, %v1156_v42  ;;  %v1080_v60 = vadd.f32 %v1079_v54, %v267_v24  ;;  %v7569_v14 = vor.u32 %v9108_v8, %v7566_v9  ;;  %v9180_v15 = vld [vmem:[#allocation8 + $0xb84] sm:$0xf] }
 0x110   :  { %v1093_v61 = vpop.f32.mrf.mxu3  ;;  %4425 = vmatpush.bf16.msra.mxu3 %v7217_v45  ;;  %v7854_v16 = vld [vmem:[#allocation8 + $0xba0] sm:$0xf0] }
 0x111   :  { %4330 = vmatmul.bf16.vlgmr.msrb.gmra.mxu0 %v9733_v53  ;;  %v1094_v4 = vadd.f32 %v1093_v61, %v1080_v60  ;;  %v9100_v17 = vld [vmem:[#allocation8 + $0x904] sm:$0xf]  ;;  %v7857_v19 = vor.u32 %v9180_v15, %v7854_v16  ;;  %v6612_v61 = vld [vmem:[#allocation8 + $0x1c8] sm:$0xf] }
 0x112   :  { %4413 = vmatpush.bf16.msra.mxu2 %v6897_v49  ;;  %4434 = vmatpush.bf16.msrb.mxu0 %v7633_v51  ;;  %v7534_v18 = vld [vmem:[#allocation8 + $0x920] sm:$0xf0]  ;;  %v6613_v8 = vor.u32 %v8873_v30, %v6612_v61  ;;  %v8865_v15 = vld [vmem:[#allocation8 + $0x1a4] sm:$0xf0] }
 0x113   :  { %v1165_v10 = vmax.f32 %v1094_v4, 0.0  ;;  %v7537_v20 = vor.u32 %v9100_v17, %v7534_v18  ;;  %v9172_v21 = vld [vmem:[#allocation8 + $0xb44] sm:$0xf]  ;;  %v6484_v61 = vld [vmem:[#allocation8 + $0xc8] sm:$0xf] }
 0x114   :  { %4426 = vmatpush.bf16.msra.mxu3 %v7185_v62  ;;  %v7822_v22 = vld [vmem:[#allocation8 + $0xb60] sm:$0xf0]  ;;  %v8841_v30 = vld [vmem:[#allocation8 + $0xe4] sm:$0xf0] }
 0x115   :  { %v9736_v13 = vpack.c.bf16 %v1165_v10, %v1157_v3  ;;  %v9092_v23 = vld [vmem:[#allocation8 + $0x8c4] sm:$0xf]  ;;  %v7825_v26 = vor.u32 %v9172_v21, %v7822_v22 }
 0x116   :  { %4435 = vmatpush.bf16.msrb.mxu0 %v7601_v5  ;;  %v7502_v24 = vld [vmem:[#allocation8 + $0x8e0] sm:$0xf0] }
 0x117   :  { %4344 = vmatmul.bf16.vlgmr.msrb.gmra.mxu1 %v9736_v13  ;;  %v7505_v29 = vor.u32 %v9092_v23, %v7502_v24  ;;  %v9164_v31 = vld [vmem:[#allocation8 + $0xb04] sm:$0xf] }
 0x118   :  { %4427 = vmatpush.bf16.msra.mxu3 %v7153_v11  ;;  %4448 = vmatpush.bf16.msrb.mxu1 %v7889_v12  ;;  %v7790_v33 = vld [vmem:[#allocation8 + $0xb20] sm:$0xf0] }
 0x119   :  { %v9084_v34 = vld [vmem:[#allocation8 + $0x884] sm:$0xf]  ;;  %v7793_v36 = vor.u32 %v9164_v31, %v7790_v33  ;;  %v6548_v33 = vld [vmem:[#allocation8 + $0x148] sm:$0xf] }
 0x11a   :  { %4436 = vmatpush.bf16.msrb.mxu0 %v7569_v14  ;;  %v7470_v35 = vld [vmem:[#allocation8 + $0x8a0] sm:$0xf0]  ;;  %v6580_v14 = vld [vmem:[#allocation8 + $0x188] sm:$0xf] }
 0x11b   :  { %v7473_v38 = vor.u32 %v9084_v34, %v7470_v35  ;;  %v9156_v39 = vld [vmem:[#allocation8 + $0xac4] sm:$0xf]  ;;  %v8857_v34 = vld [vmem:[#allocation8 + $0x164] sm:$0xf0] }
 0x11c   :  { %4449 = vmatpush.bf16.msrb.mxu1 %v7857_v19  ;;  %v7758_v40 = vld [vmem:[#allocation8 + $0xae0] sm:$0xf0] }
 0x11d   :  { %v9076_v56 = vld [vmem:[#allocation8 + $0x844] sm:$0xf]  ;;  %v7761_v46 = vor.u32 %v9156_v39, %v7758_v40 }
 0x11e   :  { %4437 = vmatpush.bf16.msrb.mxu0 %v7537_v20  ;;  %v7438_v42 = vld [vmem:[#allocation8 + $0x860] sm:$0xf0] }
 0x11f   :  { %v7441_v49 = vor.u32 %v9076_v56, %v7438_v42  ;;  %v9148_v50 = vld [vmem:[#allocation8 + $0xa84] sm:$0xf] }
 0x120   :  { %v1105_v25 = vpop.f32.mrf.mxu0  ;;  %4450 = vmatpush.bf16.msrb.mxu1 %v7825_v26  ;;  %v7726_v51 = vld [vmem:[#allocation8 + $0xaa0] sm:$0xf0]  ;;  %v6581_v26 = vor.u32 %v8865_v15, %v6580_v14 }
 0x121   :  { %4386 = vmatmul.bf16.vlgmr.msra.gmra.mxu0 %v9717_v41  ;;  %v1106_v37 = vadd.f32 %v1105_v25, %v268_v27  ;;  %v9068_v54 = vld [vmem:[#allocation8 + $0x804] sm:$0xf]  ;;  %v7729_v1 = vor.u32 %v9148_v50, %v7726_v51 }
 0x122   :  { %v1119_v28 = vpop.f32.mrf.mxu1  ;;  %4438 = vmatpush.bf16.msrb.mxu0 %v7505_v29  ;;  %v7406_v55 = vld [vmem:[#allocation8 + $0x820] sm:$0xf0] }
 0x123   :  { %v1120_v47 = vadd.f32 %v1119_v28, %v1106_v37  ;;  %v9252_v57 = vld [vmem:[#allocation8 + $0xdc4] sm:$0xf]  ;;  %v7409_v4 = vor.u32 %v9068_v54, %v7406_v55  ;;  %v8937_v28 = vld [vmem:[#allocation8 + $0x3e4] sm:$0xf0] }
 0x124   :  { %4451 = vmatpush.bf16.msrb.mxu1 %v7793_v36  ;;  %v8142_v60 = vld [vmem:[#allocation8 + $0xde0] sm:$0xf0] }
 0x125   :  { %v1158_v2 = vmax.f32 %v1120_v47, 0.0  ;;  %v9140_v5 = vld [vmem:[#allocation8 + $0xa44] sm:$0xf]  ;;  %v8145_v7 = vor.u32 %v9252_v57, %v8142_v60  ;;  %v8921_v60 = vld [vmem:[#allocation8 + $0x364] sm:$0xf0] }
 0x126   :  { %v1133_v63 = vpop.f32.mrf.mxu2  ;;  %4439 = vmatpush.bf16.msrb.mxu0 %v7473_v38  ;;  %v7694_v6 = vld [vmem:[#allocation8 + $0xa60] sm:$0xf0] }
 0x127   :  { %4400 = vmatmul.bf16.vlgmr.msra.gmra.mxu1 %v9720_v0  ;;  %v1134_v62 = vadd.f32 %v1133_v63, %v269_v43  ;;  %v9244_v9 = vld [vmem:[#allocation8 + $0xd84] sm:$0xf]  ;;  %v7697_v18 = vor.u32 %v9140_v5, %v7694_v6  ;;  %v6485_v5 = vor.u32 %v8841_v30, %v6484_v61  ;;  %v9121_v61 = vld [vmem:[#allocation8 + $0x9a4] sm:$0xf0] }
 0x128   :  { %v1147_v44 = vpop.f32.mrf.mxu3  ;;  %v1107_v45 = vpop.f32.mrf.mxu0  ;;  %4452 = vmatpush.bf16.msrb.mxu1 %v7761_v46  ;;  %v8110_v12 = vld [vmem:[#allocation8 + $0xda0] sm:$0xf0] }
 0x129   :  { %v1108_v48 = vadd.f32 %v1107_v45, %v268_v27  ;;  %v1148_v16 = vadd.f32 %v1147_v44, %v1134_v62  ;;  %v9132_v19 = vld [vmem:[#allocation8 + $0xa04] sm:$0xf]  ;;  %v8113_v25 = vor.u32 %v9244_v9, %v8110_v12  ;;  %v6868_v27 = vld [vmem:[#allocation8 + $0x3c8] sm:$0xf] }
 0x12a   :  { %v1121_v52 = vpop.f32.mrf.mxu1  ;;  %4440 = vmatpush.bf16.msrb.mxu0 %v7441_v49  ;;  %v7662_v21 = vld [vmem:[#allocation8 + $0xa20] sm:$0xf0]  ;;  %v6869_v39 = vor.u32 %v8937_v28, %v6868_v27  ;;  %v6836_v44 = vld [vmem:[#allocation8 + $0x388] sm:$0xf] }
 0x12b   :  { %v1122_v58 = vadd.f32 %v1121_v52, %v1108_v48  ;;  %v9316_v22 = vld [vmem:[#allocation8 + $0xfc4] sm:$0xf]  ;;  %v1159_v35 = vmax.f32 %v1148_v16, 0.0  ;;  %v7665_v37 = vor.u32 %v9132_v19, %v7662_v21  ;;  %v8929_v45 = vld [vmem:[#allocation8 + $0x3a4] sm:$0xf0] }
 0x12c   :  { %4453 = vmatpush.bf16.msrb.mxu1 %v7729_v1  ;;  %v8398_v23 = vld [vmem:[#allocation8 + $0xfe0] sm:$0xf0]  ;;  %v6516_v48 = vld [vmem:[#allocation8 + $0x108] sm:$0xf]  ;;  %v6837_v51 = vor.u32 %v8929_v45, %v6836_v44 }
 0x12d   :  { %v1166_v3 = vmax.f32 %v1122_v58, 0.0  ;;  %v9236_v29 = vld [vmem:[#allocation8 + $0xd44] sm:$0xf]  ;;  %v8401_v38 = vor.u32 %v9316_v22, %v8398_v23  ;;  %v8849_v49 = vld [vmem:[#allocation8 + $0x124] sm:$0xf0] }
 0x12e   :  { %v1135_v11 = vpop.f32.mrf.mxu2  ;;  %4441 = vmatpush.bf16.msrb.mxu0 %v7409_v4  ;;  %v8078_v31 = vld [vmem:[#allocation8 + $0xd60] sm:$0xf0]  ;;  %v6517_v55 = vor.u32 %v8849_v49, %v6516_v48  ;;  %v6804_v58 = vld [vmem:[#allocation8 + $0x348] sm:$0xf] }
 0x12f   :  { %v9743_v10 = vpack.c.bf16 %v1166_v3, %v1158_v2  ;;  %v1136_v17 = vadd.f32 %v1135_v11, %v269_v43  ;;  %v9308_v40 = vld [vmem:[#allocation8 + $0xf84] sm:$0xf]  ;;  %v8081_v63 = vor.u32 %v9236_v29, %v8078_v31  ;;  %v6549_v43 = vor.u32 %v8857_v34, %v6548_v33  ;;  %v6452_v11 = vld [vmem:[#allocation8 + $0x88] sm:$0xf] }
 0x130   :  { %v1149_v20 = vpop.f32.mrf.mxu3  ;;  %4454 = vmatpush.bf16.msrb.mxu1 %v7697_v18  ;;  %v8366_v56 = vld [vmem:[#allocation8 + $0xfa0] sm:$0xf0]  ;;  %v6805_v3 = vor.u32 %v8921_v60, %v6804_v58  ;;  %v8833_v12 = vld [vmem:[#allocation8 + $0xa4] sm:$0xf0] }
 0x131   :  { %4358 = vmatmul.bf16.vlgmr.msrb.gmra.mxu2 %v9743_v10  ;;  %v1150_v24 = vadd.f32 %v1149_v20, %v1136_v17  ;;  %4442 = vmatmul.bf16.vlgmr.msrb.gmra.mxu0 %v9733_v53  ;;  %v9228_v46 = vld [vmem:[#allocation8 + $0xd04] sm:$0xf]  ;;  %v8369_v50 = vor.u32 %v9308_v40, %v8366_v56  ;;  %v6453_v19 = vor.u32 %v8833_v12, %v6452_v11  ;;  %v6740_v21 = vld [vmem:[#allocation8 + $0x2c8] sm:$0xf] }
 0x132   :  { %4462 = vmatpush.bf16.msrb.mxu2 %v8145_v7  ;;  %4490 = vmatpush.bf16.msra.mxu0 %v6613_v8  ;;  %v8046_v47 = vld [vmem:[#allocation8 + $0xd20] sm:$0xf0]  ;;  %v6772_v7 = vld [vmem:[#allocation8 + $0x308] sm:$0xf] }
 0x133   :  { %v1167_v36 = vmax.f32 %v1150_v24, 0.0  ;;  %v9300_v52 = vld [vmem:[#allocation8 + $0xf44] sm:$0xf]  ;;  %v8049_v54 = vor.u32 %v9228_v46, %v8046_v47  ;;  %v8913_v8 = vld [vmem:[#allocation8 + $0x324] sm:$0xf0] }
 0x134   :  { %4455 = vmatpush.bf16.msrb.mxu1 %v7665_v37  ;;  %v8334_v57 = vld [vmem:[#allocation8 + $0xf60] sm:$0xf0]  ;;  %v6773_v17 = vor.u32 %v8913_v8, %v6772_v7  ;;  %v8905_v22 = vld [vmem:[#allocation8 + $0x2e4] sm:$0xf0] }
 0x135   :  { %v9747_v42 = vpack.c.bf16 %v1167_v36, %v1159_v35  ;;  %v9220_v62 = vld [vmem:[#allocation8 + $0xcc4] sm:$0xf]  ;;  %v8337_v2 = vor.u32 %v9300_v52, %v8334_v57  ;;  %v6420_v24 = vld [vmem:[#allocation8 + $0x48] sm:$0xf]  ;;  %v6741_v29 = vor.u32 %v8905_v22, %v6740_v21 }
 0x136   :  { %4463 = vmatpush.bf16.msrb.mxu2 %v8113_v25  ;;  %4491 = vmatpush.bf16.msra.mxu0 %v6581_v26  ;;  %v8014_v1 = vld [vmem:[#allocation8 + $0xce0] sm:$0xf0]  ;;  %v8825_v25 = vld [vmem:[#allocation8 + $0x64] sm:$0xf0] }
 0x137   :  { %4372 = vmatmul.bf16.vlgmr.msrb.gmra.mxu3 %v9747_v42  ;;  %4456 = vmatmul.bf16.vlgmr.msrb.gmra.mxu1 %v9736_v13  ;;  %v9292_v4 = vld [vmem:[#allocation8 + $0xf04] sm:$0xf]  ;;  %v8017_v9 = vor.u32 %v9220_v62, %v8014_v1  ;;  %v6421_v33 = vor.u32 %v8825_v25, %v6420_v24  ;;  %v6708_v35 = vld [vmem:[#allocation8 + $0x288] sm:$0xf] }
 0x138   :  { %4476 = vmatpush.bf16.msrb.mxu3 %v8401_v38  ;;  %4504 = vmatpush.bf16.msra.mxu1 %v6869_v39  ;;  %v8302_v6 = vld [vmem:[#allocation8 + $0xf20] sm:$0xf0]  ;;  %v8897_v36 = vld [vmem:[#allocation8 + $0x2a4] sm:$0xf0] }
 0x139   :  { %v9212_v14 = vld [vmem:[#allocation8 + $0xc84] sm:$0xf]  ;;  %v8305_v16 = vor.u32 %v9292_v4, %v8302_v6  ;;  %v6388_v39 = vld [vmem:[#allocation8 + $0x8] sm:$0xf]  ;;  %v6709_v45 = vor.u32 %v8897_v36, %v6708_v35 }
 0x13a   :  { %4464 = vmatpush.bf16.msrb.mxu2 %v8081_v63  ;;  %4492 = vmatpush.bf16.msra.mxu0 %v6549_v43  ;;  %v7982_v15 = vld [vmem:[#allocation8 + $0xca0] sm:$0xf0]  ;;  %v8817_v40 = vld [vmem:[#allocation8 + $0x24] sm:$0xf0] }
 0x13b   :  { %v9284_v18 = vld [vmem:[#allocation8 + $0xec4] sm:$0xf]  ;;  %v7985_v23 = vor.u32 %v9212_v14, %v7982_v15  ;;  %v7636_v63 = vld [vmem:[#allocation8 + $0x9c8] sm:$0xf]  ;;  %v6389_v49 = vor.u32 %v8817_v40, %v6388_v39 }
 0x13c   :  { %4477 = vmatpush.bf16.msrb.mxu3 %v8369_v50  ;;  %4505 = vmatpush.bf16.msra.mxu1 %v6837_v51  ;;  %v8270_v20 = vld [vmem:[#allocation8 + $0xee0] sm:$0xf0]  ;;  %v9129_v43 = vld [vmem:[#allocation8 + $0x9e4] sm:$0xf0] }
 0x13d   :  { %v9204_v26 = vld [vmem:[#allocation8 + $0xc44] sm:$0xf]  ;;  %v8273_v28 = vor.u32 %v9284_v18, %v8270_v20  ;;  %v7124_v46 = vld [vmem:[#allocation8 + $0x5c8] sm:$0xf] }
 0x13e   :  { %4465 = vmatpush.bf16.msrb.mxu2 %v8049_v54  ;;  %4493 = vmatpush.bf16.msra.mxu0 %v6517_v55  ;;  %v7950_v27 = vld [vmem:[#allocation8 + $0xc60] sm:$0xf0]  ;;  %v9001_v47 = vld [vmem:[#allocation8 + $0x5e4] sm:$0xf0]  ;;  %v7637_v55 = vor.u32 %v9129_v43, %v7636_v63 }
 0x13f   :  { %v9276_v31 = vld [vmem:[#allocation8 + $0xe84] sm:$0xf]  ;;  %v7953_v37 = vor.u32 %v9204_v26, %v7950_v27  ;;  %v6676_v51 = vld [vmem:[#allocation8 + $0x248] sm:$0xf]  ;;  %v7125_v57 = vor.u32 %v9001_v47, %v7124_v46 }
 0x140   :  { %4478 = vmatpush.bf16.msrb.mxu3 %v8337_v2  ;;  %4506 = vmatpush.bf16.msra.mxu1 %v6805_v3  ;;  %v8238_v34 = vld [vmem:[#allocation8 + $0xea0] sm:$0xf0]  ;;  %v8889_v52 = vld [vmem:[#allocation8 + $0x264] sm:$0xf0] }
 0x141   :  { %4414 = vmatmul.bf16.vlgmr.msra.gmra.mxu2 %v9725_v32  ;;  %v9196_v38 = vld [vmem:[#allocation8 + $0xc04] sm:$0xf]  ;;  %v8241_v44 = vor.u32 %v9276_v31, %v8238_v34  ;;  %v7092_v58 = vld [vmem:[#allocation8 + $0x588] sm:$0xf]  ;;  %v6677_v62 = vor.u32 %v8889_v52, %v6676_v51 }
 0x142   :  { %4494 = vmatpush.bf16.msra.mxu0 %v6485_v5  ;;  %4466 = vmatpush.bf16.msrb.mxu2 %v8017_v9  ;;  %v7918_v56 = vld [vmem:[#allocation8 + $0xc20] sm:$0xf0]  ;;  %v7604_v60 = vld [vmem:[#allocation8 + $0x988] sm:$0xf] }
 0x143   :  { %v9268_v48 = vld [vmem:[#allocation8 + $0xe44] sm:$0xf]  ;;  %v7921_v54 = vor.u32 %v9196_v38, %v7918_v56  ;;  %v8993_v1 = vld [vmem:[#allocation8 + $0x5a4] sm:$0xf0]  ;;  %v7605_v7 = vor.u32 %v9121_v61, %v7604_v60 }
 0x144   :  { %4479 = vmatpush.bf16.msrb.mxu3 %v8305_v16  ;;  %4507 = vmatpush.bf16.msra.mxu1 %v6773_v17  ;;  %v8206_v50 = vld [vmem:[#allocation8 + $0xe60] sm:$0xf0]  ;;  %v6644_v4 = vld [vmem:[#allocation8 + $0x208] sm:$0xf]  ;;  %v7093_v12 = vor.u32 %v8993_v1, %v7092_v58 }
 0x145   :  { %v8209_v30 = vor.u32 %v9268_v48, %v8206_v50  ;;  %v9260_v2 = vld [vmem:[#allocation8 + $0xe04] sm:$0xf]  ;;  %v8881_v5 = vld [vmem:[#allocation8 + $0x224] sm:$0xf0] }
 0x146   :  { %4495 = vmatpush.bf16.msra.mxu0 %v6453_v19  ;;  %4467 = vmatpush.bf16.msrb.mxu2 %v7985_v23  ;;  %v8174_v3 = vld [vmem:[#allocation8 + $0xe20] sm:$0xf0]  ;;  %v7380_v6 = vld [vmem:[#allocation8 + $0x7c8] sm:$0xf]  ;;  %v6645_v17 = vor.u32 %v8881_v5, %v6644_v4 }
 0x147   :  { %4428 = vmatmul.bf16.vlgmr.msra.gmra.mxu3 %v9728_v59  ;;  %v9065_v8 = vld [vmem:[#allocation8 + $0x7e4] sm:$0xf0]  ;;  %v8177_v16 = vor.u32 %v9260_v2, %v8174_v3  ;;  %v9753_v20 = vld [vmem:[#allocation10] sm:$0xff] }
 0x148   :  { %4480 = vmatpush.bf16.msrb.mxu3 %v8273_v28  ;;  %4508 = vmatpush.bf16.msra.mxu1 %v6741_v29  ;;  %v7892_v9 = vld [vmem:[#allocation8 + $0xbc8] sm:$0xf]  ;;  %v7381_v21 = vor.u32 %v9065_v8, %v7380_v6 }
 0x149   :  { %v9193_v11 = vld [vmem:[#allocation8 + $0xbe4] sm:$0xf0] }
 0x14a   :  { %4496 = vmatpush.bf16.msra.mxu0 %v6421_v33  ;;  %4468 = vmatpush.bf16.msrb.mxu2 %v7953_v37  ;;  %v7572_v14 = vld [vmem:[#allocation8 + $0x948] sm:$0xf]  ;;  %v7893_v22 = vor.u32 %v9193_v11, %v7892_v9  ;;  %v10025_v33 = vperm.slane %v9753_v20, 0 }
 0x14b   :  { %v9113_v15 = vld [vmem:[#allocation8 + $0x964] sm:$0xf0] }
 0x14c   :  { %4481 = vmatpush.bf16.msrb.mxu3 %v8241_v44  ;;  %4509 = vmatpush.bf16.msra.mxu1 %v6709_v45  ;;  %v7060_v18 = vld [vmem:[#allocation8 + $0x548] sm:$0xf]  ;;  %v7573_v24 = vor.u32 %v9113_v15, %v7572_v14 }
 0x14d   :  { %v8985_v19 = vld [vmem:[#allocation8 + $0x564] sm:$0xf0] }
 0x14e   :  { %4497 = vmatpush.bf16.msra.mxu0 %v6389_v49  ;;  %4469 = vmatpush.bf16.msrb.mxu2 %v7921_v54  ;;  %v7348_v23 = vld [vmem:[#allocation8 + $0x788] sm:$0xf]  ;;  %v7061_v28 = vor.u32 %v8985_v19, %v7060_v18  ;;  %v4275_v43 = vpop.f32.mrf.mxu0 }
 0x14f   :  { %v9057_v25 = vld [vmem:[#allocation8 + $0x7a4] sm:$0xf0]  ;;  %v4276_v47 = vadd.f32 %v4275_v43, %v10025_v33 }
 0x150   :  { %4482 = vmatpush.bf16.msrb.mxu3 %v8209_v30  ;;  %4510 = vmatpush.bf16.msra.mxu1 %v6677_v62  ;;  %v7860_v26 = vld [vmem:[#allocation8 + $0xb88] sm:$0xf]  ;;  %v7349_v36 = vor.u32 %v9057_v25, %v7348_v23 }
 0x151   :  { %4498 = vmatmul.bf16.vlgmr.msra.gmra.mxu0 %v9717_v41  ;;  %4470 = vmatmul.bf16.vlgmr.msrb.gmra.mxu2 %v9743_v10  ;;  %v9185_v27 = vld [vmem:[#allocation8 + $0xba4] sm:$0xf0] }
 0x152   :  { %4546 = vmatpush.bf16.msrb.mxu0 %v7637_v55  ;;  %4518 = vmatpush.bf16.msra.mxu2 %v7125_v57  ;;  %v7540_v29 = vld [vmem:[#allocation8 + $0x908] sm:$0xf]  ;;  %v7861_v37 = vor.u32 %v9185_v27, %v7860_v26 }
 0x153   :  { %v9105_v31 = vld [vmem:[#allocation8 + $0x924] sm:$0xf0] }
 0x154   :  { %4483 = vmatpush.bf16.msrb.mxu3 %v8177_v16  ;;  %4511 = vmatpush.bf16.msra.mxu1 %v6645_v17  ;;  %v7028_v34 = vld [vmem:[#allocation8 + $0x508] sm:$0xf]  ;;  %v7541_v39 = vor.u32 %v9105_v31, %v7540_v29  ;;  %v4289_v60 = vpop.f32.mrf.mxu1 }
 0x155   :  { %v8977_v35 = vld [vmem:[#allocation8 + $0x524] sm:$0xf0]  ;;  %v9762_v1 = vadd.f32 %v4289_v60, %v4276_v47 }
 0x156   :  { %4547 = vmatpush.bf16.msrb.mxu0 %v7605_v7  ;;  %4519 = vmatpush.bf16.msra.mxu2 %v7093_v12  ;;  %v7316_v38 = vld [vmem:[#allocation8 + $0x748] sm:$0xf]  ;;  %v7029_v44 = vor.u32 %v8977_v35, %v7028_v34  ;;  %v8869_v34 = vld [vmem:[#allocation8 + $0x1cc] sm:$0xf] }
 0x157   :  { %v9049_v40 = vld [vmem:[#allocation8 + $0x764] sm:$0xf0]  ;;  %4512 = vmatmul.bf16.vlgmr.msra.gmra.mxu1 %v9720_v0  ;;  %4484 = vmatmul.bf16.vlgmr.msrb.gmra.mxu3 %v9747_v42  ;;  %v6614_v35 = vld [vmem:[#allocation8 + $0x1e8] sm:$0xf0] }
 0x158   :  { %4532 = vmatpush.bf16.msra.mxu3 %v7381_v21  ;;  %4560 = vmatpush.bf16.msrb.mxu1 %v7893_v22  ;;  %v7828_v56 = vld [vmem:[#allocation8 + $0xb48] sm:$0xf]  ;;  %v7317_v50 = vor.u32 %v9049_v40, %v7316_v38 }
 0x159   :  { %v9177_v63 = vld [vmem:[#allocation8 + $0xb64] sm:$0xf0] }
 0x15a   :  { %4548 = vmatpush.bf16.msrb.mxu0 %v7573_v24  ;;  %4520 = vmatpush.bf16.msra.mxu2 %v7061_v28  ;;  %v7508_v45 = vld [vmem:[#allocation8 + $0x8c8] sm:$0xf]  ;;  %v7829_v51 = vor.u32 %v9177_v63, %v7828_v56 }
 0x15b   :  { %v9097_v46 = vld [vmem:[#allocation8 + $0x8e4] sm:$0xf0] }
 0x15c   :  { %v6996_v48 = vld [vmem:[#allocation8 + $0x4c8] sm:$0xf]  ;;  %4533 = vmatpush.bf16.msra.mxu3 %v7349_v36  ;;  %4561 = vmatpush.bf16.msrb.mxu1 %v7861_v37  ;;  %v7509_v54 = vor.u32 %v9097_v46, %v7508_v45  ;;  %v6617_v46 = vor.u32 %v8869_v34, %v6614_v35  ;;  %v8917_v34 = vld [vmem:[#allocation8 + $0x34c] sm:$0xf] }
 0x15d   :  { %v8969_v49 = vld [vmem:[#allocation8 + $0x4e4] sm:$0xf0]  ;;  %v6806_v35 = vld [vmem:[#allocation8 + $0x368] sm:$0xf0] }
 0x15e   :  { %v7284_v52 = vld [vmem:[#allocation8 + $0x708] sm:$0xf]  ;;  %4549 = vmatpush.bf16.msrb.mxu0 %v7541_v39  ;;  %4521 = vmatpush.bf16.msra.mxu2 %v7029_v44  ;;  %v6997_v61 = vor.u32 %v8969_v49, %v6996_v48  ;;  %v8861_v49 = vld [vmem:[#allocation8 + $0x18c] sm:$0xf] }
 0x15f   :  { %v9041_v55 = vld [vmem:[#allocation8 + $0x724] sm:$0xf0] }
 0x160   :  { %v7796_v57 = vld [vmem:[#allocation8 + $0xb08] sm:$0xf]  ;;  %4534 = vmatpush.bf16.msra.mxu3 %v7317_v50  ;;  %4562 = vmatpush.bf16.msrb.mxu1 %v7829_v51  ;;  %v7285_v4 = vor.u32 %v9041_v55, %v7284_v52  ;;  %v6582_v50 = vld [vmem:[#allocation8 + $0x1a8] sm:$0xf0] }
 0x161   :  { %v9169_v58 = vld [vmem:[#allocation8 + $0xb24] sm:$0xf0] }
 0x162   :  { %v7476_v30 = vld [vmem:[#allocation8 + $0x888] sm:$0xf]  ;;  %v7797_v5 = vor.u32 %v9169_v58, %v7796_v57  ;;  %4550 = vmatpush.bf16.msrb.mxu0 %v7509_v54  ;;  %4522 = vmatpush.bf16.msra.mxu2 %v6997_v61 }
 0x163   :  { %v9089_v62 = vld [vmem:[#allocation8 + $0x8a4] sm:$0xf0] }
 0x164   :  { %v6964_v2 = vld [vmem:[#allocation8 + $0x488] sm:$0xf]  ;;  %v7477_v7 = vor.u32 %v9089_v62, %v7476_v30  ;;  %4535 = vmatpush.bf16.msra.mxu3 %v7285_v4  ;;  %4563 = vmatpush.bf16.msrb.mxu1 %v7797_v5  ;;  %v6585_v30 = vor.u32 %v8861_v49, %v6582_v50  ;;  %v8853_v5 = vld [vmem:[#allocation8 + $0x14c] sm:$0xf] }
 0x165   :  { %v8961_v3 = vld [vmem:[#allocation8 + $0x4a4] sm:$0xf0]  ;;  %v8829_v49 = vld [vmem:[#allocation8 + $0x8c] sm:$0xf] }
 0x166   :  { %v7252_v6 = vld [vmem:[#allocation8 + $0x6c8] sm:$0xf]  ;;  %v6965_v12 = vor.u32 %v8961_v3, %v6964_v2  ;;  %4551 = vmatpush.bf16.msrb.mxu0 %v7477_v7  ;;  %v8933_v2 = vld [vmem:[#allocation8 + $0x3cc] sm:$0xf] }
 0x167   :  { %v9033_v8 = vld [vmem:[#allocation8 + $0x6e4] sm:$0xf0]  ;;  %v6870_v3 = vld [vmem:[#allocation8 + $0x3e8] sm:$0xf0] }
 0x168   :  { %v7764_v9 = vld [vmem:[#allocation8 + $0xac8] sm:$0xf]  ;;  %v7253_v18 = vor.u32 %v9033_v8, %v7252_v6  ;;  %4523 = vmatpush.bf16.msra.mxu2 %v6965_v12  ;;  %v6550_v6 = vld [vmem:[#allocation8 + $0x168] sm:$0xf0] }
 0x169   :  { %v9161_v11 = vld [vmem:[#allocation8 + $0xae4] sm:$0xf0]  ;;  %v6454_v50 = vld [vmem:[#allocation8 + $0xa8] sm:$0xf0] }
 0x16a   :  { %v7444_v14 = vld [vmem:[#allocation8 + $0x848] sm:$0xf]  ;;  %v7765_v19 = vor.u32 %v9161_v11, %v7764_v9  ;;  %4536 = vmatpush.bf16.msra.mxu3 %v7253_v18  ;;  %v6873_v11 = vor.u32 %v8933_v2, %v6870_v3  ;;  %v8925_v18 = vld [vmem:[#allocation8 + $0x38c] sm:$0xf] }
 0x16b   :  { %v9081_v15 = vld [vmem:[#allocation8 + $0x864] sm:$0xf0]  ;;  %v6742_v2 = vld [vmem:[#allocation8 + $0x2e8] sm:$0xf0] }
 0x16c   :  { %v6932_v16 = vld [vmem:[#allocation8 + $0x448] sm:$0xf]  ;;  %v7445_v22 = vor.u32 %v9081_v15, %v7444_v14  ;;  %4564 = vmatpush.bf16.msrb.mxu1 %v7765_v19  ;;  %v6838_v19 = vld [vmem:[#allocation8 + $0x3a8] sm:$0xf0] }
 0x16d   :  { %v8953_v17 = vld [vmem:[#allocation8 + $0x464] sm:$0xf0]  ;;  %v8821_v3 = vld [vmem:[#allocation8 + $0x4c] sm:$0xf] }
 0x16e   :  { %v7220_v21 = vld [vmem:[#allocation8 + $0x688] sm:$0xf]  ;;  %v6933_v26 = vor.u32 %v8953_v17, %v6932_v16  ;;  %4552 = vmatpush.bf16.msrb.mxu0 %v7445_v22  ;;  %v6553_v16 = vor.u32 %v8853_v5, %v6550_v6  ;;  %v6518_v22 = vld [vmem:[#allocation8 + $0x128] sm:$0xf0] }
 0x16f   :  { %v9025_v23 = vld [vmem:[#allocation8 + $0x6a4] sm:$0xf0] }
 0x170   :  { %v7732_v24 = vld [vmem:[#allocation8 + $0xa88] sm:$0xf]  ;;  %v7221_v36 = vor.u32 %v9025_v23, %v7220_v21  ;;  %4524 = vmatpush.bf16.msra.mxu2 %v6933_v26  ;;  %v8845_v21 = vld [vmem:[#allocation8 + $0x10c] sm:$0xf] }
 0x171   :  { %v9153_v25 = vld [vmem:[#allocation8 + $0xaa4] sm:$0xf0] }
 0x172   :  { %v6900_v27 = vld [vmem:[#allocation8 + $0x408] sm:$0xf]  ;;  %v7733_v37 = vor.u32 %v9153_v25, %v7732_v24  ;;  %4537 = vmatpush.bf16.msra.mxu3 %v7221_v36  ;;  %v6841_v25 = vor.u32 %v8925_v18, %v6838_v19  ;;  %v8837_v36 = vld [vmem:[#allocation8 + $0xcc] sm:$0xf] }
 0x173   :  { %v7412_v28 = vld [vmem:[#allocation8 + $0x808] sm:$0xf]  ;;  %v8813_v18 = vld [vmem:[#allocation8 + $0xc] sm:$0xf] }
 0x174   :  { %v9073_v29 = vld [vmem:[#allocation8 + $0x824] sm:$0xf0]  ;;  %4565 = vmatpush.bf16.msrb.mxu1 %v7733_v37  ;;  %v6486_v37 = vld [vmem:[#allocation8 + $0xe8] sm:$0xf0] }
 0x175   :  { %v8945_v31 = vld [vmem:[#allocation8 + $0x424] sm:$0xf0]  ;;  %v7413_v56 = vor.u32 %v9073_v29, %v7412_v28  ;;  %v6521_v29 = vor.u32 %v8845_v21, %v6518_v22  ;;  %v6390_v19 = vld [vmem:[#allocation8 + $0x28] sm:$0xf0] }
 0x176   :  { %v8148_v38 = vld [vmem:[#allocation8 + $0xdc8] sm:$0xf]  ;;  %v6901_v45 = vor.u32 %v8945_v31, %v6900_v27  ;;  %v9125_v22 = vld [vmem:[#allocation8 + $0x9cc] sm:$0xf] }
 0x177   :  { %v9257_v39 = vld [vmem:[#allocation8 + $0xde4] sm:$0xf0]  ;;  %4553 = vmatpush.bf16.msrb.mxu0 %v7413_v56 }
 0x178   :  { %v7188_v40 = vld [vmem:[#allocation8 + $0x648] sm:$0xf]  ;;  %v8149_v47 = vor.u32 %v9257_v39, %v8148_v38  ;;  %4525 = vmatpush.bf16.msra.mxu2 %v6901_v45 }
 0x179   :  { %v9017_v63 = vld [vmem:[#allocation8 + $0x664] sm:$0xf0] }
 0x17a   :  { %v7700_v43 = vld [vmem:[#allocation8 + $0xa48] sm:$0xf]  ;;  %v7189_v51 = vor.u32 %v9017_v63, %v7188_v40  ;;  %4554 = vmatmul.bf16.vlgmr.msrb.gmra.mxu0 %v9733_v53  ;;  %v6809_v40 = vor.u32 %v8917_v34, %v6806_v35 }
 0x17b   :  { %v9145_v44 = vld [vmem:[#allocation8 + $0xa64] sm:$0xf0]  ;;  %4602 = vmatpush.bf16.msra.mxu0 %v6617_v46  ;;  %4526 = vmatmul.bf16.vlgmr.msra.gmra.mxu2 %v9725_v32  ;;  %v8909_v46 = vld [vmem:[#allocation8 + $0x30c] sm:$0xf] }
 0x17c   :  { %v8116_v48 = vld [vmem:[#allocation8 + $0xd88] sm:$0xf]  ;;  %v7701_v52 = vor.u32 %v9145_v44, %v7700_v43  ;;  %4574 = vmatpush.bf16.msrb.mxu2 %v8149_v47  ;;  %4538 = vmatpush.bf16.msra.mxu3 %v7189_v51  ;;  %v6489_v44 = vor.u32 %v8837_v36, %v6486_v37  ;;  %v6774_v47 = vld [vmem:[#allocation8 + $0x328] sm:$0xf0] }
 0x17d   :  { %v9249_v54 = vld [vmem:[#allocation8 + $0xda4] sm:$0xf0]  ;;  %v8885_v37 = vld [vmem:[#allocation8 + $0x24c] sm:$0xf] }
 0x17e   :  { %v7156_v55 = vld [vmem:[#allocation8 + $0x608] sm:$0xf]  ;;  %v8117_v4 = vor.u32 %v9249_v54, %v8116_v48  ;;  %4566 = vmatpush.bf16.msrb.mxu1 %v7701_v52  ;;  %v4303_v48 = vpop.f32.mrf.mxu2 }
 0x17f   :  { %v9009_v57 = vld [vmem:[#allocation8 + $0x624] sm:$0xf0]  ;;  %4603 = vmatpush.bf16.msra.mxu0 %v6585_v30  ;;  %v4304_v51 = vadd.f32 %v4303_v48, %v9762_v1 }
 0x180   :  { %v7668_v58 = vld [vmem:[#allocation8 + $0xa08] sm:$0xf]  ;;  %v7157_v7 = vor.u32 %v9009_v57, %v7156_v55  ;;  %4575 = vmatpush.bf16.msrb.mxu2 %v8117_v4  ;;  %v6777_v55 = vor.u32 %v8909_v46, %v6774_v47  ;;  %v6422_v4 = vld [vmem:[#allocation8 + $0x68] sm:$0xf0] }
 0x181   :  { %v9137_v60 = vld [vmem:[#allocation8 + $0xa24] sm:$0xf0] }
 0x182   :  { %v8404_v61 = vld [vmem:[#allocation8 + $0xfc8] sm:$0xf]  ;;  %v7669_v8 = vor.u32 %v9137_v60, %v7668_v58  ;;  %4539 = vmatpush.bf16.msra.mxu3 %v7157_v7 }
 0x183   :  { %v9321_v62 = vld [vmem:[#allocation8 + $0xfe4] sm:$0xf0]  ;;  %4604 = vmatpush.bf16.msra.mxu0 %v6553_v16  ;;  %v6710_v16 = vld [vmem:[#allocation8 + $0x2a8] sm:$0xf0] }
 0x184   :  { %v8405_v9 = vor.u32 %v9321_v62, %v8404_v61  ;;  %v8084_v12 = vld [vmem:[#allocation8 + $0xd48] sm:$0xf]  ;;  %4567 = vmatpush.bf16.msrb.mxu1 %v7669_v8  ;;  %v6457_v61 = vor.u32 %v8829_v49, %v6454_v50  ;;  %v8901_v62 = vld [vmem:[#allocation8 + $0x2cc] sm:$0xf] }
 0x185   :  { %v9241_v14 = vld [vmem:[#allocation8 + $0xd64] sm:$0xf0]  ;;  %4540 = vmatmul.bf16.vlgmr.msra.gmra.mxu3 %v9728_v59  ;;  %v6745_v6 = vor.u32 %v8901_v62, %v6742_v2  ;;  %v8877_v49 = vld [vmem:[#allocation8 + $0x20c] sm:$0xf] }
 0x186   :  { %v8372_v15 = vld [vmem:[#allocation8 + $0xf88] sm:$0xf]  ;;  %v8085_v23 = vor.u32 %v9241_v14, %v8084_v12  ;;  %4588 = vmatpush.bf16.msrb.mxu3 %v8405_v9  ;;  %v6425_v12 = vor.u32 %v8821_v3, %v6422_v4  ;;  %v6646_v50 = vld [vmem:[#allocation8 + $0x228] sm:$0xf0] }
 0x187   :  { %v9313_v17 = vld [vmem:[#allocation8 + $0xfa4] sm:$0xf0]  ;;  %4568 = vmatmul.bf16.vlgmr.msrb.gmra.mxu1 %v9736_v13  ;;  %4605 = vmatpush.bf16.msra.mxu0 %v6521_v29  ;;  %v6393_v29 = vor.u32 %v8813_v18, %v6390_v19  ;;  %v6649_v2 = vor.u32 %v8877_v49, %v6646_v50  ;;  %v8981_v4 = vld [vmem:[#allocation8 + $0x54c] sm:$0xf] }
 0x188   :  { %4616 = vmatpush.bf16.msra.mxu1 %v6873_v11  ;;  %v8373_v24 = vor.u32 %v9313_v17, %v8372_v15  ;;  %v8052_v26 = vld [vmem:[#allocation8 + $0xd08] sm:$0xf]  ;;  %4576 = vmatpush.bf16.msrb.mxu2 %v8085_v23  ;;  %v4317_v11 = vpop.f32.mrf.mxu3  ;;  %v8893_v15 = vld [vmem:[#allocation8 + $0x28c] sm:$0xf] }
 0x189   :  { %v9233_v27 = vld [vmem:[#allocation8 + $0xd24] sm:$0xf0]  ;;  %v9769_v17 = vadd.f32 %v4317_v11, %v4304_v51  ;;  %v7638_v23 = vld [vmem:[#allocation8 + $0x9e8] sm:$0xf0]  ;;  %v9771_v51 = vpop.f32.mrf.mxu0 }
 0x18a   :  { %v8340_v28 = vld [vmem:[#allocation8 + $0xf48] sm:$0xf]  ;;  %v8053_v38 = vor.u32 %v9233_v27, %v8052_v26  ;;  %4589 = vmatpush.bf16.msrb.mxu3 %v8373_v24  ;;  %v7641_v36 = vor.u32 %v9125_v22, %v7638_v23  ;;  %v7862_v11 = vld [vmem:[#allocation8 + $0xba8] sm:$0xf0] }
 0x18b   :  { %v9305_v31 = vld [vmem:[#allocation8 + $0xf64] sm:$0xf0]  ;;  %4606 = vmatpush.bf16.msra.mxu0 %v6489_v44  ;;  %v8989_v44 = vld [vmem:[#allocation8 + $0x58c] sm:$0xf] }
 0x18c   :  { %4617 = vmatpush.bf16.msra.mxu1 %v6841_v25  ;;  %v8341_v39 = vor.u32 %v9305_v31, %v8340_v28  ;;  %v8020_v56 = vld [vmem:[#allocation8 + $0xcc8] sm:$0xf]  ;;  %4577 = vmatpush.bf16.msrb.mxu2 %v8053_v38  ;;  %v6713_v25 = vor.u32 %v8893_v15, %v6710_v16  ;;  %v8997_v28 = vld [vmem:[#allocation8 + $0x5cc] sm:$0xf]  ;;  %v9775_v16 = vpop.f32.mrf.mxu1 }
 0x18d   :  { %v9225_v63 = vld [vmem:[#allocation8 + $0xce4] sm:$0xf0]  ;;  %v7126_v31 = vld [vmem:[#allocation8 + $0x5e8] sm:$0xf0] }
 0x18e   :  { %v8308_v43 = vld [vmem:[#allocation8 + $0xf08] sm:$0xf]  ;;  %v8021_v52 = vor.u32 %v9225_v63, %v8020_v56  ;;  %4590 = vmatpush.bf16.msrb.mxu3 %v8341_v39  ;;  %v6678_v38 = vld [vmem:[#allocation8 + $0x268] sm:$0xf0]  ;;  %v7129_v63 = vor.u32 %v8997_v28, %v7126_v31 }
 0x18f   :  { %v9297_v45 = vld [vmem:[#allocation8 + $0xf24] sm:$0xf0]  ;;  %4607 = vmatpush.bf16.msra.mxu0 %v6457_v61  ;;  %v7606_v56 = vld [vmem:[#allocation8 + $0x9a8] sm:$0xf0]  ;;  %v6681_v47 = vor.u32 %v8885_v37, %v6678_v38 }
 0x190   :  { %4618 = vmatpush.bf16.msra.mxu1 %v6809_v40  ;;  %v8309_v54 = vor.u32 %v9297_v45, %v8308_v43  ;;  %v7988_v57 = vld [vmem:[#allocation8 + $0xc88] sm:$0xf]  ;;  %4578 = vmatpush.bf16.msrb.mxu2 %v8021_v52  ;;  %v9117_v40 = vld [vmem:[#allocation8 + $0x98c] sm:$0xf] }
 0x191   :  { %v9217_v58 = vld [vmem:[#allocation8 + $0xca4] sm:$0xf0]  ;;  %v7094_v45 = vld [vmem:[#allocation8 + $0x5a8] sm:$0xf0]  ;;  %v7609_v52 = vor.u32 %v9117_v40, %v7606_v56  ;;  %v4331_v22 = vpop.f32.mrf.mxu0 }
 0x192   :  { %v8276_v60 = vld [vmem:[#allocation8 + $0xec8] sm:$0xf]  ;;  %v7989_v5 = vor.u32 %v9217_v58, %v7988_v57  ;;  %4591 = vmatpush.bf16.msrb.mxu3 %v8309_v54  ;;  %v9061_v54 = vld [vmem:[#allocation8 + $0x7cc] sm:$0xf]  ;;  %v4332_v28 = vadd.f32 %v4331_v22, %v9769_v17 }
 0x193   :  { %v9289_v30 = vld [vmem:[#allocation8 + $0xee4] sm:$0xf0]  ;;  %4608 = vmatpush.bf16.msra.mxu0 %v6425_v12  ;;  %v9189_v57 = vld [vmem:[#allocation8 + $0xbcc] sm:$0xf] }
 0x194   :  { %4619 = vmatpush.bf16.msra.mxu1 %v6777_v55  ;;  %v8277_v1 = vor.u32 %v9289_v30, %v8276_v60  ;;  %v7956_v7 = vld [vmem:[#allocation8 + $0xc48] sm:$0xf]  ;;  %4579 = vmatpush.bf16.msrb.mxu2 %v7989_v5  ;;  %v7382_v55 = vld [vmem:[#allocation8 + $0x7e8] sm:$0xf0]  ;;  %v7097_v30 = vor.u32 %v8989_v44, %v7094_v45 }
 0x195   :  { %v9209_v8 = vld [vmem:[#allocation8 + $0xc64] sm:$0xf0]  ;;  %v7894_v58 = vld [vmem:[#allocation8 + $0xbe8] sm:$0xf0]  ;;  %v7385_v3 = vor.u32 %v9061_v54, %v7382_v55 }
 0x196   :  { %v8244_v9 = vld [vmem:[#allocation8 + $0xe88] sm:$0xf]  ;;  %v7957_v21 = vor.u32 %v9209_v8, %v7956_v7  ;;  %4592 = vmatpush.bf16.msrb.mxu3 %v8277_v1  ;;  %v9109_v60 = vld [vmem:[#allocation8 + $0x94c] sm:$0xf]  ;;  %v7897_v1 = vor.u32 %v9189_v57, %v7894_v58 }
 0x197   :  { %v9281_v14 = vld [vmem:[#allocation8 + $0xea4] sm:$0xf0]  ;;  %4609 = vmatpush.bf16.msra.mxu0 %v6393_v29  ;;  %v7574_v61 = vld [vmem:[#allocation8 + $0x968] sm:$0xf0] }
 0x198   :  { %4620 = vmatpush.bf16.msra.mxu1 %v6745_v6  ;;  %v8245_v24 = vor.u32 %v9281_v14, %v8244_v9  ;;  %v7924_v26 = vld [vmem:[#allocation8 + $0xc08] sm:$0xf]  ;;  %4580 = vmatpush.bf16.msrb.mxu2 %v7957_v21  ;;  %v7062_v5 = vld [vmem:[#allocation8 + $0x568] sm:$0xf0]  ;;  %v7577_v6 = vor.u32 %v9109_v60, %v7574_v61 }
 0x199   :  { %v9201_v27 = vld [vmem:[#allocation8 + $0xc24] sm:$0xf0]  ;;  %v9053_v7 = vld [vmem:[#allocation8 + $0x78c] sm:$0xf]  ;;  %v7065_v15 = vor.u32 %v8981_v4, %v7062_v5  ;;  %v9782_v61 = vpop.f32.mrf.mxu0 }
 0x19a   :  { %v8212_v34 = vld [vmem:[#allocation8 + $0xe48] sm:$0xf]  ;;  %v7925_v39 = vor.u32 %v9201_v27, %v7924_v26  ;;  %4593 = vmatpush.bf16.msrb.mxu3 %v8245_v24  ;;  %4610 = vmatmul.bf16.vlgmr.msra.gmra.mxu0 %v9717_v41  ;;  %v7350_v8 = vld [vmem:[#allocation8 + $0x7a8] sm:$0xf0] }
 0x19b   :  { %v9273_v35 = vld [vmem:[#allocation8 + $0xe64] sm:$0xf0]  ;;  %4658 = vmatpush.bf16.msrb.mxu0 %v7641_v36  ;;  %v9181_v9 = vld [vmem:[#allocation8 + $0xb8c] sm:$0xf]  ;;  %v7353_v18 = vor.u32 %v9053_v7, %v7350_v8 }
 0x19c   :  { %4621 = vmatpush.bf16.msra.mxu1 %v6713_v25  ;;  %v8213_v43 = vor.u32 %v9273_v35, %v8212_v34  ;;  %v8180_v46 = vld [vmem:[#allocation8 + $0xe08] sm:$0xf]  ;;  %4581 = vmatpush.bf16.msrb.mxu2 %v7925_v39  ;;  %v9101_v12 = vld [vmem:[#allocation8 + $0x90c] sm:$0xf]  ;;  %v7865_v23 = vor.u32 %v9181_v9, %v7862_v11 }
 0x19d   :  { %v9265_v48 = vld [vmem:[#allocation8 + $0xe24] sm:$0xf0]  ;;  %v7542_v14 = vld [vmem:[#allocation8 + $0x928] sm:$0xf0] }
 0x19e   :  { %4594 = vmatpush.bf16.msrb.mxu3 %v8213_v43  ;;  %v8181_v62 = vor.u32 %v9265_v48, %v8180_v46  ;;  %v8973_v19 = vld [vmem:[#allocation8 + $0x50c] sm:$0xf]  ;;  %v7545_v24 = vor.u32 %v9101_v12, %v7542_v14 }
 0x19f   :  { %4582 = vmatmul.bf16.vlgmr.msrb.gmra.mxu2 %v9743_v10  ;;  %4659 = vmatpush.bf16.msrb.mxu0 %v7609_v52  ;;  %v7030_v21 = vld [vmem:[#allocation8 + $0x528] sm:$0xf0] }
 0x1a0   :  { %4630 = vmatpush.bf16.msra.mxu2 %v7129_v63  ;;  %4622 = vmatpush.bf16.msra.mxu1 %v6681_v47  ;;  %v9045_v25 = vld [vmem:[#allocation8 + $0x74c] sm:$0xf]  ;;  %v7033_v35 = vor.u32 %v8973_v19, %v7030_v21  ;;  %v4345_v47 = vpop.f32.mrf.mxu1  ;;  %v6620_v19 = vld [vmem:[#allocation8 + $0x1d0] sm:$0xf] }
 0x1a1   :  { %v7318_v26 = vld [vmem:[#allocation8 + $0x768] sm:$0xf0]  ;;  %v9780_v52 = vadd.f32 %v4345_v47, %v4332_v28  ;;  %v8874_v21 = vld [vmem:[#allocation8 + $0x1ec] sm:$0xf0] }
 0x1a2   :  { %4595 = vmatpush.bf16.msrb.mxu3 %v8181_v62  ;;  %v9173_v27 = vld [vmem:[#allocation8 + $0xb4c] sm:$0xf]  ;;  %v7321_v36 = vor.u32 %v9045_v25, %v7318_v26 }
 0x1a3   :  { %4660 = vmatpush.bf16.msrb.mxu0 %v7577_v6  ;;  %v7830_v29 = vld [vmem:[#allocation8 + $0xb68] sm:$0xf0] }
 0x1a4   :  { %4631 = vmatpush.bf16.msra.mxu2 %v7097_v30  ;;  %4623 = vmatpush.bf16.msra.mxu1 %v6649_v2  ;;  %v9093_v31 = vld [vmem:[#allocation8 + $0x8cc] sm:$0xf]  ;;  %v7833_v39 = vor.u32 %v9173_v27, %v7830_v29 }
 0x1a5   :  { %4596 = vmatmul.bf16.vlgmr.msrb.gmra.mxu3 %v9747_v42  ;;  %v7510_v34 = vld [vmem:[#allocation8 + $0x8e8] sm:$0xf0] }
 0x1a6   :  { %4644 = vmatpush.bf16.msra.mxu3 %v7385_v3  ;;  %v8965_v37 = vld [vmem:[#allocation8 + $0x4cc] sm:$0xf]  ;;  %v7513_v40 = vor.u32 %v9093_v31, %v7510_v34 }
 0x1a7   :  { %4624 = vmatmul.bf16.vlgmr.msra.gmra.mxu1 %v9720_v0  ;;  %v6998_v38 = vld [vmem:[#allocation8 + $0x4e8] sm:$0xf0]  ;;  %4661 = vmatpush.bf16.msrb.mxu0 %v7545_v24 }
 0x1a8   :  { %4672 = vmatpush.bf16.msrb.mxu1 %v7897_v1  ;;  %4632 = vmatpush.bf16.msra.mxu2 %v7065_v15  ;;  %v9037_v56 = vld [vmem:[#allocation8 + $0x70c] sm:$0xf]  ;;  %v7001_v46 = vor.u32 %v8965_v37, %v6998_v38  ;;  %v9784_v22 = vpop.f32.mrf.mxu1  ;;  %v10024_v38 = vperm.slane %v9753_v20, 1 }
 0x1a9   :  { %v7286_v63 = vld [vmem:[#allocation8 + $0x728] sm:$0xf0] }
 0x1aa   :  { %4645 = vmatpush.bf16.msra.mxu3 %v7353_v18  ;;  %v9165_v43 = vld [vmem:[#allocation8 + $0xb0c] sm:$0xf]  ;;  %v7289_v48 = vor.u32 %v9037_v56, %v7286_v63  ;;  %v8866_v56 = vld [vmem:[#allocation8 + $0x1ac] sm:$0xf0]  ;;  %v4387_v63 = vpop.f32.mrf.mxu0 }
 0x1ab   :  { %v7798_v44 = vld [vmem:[#allocation8 + $0xb28] sm:$0xf0]  ;;  %4662 = vmatpush.bf16.msrb.mxu0 %v7513_v40  ;;  %v6588_v40 = vld [vmem:[#allocation8 + $0x190] sm:$0xf] }
 0x1ac   :  { %4673 = vmatpush.bf16.msrb.mxu1 %v7865_v23  ;;  %v9085_v17 = vld [vmem:[#allocation8 + $0x88c] sm:$0xf]  ;;  %4633 = vmatpush.bf16.msra.mxu2 %v7033_v35  ;;  %v7801_v54 = vor.u32 %v9165_v43, %v7798_v44  ;;  %v6621_v35 = vor.u32 %v8874_v21, %v6620_v19  ;;  %v8930_v19 = vld [vmem:[#allocation8 + $0x3ac] sm:$0xf0] }
 0x1ad   :  { %v7478_v45 = vld [vmem:[#allocation8 + $0x8a8] sm:$0xf0]  ;;  %v6524_v21 = vld [vmem:[#allocation8 + $0x110] sm:$0xf] }
 0x1ae   :  { %4646 = vmatpush.bf16.msra.mxu3 %v7321_v36  ;;  %v8957_v49 = vld [vmem:[#allocation8 + $0x48c] sm:$0xf]  ;;  %v7481_v55 = vor.u32 %v9085_v17, %v7478_v45 }
 0x1af   :  { %v6966_v50 = vld [vmem:[#allocation8 + $0x4a8] sm:$0xf0] }
 0x1b0   :  { %4674 = vmatpush.bf16.msrb.mxu1 %v7833_v39  ;;  %v9029_v57 = vld [vmem:[#allocation8 + $0x6cc] sm:$0xf]  ;;  %4634 = vmatpush.bf16.msra.mxu2 %v7001_v46  ;;  %v6969_v3 = vor.u32 %v8957_v49, %v6966_v50 }
 0x1b1   :  { %v7254_v58 = vld [vmem:[#allocation8 + $0x6e8] sm:$0xf0]  ;;  %4663 = vmatpush.bf16.msrb.mxu0 %v7481_v55 }
 0x1b2   :  { %v9157_v60 = vld [vmem:[#allocation8 + $0xacc] sm:$0xf]  ;;  %4647 = vmatpush.bf16.msra.mxu3 %v7289_v48  ;;  %v7257_v4 = vor.u32 %v9029_v57, %v7254_v58  ;;  %v6876_v58 = vld [vmem:[#allocation8 + $0x3d0] sm:$0xf] }
 0x1b3   :  { %v7766_v30 = vld [vmem:[#allocation8 + $0xae8] sm:$0xf0] }
 0x1b4   :  { %v9077_v62 = vld [vmem:[#allocation8 + $0x84c] sm:$0xf]  ;;  %4675 = vmatpush.bf16.msrb.mxu1 %v7801_v54  ;;  %v7769_v6 = vor.u32 %v9157_v60, %v7766_v30  ;;  %4635 = vmatpush.bf16.msra.mxu2 %v6969_v3  ;;  %v6589_v54 = vor.u32 %v8866_v56, %v6588_v40  ;;  %v4388_v60 = vadd.f32 %v4387_v63, %v10024_v38  ;;  %v8938_v30 = vld [vmem:[#allocation8 + $0x3ec] sm:$0xf0]  ;;  %v4401_v3 = vpop.f32.mrf.mxu1  ;;  %v6942_v38 = vld [vmem:[#allocation8 + $0x470] sm:$0xf0] }
 0x1b5   :  { %v7446_v2 = vld [vmem:[#allocation8 + $0x868] sm:$0xf0]  ;;  %v8842_v40 = vld [vmem:[#allocation8 + $0xec] sm:$0xf0] }
 0x1b6   :  { %v8949_v5 = vld [vmem:[#allocation8 + $0x44c] sm:$0xf]  ;;  %v7449_v7 = vor.u32 %v9077_v62, %v7446_v2  ;;  %4648 = vmatpush.bf16.msra.mxu3 %v7257_v4  ;;  %v6556_v62 = vld [vmem:[#allocation8 + $0x150] sm:$0xf] }
 0x1b7   :  { %v6934_v1 = vld [vmem:[#allocation8 + $0x468] sm:$0xf0]  ;;  %v8858_v2 = vld [vmem:[#allocation8 + $0x16c] sm:$0xf0] }
 0x1b8   :  { %v9021_v8 = vld [vmem:[#allocation8 + $0x68c] sm:$0xf]  ;;  %v6937_v18 = vor.u32 %v8949_v5, %v6934_v1  ;;  %4676 = vmatpush.bf16.msrb.mxu1 %v7769_v6  ;;  %4664 = vmatpush.bf16.msrb.mxu0 %v7449_v7  ;;  %v9789_v1 = vadd.f32 %v4401_v3, %v4388_v60  ;;  %v9799_v60 = vpop.f32.mrf.mxu0 }
 0x1b9   :  { %v7222_v9 = vld [vmem:[#allocation8 + $0x6a8] sm:$0xf0] }
 0x1ba   :  { %v9149_v11 = vld [vmem:[#allocation8 + $0xa8c] sm:$0xf]  ;;  %v7225_v23 = vor.u32 %v9021_v8, %v7222_v9  ;;  %4636 = vmatpush.bf16.msra.mxu2 %v6937_v18  ;;  %v6844_v18 = vld [vmem:[#allocation8 + $0x390] sm:$0xf] }
 0x1bb   :  { %v7734_v12 = vld [vmem:[#allocation8 + $0xaa8] sm:$0xf0] }
 0x1bc   :  { %v9069_v14 = vld [vmem:[#allocation8 + $0x80c] sm:$0xf]  ;;  %v7737_v27 = vor.u32 %v9149_v11, %v7734_v12  ;;  %4649 = vmatpush.bf16.msra.mxu3 %v7225_v23  ;;  %v6877_v11 = vor.u32 %v8938_v30, %v6876_v58  ;;  %v6557_v12 = vor.u32 %v8858_v2, %v6556_v62  ;;  %v8850_v23 = vld [vmem:[#allocation8 + $0x12c] sm:$0xf0] }
 0x1bd   :  { %v7414_v15 = vld [vmem:[#allocation8 + $0x828] sm:$0xf0] }
 0x1be   :  { %v8941_v24 = vld [vmem:[#allocation8 + $0x40c] sm:$0xf]  ;;  %v7417_v28 = vor.u32 %v9069_v14, %v7414_v15  ;;  %4677 = vmatpush.bf16.msrb.mxu1 %v7737_v27 }
 0x1bf   :  { %v6902_v25 = vld [vmem:[#allocation8 + $0x428] sm:$0xf0] }
 0x1c0   :  { %v9253_v26 = vld [vmem:[#allocation8 + $0xdcc] sm:$0xf]  ;;  %v6905_v39 = vor.u32 %v8941_v24, %v6902_v25  ;;  %4665 = vmatpush.bf16.msrb.mxu0 %v7417_v28  ;;  %v9793_v24 = vpop.f32.mrf.mxu2 }
 0x1c1   :  { %v8150_v29 = vld [vmem:[#allocation8 + $0xde8] sm:$0xf0] }
 0x1c2   :  { %v9013_v31 = vld [vmem:[#allocation8 + $0x64c] sm:$0xf]  ;;  %v8153_v43 = vor.u32 %v9253_v26, %v8150_v29  ;;  %4637 = vmatpush.bf16.msra.mxu2 %v6905_v39  ;;  %v6845_v29 = vor.u32 %v8930_v19, %v6844_v18  ;;  %v6492_v39 = vld [vmem:[#allocation8 + $0xd0] sm:$0xf] }
 0x1c3   :  { %v7190_v34 = vld [vmem:[#allocation8 + $0x668] sm:$0xf0]  ;;  %4666 = vmatmul.bf16.vlgmr.msrb.gmra.mxu0 %v9733_v53 }
 0x1c4   :  { %v9141_v36 = vld [vmem:[#allocation8 + $0xa4c] sm:$0xf]  ;;  %v7193_v44 = vor.u32 %v9013_v31, %v7190_v34  ;;  %4714 = vmatpush.bf16.msra.mxu0 %v6621_v35  ;;  %v6525_v31 = vor.u32 %v8850_v23, %v6524_v21 }
 0x1c5   :  { %v7702_v37 = vld [vmem:[#allocation8 + $0xa68] sm:$0xf0]  ;;  %4638 = vmatmul.bf16.vlgmr.msra.gmra.mxu2 %v9725_v32 }
 0x1c6   :  { %v9245_v17 = vld [vmem:[#allocation8 + $0xd8c] sm:$0xf]  ;;  %v7705_v47 = vor.u32 %v9141_v36, %v7702_v37  ;;  %4686 = vmatpush.bf16.msrb.mxu2 %v8153_v43  ;;  %4650 = vmatpush.bf16.msra.mxu3 %v7193_v44  ;;  %v6812_v36 = vld [vmem:[#allocation8 + $0x350] sm:$0xf] }
 0x1c7   :  { %v8118_v45 = vld [vmem:[#allocation8 + $0xda8] sm:$0xf0]  ;;  %v8922_v37 = vld [vmem:[#allocation8 + $0x36c] sm:$0xf0] }
 0x1c8   :  { %v9005_v46 = vld [vmem:[#allocation8 + $0x60c] sm:$0xf]  ;;  %v8121_v4 = vor.u32 %v9245_v17, %v8118_v45  ;;  %4678 = vmatpush.bf16.msrb.mxu1 %v7705_v47  ;;  %4715 = vmatpush.bf16.msra.mxu0 %v6589_v54  ;;  %v6813_v17 = vor.u32 %v8922_v37, %v6812_v36  ;;  %v6493_v45 = vor.u32 %v8842_v40, %v6492_v39  ;;  %v6460_v54 = vld [vmem:[#allocation8 + $0x90] sm:$0xf] }
 0x1c9   :  { %v7158_v48 = vld [vmem:[#allocation8 + $0x628] sm:$0xf0]  ;;  %v7644_v39 = vld [vmem:[#allocation8 + $0x9d0] sm:$0xf] }
 0x1ca   :  { %v9133_v49 = vld [vmem:[#allocation8 + $0xa0c] sm:$0xf]  ;;  %v7161_v5 = vor.u32 %v9005_v46, %v7158_v48  ;;  %4687 = vmatpush.bf16.msrb.mxu2 %v8121_v4  ;;  %v6780_v48 = vld [vmem:[#allocation8 + $0x310] sm:$0xf] }
 0x1cb   :  { %v7670_v50 = vld [vmem:[#allocation8 + $0xa28] sm:$0xf0]  ;;  %v9130_v40 = vld [vmem:[#allocation8 + $0x9ec] sm:$0xf0] }
 0x1cc   :  { %v9317_v55 = vld [vmem:[#allocation8 + $0xfcc] sm:$0xf]  ;;  %v7673_v6 = vor.u32 %v9133_v49, %v7670_v50  ;;  %4651 = vmatpush.bf16.msra.mxu3 %v7161_v5  ;;  %4716 = vmatpush.bf16.msra.mxu0 %v6557_v12  ;;  %v9797_v49 = vpop.f32.mrf.mxu3  ;;  %v8914_v50 = vld [vmem:[#allocation8 + $0x32c] sm:$0xf0] }
 0x1cd   :  { %v8406_v57 = vld [vmem:[#allocation8 + $0xfe8] sm:$0xf0]  ;;  %v6781_v4 = vor.u32 %v8914_v50, %v6780_v48  ;;  %v8826_v12 = vld [vmem:[#allocation8 + $0x6c] sm:$0xf0]  ;;  %v9808_v50 = vpop.f32.mrf.mxu0 }
 0x1ce   :  { %v8409_v7 = vor.u32 %v9317_v55, %v8406_v57  ;;  %v9237_v8 = vld [vmem:[#allocation8 + $0xd4c] sm:$0xf]  ;;  %4679 = vmatpush.bf16.msrb.mxu1 %v7673_v6  ;;  %v8834_v55 = vld [vmem:[#allocation8 + $0xac] sm:$0xf0]  ;;  %v4359_v57 = vpop.f32.mrf.mxu2 }
 0x1cf   :  { %v8086_v9 = vld [vmem:[#allocation8 + $0xd68] sm:$0xf0]  ;;  %4652 = vmatmul.bf16.vlgmr.msra.gmra.mxu3 %v9728_v59  ;;  %v4360_v30 = vadd.f32 %v4359_v57, %v9780_v52  ;;  %v6461_v5 = vor.u32 %v8834_v55, %v6460_v54  ;;  %v7645_v54 = vor.u32 %v9130_v40, %v7644_v39  ;;  %v6684_v55 = vld [vmem:[#allocation8 + $0x250] sm:$0xf] }
 0x1d0   :  { %v9309_v14 = vld [vmem:[#allocation8 + $0xf8c] sm:$0xf]  ;;  %v8089_v25 = vor.u32 %v9237_v8, %v8086_v9  ;;  %4700 = vmatpush.bf16.msrb.mxu3 %v8409_v7  ;;  %4717 = vmatpush.bf16.msra.mxu0 %v6525_v31  ;;  %v6748_v8 = vld [vmem:[#allocation8 + $0x2d0] sm:$0xf] }
 0x1d1   :  { %v8374_v15 = vld [vmem:[#allocation8 + $0xfa8] sm:$0xf0]  ;;  %4680 = vmatmul.bf16.vlgmr.msrb.gmra.mxu1 %v9736_v13  ;;  %v8906_v9 = vld [vmem:[#allocation8 + $0x2ec] sm:$0xf0] }
 0x1d2   :  { %v8377_v26 = vor.u32 %v9309_v14, %v8374_v15  ;;  %v9229_v27 = vld [vmem:[#allocation8 + $0xd0c] sm:$0xf]  ;;  %4728 = vmatpush.bf16.msra.mxu1 %v6877_v11  ;;  %4688 = vmatpush.bf16.msrb.mxu2 %v8089_v25  ;;  %v6428_v11 = vld [vmem:[#allocation8 + $0x50] sm:$0xf]  ;;  %v9802_v15 = vpop.f32.mrf.mxu1  ;;  %v6749_v21 = vor.u32 %v8906_v9, %v6748_v8 }
 0x1d3   :  { %v8054_v28 = vld [vmem:[#allocation8 + $0xd28] sm:$0xf0]  ;;  %v6429_v23 = vor.u32 %v8826_v12, %v6428_v11  ;;  %v6396_v31 = vld [vmem:[#allocation8 + $0x10] sm:$0xf] }
 0x1d4   :  { %v9301_v34 = vld [vmem:[#allocation8 + $0xf4c] sm:$0xf]  ;;  %v8057_v56 = vor.u32 %v9229_v27, %v8054_v28  ;;  %4701 = vmatpush.bf16.msrb.mxu3 %v8377_v26  ;;  %4718 = vmatpush.bf16.msra.mxu0 %v6493_v45  ;;  %v6716_v27 = vld [vmem:[#allocation8 + $0x290] sm:$0xf]  ;;  %v4373_v28 = vpop.f32.mrf.mxu3 }
 0x1d5   :  { %v8342_v35 = vld [vmem:[#allocation8 + $0xf68] sm:$0xf0]  ;;  %v8890_v57 = vld [vmem:[#allocation8 + $0x26c] sm:$0xf0] }
 0x1d6   :  { %v8345_v63 = vor.u32 %v9301_v34, %v8342_v35  ;;  %v9221_v43 = vld [vmem:[#allocation8 + $0xccc] sm:$0xf]  ;;  %4729 = vmatpush.bf16.msra.mxu1 %v6845_v29  ;;  %4689 = vmatpush.bf16.msrb.mxu2 %v8057_v56  ;;  %v8898_v29 = vld [vmem:[#allocation8 + $0x2ac] sm:$0xf0]  ;;  %v9804_v35 = vadd.f32 %v4373_v28, %v4360_v30  ;;  %v9806_v36 = vpop.f32.mrf.mxu2 }
 0x1d7   :  { %v8022_v44 = vld [vmem:[#allocation8 + $0xce8] sm:$0xf0]  ;;  %v8818_v34 = vld [vmem:[#allocation8 + $0x2c] sm:$0xf0] }
 0x1d8   :  { %v9293_v46 = vld [vmem:[#allocation8 + $0xf0c] sm:$0xf]  ;;  %v8025_v58 = vor.u32 %v9221_v43, %v8022_v44  ;;  %4702 = vmatpush.bf16.msrb.mxu3 %v8345_v63  ;;  %4719 = vmatpush.bf16.msra.mxu0 %v6461_v5  ;;  %v7132_v44 = vld [vmem:[#allocation8 + $0x5d0] sm:$0xf]  ;;  %v6397_v45 = vor.u32 %v8818_v34, %v6396_v31 }
 0x1d9   :  { %v8310_v47 = vld [vmem:[#allocation8 + $0xf28] sm:$0xf0]  ;;  %v7612_v30 = vld [vmem:[#allocation8 + $0x990] sm:$0xf] }
 0x1da   :  { %v8313_v62 = vor.u32 %v9293_v46, %v8310_v47  ;;  %v9213_v2 = vld [vmem:[#allocation8 + $0xc8c] sm:$0xf]  ;;  %4730 = vmatpush.bf16.msra.mxu1 %v6813_v17  ;;  %4690 = vmatpush.bf16.msrb.mxu2 %v8025_v58  ;;  %v6717_v17 = vor.u32 %v8898_v29, %v6716_v27  ;;  %v9002_v46 = vld [vmem:[#allocation8 + $0x5ec] sm:$0xf0]  ;;  %v9810_v12 = vpop.f32.mrf.mxu1 }
 0x1db   :  { %v7990_v3 = vld [vmem:[#allocation8 + $0xca8] sm:$0xf0]  ;;  %v8994_v5 = vld [vmem:[#allocation8 + $0x5ac] sm:$0xf0] }
 0x1dc   :  { %v9285_v6 = vld [vmem:[#allocation8 + $0xecc] sm:$0xf]  ;;  %v7993_v14 = vor.u32 %v9213_v2, %v7990_v3  ;;  %4703 = vmatpush.bf16.msrb.mxu3 %v8313_v62  ;;  %4720 = vmatpush.bf16.msra.mxu0 %v6429_v23  ;;  %v9122_v62 = vld [vmem:[#allocation8 + $0x9ac] sm:$0xf0]  ;;  %v7133_v2 = vor.u32 %v9002_v46, %v7132_v44 }
 0x1dd   :  { %v8278_v7 = vld [vmem:[#allocation8 + $0xee8] sm:$0xf0]  ;;  %v6652_v9 = vld [vmem:[#allocation8 + $0x210] sm:$0xf] }
 0x1de   :  { %v8281_v18 = vor.u32 %v9285_v6, %v8278_v7  ;;  %v9205_v52 = vld [vmem:[#allocation8 + $0xc4c] sm:$0xf]  ;;  %4731 = vmatpush.bf16.msra.mxu1 %v6781_v4  ;;  %4691 = vmatpush.bf16.msrb.mxu2 %v7993_v14  ;;  %v7100_v4 = vld [vmem:[#allocation8 + $0x590] sm:$0xf]  ;;  %v6685_v7 = vor.u32 %v8890_v57, %v6684_v55  ;;  %v9812_v14 = vpop.f32.mrf.mxu3  ;;  %v4415_v27 = vpop.f32.mrf.mxu2 }
 0x1df   :  { %v7958_v19 = vld [vmem:[#allocation8 + $0xc68] sm:$0xf0]  ;;  %v8882_v11 = vld [vmem:[#allocation8 + $0x22c] sm:$0xf0]  ;;  %v7101_v28 = vor.u32 %v8994_v5, %v7100_v4  ;;  %v4416_v31 = vadd.f32 %v4415_v27, %v9789_v1 }
 0x1e0   :  { %v9277_v25 = vld [vmem:[#allocation8 + $0xe8c] sm:$0xf]  ;;  %v7961_v37 = vor.u32 %v9205_v52, %v7958_v19  ;;  %4704 = vmatpush.bf16.msrb.mxu3 %v8281_v18  ;;  %4721 = vmatpush.bf16.msra.mxu0 %v6397_v45  ;;  %v7613_v18 = vor.u32 %v9122_v62, %v7612_v30  ;;  %v7388_v52 = vld [vmem:[#allocation8 + $0x7d0] sm:$0xf]  ;;  %v6653_v34 = vor.u32 %v8882_v11, %v6652_v9 }
 0x1e1   :  { %v8246_v26 = vld [vmem:[#allocation8 + $0xea8] sm:$0xf0]  ;;  %v9066_v19 = vld [vmem:[#allocation8 + $0x7ec] sm:$0xf0] }
 0x1e2   :  { %v8249_v56 = vor.u32 %v9277_v25, %v8246_v26  ;;  %v9197_v63 = vld [vmem:[#allocation8 + $0xc0c] sm:$0xf]  ;;  %4732 = vmatpush.bf16.msra.mxu1 %v6749_v21  ;;  %4692 = vmatpush.bf16.msrb.mxu2 %v7961_v37  ;;  %v7900_v21 = vld [vmem:[#allocation8 + $0xbd0] sm:$0xf]  ;;  %v7389_v37 = vor.u32 %v9066_v19, %v7388_v52  ;;  %v9820_v9 = vpop.f32.mrf.mxu1  ;;  %v9826_v19 = vld [vmem:[#allocation10] sm:$0xff] }
 0x1e3   :  { %v7926_v43 = vld [vmem:[#allocation8 + $0xc28] sm:$0xf0]  ;;  %v9194_v23 = vld [vmem:[#allocation8 + $0xbec] sm:$0xf0]  ;;  %4722 = vmatmul.bf16.vlgmr.msra.gmra.mxu0 %v9717_v41 }
 0x1e4   :  { %v9269_v47 = vld [vmem:[#allocation8 + $0xe4c] sm:$0xf]  ;;  %v7929_v58 = vor.u32 %v9197_v63, %v7926_v43  ;;  %4705 = vmatpush.bf16.msrb.mxu3 %v8249_v56  ;;  %4770 = vmatpush.bf16.msrb.mxu0 %v7645_v54  ;;  %v7580_v25 = vld [vmem:[#allocation8 + $0x950] sm:$0xf]  ;;  %v7901_v56 = vor.u32 %v9194_v23, %v7900_v21  ;;  %v10023_v21 = vperm.slane %v9826_v19, 2 }
 0x1e5   :  { %v8214_v48 = vld [vmem:[#allocation8 + $0xe68] sm:$0xf0]  ;;  %v9114_v26 = vld [vmem:[#allocation8 + $0x96c] sm:$0xf0] }
 0x1e6   :  { %v8217_v3 = vor.u32 %v9269_v47, %v8214_v48  ;;  %v9261_v6 = vld [vmem:[#allocation8 + $0xe0c] sm:$0xf]  ;;  %4733 = vmatpush.bf16.msra.mxu1 %v6717_v17  ;;  %4693 = vmatpush.bf16.msrb.mxu2 %v7929_v58  ;;  %v7068_v39 = vld [vmem:[#allocation8 + $0x550] sm:$0xf]  ;;  %v7581_v63 = vor.u32 %v9114_v26, %v7580_v25  ;;  %v9817_v48 = vpop.f32.mrf.mxu0  ;;  %v4429_v58 = vpop.f32.mrf.mxu3 }
 0x1e7   :  { %v8182_v8 = vld [vmem:[#allocation8 + $0xe28] sm:$0xf0]  ;;  %v8986_v40 = vld [vmem:[#allocation8 + $0x56c] sm:$0xf0]  ;;  %v4430_v5 = vadd.f32 %v4429_v58, %v4416_v31  ;;  %v9823_v11 = vpop.f32.mrf.mxu2 }
 0x1e8   :  { %4706 = vmatpush.bf16.msrb.mxu3 %v8217_v3  ;;  %v8185_v29 = vor.u32 %v9261_v6, %v8182_v8  ;;  %4771 = vmatpush.bf16.msrb.mxu0 %v7613_v18  ;;  %v7356_v43 = vld [vmem:[#allocation8 + $0x790] sm:$0xf]  ;;  %v7069_v1 = vor.u32 %v8986_v40, %v7068_v39 }
 0x1e9   :  { %4694 = vmatmul.bf16.vlgmr.msrb.gmra.mxu2 %v9743_v10  ;;  %v9058_v44 = vld [vmem:[#allocation8 + $0x7ac] sm:$0xf0]  ;;  %v4444_v52 = vadd.f32 %v9808_v50, %v4430_v5 }
 0x1ea   :  { %4742 = vmatpush.bf16.msra.mxu2 %v7133_v2  ;;  %4734 = vmatpush.bf16.msra.mxu1 %v6685_v7  ;;  %v7868_v17 = vld [vmem:[#allocation8 + $0xb90] sm:$0xf]  ;;  %v7357_v54 = vor.u32 %v9058_v44, %v7356_v43 }
 0x1eb   :  { %v9186_v45 = vld [vmem:[#allocation8 + $0xbac] sm:$0xf0] }
 0x1ec   :  { %v7548_v46 = vld [vmem:[#allocation8 + $0x910] sm:$0xf]  ;;  %4707 = vmatpush.bf16.msrb.mxu3 %v8185_v29  ;;  %4772 = vmatpush.bf16.msrb.mxu0 %v7581_v63  ;;  %v7869_v30 = vor.u32 %v9186_v45, %v7868_v17 }
 0x1ed   :  { %v9106_v47 = vld [vmem:[#allocation8 + $0x92c] sm:$0xf0] }
 0x1ee   :  { %4743 = vmatpush.bf16.msra.mxu2 %v7101_v28  ;;  %4735 = vmatpush.bf16.msra.mxu1 %v6653_v34  ;;  %v7036_v55 = vld [vmem:[#allocation8 + $0x510] sm:$0xf]  ;;  %v7549_v62 = vor.u32 %v9106_v47, %v7548_v46  ;;  %v9830_v45 = vpop.f32.mrf.mxu3 }
 0x1ef   :  { %v8978_v57 = vld [vmem:[#allocation8 + $0x52c] sm:$0xf0]  ;;  %4708 = vmatmul.bf16.vlgmr.msrb.gmra.mxu3 %v9747_v42 }
 0x1f0   :  { %4756 = vmatpush.bf16.msra.mxu3 %v7389_v37  ;;  %v7324_v2 = vld [vmem:[#allocation8 + $0x750] sm:$0xf]  ;;  %v7037_v18 = vor.u32 %v8978_v57, %v7036_v55  ;;  %4773 = vmatpush.bf16.msrb.mxu0 %v7549_v62  ;;  %v4458_v37 = vadd.f32 %v9810_v12, %v4444_v52  ;;  %v4513_v62 = vpop.f32.mrf.mxu1 }
 0x1f1   :  { %v9050_v3 = vld [vmem:[#allocation8 + $0x76c] sm:$0xf0]  ;;  %4736 = vmatmul.bf16.vlgmr.msra.gmra.mxu1 %v9720_v0 }
 0x1f2   :  { %4784 = vmatpush.bf16.msrb.mxu1 %v7901_v56  ;;  %v7836_v4 = vld [vmem:[#allocation8 + $0xb50] sm:$0xf]  ;;  %4744 = vmatpush.bf16.msra.mxu2 %v7069_v1  ;;  %v7325_v23 = vor.u32 %v9050_v3, %v7324_v2  ;;  %v4499_v56 = vpop.f32.mrf.mxu0  ;;  %v4471_v2 = vpop.f32.mrf.mxu2 }
 0x1f3   :  { %v9178_v6 = vld [vmem:[#allocation8 + $0xb6c] sm:$0xf0]  ;;  %v4500_v12 = vadd.f32 %v4499_v56, %v10023_v21  ;;  %v4472_v5 = vadd.f32 %v4471_v2, %v4458_v37  ;;  %v7102_v21 = vld [vmem:[#allocation8 + $0x5b0] sm:$0xf0] }
 0x1f4   :  { %v7516_v7 = vld [vmem:[#allocation8 + $0x8d0] sm:$0xf]  ;;  %4757 = vmatpush.bf16.msra.mxu3 %v7357_v54  ;;  %v7837_v27 = vor.u32 %v9178_v6, %v7836_v4 }
 0x1f5   :  { %v9098_v8 = vld [vmem:[#allocation8 + $0x8ec] sm:$0xf0]  ;;  %v9834_v4 = vadd.f32 %v4513_v62, %v4500_v12 }
 0x1f6   :  { %v7004_v25 = vld [vmem:[#allocation8 + $0x4d0] sm:$0xf]  ;;  %4785 = vmatpush.bf16.msrb.mxu1 %v7869_v30  ;;  %v7517_v28 = vor.u32 %v9098_v8, %v7516_v7  ;;  %4745 = vmatpush.bf16.msra.mxu2 %v7037_v18 }
 0x1f7   :  { %v8970_v26 = vld [vmem:[#allocation8 + $0x4ec] sm:$0xf0] }
 0x1f8   :  { %v7292_v29 = vld [vmem:[#allocation8 + $0x710] sm:$0xf]  ;;  %v7005_v63 = vor.u32 %v8970_v26, %v7004_v25  ;;  %4758 = vmatpush.bf16.msra.mxu3 %v7325_v23  ;;  %4774 = vmatpush.bf16.msrb.mxu0 %v7517_v28 }
 0x1f9   :  { %v9042_v31 = vld [vmem:[#allocation8 + $0x72c] sm:$0xf0] }
 0x1fa   :  { %v7804_v34 = vld [vmem:[#allocation8 + $0xb10] sm:$0xf]  ;;  %v7293_v43 = vor.u32 %v9042_v31, %v7292_v29  ;;  %4786 = vmatpush.bf16.msrb.mxu1 %v7837_v27  ;;  %4746 = vmatpush.bf16.msra.mxu2 %v7005_v63 }
 0x1fb   :  { %v9170_v39 = vld [vmem:[#allocation8 + $0xb2c] sm:$0xf0] }
 0x1fc   :  { %v7484_v40 = vld [vmem:[#allocation8 + $0x890] sm:$0xf]  ;;  %v7805_v46 = vor.u32 %v9170_v39, %v7804_v34  ;;  %4759 = vmatpush.bf16.msra.mxu3 %v7293_v43  ;;  %v8870_v34 = vld [vmem:[#allocation8 + $0x1d4] sm:$0xf] }
 0x1fd   :  { %v9090_v50 = vld [vmem:[#allocation8 + $0x8ac] sm:$0xf0]  ;;  %v6622_v39 = vld [vmem:[#allocation8 + $0x1f0] sm:$0xf0] }
 0x1fe   :  { %v6972_v44 = vld [vmem:[#allocation8 + $0x490] sm:$0xf]  ;;  %v7485_v47 = vor.u32 %v9090_v50, %v7484_v40  ;;  %4787 = vmatpush.bf16.msrb.mxu1 %v7805_v46 }
 0x1ff   :  { %v8962_v17 = vld [vmem:[#allocation8 + $0x4ac] sm:$0xf0] }
 0x200   :  { %v7260_v1 = vld [vmem:[#allocation8 + $0x6d0] sm:$0xf]  ;;  %v6973_v3 = vor.u32 %v8962_v17, %v6972_v44  ;;  %4775 = vmatpush.bf16.msrb.mxu0 %v7485_v47  ;;  %v4485_v47 = vpop.f32.mrf.mxu3 }
 0x201   :  { %v9034_v54 = vld [vmem:[#allocation8 + $0x6ec] sm:$0xf0]  ;;  %v9836_v12 = vadd.f32 %v4485_v47, %v4472_v5  ;;  %v6846_v47 = vld [vmem:[#allocation8 + $0x3b0] sm:$0xf0] }
 0x202   :  { %v7772_v55 = vld [vmem:[#allocation8 + $0xad0] sm:$0xf]  ;;  %v7261_v6 = vor.u32 %v9034_v54, %v7260_v1  ;;  %4747 = vmatpush.bf16.msra.mxu2 %v6973_v3  ;;  %v6625_v1 = vor.u32 %v8870_v34, %v6622_v39 }
 0x203   :  { %v9162_v57 = vld [vmem:[#allocation8 + $0xaec] sm:$0xf0] }
 0x204   :  { %v7452_v58 = vld [vmem:[#allocation8 + $0x850] sm:$0xf]  ;;  %v7773_v18 = vor.u32 %v9162_v57, %v7772_v55  ;;  %4760 = vmatpush.bf16.msra.mxu3 %v7261_v6 }
 0x205   :  { %v9082_v30 = vld [vmem:[#allocation8 + $0x86c] sm:$0xf0] }
 0x206   :  { %v6940_v7 = vld [vmem:[#allocation8 + $0x450] sm:$0xf]  ;;  %v7453_v52 = vor.u32 %v9082_v30, %v7452_v58  ;;  %4788 = vmatpush.bf16.msrb.mxu1 %v7773_v18  ;;  %v8862_v58 = vld [vmem:[#allocation8 + $0x194] sm:$0xf] }
 0x207   :  { %v8954_v8 = vld [vmem:[#allocation8 + $0x46c] sm:$0xf0]  ;;  %v6590_v30 = vld [vmem:[#allocation8 + $0x1b0] sm:$0xf0] }
 0x208   :  { %v7228_v23 = vld [vmem:[#allocation8 + $0x690] sm:$0xf]  ;;  %v6941_v31 = vor.u32 %v8954_v8, %v6940_v7  ;;  %4776 = vmatpush.bf16.msrb.mxu0 %v7453_v52 }
 0x209   :  { %v9026_v25 = vld [vmem:[#allocation8 + $0x6ac] sm:$0xf0] }
 0x20a   :  { %v7740_v26 = vld [vmem:[#allocation8 + $0xa90] sm:$0xf]  ;;  %v7229_v37 = vor.u32 %v9026_v25, %v7228_v23  ;;  %4748 = vmatpush.bf16.msra.mxu2 %v6941_v31  ;;  %v6593_v25 = vor.u32 %v8862_v58, %v6590_v30  ;;  %v6558_v31 = vld [vmem:[#allocation8 + $0x170] sm:$0xf0] }
 0x20b   :  { %v9154_v27 = vld [vmem:[#allocation8 + $0xaac] sm:$0xf0] }
 0x20c   :  { %v7420_v28 = vld [vmem:[#allocation8 + $0x810] sm:$0xf]  ;;  %v7741_v63 = vor.u32 %v9154_v27, %v7740_v26  ;;  %4761 = vmatpush.bf16.msra.mxu3 %v7229_v37  ;;  %v8934_v27 = vld [vmem:[#allocation8 + $0x3d4] sm:$0xf] }
 0x20d   :  { %v9074_v29 = vld [vmem:[#allocation8 + $0x82c] sm:$0xf0] }
 0x20e   :  { %v6908_v40 = vld [vmem:[#allocation8 + $0x410] sm:$0xf]  ;;  %v7421_v43 = vor.u32 %v9074_v29, %v7420_v28  ;;  %4789 = vmatpush.bf16.msrb.mxu1 %v7741_v63  ;;  %v6878_v28 = vld [vmem:[#allocation8 + $0x3f0] sm:$0xf0] }
 0x20f   :  { %v8946_v50 = vld [vmem:[#allocation8 + $0x42c] sm:$0xf0]  ;;  %v8854_v29 = vld [vmem:[#allocation8 + $0x154] sm:$0xf]  ;;  %v6881_v63 = vor.u32 %v8934_v27, %v6878_v28 }
 0x210   :  { %v8156_v56 = vld [vmem:[#allocation8 + $0xdd0] sm:$0xf]  ;;  %v6909_v57 = vor.u32 %v8946_v50, %v6908_v40  ;;  %4777 = vmatpush.bf16.msrb.mxu0 %v7421_v43  ;;  %v6561_v43 = vor.u32 %v8854_v29, %v6558_v31 }
 0x211   :  { %v9258_v44 = vld [vmem:[#allocation8 + $0xdec] sm:$0xf0] }
 0x212   :  { %v7196_v17 = vld [vmem:[#allocation8 + $0x650] sm:$0xf]  ;;  %v8157_v62 = vor.u32 %v9258_v44, %v8156_v56  ;;  %4749 = vmatpush.bf16.msra.mxu2 %v6909_v57 }
 0x213   :  { %v9018_v46 = vld [vmem:[#allocation8 + $0x66c] sm:$0xf0]  ;;  %4778 = vmatmul.bf16.vlgmr.msrb.gmra.mxu0 %v9733_v53 }
 0x214   :  { %v7708_v54 = vld [vmem:[#allocation8 + $0xa50] sm:$0xf]  ;;  %v7197_v2 = vor.u32 %v9018_v46, %v7196_v17  ;;  %4826 = vmatpush.bf16.msra.mxu0 %v6625_v1  ;;  %v8926_v46 = vld [vmem:[#allocation8 + $0x394] sm:$0xf] }
 0x215   :  { %v9146_v55 = vld [vmem:[#allocation8 + $0xa6c] sm:$0xf0]  ;;  %4750 = vmatmul.bf16.vlgmr.msra.gmra.mxu2 %v9725_v32  ;;  %v8846_v1 = vld [vmem:[#allocation8 + $0x114] sm:$0xf] }
 0x216   :  { %v8124_v3 = vld [vmem:[#allocation8 + $0xd90] sm:$0xf]  ;;  %v7709_v8 = vor.u32 %v9146_v55, %v7708_v54  ;;  %4798 = vmatpush.bf16.msrb.mxu2 %v8157_v62  ;;  %4762 = vmatpush.bf16.msra.mxu3 %v7197_v2  ;;  %v6526_v54 = vld [vmem:[#allocation8 + $0x130] sm:$0xf0]  ;;  %v6849_v62 = vor.u32 %v8926_v46, %v6846_v47  ;;  %v9846_v46 = vpop.f32.mrf.mxu3 }
 0x217   :  { %v9250_v6 = vld [vmem:[#allocation8 + $0xdac] sm:$0xf0]  ;;  %v6529_v2 = vor.u32 %v8846_v1, %v6526_v54 }
 0x218   :  { %v7164_v7 = vld [vmem:[#allocation8 + $0x610] sm:$0xf]  ;;  %v8125_v34 = vor.u32 %v9250_v6, %v8124_v3  ;;  %4790 = vmatpush.bf16.msrb.mxu1 %v7709_v8  ;;  %4827 = vmatpush.bf16.msra.mxu0 %v6593_v25  ;;  %v6814_v8 = vld [vmem:[#allocation8 + $0x370] sm:$0xf0] }
 0x219   :  { %v9010_v18 = vld [vmem:[#allocation8 + $0x62c] sm:$0xf0] }
 0x21a   :  { %v7676_v52 = vld [vmem:[#allocation8 + $0xa10] sm:$0xf]  ;;  %v7165_v39 = vor.u32 %v9010_v18, %v7164_v7  ;;  %4799 = vmatpush.bf16.msrb.mxu2 %v8125_v34  ;;  %v8918_v7 = vld [vmem:[#allocation8 + $0x354] sm:$0xf] }
 0x21b   :  { %v9138_v23 = vld [vmem:[#allocation8 + $0xa2c] sm:$0xf0]  ;;  %v8838_v18 = vld [vmem:[#allocation8 + $0xd4] sm:$0xf]  ;;  %v6817_v28 = vor.u32 %v8918_v7, %v6814_v8 }
 0x21c   :  { %v8412_v5 = vld [vmem:[#allocation8 + $0xfd0] sm:$0xf]  ;;  %v7677_v37 = vor.u32 %v9138_v23, %v7676_v52  ;;  %4763 = vmatpush.bf16.msra.mxu3 %v7165_v39  ;;  %4828 = vmatpush.bf16.msra.mxu0 %v6561_v43  ;;  %v6494_v52 = vld [vmem:[#allocation8 + $0xf0] sm:$0xf0]  ;;  %v9841_v23 = vpop.f32.mrf.mxu2 }
 0x21d   :  { %v9322_v26 = vld [vmem:[#allocation8 + $0xfec] sm:$0xf0]  ;;  %v6497_v29 = vor.u32 %v8838_v18, %v6494_v52  ;;  %v8910_v39 = vld [vmem:[#allocation8 + $0x314] sm:$0xf]  ;;  %v9849_v52 = vpop.f32.mrf.mxu1 }
 0x21e   :  { %v8413_v40 = vor.u32 %v9322_v26, %v8412_v5  ;;  %v8092_v50 = vld [vmem:[#allocation8 + $0xd50] sm:$0xf]  ;;  %4791 = vmatpush.bf16.msrb.mxu1 %v7677_v37  ;;  %v6782_v37 = vld [vmem:[#allocation8 + $0x330] sm:$0xf0] }
 0x21f   :  { %v9242_v56 = vld [vmem:[#allocation8 + $0xd6c] sm:$0xf0]  ;;  %4764 = vmatmul.bf16.vlgmr.msra.gmra.mxu3 %v9728_v59  ;;  %v6785_v47 = vor.u32 %v8910_v39, %v6782_v37  ;;  %v9126_v37 = vld [vmem:[#allocation8 + $0x9d4] sm:$0xf] }
 0x220   :  { %v8380_v44 = vld [vmem:[#allocation8 + $0xf90] sm:$0xf]  ;;  %v8093_v55 = vor.u32 %v9242_v56, %v8092_v50  ;;  %4812 = vmatpush.bf16.msrb.mxu3 %v8413_v40  ;;  %4829 = vmatpush.bf16.msra.mxu0 %v6529_v2  ;;  %v8830_v40 = vld [vmem:[#allocation8 + $0x94] sm:$0xf] }
 0x221   :  { %v9314_v17 = vld [vmem:[#allocation8 + $0xfac] sm:$0xf0]  ;;  %4792 = vmatmul.bf16.vlgmr.msrb.gmra.mxu1 %v9736_v13  ;;  %v6462_v50 = vld [vmem:[#allocation8 + $0xb0] sm:$0xf0] }
 0x222   :  { %v8381_v57 = vor.u32 %v9314_v17, %v8380_v44  ;;  %v8060_v58 = vld [vmem:[#allocation8 + $0xd10] sm:$0xf]  ;;  %4840 = vmatpush.bf16.msra.mxu1 %v6881_v63  ;;  %4800 = vmatpush.bf16.msrb.mxu2 %v8093_v55  ;;  %v9844_v17 = vpop.f32.mrf.mxu0  ;;  %v6465_v1 = vor.u32 %v8830_v40, %v6462_v50 }
 0x223   :  { %v9234_v30 = vld [vmem:[#allocation8 + $0xd2c] sm:$0xf0] }
 0x224   :  { %v8348_v3 = vld [vmem:[#allocation8 + $0xf50] sm:$0xf]  ;;  %v8061_v25 = vor.u32 %v9234_v30, %v8060_v58  ;;  %4813 = vmatpush.bf16.msrb.mxu3 %v8381_v57  ;;  %4830 = vmatpush.bf16.msra.mxu0 %v6497_v29  ;;  %v8902_v57 = vld [vmem:[#allocation8 + $0x2d4] sm:$0xf]  ;;  %v4527_v2 = vpop.f32.mrf.mxu2 }
 0x225   :  { %v9306_v6 = vld [vmem:[#allocation8 + $0xf6c] sm:$0xf0]  ;;  %v6750_v58 = vld [vmem:[#allocation8 + $0x2f0] sm:$0xf0] }
 0x226   :  { %v8349_v5 = vor.u32 %v9306_v6, %v8348_v3  ;;  %v8028_v26 = vld [vmem:[#allocation8 + $0xcd0] sm:$0xf]  ;;  %4841 = vmatpush.bf16.msra.mxu1 %v6849_v62  ;;  %4801 = vmatpush.bf16.msrb.mxu2 %v8061_v25  ;;  %v8822_v30 = vld [vmem:[#allocation8 + $0x54] sm:$0xf]  ;;  %v4528_v6 = vadd.f32 %v4527_v2, %v9834_v4  ;;  %v6753_v25 = vor.u32 %v8902_v57, %v6750_v58 }
 0x227   :  { %v9226_v27 = vld [vmem:[#allocation8 + $0xcec] sm:$0xf0]  ;;  %v6430_v62 = vld [vmem:[#allocation8 + $0x70] sm:$0xf0] }
 0x228   :  { %v8316_v31 = vld [vmem:[#allocation8 + $0xf10] sm:$0xf]  ;;  %v8029_v56 = vor.u32 %v9226_v27, %v8028_v26  ;;  %4814 = vmatpush.bf16.msrb.mxu3 %v8349_v5  ;;  %4831 = vmatpush.bf16.msra.mxu0 %v6465_v1  ;;  %v6433_v5 = vor.u32 %v8822_v30, %v6430_v62  ;;  %v6718_v29 = vld [vmem:[#allocation8 + $0x2b0] sm:$0xf0] }
 0x229   :  { %v9298_v34 = vld [vmem:[#allocation8 + $0xf2c] sm:$0xf0]  ;;  %v7646_v4 = vld [vmem:[#allocation8 + $0x9f0] sm:$0xf0] }
 0x22a   :  { %v8317_v63 = vor.u32 %v9298_v34, %v8316_v31  ;;  %v7996_v43 = vld [vmem:[#allocation8 + $0xc90] sm:$0xf]  ;;  %4842 = vmatpush.bf16.msra.mxu1 %v6817_v28  ;;  %4802 = vmatpush.bf16.msrb.mxu2 %v8029_v56  ;;  %v8894_v28 = vld [vmem:[#allocation8 + $0x294] sm:$0xf]  ;;  %v7649_v30 = vor.u32 %v9126_v37, %v7646_v4 }
 0x22b   :  { %v9218_v44 = vld [vmem:[#allocation8 + $0xcac] sm:$0xf0]  ;;  %v8814_v31 = vld [vmem:[#allocation8 + $0x14] sm:$0xf] }
 0x22c   :  { %v8284_v54 = vld [vmem:[#allocation8 + $0xed0] sm:$0xf]  ;;  %v7997_v3 = vor.u32 %v9218_v44, %v7996_v43  ;;  %4815 = vmatpush.bf16.msrb.mxu3 %v8317_v63  ;;  %v6398_v34 = vld [vmem:[#allocation8 + $0x30] sm:$0xf0]  ;;  %v4555_v43 = vpop.f32.mrf.mxu0  ;;  %v4541_v44 = vpop.f32.mrf.mxu3  ;;  %4832 = vmatpush.bf16.msra.mxu0 %v6433_v5 }
 0x22d   :  { %v9290_v55 = vld [vmem:[#allocation8 + $0xeec] sm:$0xf0]  ;;  %v8998_v63 = vld [vmem:[#allocation8 + $0x5d4] sm:$0xf]  ;;  %v6401_v1 = vor.u32 %v8814_v31, %v6398_v34  ;;  %v4542_v58 = vadd.f32 %v4541_v44, %v4528_v6 }
 0x22e   :  { %v8285_v7 = vor.u32 %v9290_v55, %v8284_v54  ;;  %v7964_v8 = vld [vmem:[#allocation8 + $0xc50] sm:$0xf]  ;;  %4843 = vmatpush.bf16.msra.mxu1 %v6785_v47  ;;  %4803 = vmatpush.bf16.msrb.mxu2 %v7997_v3  ;;  %v6721_v47 = vor.u32 %v8894_v28, %v6718_v29  ;;  %v7134_v54 = vld [vmem:[#allocation8 + $0x5f0] sm:$0xf0]  ;;  %v4569_v28 = vpop.f32.mrf.mxu1 }
 0x22f   :  { %v9210_v18 = vld [vmem:[#allocation8 + $0xc6c] sm:$0xf0]  ;;  %v8886_v62 = vld [vmem:[#allocation8 + $0x254] sm:$0xf] }
 0x230   :  { %v8252_v26 = vld [vmem:[#allocation8 + $0xe90] sm:$0xf]  ;;  %v7965_v39 = vor.u32 %v9210_v18, %v7964_v8  ;;  %4816 = vmatpush.bf16.msrb.mxu3 %v8285_v7  ;;  %v6686_v2 = vld [vmem:[#allocation8 + $0x270] sm:$0xf0]  ;;  %v4556_v18 = vadd.f32 %v4555_v43, %v4542_v58  ;;  %4833 = vmatpush.bf16.msra.mxu0 %v6401_v1 }
 0x231   :  { %v9282_v27 = vld [vmem:[#allocation8 + $0xeac] sm:$0xf0]  ;;  %v9118_v7 = vld [vmem:[#allocation8 + $0x994] sm:$0xf]  ;;  %v6689_v29 = vor.u32 %v8886_v62, %v6686_v2 }
 0x232   :  { %v8253_v40 = vor.u32 %v9282_v27, %v8252_v26  ;;  %v7932_v50 = vld [vmem:[#allocation8 + $0xc10] sm:$0xf]  ;;  %4844 = vmatpush.bf16.msra.mxu1 %v6753_v25  ;;  %4804 = vmatpush.bf16.msrb.mxu2 %v7965_v39  ;;  %v7614_v8 = vld [vmem:[#allocation8 + $0x9b0] sm:$0xf0]  ;;  %v7137_v26 = vor.u32 %v8998_v63, %v7134_v54 }
 0x233   :  { %v9202_v56 = vld [vmem:[#allocation8 + $0xc2c] sm:$0xf0]  ;;  %v8990_v25 = vld [vmem:[#allocation8 + $0x594] sm:$0xf]  ;;  %v7617_v37 = vor.u32 %v9118_v7, %v7614_v8  ;;  %4834 = vmatmul.bf16.vlgmr.msra.gmra.mxu0 %v9717_v41 }
 0x234   :  { %v8220_v55 = vld [vmem:[#allocation8 + $0xe50] sm:$0xf]  ;;  %v7933_v3 = vor.u32 %v9202_v56, %v7932_v50  ;;  %4817 = vmatpush.bf16.msrb.mxu3 %v8253_v40  ;;  %v8878_v6 = vld [vmem:[#allocation8 + $0x214] sm:$0xf]  ;;  %4882 = vmatpush.bf16.msrb.mxu0 %v7649_v30  ;;  %v9851_v56 = vadd.f32 %v4569_v28, %v4556_v18  ;;  %v7105_v44 = vor.u32 %v8990_v25, %v7102_v21  ;;  %v9855_v7 = vpop.f32.mrf.mxu0 }
 0x235   :  { %v9274_v57 = vld [vmem:[#allocation8 + $0xe6c] sm:$0xf0]  ;;  %v6654_v34 = vld [vmem:[#allocation8 + $0x230] sm:$0xf0]  ;;  %10026 = vst [vmem:[#allocation20_spill] sm:$0xff] %v9855_v7 }
 0x236   :  { %v8221_v27 = vor.u32 %v9274_v57, %v8220_v55  ;;  %v8188_v5 = vld [vmem:[#allocation8 + $0xe10] sm:$0xf]  ;;  %4845 = vmatpush.bf16.msra.mxu1 %v6721_v47  ;;  %v9062_v39 = vld [vmem:[#allocation8 + $0x7d4] sm:$0xf]  ;;  %4805 = vmatpush.bf16.msrb.mxu2 %v7933_v3  ;;  %v6657_v1 = vor.u32 %v8878_v6, %v6654_v34 }
 0x237   :  { %v9266_v31 = vld [vmem:[#allocation8 + $0xe2c] sm:$0xf0]  ;;  %v7390_v4 = vld [vmem:[#allocation8 + $0x7f0] sm:$0xf0] }
 0x238   :  { %v9190_v50 = vld [vmem:[#allocation8 + $0xbd4] sm:$0xf]  ;;  %4818 = vmatpush.bf16.msrb.mxu3 %v8221_v27  ;;  %v8189_v47 = vor.u32 %v9266_v31, %v8188_v5  ;;  %v7393_v54 = vor.u32 %v9062_v39, %v7390_v4  ;;  %4883 = vmatpush.bf16.msrb.mxu0 %v7617_v37 }
 0x239   :  { %v7902_v40 = vld [vmem:[#allocation8 + $0xbf0] sm:$0xf0]  ;;  %4806 = vmatmul.bf16.vlgmr.msrb.gmra.mxu2 %v9743_v10 }
 0x23a   :  { %v9110_v63 = vld [vmem:[#allocation8 + $0x954] sm:$0xf]  ;;  %4854 = vmatpush.bf16.msra.mxu2 %v7137_v26  ;;  %4846 = vmatpush.bf16.msra.mxu1 %v6689_v29  ;;  %v7905_v58 = vor.u32 %v9190_v50, %v7902_v40  ;;  %v9859_v40 = vpop.f32.mrf.mxu2 }
 0x23b   :  { %v7582_v43 = vld [vmem:[#allocation8 + $0x970] sm:$0xf0] }
 0x23c   :  { %v8982_v55 = vld [vmem:[#allocation8 + $0x554] sm:$0xf]  ;;  %v7585_v30 = vor.u32 %v9110_v63, %v7582_v43  ;;  %4819 = vmatpush.bf16.msrb.mxu3 %v8189_v47  ;;  %v9861_v63 = vpop.f32.mrf.mxu1 }
 0x23d   :  { %v7070_v57 = vld [vmem:[#allocation8 + $0x570] sm:$0xf0]  ;;  %10027 = vst [vmem:[#allocation21_spill] sm:$0xff] %v9861_v63 }
 0x23e   :  { %v9054_v62 = vld [vmem:[#allocation8 + $0x794] sm:$0xf]  ;;  %4855 = vmatpush.bf16.msra.mxu2 %v7105_v44  ;;  %v7073_v26 = vor.u32 %v8982_v55, %v7070_v57  ;;  %4847 = vmatpush.bf16.msra.mxu1 %v6657_v1 }
 0x23f   :  { %v7358_v2 = vld [vmem:[#allocation8 + $0x7b0] sm:$0xf0]  ;;  %4884 = vmatpush.bf16.msrb.mxu0 %v7585_v30  ;;  %4820 = vmatmul.bf16.vlgmr.msrb.gmra.mxu3 %v9747_v42  ;;  %v4611_v30 = vpop.f32.mrf.mxu0 }
 0x240   :  { %v9182_v3 = vld [vmem:[#allocation8 + $0xb94] sm:$0xf]  ;;  %4868 = vmatpush.bf16.msra.mxu3 %v7393_v54  ;;  %v7361_v27 = vor.u32 %v9054_v62, %v7358_v2 }
 0x241   :  { %v7870_v8 = vld [vmem:[#allocation8 + $0xbb0] sm:$0xf0]  ;;  %4848 = vmatmul.bf16.vlgmr.msra.gmra.mxu1 %v9720_v0 }
 0x242   :  { %v9102_v21 = vld [vmem:[#allocation8 + $0x914] sm:$0xf]  ;;  %4896 = vmatpush.bf16.msrb.mxu1 %v7905_v58  ;;  %v7873_v28 = vor.u32 %v9182_v3, %v7870_v8  ;;  %4856 = vmatpush.bf16.msra.mxu2 %v7073_v26  ;;  %v1693_v8 = vperm.slane %v9826_v19, 3 }
 0x243   :  { %v7550_v18 = vld [vmem:[#allocation8 + $0x930] sm:$0xf0] }
 0x244   :  { %v8974_v25 = vld [vmem:[#allocation8 + $0x514] sm:$0xf]  ;;  %v7553_v29 = vor.u32 %v9102_v21, %v7550_v18  ;;  %4869 = vmatpush.bf16.msra.mxu3 %v7361_v27 }
 0x245   :  { %v7038_v5 = vld [vmem:[#allocation8 + $0x530] sm:$0xf0] }
 0x246   :  { %v9046_v31 = vld [vmem:[#allocation8 + $0x754] sm:$0xf]  ;;  %v7041_v50 = vor.u32 %v8974_v25, %v7038_v5  ;;  %4897 = vmatpush.bf16.msrb.mxu1 %v7873_v28  ;;  %4885 = vmatpush.bf16.msrb.mxu0 %v7553_v29  ;;  %v9864_v5 = vpop.f32.mrf.mxu3 }
 0x247   :  { %v7326_v6 = vld [vmem:[#allocation8 + $0x770] sm:$0xf0]  ;;  %10028 = vst [vmem:[#allocation22_spill] sm:$0xff] %v9864_v5 }
 0x248   :  { %v9174_v34 = vld [vmem:[#allocation8 + $0xb54] sm:$0xf]  ;;  %v7329_v43 = vor.u32 %v9046_v31, %v7326_v6  ;;  %4857 = vmatpush.bf16.msra.mxu2 %v7041_v50 }
 0x249   :  { %v7838_v37 = vld [vmem:[#allocation8 + $0xb70] sm:$0xf0] }
 0x24a   :  { %v9094_v39 = vld [vmem:[#allocation8 + $0x8d4] sm:$0xf]  ;;  %v7841_v1 = vor.u32 %v9174_v34, %v7838_v37  ;;  %4870 = vmatpush.bf16.msra.mxu3 %v7329_v43  ;;  %v4625_v43 = vpop.f32.mrf.mxu1 }
 0x24b   :  { %v7518_v4 = vld [vmem:[#allocation8 + $0x8f0] sm:$0xf0] }
 0x24c   :  { %v8966_v44 = vld [vmem:[#allocation8 + $0x4d4] sm:$0xf]  ;;  %v7521_v54 = vor.u32 %v9094_v39, %v7518_v4  ;;  %4898 = vmatpush.bf16.msrb.mxu1 %v7841_v1  ;;  %v4612_v4 = vadd.f32 %v4611_v30, %v1693_v8 }
 0x24d   :  { %v7006_v47 = vld [vmem:[#allocation8 + $0x4f0] sm:$0xf0] }
 0x24e   :  { %v9038_v55 = vld [vmem:[#allocation8 + $0x714] sm:$0xf]  ;;  %v7009_v21 = vor.u32 %v8966_v44, %v7006_v47  ;;  %4886 = vmatpush.bf16.msrb.mxu0 %v7521_v54  ;;  %v4583_v44 = vpop.f32.mrf.mxu2  ;;  %v9867_v54 = vadd.f32 %v4625_v43, %v4612_v4 }
 0x24f   :  { %v7294_v57 = vld [vmem:[#allocation8 + $0x730] sm:$0xf0]  ;;  %v4584_v1 = vadd.f32 %v4583_v44, %v9851_v56 }
 0x250   :  { %v9166_v58 = vld [vmem:[#allocation8 + $0xb14] sm:$0xf]  ;;  %v7297_v18 = vor.u32 %v9038_v55, %v7294_v57  ;;  %4858 = vmatpush.bf16.msra.mxu2 %v7009_v21 }
 0x251   :  { %v7806_v62 = vld [vmem:[#allocation8 + $0xb30] sm:$0xf0] }
 0x252   :  { %v9086_v2 = vld [vmem:[#allocation8 + $0x894] sm:$0xf]  ;;  %v7809_v28 = vor.u32 %v9166_v58, %v7806_v62  ;;  %4871 = vmatpush.bf16.msra.mxu3 %v7297_v18  ;;  %v6628_v18 = vld [vmem:[#allocation8 + $0x1d8] sm:$0xf]  ;;  %v4627_v7 = vpop.f32.mrf.mxu1 }
 0x253   :  { %v7486_v3 = vld [vmem:[#allocation8 + $0x8b0] sm:$0xf0] }
 0x254   :  { %v8958_v26 = vld [vmem:[#allocation8 + $0x494] sm:$0xf]  ;;  %v7489_v29 = vor.u32 %v9086_v2, %v7486_v3  ;;  %4899 = vmatpush.bf16.msrb.mxu1 %v7809_v28  ;;  %v4597_v28 = vpop.f32.mrf.mxu3 }
 0x255   :  { %v6974_v27 = vld [vmem:[#allocation8 + $0x4b0] sm:$0xf0]  ;;  %v9869_v33 = vadd.f32 %v4597_v28, %v4584_v1 }
 0x256   :  { %v9030_v25 = vld [vmem:[#allocation8 + $0x6d4] sm:$0xf]  ;;  %v6977_v50 = vor.u32 %v8958_v26, %v6974_v27  ;;  %4887 = vmatpush.bf16.msrb.mxu0 %v7489_v29 }
 0x257   :  { %v7262_v31 = vld [vmem:[#allocation8 + $0x6f0] sm:$0xf0]  ;;  %10029 = vst [vmem:[#allocation23_spill] sm:$0xff] %v9869_v33 }
 0x258   :  { %v9158_v6 = vld [vmem:[#allocation8 + $0xad4] sm:$0xf]  ;;  %v7265_v47 = vor.u32 %v9030_v25, %v7262_v31  ;;  %4859 = vmatpush.bf16.msra.mxu2 %v6977_v50  ;;  %v8875_v25 = vld [vmem:[#allocation8 + $0x1f4] sm:$0xf0]  ;;  %v4613_v31 = vpop.f32.mrf.mxu0 }
 0x259   :  { %v7774_v34 = vld [vmem:[#allocation8 + $0xaf0] sm:$0xf0]  ;;  %v6629_v50 = vor.u32 %v8875_v25, %v6628_v18  ;;  %v4614_v63 = vadd.f32 %v4613_v31, %v1693_v8 }
 0x25a   :  { %v9078_v37 = vld [vmem:[#allocation8 + $0x854] sm:$0xf]  ;;  %v7777_v55 = vor.u32 %v9158_v6, %v7774_v34  ;;  %4872 = vmatpush.bf16.msra.mxu3 %v7265_v47 }
 0x25b   :  { %v7454_v39 = vld [vmem:[#allocation8 + $0x870] sm:$0xf0] }
 0x25c   :  { %v8950_v57 = vld [vmem:[#allocation8 + $0x454] sm:$0xf]  ;;  %v7457_v58 = vor.u32 %v9078_v37, %v7454_v39  ;;  %4900 = vmatpush.bf16.msrb.mxu1 %v7777_v55 }
 0x25d   :  { %v9022_v62 = vld [vmem:[#allocation8 + $0x694] sm:$0xf]  ;;  %v6945_v27 = vor.u32 %v8950_v57, %v6942_v38 }
 0x25e   :  { %v7230_v2 = vld [vmem:[#allocation8 + $0x6b0] sm:$0xf0]  ;;  %4888 = vmatpush.bf16.msrb.mxu0 %v7457_v58 }
 0x25f   :  { %v9150_v3 = vld [vmem:[#allocation8 + $0xa94] sm:$0xf]  ;;  %v7233_v6 = vor.u32 %v9022_v62, %v7230_v2  ;;  %4860 = vmatpush.bf16.msra.mxu2 %v6945_v27  ;;  %v6596_v62 = vld [vmem:[#allocation8 + $0x198] sm:$0xf] }
 0x260   :  { %v7742_v30 = vld [vmem:[#allocation8 + $0xab0] sm:$0xf0]  ;;  %v8867_v2 = vld [vmem:[#allocation8 + $0x1b4] sm:$0xf0] }
 0x261   :  { %v9070_v21 = vld [vmem:[#allocation8 + $0x814] sm:$0xf]  ;;  %v7745_v29 = vor.u32 %v9150_v3, %v7742_v30  ;;  %4873 = vmatpush.bf16.msra.mxu3 %v7233_v6  ;;  %v6597_v8 = vor.u32 %v8867_v2, %v6596_v62  ;;  %v8939_v6 = vld [vmem:[#allocation8 + $0x3f4] sm:$0xf0] }
 0x262   :  { %v7422_v26 = vld [vmem:[#allocation8 + $0x830] sm:$0xf0]  ;;  %v6532_v62 = vld [vmem:[#allocation8 + $0x118] sm:$0xf] }
 0x263   :  { %v8942_v34 = vld [vmem:[#allocation8 + $0x414] sm:$0xf]  ;;  %v7425_v37 = vor.u32 %v9070_v21, %v7422_v26  ;;  %v9871_v21 = vadd.f32 %v4627_v7, %v4614_v63  ;;  %4901 = vmatpush.bf16.msrb.mxu1 %v7745_v29 }
 0x264   :  { %v6910_v56 = vld [vmem:[#allocation8 + $0x430] sm:$0xf0] }
 0x265   :  { %v9254_v4 = vld [vmem:[#allocation8 + $0xdd4] sm:$0xf]  ;;  %v6913_v47 = vor.u32 %v8942_v34, %v6910_v56  ;;  %4889 = vmatpush.bf16.msrb.mxu0 %v7425_v37  ;;  %v6884_v34 = vld [vmem:[#allocation8 + $0x3d8] sm:$0xf] }
 0x266   :  { %v8158_v39 = vld [vmem:[#allocation8 + $0xdf0] sm:$0xf0]  ;;  %v6564_v56 = vld [vmem:[#allocation8 + $0x158] sm:$0xf] }
 0x267   :  { %v9014_v44 = vld [vmem:[#allocation8 + $0x654] sm:$0xf]  ;;  %v8161_v55 = vor.u32 %v9254_v4, %v8158_v39  ;;  %4861 = vmatpush.bf16.msra.mxu2 %v6913_v47  ;;  %v8859_v4 = vld [vmem:[#allocation8 + $0x174] sm:$0xf0] }
 0x268   :  { %v7198_v43 = vld [vmem:[#allocation8 + $0x670] sm:$0xf0]  ;;  %4890 = vmatmul.bf16.vlgmr.msrb.gmra.mxu0 %v9733_v53  ;;  %v8931_v47 = vld [vmem:[#allocation8 + $0x3b4] sm:$0xf0] }
 0x269   :  { %v9142_v38 = vld [vmem:[#allocation8 + $0xa54] sm:$0xf]  ;;  %v7201_v5 = vor.u32 %v9014_v44, %v7198_v43  ;;  %4938 = vmatpush.bf16.msra.mxu0 %v6629_v50  ;;  %v6885_v44 = vor.u32 %v8939_v6, %v6884_v34  ;;  %v6565_v43 = vor.u32 %v8859_v4, %v6564_v56  ;;  %v9877_v6 = vpop.f32.mrf.mxu2 }
 0x26a   :  { %v7710_v57 = vld [vmem:[#allocation8 + $0xa70] sm:$0xf0]  ;;  %4862 = vmatmul.bf16.vlgmr.msra.gmra.mxu2 %v9725_v32 }
 0x26b   :  { %v9246_v58 = vld [vmem:[#allocation8 + $0xd94] sm:$0xf]  ;;  %v7713_v1 = vor.u32 %v9142_v38, %v7710_v57  ;;  %4910 = vmatpush.bf16.msrb.mxu2 %v8161_v55  ;;  %4874 = vmatpush.bf16.msra.mxu3 %v7201_v5  ;;  %v6852_v57 = vld [vmem:[#allocation8 + $0x398] sm:$0xf] }
 0x26c   :  { %v8126_v3 = vld [vmem:[#allocation8 + $0xdb0] sm:$0xf0]  ;;  %v8851_v5 = vld [vmem:[#allocation8 + $0x134] sm:$0xf0] }
 0x26d   :  { %v9006_v30 = vld [vmem:[#allocation8 + $0x614] sm:$0xf]  ;;  %v8129_v28 = vor.u32 %v9246_v58, %v8126_v3  ;;  %4902 = vmatpush.bf16.msrb.mxu1 %v7713_v1  ;;  %4939 = vmatpush.bf16.msra.mxu0 %v6597_v8  ;;  %v6533_v1 = vor.u32 %v8851_v5, %v6532_v62  ;;  %v8923_v8 = vld [vmem:[#allocation8 + $0x374] sm:$0xf0]  ;;  %v9879_v5 = vpop.f32.mrf.mxu3 }
 0x26e   :  { %v7166_v26 = vld [vmem:[#allocation8 + $0x630] sm:$0xf0]  ;;  %10030 = vst [vmem:[#allocation24_spill] sm:$0xff] %v9879_v5 }
 0x26f   :  { %v9134_v18 = vld [vmem:[#allocation8 + $0xa14] sm:$0xf]  ;;  %v7169_v7 = vor.u32 %v9006_v30, %v7166_v26  ;;  %4911 = vmatpush.bf16.msrb.mxu2 %v8129_v28  ;;  %v6853_v30 = vor.u32 %v8931_v47, %v6852_v57 }
 0x270   :  { %v7678_v25 = vld [vmem:[#allocation8 + $0xa30] sm:$0xf0] }
 0x271   :  { %v9318_v27 = vld [vmem:[#allocation8 + $0xfd4] sm:$0xf]  ;;  %v7681_v63 = vor.u32 %v9134_v18, %v7678_v25  ;;  %4875 = vmatpush.bf16.msra.mxu3 %v7169_v7  ;;  %4940 = vmatpush.bf16.msra.mxu0 %v6565_v43  ;;  %v6820_v25 = vld [vmem:[#allocation8 + $0x358] sm:$0xf] }
 0x272   :  { %v8414_v31 = vld [vmem:[#allocation8 + $0xff0] sm:$0xf0]  ;;  %v6821_v7 = vor.u32 %v8923_v8, %v6820_v25  ;;  %v6468_v43 = vld [vmem:[#allocation8 + $0x98] sm:$0xf]  ;;  %v4639_v8 = vpop.f32.mrf.mxu2 }
 0x273   :  { %v8417_v29 = vor.u32 %v9318_v27, %v8414_v31  ;;  %v9238_v37 = vld [vmem:[#allocation8 + $0xd54] sm:$0xf]  ;;  %4903 = vmatpush.bf16.msrb.mxu1 %v7681_v63  ;;  %v6500_v27 = vld [vmem:[#allocation8 + $0xd8] sm:$0xf] }
 0x274   :  { %v8094_v39 = vld [vmem:[#allocation8 + $0xd70] sm:$0xf0]  ;;  %4876 = vmatmul.bf16.vlgmr.msra.gmra.mxu3 %v9728_v59  ;;  %v8843_v31 = vld [vmem:[#allocation8 + $0xf4] sm:$0xf0] }
 0x275   :  { %v9310_v50 = vld [vmem:[#allocation8 + $0xf94] sm:$0xf]  ;;  %v8097_v2 = vor.u32 %v9238_v37, %v8094_v39  ;;  %4924 = vmatpush.bf16.msrb.mxu3 %v8417_v29  ;;  %4941 = vmatpush.bf16.msra.mxu0 %v6533_v1  ;;  %v6501_v63 = vor.u32 %v8843_v31, %v6500_v27  ;;  %v6788_v39 = vld [vmem:[#allocation8 + $0x318] sm:$0xf] }
 0x276   :  { %v8382_v38 = vld [vmem:[#allocation8 + $0xfb0] sm:$0xf0]  ;;  %4904 = vmatmul.bf16.vlgmr.msrb.gmra.mxu1 %v9736_v13  ;;  %v8907_v1 = vld [vmem:[#allocation8 + $0x2f4] sm:$0xf0] }
 0x277   :  { %v8385_v55 = vor.u32 %v9310_v50, %v8382_v38  ;;  %v9230_v58 = vld [vmem:[#allocation8 + $0xd14] sm:$0xf]  ;;  %4952 = vmatpush.bf16.msra.mxu1 %v6885_v44  ;;  %4912 = vmatpush.bf16.msrb.mxu2 %v8097_v2  ;;  %v8915_v44 = vld [vmem:[#allocation8 + $0x334] sm:$0xf0] }
 0x278   :  { %v8062_v3 = vld [vmem:[#allocation8 + $0xd30] sm:$0xf0]  ;;  %v8835_v50 = vld [vmem:[#allocation8 + $0xb4] sm:$0xf0]  ;;  %v6789_v2 = vor.u32 %v8915_v44, %v6788_v39 }
 0x279   :  { %v9302_v26 = vld [vmem:[#allocation8 + $0xf54] sm:$0xf]  ;;  %v8065_v34 = vor.u32 %v9230_v58, %v8062_v3  ;;  %4925 = vmatpush.bf16.msrb.mxu3 %v8385_v55  ;;  %4942 = vmatpush.bf16.msra.mxu0 %v6501_v63  ;;  %v6469_v55 = vor.u32 %v8835_v50, %v6468_v43  ;;  %v6404_v39 = vld [vmem:[#allocation8 + $0x18] sm:$0xf] }
 0x27a   :  { %v8350_v18 = vld [vmem:[#allocation8 + $0xf70] sm:$0xf0]  ;;  %v8819_v44 = vld [vmem:[#allocation8 + $0x34] sm:$0xf0]  ;;  %v4641_v33 = vpop.f32.mrf.mxu2 }
 0x27b   :  { %v8353_v56 = vor.u32 %v9302_v26, %v8350_v18  ;;  %v9222_v4 = vld [vmem:[#allocation8 + $0xcd4] sm:$0xf]  ;;  %4953 = vmatpush.bf16.msra.mxu1 %v6853_v30  ;;  %4913 = vmatpush.bf16.msrb.mxu2 %v8065_v34  ;;  %v6756_v30 = vld [vmem:[#allocation8 + $0x2d8] sm:$0xf] }
 0x27c   :  { %v8030_v28 = vld [vmem:[#allocation8 + $0xcf0] sm:$0xf0]  ;;  %v6436_v26 = vld [vmem:[#allocation8 + $0x58] sm:$0xf] }
 0x27d   :  { %v9294_v29 = vld [vmem:[#allocation8 + $0xf14] sm:$0xf]  ;;  %v8033_v38 = vor.u32 %v9222_v4, %v8030_v28  ;;  %4926 = vmatpush.bf16.msrb.mxu3 %v8353_v56  ;;  %v8827_v18 = vld [vmem:[#allocation8 + $0x74] sm:$0xf0]  ;;  %v4640_v56 = vadd.f32 %v4639_v8, %v9867_v54  ;;  %4943 = vmatpush.bf16.msra.mxu0 %v6469_v55  ;;  %v6757_v4 = vor.u32 %v8907_v1, %v6756_v30  ;;  %v4653_v54 = vpop.f32.mrf.mxu3 }
 0x27e   :  { %v8318_v37 = vld [vmem:[#allocation8 + $0xf30] sm:$0xf0]  ;;  %v6437_v28 = vor.u32 %v8827_v18, %v6436_v26  ;;  %v7652_v50 = vld [vmem:[#allocation8 + $0x9d8] sm:$0xf]  ;;  %v6405_v55 = vor.u32 %v8819_v44, %v6404_v39  ;;  %v4681_v39 = vpop.f32.mrf.mxu1  ;;  %v4642_v44 = vadd.f32 %v4641_v33, %v9871_v21 }
 0x27f   :  { %v8321_v57 = vor.u32 %v9294_v29, %v8318_v37  ;;  %v9214_v47 = vld [vmem:[#allocation8 + $0xc94] sm:$0xf]  ;;  %4954 = vmatpush.bf16.msra.mxu1 %v6821_v7  ;;  %4914 = vmatpush.bf16.msrb.mxu2 %v8033_v38  ;;  %v6724_v29 = vld [vmem:[#allocation8 + $0x298] sm:$0xf]  ;;  %v4654_v26 = vadd.f32 %v4653_v54, %v4640_v56 }
 0x280   :  { %v7998_v62 = vld [vmem:[#allocation8 + $0xcb0] sm:$0xf0]  ;;  %v8899_v37 = vld [vmem:[#allocation8 + $0x2b4] sm:$0xf0] }
 0x281   :  { %v9286_v58 = vld [vmem:[#allocation8 + $0xed4] sm:$0xf]  ;;  %v8001_v25 = vor.u32 %v9214_v47, %v7998_v62  ;;  %4927 = vmatpush.bf16.msrb.mxu3 %v8321_v57  ;;  %v9131_v38 = vld [vmem:[#allocation8 + $0x9f4] sm:$0xf0]  ;;  %4944 = vmatpush.bf16.msra.mxu0 %v6437_v28 }
 0x282   :  { %v8286_v3 = vld [vmem:[#allocation8 + $0xef0] sm:$0xf0]  ;;  %v7653_v18 = vor.u32 %v9131_v38, %v7652_v50  ;;  %v6692_v8 = vld [vmem:[#allocation8 + $0x258] sm:$0xf] }
 0x283   :  { %v8289_v27 = vor.u32 %v9286_v58, %v8286_v3  ;;  %v9206_v31 = vld [vmem:[#allocation8 + $0xc54] sm:$0xf]  ;;  %4955 = vmatpush.bf16.msra.mxu1 %v6789_v2  ;;  %4915 = vmatpush.bf16.msrb.mxu2 %v8001_v25  ;;  %v7140_v58 = vld [vmem:[#allocation8 + $0x5d8] sm:$0xf]  ;;  %v6725_v2 = vor.u32 %v8899_v37, %v6724_v29 }
 0x284   :  { %v7966_v34 = vld [vmem:[#allocation8 + $0xc70] sm:$0xf0]  ;;  %v9003_v3 = vld [vmem:[#allocation8 + $0x5f4] sm:$0xf0] }
 0x285   :  { %v9278_v7 = vld [vmem:[#allocation8 + $0xe94] sm:$0xf]  ;;  %v7969_v43 = vor.u32 %v9206_v31, %v7966_v34  ;;  %4928 = vmatpush.bf16.msrb.mxu3 %v8289_v27  ;;  %v8891_v25 = vld [vmem:[#allocation8 + $0x274] sm:$0xf0]  ;;  %v4667_v31 = vpop.f32.mrf.mxu0  ;;  %4945 = vmatpush.bf16.msra.mxu0 %v6405_v55 }
 0x286   :  { %v8254_v63 = vld [vmem:[#allocation8 + $0xeb0] sm:$0xf0]  ;;  %v7620_v27 = vld [vmem:[#allocation8 + $0x998] sm:$0xf]  ;;  %v6693_v56 = vor.u32 %v8891_v25, %v6692_v8 }
 0x287   :  { %v8257_v57 = vor.u32 %v9278_v7, %v8254_v63  ;;  %v9198_v47 = vld [vmem:[#allocation8 + $0xc14] sm:$0xf]  ;;  %4956 = vmatpush.bf16.msra.mxu1 %v6757_v4  ;;  %4916 = vmatpush.bf16.msrb.mxu2 %v7969_v43  ;;  %v9123_v7 = vld [vmem:[#allocation8 + $0x9b4] sm:$0xf0]  ;;  %v4668_v63 = vadd.f32 %v4667_v31, %v4654_v26  ;;  %v7141_v4 = vor.u32 %v9003_v3, %v7140_v58 }
 0x288   :  { %v7934_v62 = vld [vmem:[#allocation8 + $0xc30] sm:$0xf0]  ;;  %v7108_v28 = vld [vmem:[#allocation8 + $0x598] sm:$0xf]  ;;  %4946 = vmatmul.bf16.vlgmr.msra.gmra.mxu0 %v9717_v41 }
 0x289   :  { %v9270_v30 = vld [vmem:[#allocation8 + $0xe54] sm:$0xf]  ;;  %v7937_v34 = vor.u32 %v9198_v47, %v7934_v62  ;;  %4929 = vmatpush.bf16.msrb.mxu3 %v8257_v57  ;;  %v8995_v29 = vld [vmem:[#allocation8 + $0x5b4] sm:$0xf0]  ;;  %4994 = vmatpush.bf16.msrb.mxu0 %v7653_v18  ;;  %v7621_v47 = vor.u32 %v9123_v7, %v7620_v27  ;;  %v9883_v57 = vadd.f32 %v4681_v39, %v4668_v63 }
 0x28a   :  { %v8222_v1 = vld [vmem:[#allocation8 + $0xe70] sm:$0xf0]  ;;  %v6660_v38 = vld [vmem:[#allocation8 + $0x218] sm:$0xf]  ;;  %v7109_v33 = vor.u32 %v8995_v29, %v7108_v28 }
 0x28b   :  { %v8225_v5 = vor.u32 %v9270_v30, %v8222_v1  ;;  %v9262_v37 = vld [vmem:[#allocation8 + $0xe14] sm:$0xf]  ;;  %4957 = vmatpush.bf16.msra.mxu1 %v6725_v2  ;;  %v8883_v43 = vld [vmem:[#allocation8 + $0x234] sm:$0xf0]  ;;  %4917 = vmatpush.bf16.msrb.mxu2 %v7937_v34  ;;  %v4655_v2 = vpop.f32.mrf.mxu3 }
 0x28c   :  { %v8190_v50 = vld [vmem:[#allocation8 + $0xe30] sm:$0xf0]  ;;  %v7396_v62 = vld [vmem:[#allocation8 + $0x7d8] sm:$0xf]  ;;  %v6661_v55 = vor.u32 %v8883_v43, %v6660_v38  ;;  %v9886_v25 = vadd.f32 %v4655_v2, %v4642_v44 }
 0x28d   :  { %v9067_v54 = vld [vmem:[#allocation8 + $0x7f4] sm:$0xf0]  ;;  %4930 = vmatpush.bf16.msrb.mxu3 %v8225_v5  ;;  %v8193_v21 = vor.u32 %v9262_v37, %v8190_v50  ;;  %4995 = vmatpush.bf16.msrb.mxu0 %v7621_v47 }
 0x28e   :  { %v7908_v26 = vld [vmem:[#allocation8 + $0xbd8] sm:$0xf]  ;;  %v7397_v1 = vor.u32 %v9067_v54, %v7396_v62  ;;  %4918 = vmatmul.bf16.vlgmr.msrb.gmra.mxu2 %v9743_v10 }
 0x28f   :  { %v9195_v58 = vld [vmem:[#allocation8 + $0xbf4] sm:$0xf0]  ;;  %4966 = vmatpush.bf16.msra.mxu2 %v7141_v4  ;;  %4958 = vmatpush.bf16.msra.mxu1 %v6693_v56 }
 0x290   :  { %v7588_v3 = vld [vmem:[#allocation8 + $0x958] sm:$0xf]  ;;  %v7909_v31 = vor.u32 %v9195_v58, %v7908_v26 }
 0x291   :  { %v9115_v30 = vld [vmem:[#allocation8 + $0x974] sm:$0xf0]  ;;  %4931 = vmatpush.bf16.msrb.mxu3 %v8193_v21 }
 0x292   :  { %v7076_v18 = vld [vmem:[#allocation8 + $0x558] sm:$0xf]  ;;  %v7589_v34 = vor.u32 %v9115_v30, %v7588_v3 }
 0x293   :  { %v8987_v8 = vld [vmem:[#allocation8 + $0x574] sm:$0xf0]  ;;  %4967 = vmatpush.bf16.msra.mxu2 %v7109_v33  ;;  %4959 = vmatpush.bf16.msra.mxu1 %v6661_v55 }
 0x294   :  { %v7364_v27 = vld [vmem:[#allocation8 + $0x798] sm:$0xf]  ;;  %v7077_v29 = vor.u32 %v8987_v8, %v7076_v18  ;;  %4996 = vmatpush.bf16.msrb.mxu0 %v7589_v34  ;;  %4932 = vmatmul.bf16.vlgmr.msrb.gmra.mxu3 %v9747_v42 }
 0x295   :  { %v9059_v7 = vld [vmem:[#allocation8 + $0x7b4] sm:$0xf0]  ;;  %4980 = vmatpush.bf16.msra.mxu3 %v7397_v1 }
 0x296   :  { %v7876_v5 = vld [vmem:[#allocation8 + $0xb98] sm:$0xf]  ;;  %v7365_v37 = vor.u32 %v9059_v7, %v7364_v27  ;;  %4960 = vmatmul.bf16.vlgmr.msra.gmra.mxu1 %v9720_v0 }
 0x297   :  { %v9187_v63 = vld [vmem:[#allocation8 + $0xbb4] sm:$0xf0]  ;;  %5008 = vmatpush.bf16.msrb.mxu1 %v7909_v31  ;;  %4968 = vmatpush.bf16.msra.mxu2 %v7077_v29 }
 0x298   :  { %v7556_v4 = vld [vmem:[#allocation8 + $0x918] sm:$0xf]  ;;  %v7877_v56 = vor.u32 %v9187_v63, %v7876_v5 }
 0x299   :  { %v9107_v28 = vld [vmem:[#allocation8 + $0x934] sm:$0xf0]  ;;  %4981 = vmatpush.bf16.msra.mxu3 %v7365_v37 }
 0x29a   :  { %v7044_v39 = vld [vmem:[#allocation8 + $0x518] sm:$0xf]  ;;  %v7557_v50 = vor.u32 %v9107_v28, %v7556_v4 }
 0x29b   :  { %v8979_v44 = vld [vmem:[#allocation8 + $0x534] sm:$0xf0]  ;;  %5009 = vmatpush.bf16.msrb.mxu1 %v7877_v56 }
 0x29c   :  { %v7332_v38 = vld [vmem:[#allocation8 + $0x758] sm:$0xf]  ;;  %v7045_v58 = vor.u32 %v8979_v44, %v7044_v39  ;;  %4997 = vmatpush.bf16.msrb.mxu0 %v7557_v50 }
 0x29d   :  { %v9051_v43 = vld [vmem:[#allocation8 + $0x774] sm:$0xf0] }
 0x29e   :  { %v7844_v47 = vld [vmem:[#allocation8 + $0xb58] sm:$0xf]  ;;  %v7333_v3 = vor.u32 %v9051_v43, %v7332_v38  ;;  %4969 = vmatpush.bf16.msra.mxu2 %v7045_v58  ;;  %v4695_v43 = vpop.f32.mrf.mxu2 }
 0x29f   :  { %v9179_v62 = vld [vmem:[#allocation8 + $0xb74] sm:$0xf0] }
 0x2a0   :  { %v7524_v54 = vld [vmem:[#allocation8 + $0x8d8] sm:$0xf]  ;;  %v7845_v21 = vor.u32 %v9179_v62, %v7844_v47  ;;  %4982 = vmatpush.bf16.msra.mxu3 %v7333_v3 }
 0x2a1   :  { %v9099_v26 = vld [vmem:[#allocation8 + $0x8f4] sm:$0xf0] }
 0x2a2   :  { %v7012_v30 = vld [vmem:[#allocation8 + $0x4d8] sm:$0xf]  ;;  %v7525_v2 = vor.u32 %v9099_v26, %v7524_v54  ;;  %5010 = vmatpush.bf16.msrb.mxu1 %v7845_v21  ;;  %v4696_v26 = vadd.f32 %v4695_v43, %v9883_v57  ;;  %v4669_v57 = vpop.f32.mrf.mxu0 }
 0x2a3   :  { %v8971_v33 = vld [vmem:[#allocation8 + $0x4f4] sm:$0xf0] }
 0x2a4   :  { %v7300_v55 = vld [vmem:[#allocation8 + $0x718] sm:$0xf]  ;;  %v7013_v27 = vor.u32 %v8971_v33, %v7012_v30  ;;  %4998 = vmatpush.bf16.msrb.mxu0 %v7525_v2 }
 0x2a5   :  { %v9043_v1 = vld [vmem:[#allocation8 + $0x734] sm:$0xf0] }
 0x2a6   :  { %v7812_v18 = vld [vmem:[#allocation8 + $0xb18] sm:$0xf]  ;;  %v7301_v7 = vor.u32 %v9043_v1, %v7300_v55  ;;  %4970 = vmatpush.bf16.msra.mxu2 %v7013_v27 }
 0x2a7   :  { %v9171_v8 = vld [vmem:[#allocation8 + $0xb34] sm:$0xf0] }
 0x2a8   :  { %v7492_v31 = vld [vmem:[#allocation8 + $0x898] sm:$0xf]  ;;  %v7813_v4 = vor.u32 %v9171_v8, %v7812_v18  ;;  %4983 = vmatpush.bf16.msra.mxu3 %v7301_v7  ;;  %v8871_v8 = vld [vmem:[#allocation8 + $0x1dc] sm:$0xf] }
 0x2a9   :  { %v9091_v34 = vld [vmem:[#allocation8 + $0x8b4] sm:$0xf0] }
 0x2aa   :  { %v6980_v5 = vld [vmem:[#allocation8 + $0x498] sm:$0xf]  ;;  %v7493_v28 = vor.u32 %v9091_v34, %v7492_v31  ;;  %5011 = vmatpush.bf16.msrb.mxu1 %v7813_v4  ;;  %v6630_v31 = vld [vmem:[#allocation8 + $0x1f8] sm:$0xf0] }
 0x2ab   :  { %v8963_v63 = vld [vmem:[#allocation8 + $0x4b4] sm:$0xf0] }
 0x2ac   :  { %v7268_v29 = vld [vmem:[#allocation8 + $0x6d8] sm:$0xf]  ;;  %v6981_v38 = vor.u32 %v8963_v63, %v6980_v5  ;;  %4999 = vmatpush.bf16.msrb.mxu0 %v7493_v28  ;;  %v4709_v63 = vpop.f32.mrf.mxu3 }
 0x2ad   :  { %v9035_v37 = vld [vmem:[#allocation8 + $0x6f4] sm:$0xf0] }
 0x2ae   :  { %v7780_v39 = vld [vmem:[#allocation8 + $0xad8] sm:$0xf]  ;;  %v7269_v47 = vor.u32 %v9035_v37, %v7268_v29  ;;  %4971 = vmatpush.bf16.msra.mxu2 %v6981_v38 }
 0x2af   :  { %v9163_v44 = vld [vmem:[#allocation8 + $0xaf4] sm:$0xf0] }
 0x2b0   :  { %v7460_v56 = vld [vmem:[#allocation8 + $0x858] sm:$0xf]  ;;  %v7781_v58 = vor.u32 %v9163_v44, %v7780_v39  ;;  %4984 = vmatpush.bf16.msra.mxu3 %v7269_v47  ;;  %v4670_v44 = vadd.f32 %v4669_v57, %v9886_v25  ;;  %v8935_v57 = vld [vmem:[#allocation8 + $0x3dc] sm:$0xf] }
 0x2b1   :  { %v9083_v50 = vld [vmem:[#allocation8 + $0x874] sm:$0xf0] }
 0x2b2   :  { %v6948_v62 = vld [vmem:[#allocation8 + $0x458] sm:$0xf]  ;;  %v7461_v3 = vor.u32 %v9083_v50, %v7460_v56  ;;  %5012 = vmatpush.bf16.msrb.mxu1 %v7781_v58  ;;  %v9893_v56 = vadd.f32 %v4709_v63, %v4696_v26  ;;  %v6633_v50 = vor.u32 %v8871_v8, %v6630_v31  ;;  %v6566_v63 = vld [vmem:[#allocation8 + $0x178] sm:$0xf0] }
 0x2b3   :  { %v8955_v54 = vld [vmem:[#allocation8 + $0x474] sm:$0xf0] }
 0x2b4   :  { %v7236_v30 = vld [vmem:[#allocation8 + $0x698] sm:$0xf]  ;;  %v6949_v18 = vor.u32 %v8955_v54, %v6948_v62  ;;  %5000 = vmatpush.bf16.msrb.mxu0 %v7461_v3  ;;  %v8863_v62 = vld [vmem:[#allocation8 + $0x19c] sm:$0xf] }
 0x2b5   :  { %v9027_v33 = vld [vmem:[#allocation8 + $0x6b4] sm:$0xf0]  ;;  %v6598_v54 = vld [vmem:[#allocation8 + $0x1b8] sm:$0xf0] }
 0x2b6   :  { %v7748_v21 = vld [vmem:[#allocation8 + $0xa98] sm:$0xf]  ;;  %v7237_v34 = vor.u32 %v9027_v33, %v7236_v30  ;;  %4972 = vmatpush.bf16.msra.mxu2 %v6949_v18  ;;  %v6601_v18 = vor.u32 %v8863_v62, %v6598_v54 }
 0x2b7   :  { %v9155_v2 = vld [vmem:[#allocation8 + $0xab4] sm:$0xf0] }
 0x2b8   :  { %v7428_v55 = vld [vmem:[#allocation8 + $0x818] sm:$0xf]  ;;  %v7749_v4 = vor.u32 %v9155_v2, %v7748_v21  ;;  %4985 = vmatpush.bf16.msra.mxu3 %v7237_v34  ;;  %v4683_v2 = vpop.f32.mrf.mxu1  ;;  %v6886_v34 = vld [vmem:[#allocation8 + $0x3f8] sm:$0xf0] }
 0x2b9   :  { %v9075_v1 = vld [vmem:[#allocation8 + $0x834] sm:$0xf0]  ;;  %v4684_v31 = vadd.f32 %v4683_v2, %v4670_v44 }
 0x2ba   :  { %v6916_v27 = vld [vmem:[#allocation8 + $0x418] sm:$0xf]  ;;  %v7429_v28 = vor.u32 %v9075_v1, %v7428_v55  ;;  %v4697_v55 = vpop.f32.mrf.mxu2  ;;  %5013 = vmatpush.bf16.msrb.mxu1 %v7749_v4 }
 0x2bb   :  { %v8947_v7 = vld [vmem:[#allocation8 + $0x434] sm:$0xf0] }
 0x2bc   :  { %v8164_v5 = vld [vmem:[#allocation8 + $0xdd8] sm:$0xf]  ;;  %v6917_v47 = vor.u32 %v8947_v7, %v6916_v27  ;;  %5001 = vmatpush.bf16.msrb.mxu0 %v7429_v28  ;;  %v4711_v28 = vpop.f32.mrf.mxu3 }
 0x2bd   :  { %v9259_v29 = vld [vmem:[#allocation8 + $0xdf4] sm:$0xf0] }
 0x2be   :  { %v7204_v37 = vld [vmem:[#allocation8 + $0x658] sm:$0xf]  ;;  %v8165_v58 = vor.u32 %v9259_v29, %v8164_v5  ;;  %4973 = vmatpush.bf16.msra.mxu2 %v6917_v47  ;;  %v8855_v5 = vld [vmem:[#allocation8 + $0x15c] sm:$0xf]  ;;  %v4698_v29 = vadd.f32 %v4697_v55, %v4684_v31  ;;  %v6889_v47 = vor.u32 %v8935_v57, %v6886_v34 }
 0x2bf   :  { %v9019_v39 = vld [vmem:[#allocation8 + $0x674] sm:$0xf0]  ;;  %5002 = vmatmul.bf16.vlgmr.msrb.gmra.mxu0 %v9733_v53  ;;  %v6569_v62 = vor.u32 %v8855_v5, %v6566_v63  ;;  %v8919_v34 = vld [vmem:[#allocation8 + $0x35c] sm:$0xf] }
 0x2c0   :  { %v7716_v38 = vld [vmem:[#allocation8 + $0xa58] sm:$0xf]  ;;  %v7205_v30 = vor.u32 %v9019_v39, %v7204_v37  ;;  %5050 = vmatpush.bf16.msra.mxu0 %v6633_v50  ;;  %v8839_v5 = vld [vmem:[#allocation8 + $0xdc] sm:$0xf] }
 0x2c1   :  { %v9147_v43 = vld [vmem:[#allocation8 + $0xa74] sm:$0xf0]  ;;  %4974 = vmatmul.bf16.vlgmr.msra.gmra.mxu2 %v9725_v32  ;;  %v6502_v63 = vld [vmem:[#allocation8 + $0xf8] sm:$0xf0] }
 0x2c2   :  { %v8132_v3 = vld [vmem:[#allocation8 + $0xd98] sm:$0xf]  ;;  %v7717_v25 = vor.u32 %v9147_v43, %v7716_v38  ;;  %5022 = vmatpush.bf16.msrb.mxu2 %v8165_v58  ;;  %4986 = vmatpush.bf16.msra.mxu3 %v7205_v30  ;;  %v4712_v43 = vadd.f32 %v4711_v28, %v4698_v29  ;;  %v8927_v58 = vld [vmem:[#allocation8 + $0x39c] sm:$0xf] }
 0x2c3   :  { %v9251_v33 = vld [vmem:[#allocation8 + $0xdb4] sm:$0xf0]  ;;  %v6854_v30 = vld [vmem:[#allocation8 + $0x3b8] sm:$0xf0] }
 0x2c4   :  { %v7172_v21 = vld [vmem:[#allocation8 + $0x618] sm:$0xf]  ;;  %v8133_v37 = vor.u32 %v9251_v33, %v8132_v3  ;;  %5014 = vmatpush.bf16.msrb.mxu1 %v7717_v25  ;;  %5051 = vmatpush.bf16.msra.mxu0 %v6601_v18  ;;  %v8847_v3 = vld [vmem:[#allocation8 + $0x11c] sm:$0xf]  ;;  %v5173_v55 = vmax.f32 %v4712_v43, 0.0  ;;  %v6857_v18 = vor.u32 %v8927_v58, %v6854_v30 }
 0x2c5   :  { %v9011_v26 = vld [vmem:[#allocation8 + $0x634] sm:$0xf0]  ;;  %v6534_v33 = vld [vmem:[#allocation8 + $0x138] sm:$0xf0] }
 0x2c6   :  { %v7684_v1 = vld [vmem:[#allocation8 + $0xa18] sm:$0xf]  ;;  %v7173_v4 = vor.u32 %v9011_v26, %v7172_v21  ;;  %v5165_v21 = vmax.f32 %v9893_v56, 0.0  ;;  %5023 = vmatpush.bf16.msrb.mxu2 %v8133_v37  ;;  %v6822_v56 = vld [vmem:[#allocation8 + $0x378] sm:$0xf0] }
 0x2c7   :  { %v9139_v8 = vld [vmem:[#allocation8 + $0xa34] sm:$0xf0]  ;;  %v8911_v43 = vld [vmem:[#allocation8 + $0x31c] sm:$0xf] }
 0x2c8   :  { %v8420_v27 = vld [vmem:[#allocation8 + $0xfd8] sm:$0xf]  ;;  %v7685_v39 = vor.u32 %v9139_v8, %v7684_v1  ;;  %4987 = vmatpush.bf16.msra.mxu3 %v7173_v4  ;;  %v9898_v31 = vpack.c.bf16 %v5173_v55, %v5165_v21  ;;  %5052 = vmatpush.bf16.msra.mxu0 %v6569_v62  ;;  %v8831_v62 = vld [vmem:[#allocation8 + $0x9c] sm:$0xf] }
 0x2c9   :  { %v9323_v7 = vld [vmem:[#allocation8 + $0xff4] sm:$0xf0] }
 0x2ca   :  { %v8421_v44 = vor.u32 %v9323_v7, %v8420_v27  ;;  %v8100_v50 = vld [vmem:[#allocation8 + $0xd58] sm:$0xf]  ;;  %5015 = vmatpush.bf16.msrb.mxu1 %v7685_v39  ;;  %v6537_v27 = vor.u32 %v8847_v3, %v6534_v33  ;;  %v6825_v39 = vor.u32 %v8919_v34, %v6822_v56 }
 0x2cb   :  { %v9243_v38 = vld [vmem:[#allocation8 + $0xd74] sm:$0xf0]  ;;  %4988 = vmatmul.bf16.vlgmr.msra.gmra.mxu3 %v9728_v59 }
 0x2cc   :  { %v8388_v54 = vld [vmem:[#allocation8 + $0xf98] sm:$0xf]  ;;  %v8101_v25 = vor.u32 %v9243_v38, %v8100_v50  ;;  %5036 = vmatpush.bf16.msrb.mxu3 %v8421_v44  ;;  %5053 = vmatpush.bf16.msra.mxu0 %v6537_v27  ;;  %v6505_v44 = vor.u32 %v8839_v5, %v6502_v63 }
 0x2cd   :  { %v9315_v2 = vld [vmem:[#allocation8 + $0xfb4] sm:$0xf0]  ;;  %5016 = vmatmul.bf16.vlgmr.msrb.gmra.mxu1 %v9736_v13 }
 0x2ce   :  { %v8389_v26 = vor.u32 %v9315_v2, %v8388_v54  ;;  %v8068_v1 = vld [vmem:[#allocation8 + $0xd18] sm:$0xf]  ;;  %5064 = vmatpush.bf16.msra.mxu1 %v6889_v47  ;;  %5024 = vmatpush.bf16.msrb.mxu2 %v8101_v25  ;;  %v6790_v47 = vld [vmem:[#allocation8 + $0x338] sm:$0xf0] }
 0x2cf   :  { %v9235_v8 = vld [vmem:[#allocation8 + $0xd34] sm:$0xf0]  ;;  %v6470_v54 = vld [vmem:[#allocation8 + $0xb8] sm:$0xf0]  ;;  %v6793_v33 = vor.u32 %v8911_v43, %v6790_v47 }
 0x2d0   :  { %v8356_v7 = vld [vmem:[#allocation8 + $0xf58] sm:$0xf]  ;;  %v8069_v29 = vor.u32 %v9235_v8, %v8068_v1  ;;  %5037 = vmatpush.bf16.msrb.mxu3 %v8389_v26  ;;  %5054 = vmatpush.bf16.msra.mxu0 %v6505_v44  ;;  %v6473_v21 = vor.u32 %v8831_v62, %v6470_v54  ;;  %v8903_v26 = vld [vmem:[#allocation8 + $0x2dc] sm:$0xf] }
 0x2d1   :  { %v9307_v57 = vld [vmem:[#allocation8 + $0xf74] sm:$0xf0]  ;;  %v6758_v1 = vld [vmem:[#allocation8 + $0x2f8] sm:$0xf0] }
 0x2d2   :  { %v8357_v37 = vor.u32 %v9307_v57, %v8356_v7  ;;  %v8036_v4 = vld [vmem:[#allocation8 + $0xcd8] sm:$0xf]  ;;  %5065 = vmatpush.bf16.msra.mxu1 %v6857_v18  ;;  %5025 = vmatpush.bf16.msrb.mxu2 %v8069_v29  ;;  %v8823_v8 = vld [vmem:[#allocation8 + $0x5c] sm:$0xf]  ;;  %v6761_v56 = vor.u32 %v8903_v26, %v6758_v1 }
 0x2d3   :  { %v9227_v28 = vld [vmem:[#allocation8 + $0xcf4] sm:$0xf0]  ;;  %v6438_v18 = vld [vmem:[#allocation8 + $0x78] sm:$0xf0] }
 0x2d4   :  { %v8324_v50 = vld [vmem:[#allocation8 + $0xf18] sm:$0xf]  ;;  %v8037_v2 = vor.u32 %v9227_v28, %v8036_v4  ;;  %5038 = vmatpush.bf16.msrb.mxu3 %v8357_v37  ;;  %5055 = vmatpush.bf16.msra.mxu0 %v6473_v21  ;;  %v6441_v5 = vor.u32 %v8823_v8, %v6438_v18  ;;  %v8895_v37 = vld [vmem:[#allocation8 + $0x29c] sm:$0xf] }
 0x2d5   :  { %v9299_v38 = vld [vmem:[#allocation8 + $0xf34] sm:$0xf0]  ;;  %v6726_v4 = vld [vmem:[#allocation8 + $0x2b8] sm:$0xf0] }
 0x2d6   :  { %v8325_v58 = vor.u32 %v9299_v38, %v8324_v50  ;;  %v8004_v30 = vld [vmem:[#allocation8 + $0xc98] sm:$0xf]  ;;  %5066 = vmatpush.bf16.msra.mxu1 %v6825_v39  ;;  %5026 = vmatpush.bf16.msrb.mxu2 %v8037_v2  ;;  %v8815_v28 = vld [vmem:[#allocation8 + $0x1c] sm:$0xf]  ;;  %v6729_v2 = vor.u32 %v8895_v37, %v6726_v4 }
 0x2d7   :  { %v9219_v3 = vld [vmem:[#allocation8 + $0xcb4] sm:$0xf0]  ;;  %v6406_v39 = vld [vmem:[#allocation8 + $0x38] sm:$0xf0] }
 0x2d8   :  { %v8292_v55 = vld [vmem:[#allocation8 + $0xed8] sm:$0xf]  ;;  %v8005_v27 = vor.u32 %v9219_v3, %v8004_v30  ;;  %5039 = vmatpush.bf16.msrb.mxu3 %v8325_v58  ;;  %v9127_v50 = vld [vmem:[#allocation8 + $0x9dc] sm:$0xf]  ;;  %5056 = vmatpush.bf16.msra.mxu0 %v6441_v5  ;;  %v6409_v58 = vor.u32 %v8815_v28, %v6406_v39 }
 0x2d9   :  { %v9291_v25 = vld [vmem:[#allocation8 + $0xef4] sm:$0xf0]  ;;  %v7654_v38 = vld [vmem:[#allocation8 + $0x9f8] sm:$0xf0] }
 0x2da   :  { %v8293_v7 = vor.u32 %v9291_v25, %v8292_v55  ;;  %v7972_v57 = vld [vmem:[#allocation8 + $0xc58] sm:$0xf]  ;;  %5067 = vmatpush.bf16.msra.mxu1 %v6793_v33  ;;  %5027 = vmatpush.bf16.msrb.mxu2 %v8005_v27  ;;  %v8999_v54 = vld [vmem:[#allocation8 + $0x5dc] sm:$0xf]  ;;  %v7657_v21 = vor.u32 %v9127_v50, %v7654_v38 }
 0x2db   :  { %v9211_v34 = vld [vmem:[#allocation8 + $0xc74] sm:$0xf0]  ;;  %v7142_v30 = vld [vmem:[#allocation8 + $0x5f8] sm:$0xf0] }
 0x2dc   :  { %v8260_v63 = vld [vmem:[#allocation8 + $0xe98] sm:$0xf]  ;;  %v7973_v44 = vor.u32 %v9211_v34, %v7972_v57  ;;  %5040 = vmatpush.bf16.msrb.mxu3 %v8293_v7  ;;  %v8887_v55 = vld [vmem:[#allocation8 + $0x25c] sm:$0xf]  ;;  %v7145_v18 = vor.u32 %v8999_v54, %v7142_v30  ;;  %5057 = vmatpush.bf16.msra.mxu0 %v6409_v58 }
 0x2dd   :  { %v9283_v29 = vld [vmem:[#allocation8 + $0xeb4] sm:$0xf0]  ;;  %v6694_v25 = vld [vmem:[#allocation8 + $0x278] sm:$0xf0] }
 0x2de   :  { %v8261_v43 = vor.u32 %v9283_v29, %v8260_v63  ;;  %v7940_v47 = vld [vmem:[#allocation8 + $0xc18] sm:$0xf]  ;;  %5068 = vmatpush.bf16.msra.mxu1 %v6761_v56  ;;  %5028 = vmatpush.bf16.msrb.mxu2 %v7973_v44  ;;  %v9119_v1 = vld [vmem:[#allocation8 + $0x99c] sm:$0xf]  ;;  %v6697_v56 = vor.u32 %v8887_v55, %v6694_v25 }
 0x2df   :  { %v9203_v62 = vld [vmem:[#allocation8 + $0xc34] sm:$0xf0]  ;;  %v7622_v8 = vld [vmem:[#allocation8 + $0x9b8] sm:$0xf0]  ;;  %5058 = vmatmul.bf16.vlgmr.msra.gmra.mxu0 %v9717_v41 }
 0x2e0   :  { %v8228_v3 = vld [vmem:[#allocation8 + $0xe58] sm:$0xf]  ;;  %v7941_v26 = vor.u32 %v9203_v62, %v7940_v47  ;;  %5041 = vmatpush.bf16.msrb.mxu3 %v8261_v43  ;;  %v8991_v7 = vld [vmem:[#allocation8 + $0x59c] sm:$0xf]  ;;  %5106 = vmatpush.bf16.msrb.mxu0 %v7657_v21  ;;  %v7625_v37 = vor.u32 %v9119_v1, %v7622_v8 }
 0x2e1   :  { %v9275_v33 = vld [vmem:[#allocation8 + $0xe74] sm:$0xf0]  ;;  %v7110_v57 = vld [vmem:[#allocation8 + $0x5b8] sm:$0xf0] }
 0x2e2   :  { %v8229_v27 = vor.u32 %v9275_v33, %v8228_v3  ;;  %v8196_v34 = vld [vmem:[#allocation8 + $0xe18] sm:$0xf]  ;;  %5069 = vmatpush.bf16.msra.mxu1 %v6729_v2  ;;  %v8879_v63 = vld [vmem:[#allocation8 + $0x21c] sm:$0xf]  ;;  %5029 = vmatpush.bf16.msrb.mxu2 %v7941_v26  ;;  %v7113_v43 = vor.u32 %v8991_v7, %v7110_v57 }
 0x2e3   :  { %v9267_v5 = vld [vmem:[#allocation8 + $0xe34] sm:$0xf0]  ;;  %v6662_v29 = vld [vmem:[#allocation8 + $0x238] sm:$0xf0] }
 0x2e4   :  { %v9063_v4 = vld [vmem:[#allocation8 + $0x7dc] sm:$0xf]  ;;  %5042 = vmatpush.bf16.msrb.mxu3 %v8229_v27  ;;  %v8197_v47 = vor.u32 %v9267_v5, %v8196_v34  ;;  %v6665_v62 = vor.u32 %v8879_v63, %v6662_v29  ;;  %5107 = vmatpush.bf16.msrb.mxu0 %v7625_v37 }
 0x2e5   :  { %v7398_v28 = vld [vmem:[#allocation8 + $0x7f8] sm:$0xf0]  ;;  %5030 = vmatmul.bf16.vlgmr.msrb.gmra.mxu2 %v9743_v10 }
 0x2e6   :  { %v9191_v39 = vld [vmem:[#allocation8 + $0xbdc] sm:$0xf]  ;;  %5078 = vmatpush.bf16.msra.mxu2 %v7145_v18  ;;  %5070 = vmatpush.bf16.msra.mxu1 %v6697_v56  ;;  %v7401_v54 = vor.u32 %v9063_v4, %v7398_v28 }
 0x2e7   :  { %v7910_v44 = vld [vmem:[#allocation8 + $0xbf8] sm:$0xf0] }
 0x2e8   :  { %v9111_v50 = vld [vmem:[#allocation8 + $0x95c] sm:$0xf]  ;;  %v7913_v30 = vor.u32 %v9191_v39, %v7910_v44  ;;  %5043 = vmatpush.bf16.msrb.mxu3 %v8197_v47 }
 0x2e9   :  { %v7590_v38 = vld [vmem:[#allocation8 + $0x978] sm:$0xf0] }
 0x2ea   :  { %v8983_v2 = vld [vmem:[#allocation8 + $0x55c] sm:$0xf]  ;;  %v7593_v3 = vor.u32 %v9111_v50, %v7590_v38  ;;  %5079 = vmatpush.bf16.msra.mxu2 %v7113_v43  ;;  %5071 = vmatpush.bf16.msra.mxu1 %v6665_v62 }
 0x2eb   :  { %v7078_v58 = vld [vmem:[#allocation8 + $0x578] sm:$0xf0]  ;;  %5044 = vmatmul.bf16.vlgmr.msrb.gmra.mxu3 %v9747_v42 }
 0x2ec   :  { %v9055_v33 = vld [vmem:[#allocation8 + $0x79c] sm:$0xf]  ;;  %v7081_v8 = vor.u32 %v8983_v2, %v7078_v58  ;;  %5092 = vmatpush.bf16.msra.mxu3 %v7401_v54  ;;  %5108 = vmatpush.bf16.msrb.mxu0 %v7593_v3 }
 0x2ed   :  { %v7366_v21 = vld [vmem:[#allocation8 + $0x7b8] sm:$0xf0]  ;;  %5072 = vmatmul.bf16.vlgmr.msra.gmra.mxu1 %v9720_v0 }
 0x2ee   :  { %v9183_v55 = vld [vmem:[#allocation8 + $0xb9c] sm:$0xf]  ;;  %v7369_v41 = vor.u32 %v9055_v33, %v7366_v21  ;;  %5120 = vmatpush.bf16.msrb.mxu1 %v7913_v30  ;;  %5080 = vmatpush.bf16.msra.mxu2 %v7081_v8 }
 0x2ef   :  { %v7878_v25 = vld [vmem:[#allocation8 + $0xbb8] sm:$0xf0] }
 0x2f0   :  { %v9103_v26 = vld [vmem:[#allocation8 + $0x91c] sm:$0xf]  ;;  %v7881_v7 = vor.u32 %v9183_v55, %v7878_v25  ;;  %5093 = vmatpush.bf16.msra.mxu3 %v7369_v41 }
 0x2f1   :  { %v7558_v1 = vld [vmem:[#allocation8 + $0x938] sm:$0xf0] }
 0x2f2   :  { %v8975_v18 = vld [vmem:[#allocation8 + $0x51c] sm:$0xf]  ;;  %v7561_v57 = vor.u32 %v9103_v26, %v7558_v1  ;;  %5121 = vmatpush.bf16.msrb.mxu1 %v7881_v7 }
 0x2f3   :  { %v7046_v27 = vld [vmem:[#allocation8 + $0x538] sm:$0xf0] }
 0x2f4   :  { %v9047_v34 = vld [vmem:[#allocation8 + $0x75c] sm:$0xf]  ;;  %v7049_v4 = vor.u32 %v8975_v18, %v7046_v27  ;;  %5109 = vmatpush.bf16.msrb.mxu0 %v7561_v57  ;;  %v9906_v27 = vpop.f32.mrf.mxu0 }
 0x2f5   :  { %v7334_v56 = vld [vmem:[#allocation8 + $0x778] sm:$0xf0] }
 0x2f6   :  { %v9175_v5 = vld [vmem:[#allocation8 + $0xb5c] sm:$0xf]  ;;  %v7337_v28 = vor.u32 %v9047_v34, %v7334_v56  ;;  %5081 = vmatpush.bf16.msra.mxu2 %v7049_v4 }
 0x2f7   :  { %v7846_v63 = vld [vmem:[#allocation8 + $0xb78] sm:$0xf0] }
 0x2f8   :  { %v9095_v29 = vld [vmem:[#allocation8 + $0x8dc] sm:$0xf]  ;;  %v7849_v50 = vor.u32 %v9175_v5, %v7846_v63  ;;  %5094 = vmatpush.bf16.msra.mxu3 %v7337_v28 }
 0x2f9   :  { %v7526_v37 = vld [vmem:[#allocation8 + $0x8f8] sm:$0xf0] }
 0x2fa   :  { %v8967_v39 = vld [vmem:[#allocation8 + $0x4dc] sm:$0xf]  ;;  %v7529_v38 = vor.u32 %v9095_v29, %v7526_v37  ;;  %5122 = vmatpush.bf16.msrb.mxu1 %v7849_v50  ;;  %v9908_v50 = vpop.f32.mrf.mxu1 }
 0x2fb   :  { %v7014_v44 = vld [vmem:[#allocation8 + $0x4f8] sm:$0xf0] }
 0x2fc   :  { %v9039_v43 = vld [vmem:[#allocation8 + $0x71c] sm:$0xf]  ;;  %v7017_v30 = vor.u32 %v8967_v39, %v7014_v44  ;;  %5110 = vmatpush.bf16.msrb.mxu0 %v7529_v38 }
 0x2fd   :  { %v7302_v47 = vld [vmem:[#allocation8 + $0x738] sm:$0xf0] }
 0x2fe   :  { %v9167_v62 = vld [vmem:[#allocation8 + $0xb1c] sm:$0xf]  ;;  %v7305_v0 = vor.u32 %v9039_v43, %v7302_v47  ;;  %5082 = vmatpush.bf16.msra.mxu2 %v7017_v30  ;;  %v9910_v43 = vpop.f32.mrf.mxu2 }
 0x2ff   :  { %v7814_v54 = vld [vmem:[#allocation8 + $0xb38] sm:$0xf0] }
 0x300   :  { %v9087_v2 = vld [vmem:[#allocation8 + $0x89c] sm:$0xf]  ;;  %v7817_v21 = vor.u32 %v9167_v62, %v7814_v54  ;;  %5095 = vmatpush.bf16.msra.mxu3 %v7305_v0 }
 0x301   :  { %v7494_v58 = vld [vmem:[#allocation8 + $0x8b8] sm:$0xf0] }
 0x302   :  { %v8959_v3 = vld [vmem:[#allocation8 + $0x49c] sm:$0xf]  ;;  %v7497_v55 = vor.u32 %v9087_v2, %v7494_v58  ;;  %5123 = vmatpush.bf16.msrb.mxu1 %v7817_v21  ;;  %v9331_v21 = vld [vmem:[#allocation11 + $0x38] sm:$0xff] }
 0x303   :  { %v6982_v33 = vld [vmem:[#allocation8 + $0x4b8] sm:$0xf0] }
 0x304   :  { %v9031_v25 = vld [vmem:[#allocation8 + $0x6dc] sm:$0xf]  ;;  %v6985_v7 = vor.u32 %v8959_v3, %v6982_v33  ;;  %5111 = vmatpush.bf16.msrb.mxu0 %v7497_v55 }
 0x305   :  { %v7270_v26 = vld [vmem:[#allocation8 + $0x6f8] sm:$0xf0] }
 0x306   :  { %v9159_v1 = vld [vmem:[#allocation8 + $0xadc] sm:$0xf]  ;;  %v7273_v57 = vor.u32 %v9031_v25, %v7270_v26  ;;  %5083 = vmatpush.bf16.msra.mxu2 %v6985_v7 }
 0x307   :  { %v7782_v8 = vld [vmem:[#allocation8 + $0xaf8] sm:$0xf0] }
 0x308   :  { %v9079_v41 = vld [vmem:[#allocation8 + $0x85c] sm:$0xf]  ;;  %v7785_v5 = vor.u32 %v9159_v1, %v7782_v8  ;;  %5096 = vmatpush.bf16.msra.mxu3 %v7273_v57  ;;  %v9912_v57 = vpop.f32.mrf.mxu0 }
 0x309   :  { %v7462_v18 = vld [vmem:[#allocation8 + $0x878] sm:$0xf0] }
 0x30a   :  { %v8951_v34 = vld [vmem:[#allocation8 + $0x45c] sm:$0xf]  ;;  %v7465_v63 = vor.u32 %v9079_v41, %v7462_v18  ;;  %5124 = vmatpush.bf16.msrb.mxu1 %v7785_v5 }
 0x30b   :  { %v6950_v56 = vld [vmem:[#allocation8 + $0x478] sm:$0xf0] }
 0x30c   :  { %v9023_v29 = vld [vmem:[#allocation8 + $0x69c] sm:$0xf]  ;;  %v6953_v38 = vor.u32 %v8951_v34, %v6950_v56  ;;  %5112 = vmatpush.bf16.msrb.mxu0 %v7465_v63  ;;  %v9914_v34 = vpop.f32.mrf.mxu3 }
 0x30d   :  { %v7238_v37 = vld [vmem:[#allocation8 + $0x6b8] sm:$0xf0] }
 0x30e   :  { %v9151_v4 = vld [vmem:[#allocation8 + $0xa9c] sm:$0xf]  ;;  %v7241_v47 = vor.u32 %v9023_v29, %v7238_v37  ;;  %5084 = vmatpush.bf16.msra.mxu2 %v6953_v38  ;;  %v9916_v38 = vpop.f32.mrf.mxu1 }
 0x30f   :  { %v7750_v28 = vld [vmem:[#allocation8 + $0xab8] sm:$0xf0] }
 0x310   :  { %v9071_v39 = vld [vmem:[#allocation8 + $0x81c] sm:$0xf]  ;;  %v7753_v58 = vor.u32 %v9151_v4, %v7750_v28  ;;  %5097 = vmatpush.bf16.msra.mxu3 %v7241_v47 }
 0x311   :  { %v7430_v44 = vld [vmem:[#allocation8 + $0x838] sm:$0xf0] }
 0x312   :  { %v8943_v62 = vld [vmem:[#allocation8 + $0x41c] sm:$0xf]  ;;  %v7433_v30 = vor.u32 %v9071_v39, %v7430_v44  ;;  %5125 = vmatpush.bf16.msrb.mxu1 %v7753_v58 }
 0x313   :  { %v6918_v54 = vld [vmem:[#allocation8 + $0x438] sm:$0xf0] }
 0x314   :  { %v9255_v2 = vld [vmem:[#allocation8 + $0xddc] sm:$0xf]  ;;  %v6921_v26 = vor.u32 %v8943_v62, %v6918_v54  ;;  %5113 = vmatpush.bf16.msrb.mxu0 %v7433_v30  ;;  %v9339_v54 = vld [vmem:[#allocation11 + $0x78] sm:$0xff]  ;;  %v9919_v30 = vpop.f32.mrf.mxu2 }
 0x315   :  { %v8166_v0 = vld [vmem:[#allocation8 + $0xdf8] sm:$0xf0] }
 0x316   :  { %v9015_v3 = vld [vmem:[#allocation8 + $0x65c] sm:$0xf]  ;;  %v8169_v1 = vor.u32 %v9255_v2, %v8166_v0  ;;  %5085 = vmatpush.bf16.msra.mxu2 %v6921_v26  ;;  %v9329_v0 = vld [vmem:[#allocation11 + $0x28] sm:$0xff] }
 0x317   :  { %v7206_v33 = vld [vmem:[#allocation8 + $0x678] sm:$0xf0]  ;;  %5114 = vmatmul.bf16.vlgmr.msrb.gmra.mxu0 %v9733_v53 }
 0x318   :  { %v9143_v55 = vld [vmem:[#allocation8 + $0xa5c] sm:$0xf]  ;;  %v7209_v8 = vor.u32 %v9015_v3, %v7206_v33  ;;  %5702 = vmatpush.bf16.msra.mxu0 %v9331_v21  ;;  %v10031_v21 = vperm.slane %v9753_v20, 0 }
 0x319   :  { %v7718_v25 = vld [vmem:[#allocation8 + $0xa78] sm:$0xf0]  ;;  %5086 = vmatmul.bf16.vlgmr.msra.gmra.mxu2 %v9725_v32  ;;  %v9328_v32 = vld [vmem:[#allocation11 + $0x20] sm:$0xff] }
 0x31a   :  { %v9247_v41 = vld [vmem:[#allocation8 + $0xd9c] sm:$0xf]  ;;  %v7721_v56 = vor.u32 %v9143_v55, %v7718_v25  ;;  %5134 = vmatpush.bf16.msrb.mxu2 %v8169_v1  ;;  %5098 = vmatpush.bf16.msra.mxu3 %v7209_v8  ;;  %v4278_v55 = vadd.f32 %v9771_v51, %v10031_v21  ;;  %v9925_v25 = vpop.f32.mrf.mxu0 }
 0x31b   :  { %v8134_v18 = vld [vmem:[#allocation8 + $0xdb8] sm:$0xf0] }
 0x31c   :  { %v9330_v7 = vld [vmem:[#allocation11 + $0x30] sm:$0xff]  ;;  %v8137_v39 = vor.u32 %v9247_v41, %v8134_v18  ;;  %5126 = vmatpush.bf16.msrb.mxu1 %v7721_v56  ;;  %v9927_v56 = vpop.f32.mrf.mxu3  ;;  %v4292_v51 = vadd.f32 %v9775_v16, %v4278_v55 }
 0x31d   :  { %v9007_v5 = vld [vmem:[#allocation8 + $0x61c] sm:$0xf]  ;;  %5703 = vmatpush.bf16.msra.mxu0 %v9330_v7 }
 0x31e   :  { %v7174_v63 = vld [vmem:[#allocation8 + $0x638] sm:$0xf0]  ;;  %5135 = vmatpush.bf16.msrb.mxu2 %v8137_v39 }
 0x31f   :  { %v9135_v29 = vld [vmem:[#allocation8 + $0xa1c] sm:$0xf]  ;;  %v7177_v44 = vor.u32 %v9007_v5, %v7174_v63  ;;  %v10032_v63 = vperm.slane %v9753_v20, 1 }
 0x320   :  { %v7686_v37 = vld [vmem:[#allocation8 + $0xa38] sm:$0xf0] }
 0x321   :  { %v9319_v4 = vld [vmem:[#allocation8 + $0xfdc] sm:$0xf]  ;;  %v7689_v47 = vor.u32 %v9135_v29, %v7686_v37  ;;  %5099 = vmatpush.bf16.msra.mxu3 %v7177_v44  ;;  %5704 = vmatpush.bf16.msra.mxu0 %v9329_v0  ;;  %v4390_v29 = vadd.f32 %v9799_v60, %v10032_v63  ;;  %v9935_v37 = vpop.f32.mrf.mxu1  ;;  %v9336_v0 = vld [vmem:[#allocation11 + $0x60] sm:$0xff] }
 0x322   :  { %v8422_v28 = vld [vmem:[#allocation8 + $0xff8] sm:$0xf0] }
 0x323   :  { %v8425_v62 = vor.u32 %v9319_v4, %v8422_v28  ;;  %v9239_v2 = vld [vmem:[#allocation8 + $0xd5c] sm:$0xf]  ;;  %5127 = vmatpush.bf16.msrb.mxu1 %v7689_v47  ;;  %v9337_v28 = vld [vmem:[#allocation11 + $0x68] sm:$0xff]  ;;  %v4306_v47 = vadd.f32 %v9793_v24, %v4292_v51  ;;  %v4404_v20 = vadd.f32 %v9802_v15, %v4390_v29 }
 0x324   :  { %v8102_v58 = vld [vmem:[#allocation8 + $0xd78] sm:$0xf0]  ;;  %5100 = vmatmul.bf16.vlgmr.msra.gmra.mxu3 %v9728_v59  ;;  %v9938_v59 = vpop.f32.mrf.mxu2 }
 0x325   :  { %v9311_v3 = vld [vmem:[#allocation8 + $0xf9c] sm:$0xf]  ;;  %v8105_v53 = vor.u32 %v9239_v2, %v8102_v58  ;;  %5148 = vmatpush.bf16.msrb.mxu3 %v8425_v62  ;;  %5705 = vmatpush.bf16.msra.mxu0 %v9328_v32  ;;  %v4320_v60 = vadd.f32 %v9797_v49, %v4306_v47  ;;  %v4418_v2 = vadd.f32 %v9823_v11, %v4404_v20  ;;  %v9947_v49 = vpop.f32.mrf.mxu3  ;;  %v9324_v47 = vld [vmem:[#allocation11] sm:$0xff]  ;;  %v9363_v20 = vld [vmem:[#allocation11 + $0x138] sm:$0xff] }
 0x326   :  { %v8390_v33 = vld [vmem:[#allocation8 + $0xfb8] sm:$0xf0]  ;;  %5128 = vmatmul.bf16.vlgmr.msrb.gmra.mxu1 %v9736_v13  ;;  %v9327_v13 = vld [vmem:[#allocation11 + $0x18] sm:$0xff] }
 0x327   :  { %v8393_v26 = vor.u32 %v9311_v3, %v8390_v33  ;;  %v9338_v1 = vld [vmem:[#allocation11 + $0x70] sm:$0xff]  ;;  %5716 = vmatpush.bf16.msra.mxu1 %v9339_v54  ;;  %5136 = vmatpush.bf16.msrb.mxu2 %v8105_v53  ;;  %v4334_v33 = vadd.f32 %v9782_v61, %v4320_v60  ;;  %v4432_v15 = vadd.f32 %v9830_v45, %v4418_v2 }
 0x328   :  { %v9231_v8 = vld [vmem:[#allocation8 + $0xd1c] sm:$0xf] }
 0x329   :  { %v8070_v41 = vld [vmem:[#allocation8 + $0xd38] sm:$0xf0]  ;;  %5149 = vmatpush.bf16.msrb.mxu3 %v8393_v26  ;;  %5706 = vmatpush.bf16.msra.mxu0 %v9327_v13  ;;  %v9945_v26 = vpop.f32.mrf.mxu0  ;;  %v4348_v11 = vadd.f32 %v9784_v22, %v4334_v33  ;;  %v9952_v63 = vpop.f32.mrf.mxu1 }
 0x32a   :  { %v9303_v18 = vld [vmem:[#allocation8 + $0xf5c] sm:$0xf]  ;;  %v8073_v5 = vor.u32 %v9231_v8, %v8070_v41  ;;  %v9335_v41 = vld [vmem:[#allocation11 + $0x58] sm:$0xff] }
 0x32b   :  { %v8358_v7 = vld [vmem:[#allocation8 + $0xf78] sm:$0xf0]  ;;  %5717 = vmatpush.bf16.msra.mxu1 %v9338_v1 }
 0x32c   :  { %v8361_v4 = vor.u32 %v9303_v18, %v8358_v7  ;;  %v9223_v39 = vld [vmem:[#allocation8 + $0xcdc] sm:$0xf]  ;;  %5137 = vmatpush.bf16.msrb.mxu2 %v8073_v5  ;;  %v4362_v18 = vadd.f32 %v9806_v36, %v4348_v11  ;;  %v9325_v7 = vld [vmem:[#allocation11 + $0x8] sm:$0xff]  ;;  %v4446_v5 = vadd.f32 %v9817_v48, %v4432_v15  ;;  %v9955_v29 = vpop.f32.mrf.mxu2 }
 0x32d   :  { %v8038_v44 = vld [vmem:[#allocation8 + $0xcf8] sm:$0xf0]  ;;  %v9961_v2 = vpop.f32.mrf.mxu3 }
 0x32e   :  { %v9295_v16 = vld [vmem:[#allocation8 + $0xf1c] sm:$0xf]  ;;  %v8041_v54 = vor.u32 %v9223_v39, %v8038_v44  ;;  %5150 = vmatpush.bf16.msrb.mxu3 %v8361_v4  ;;  %v4376_v22 = vadd.f32 %v9812_v14, %v4362_v18  ;;  %v4460_v48 = vadd.f32 %v9820_v9, %v4446_v5 }
 0x32f   :  { %v8326_v62 = vld [vmem:[#allocation8 + $0xf38] sm:$0xf0]  ;;  %5718 = vmatpush.bf16.msra.mxu1 %v9337_v28 }
 0x330   :  { %v8329_v58 = vor.u32 %v9295_v16, %v8326_v62  ;;  %v9215_v3 = vld [vmem:[#allocation8 + $0xc9c] sm:$0xf]  ;;  %5138 = vmatpush.bf16.msrb.mxu2 %v8041_v54  ;;  %v5170_v14 = vmax.f32 %v4376_v22, 0.0  ;;  %v4474_v54 = vadd.f32 %v9841_v23, %v4460_v48  ;;  %v9967_v23 = vld [vmem:[#allocation10] sm:$0xff]  ;;  %v9344_v48 = vld [vmem:[#allocation11 + $0xa0] sm:$0xff] }
 0x331   :  { %v8006_v24 = vld [vmem:[#allocation8 + $0xcb8] sm:$0xf0]  ;;  %v9958_v62 = vpop.f32.mrf.mxu0  ;;  %v1694_v11 = vperm.slane %v9967_v23, 4 }
 0x332   :  { %v9326_v21 = vld [vmem:[#allocation11 + $0x10] sm:$0xff]  ;;  %v8009_v1 = vor.u32 %v9215_v3, %v8006_v24  ;;  %5151 = vmatpush.bf16.msrb.mxu3 %v8329_v58  ;;  %v9347_v58 = vld [vmem:[#allocation11 + $0xb8] sm:$0xff]  ;;  %v5162_v3 = vmax.f32 %v9804_v35, 0.0  ;;  %v9333_v24 = vld [vmem:[#allocation11 + $0x48] sm:$0xff] }
 0x333   :  { %v9287_v55 = vld [vmem:[#allocation8 + $0xedc] sm:$0xf]  ;;  %5719 = vmatpush.bf16.msra.mxu1 %v9336_v0  ;;  %5707 = vmatpush.bf16.msra.mxu0 %v9326_v21  ;;  %v4488_v21 = vadd.f32 %v9846_v46, %v4474_v54  ;;  %v9332_v46 = vld [vmem:[#allocation11 + $0x40] sm:$0xff]  ;;  %v4724_v5 = vadd.f32 %v9906_v27, %v1694_v11 }
 0x334   :  { %v8294_v53 = vld [vmem:[#allocation8 + $0xef8] sm:$0xf0]  ;;  %5139 = vmatpush.bf16.msrb.mxu2 %v8009_v1  ;;  %v5178_v15 = vpack.c.bf16 %v5170_v14, %v5162_v3  ;;  %v9970_v1 = vpop.f32.mrf.mxu2  ;;  %v9353_v14 = vld [vmem:[#allocation11 + $0xe8] sm:$0xff]  ;;  %v9343_v3 = vld [vmem:[#allocation11 + $0x98] sm:$0xff] }
 0x335   :  { %v8297_v8 = vor.u32 %v9287_v55, %v8294_v53  ;;  %v9207_v32 = vld [vmem:[#allocation8 + $0xc5c] sm:$0xf]  ;;  %v9965_v55 = vpop.f32.mrf.mxu1 }
 0x336   :  { %v7974_v61 = vld [vmem:[#allocation8 + $0xc78] sm:$0xf0] }
 0x337   :  { %v9279_v51 = vld [vmem:[#allocation8 + $0xe9c] sm:$0xf]  ;;  %v7977_v4 = vor.u32 %v9207_v32, %v7974_v61  ;;  %5152 = vmatpush.bf16.msrb.mxu3 %v8297_v8  ;;  %5720 = vmatpush.bf16.msra.mxu1 %v9335_v41  ;;  %v4726_v41 = vadd.f32 %v9912_v57, %v1694_v11  ;;  %v9355_v32 = vld [vmem:[#allocation11 + $0xf8] sm:$0xff]  ;;  %v10033_v61 = vperm.slane %v9826_v19, 2  ;;  %v5163_v57 = vmax.f32 %v9836_v12, 0.0  ;;  %v9345_v19 = vld [vmem:[#allocation11 + $0xa8] sm:$0xff] }
 0x338   :  { %v8262_v45 = vld [vmem:[#allocation8 + $0xeb8] sm:$0xf0]  ;;  %5708 = vmatpush.bf16.msra.mxu0 %v9325_v7  ;;  %v5171_v7 = vmax.f32 %v4488_v21, 0.0 }
 0x339   :  { %v8265_v28 = vor.u32 %v9279_v51, %v8262_v45  ;;  %v9334_v39 = vld [vmem:[#allocation11 + $0x50] sm:$0xff]  ;;  %5140 = vmatpush.bf16.msrb.mxu2 %v7977_v4  ;;  %v4502_v18 = vadd.f32 %v9844_v17, %v10033_v61  ;;  %v9371_v51 = vld [vmem:[#allocation11 + $0x178] sm:$0xff]  ;;  %v9361_v45 = vld [vmem:[#allocation11 + $0x128] sm:$0xff]  ;;  %v4740_v22 = vadd.f32 %v9916_v38, %v4726_v41  ;;  %v4738_v17 = vadd.f32 %v9908_v50, %v4724_v5 }
 0x33a   :  { %v9199_v44 = vld [vmem:[#allocation8 + $0xc1c] sm:$0xf]  ;;  %v9360_v38 = vld [vmem:[#allocation11 + $0x120] sm:$0xff] }
 0x33b   :  { %v7942_v36 = vld [vmem:[#allocation8 + $0xc38] sm:$0xf0]  ;;  %5153 = vmatpush.bf16.msrb.mxu3 %v8265_v28  ;;  %5721 = vmatpush.bf16.msra.mxu1 %v9334_v39  ;;  %v4516_v4 = vadd.f32 %v9849_v52, %v4502_v18  ;;  %v4837_v28 = vpop.f32.mrf.mxu0  ;;  %v4877_v39 = vpop.f32.mrf.mxu3  ;;  %v4752_v52 = vadd.f32 %v9910_v43, %v4738_v17  ;;  %v10034_v50 = vld [vmem:[#allocation22_spill] sm:$0xff] }
 0x33c   :  { %v9271_v13 = vld [vmem:[#allocation8 + $0xe5c] sm:$0xf]  ;;  %v7945_v60 = vor.u32 %v9199_v44, %v7942_v36  ;;  %5709 = vmatpush.bf16.msra.mxu0 %v9324_v47  ;;  %v5179_v36 = vpack.c.bf16 %v5171_v7, %v5163_v57  ;;  %v9369_v43 = vld [vmem:[#allocation11 + $0x168] sm:$0xff]  ;;  %v9351_v7 = vld [vmem:[#allocation11 + $0xd8] sm:$0xff] }
 0x33d   :  { %v8230_v16 = vld [vmem:[#allocation8 + $0xe78] sm:$0xf0]  ;;  %v4530_v27 = vadd.f32 %v9859_v40, %v4516_v4  ;;  %v4766_v40 = vadd.f32 %v9914_v34, %v4752_v52 }
 0x33e   :  { %v8233_v0 = vor.u32 %v9271_v13, %v8230_v16  ;;  %v9263_v33 = vld [vmem:[#allocation8 + $0xe1c] sm:$0xf]  ;;  %5141 = vmatpush.bf16.msrb.mxu2 %v7945_v60  ;;  %v1695_v13 = vperm.slane %v9967_v23, 5  ;;  %v4851_v16 = vpop.f32.mrf.mxu1  ;;  %v9359_v60 = vld [vmem:[#allocation11 + $0x118] sm:$0xff] }
 0x33f   :  { %v8198_v9 = vld [vmem:[#allocation8 + $0xe38] sm:$0xf0]  ;;  %5722 = vmatpush.bf16.msra.mxu1 %v9333_v24  ;;  %5710 = vmatmul.bf16.vlgmr.msra.gmra.mxu0 %v5178_v15  ;;  %v4780_v24 = vadd.f32 %v9925_v25, %v4766_v40 }
 0x340   :  { %5758 = vmatpush.bf16.msrb.mxu0 %v9363_v20  ;;  %v9362_v53 = vld [vmem:[#allocation11 + $0x130] sm:$0xff]  ;;  %5154 = vmatpush.bf16.msrb.mxu3 %v8233_v0  ;;  %v8201_v8 = vor.u32 %v9263_v33, %v8198_v9  ;;  %v4865_v20 = vpop.f32.mrf.mxu2  ;;  %v4836_v54 = vadd.f32 %v9958_v62, %v1695_v13  ;;  %v4838_v33 = vadd.f32 %v4837_v28, %v1695_v13  ;;  %v9352_v9 = vld [vmem:[#allocation11 + $0xe0] sm:$0xff] }
 0x341   :  { %v9346_v35 = vld [vmem:[#allocation11 + $0xb0] sm:$0xff]  ;;  %5142 = vmatmul.bf16.vlgmr.msrb.gmra.mxu2 %v9743_v10  ;;  %v4754_v10 = vadd.f32 %v9919_v30, %v4740_v22  ;;  %v4544_v30 = vadd.f32 %v10034_v50, %v4530_v27 }
 0x342   :  { %5730 = vmatpush.bf16.msra.mxu2 %v9347_v58  ;;  %v9354_v44 = vld [vmem:[#allocation11 + $0xf0] sm:$0xff]  ;;  %v4850_v34 = vadd.f32 %v9965_v55, %v4836_v54  ;;  %v4852_v62 = vadd.f32 %v4851_v16, %v4838_v33  ;;  %v4794_v55 = vadd.f32 %v9935_v37, %v4780_v24  ;;  %v9341_v37 = vld [vmem:[#allocation11 + $0x88] sm:$0xff]  ;;  %v9379_v54 = vld [vmem:[#allocation11 + $0x1b8] sm:$0xff] }
 0x343   :  { %5723 = vmatpush.bf16.msra.mxu1 %v9332_v46  ;;  %v9370_v12 = vld [vmem:[#allocation11 + $0x170] sm:$0xff]  ;;  %v4768_v47 = vadd.f32 %v9927_v56, %v4754_v10  ;;  %v4891_v0 = vpop.f32.mrf.mxu0  ;;  %v4879_v21 = vpop.f32.mrf.mxu3  ;;  %v9376_v33 = vld [vmem:[#allocation11 + $0x1a0] sm:$0xff] }
 0x344   :  { %5759 = vmatpush.bf16.msrb.mxu0 %v9362_v53  ;;  %5155 = vmatpush.bf16.msrb.mxu3 %v8201_v8  ;;  %v9368_v53 = vld [vmem:[#allocation11 + $0x160] sm:$0xff]  ;;  %v9358_v15 = vld [vmem:[#allocation11 + $0x110] sm:$0xff]  ;;  %v4864_v11 = vadd.f32 %v9970_v1, %v4850_v34  ;;  %v4866_v61 = vadd.f32 %v4865_v20, %v4852_v62  ;;  %v9377_v34 = vld [vmem:[#allocation11 + $0x1a8] sm:$0xff] }
 0x345   :  { %v4782_v56 = vadd.f32 %v9945_v26, %v4768_v47  ;;  %v9342_v25 = vld [vmem:[#allocation11 + $0x90] sm:$0xff]  ;;  %v9365_v47 = vld [vmem:[#allocation11 + $0x148] sm:$0xff] }
 0x346   :  { %5731 = vmatpush.bf16.msra.mxu2 %v9346_v35  ;;  %5724 = vmatmul.bf16.vlgmr.msra.gmra.mxu1 %v5179_v36  ;;  %v10036_v35 = vld [vmem:[#allocation21_spill] sm:$0xff]  ;;  %v4905_v41 = vpop.f32.mrf.mxu1  ;;  %v4880_v22 = vadd.f32 %v4879_v21, %v4866_v61  ;;  %v10037_v57 = vld [vmem:[#allocation24_spill] sm:$0xff]  ;;  %v10038_v13 = vld [vmem:[#allocation23_spill] sm:$0xff] }
 0x347   :  { %5772 = vmatpush.bf16.msrb.mxu1 %v9371_v51  ;;  %5156 = vmatmul.bf16.vlgmr.msrb.gmra.mxu3 %v9747_v42  ;;  %v10035_v42 = vld [vmem:[#allocation20_spill] sm:$0xff]  ;;  %v4796_v26 = vadd.f32 %v9952_v63, %v4782_v56  ;;  %v9357_v51 = vld [vmem:[#allocation11 + $0x108] sm:$0xff]  ;;  %v5164_v50 = vmax.f32 %v10038_v13, 0.0  ;;  %v9364_v56 = vld [vmem:[#allocation11 + $0x140] sm:$0xff] }
 0x348   :  { %5744 = vmatpush.bf16.msra.mxu3 %v9355_v32  ;;  %5760 = vmatpush.bf16.msrb.mxu0 %v9361_v45  ;;  %v4558_v58 = vadd.f32 %v10035_v42, %v4544_v30  ;;  %v4878_v32 = vadd.f32 %v4877_v39, %v4864_v11  ;;  %v4919_v18 = vpop.f32.mrf.mxu2  ;;  %v9367_v63 = vld [vmem:[#allocation11 + $0x158] sm:$0xff]  ;;  %v4808_v45 = vadd.f32 %v9938_v59, %v4794_v55  ;;  %v9350_v39 = vld [vmem:[#allocation11 + $0xd0] sm:$0xff]  ;;  %v9372_v11 = vld [vmem:[#allocation11 + $0x180] sm:$0xff] }
 0x349   :  { %v4810_v46 = vadd.f32 %v9955_v29, %v4796_v26  ;;  %v9366_v10 = vld [vmem:[#allocation11 + $0x150] sm:$0xff]  ;;  %v9383_v13 = vld [vmem:[#allocation11 + $0x1d8] sm:$0xff] }
 0x34a   :  { %5732 = vmatpush.bf16.msra.mxu2 %v9345_v19  ;;  %v4572_v8 = vadd.f32 %v10036_v35, %v4558_v58  ;;  %v4822_v4 = vadd.f32 %v9947_v49, %v4808_v45  ;;  %v4892_v28 = vadd.f32 %v4891_v0, %v4878_v32  ;;  %v9378_v24 = vld [vmem:[#allocation11 + $0x1b0] sm:$0xff] }
 0x34b   :  { %5773 = vmatpush.bf16.msrb.mxu1 %v9370_v12  ;;  %v4824_v5 = vadd.f32 %v9961_v2, %v4810_v46  ;;  %v4893_v19 = vpop.f32.mrf.mxu0  ;;  %v4933_v17 = vpop.f32.mrf.mxu3  ;;  %v9340_v2 = vld [vmem:[#allocation11 + $0x80] sm:$0xff]  ;;  %v9374_v21 = vld [vmem:[#allocation11 + $0x190] sm:$0xff] }
 0x34c   :  { %5745 = vmatpush.bf16.msra.mxu3 %v9354_v44  ;;  %5761 = vmatpush.bf16.msrb.mxu0 %v9360_v38  ;;  %v4586_v1 = vadd.f32 %v9877_v6, %v4572_v8  ;;  %v9356_v6 = vld [vmem:[#allocation11 + $0x100] sm:$0xff]  ;;  %v4894_v59 = vadd.f32 %v4893_v19, %v4880_v22  ;;  %v5166_v27 = vmax.f32 %v4822_v4, 0.0  ;;  %v4906_v12 = vadd.f32 %v4905_v41, %v4892_v28  ;;  %v9349_v38 = vld [vmem:[#allocation11 + $0xc8] sm:$0xff] }
 0x34d   :  { %v5174_v44 = vmax.f32 %v4824_v5, 0.0 }
 0x34e   :  { %5733 = vmatpush.bf16.msra.mxu2 %v9344_v48  ;;  %v4600_v29 = vadd.f32 %v10037_v57, %v4586_v1  ;;  %v4907_v52 = vpop.f32.mrf.mxu1  ;;  %v4920_v16 = vadd.f32 %v4919_v18, %v4906_v12 }
 0x34f   :  { %5774 = vmatpush.bf16.msrb.mxu1 %v9369_v43  ;;  %v5182_v30 = vpack.c.bf16 %v5174_v44, %v5166_v27  ;;  %v4908_v48 = vadd.f32 %v4907_v52, %v4894_v59  ;;  %v9348_v43 = vld [vmem:[#allocation11 + $0xc0] sm:$0xff]  ;;  %v9386_v52 = vld [vmem:[#allocation11 + $0x1f0] sm:$0xff] }
 0x350   :  { %5746 = vmatpush.bf16.msra.mxu3 %v9353_v14  ;;  %5762 = vmatpush.bf16.msrb.mxu0 %v9359_v60  ;;  %v5172_v36 = vmax.f32 %v4600_v29, 0.0  ;;  %v4921_v49 = vpop.f32.mrf.mxu2  ;;  %v4934_v20 = vadd.f32 %v4933_v17, %v4920_v16  ;;  %v9381_v16 = vld [vmem:[#allocation11 + $0x1c8] sm:$0xff] }
 0x351   :  { %v4922_v14 = vadd.f32 %v4921_v49, %v4908_v48  ;;  %v9385_v49 = vld [vmem:[#allocation11 + $0x1e8] sm:$0xff] }
 0x352   :  { %5734 = vmatpush.bf16.msra.mxu2 %v9343_v3  ;;  %v5180_v40 = vpack.c.bf16 %v5172_v36, %v5164_v50  ;;  %v5167_v58 = vmax.f32 %v4934_v20, 0.0  ;;  %v9382_v50 = vld [vmem:[#allocation11 + $0x1d0] sm:$0xff]  ;;  %v9380_v20 = vld [vmem:[#allocation11 + $0x1c0] sm:$0xff] }
 0x353   :  { %5775 = vmatpush.bf16.msrb.mxu1 %v9368_v53  ;;  %v4935_v60 = vpop.f32.mrf.mxu3  ;;  %v4947_v53 = vpop.f32.mrf.mxu0 }
 0x354   :  { %5747 = vmatpush.bf16.msra.mxu3 %v9352_v9  ;;  %5763 = vmatpush.bf16.msrb.mxu0 %v9358_v15  ;;  %v4936_v42 = vadd.f32 %v4935_v60, %v4922_v14  ;;  %v9375_v9 = vld [vmem:[#allocation11 + $0x198] sm:$0xff]  ;;  %v9373_v15 = vld [vmem:[#allocation11 + $0x188] sm:$0xff]  ;;  %v1697_v60 = vperm.slane %v9967_v23, 7 }
 0x356   :  { %5735 = vmatpush.bf16.msra.mxu2 %v9342_v25  ;;  %v5175_v0 = vmax.f32 %v4936_v42, 0.0  ;;  %v4961_v26 = vpop.f32.mrf.mxu1 }
 0x357   :  { %5776 = vmatpush.bf16.msrb.mxu1 %v9367_v63 }
 0x358   :  { %5748 = vmatpush.bf16.msra.mxu3 %v9351_v7  ;;  %5764 = vmatpush.bf16.msrb.mxu0 %v9357_v51  ;;  %v5183_v3 = vpack.c.bf16 %v5175_v0, %v5167_v58  ;;  %v4975_v62 = vpop.f32.mrf.mxu2 }
 0x35a   :  { %5736 = vmatpush.bf16.msra.mxu2 %v9341_v37 }
 0x35b   :  { %5777 = vmatpush.bf16.msrb.mxu1 %v9366_v10  ;;  %v4949_v35 = vpop.f32.mrf.mxu0  ;;  %v4989_v8 = vpop.f32.mrf.mxu3 }
 0x35c   :  { %5749 = vmatpush.bf16.msra.mxu3 %v9350_v39  ;;  %5765 = vmatpush.bf16.msrb.mxu0 %v9356_v6 }
 0x35e   :  { %5737 = vmatpush.bf16.msra.mxu2 %v9340_v2  ;;  %v4963_v41 = vpop.f32.mrf.mxu1  ;;  %v9387_v2 = vld [vmem:[#allocation11 + $0x1f8] sm:$0xff] }
 0x35f   :  { %5766 = vmatmul.bf16.vlgmr.msrb.gmra.mxu0 %v5182_v30  ;;  %5778 = vmatpush.bf16.msrb.mxu1 %v9365_v47  ;;  %v9384_v47 = vld [vmem:[#allocation11 + $0x1e0] sm:$0xff] }
 0x360   :  { %5750 = vmatpush.bf16.msra.mxu3 %v9349_v38  ;;  %v4977_v25 = vpop.f32.mrf.mxu2 }
 0x361   :  { %5738 = vmatmul.bf16.vlgmr.msra.gmra.mxu2 %v5180_v40 }
 0x362   :  { %5786 = vmatpush.bf16.msrb.mxu2 %v9379_v54 }
 0x363   :  { %5779 = vmatpush.bf16.msrb.mxu1 %v9364_v56  ;;  %v5003_v46 = vpop.f32.mrf.mxu0  ;;  %v4991_v18 = vpop.f32.mrf.mxu3 }
 0x364   :  { %5751 = vmatpush.bf16.msra.mxu3 %v9348_v43 }
 0x366   :  { %5780 = vmatmul.bf16.vlgmr.msrb.gmra.mxu1 %v5183_v3  ;;  %5787 = vmatpush.bf16.msrb.mxu2 %v9378_v24  ;;  %v5017_v51 = vpop.f32.mrf.mxu1 }
 0x367   :  { %5752 = vmatmul.bf16.vlgmr.msra.gmra.mxu3 %v9898_v31  ;;  %v1696_v31 = vperm.slane %v9967_v23, 6 }
 0x368   :  { %v5031_v5 = vpop.f32.mrf.mxu2  ;;  %5800 = vmatpush.bf16.msrb.mxu3 %v9387_v2 }
 0x369   :  { %v4948_v55 = vadd.f32 %v4947_v53, %v1696_v31  ;;  %v4950_v61 = vadd.f32 %v4949_v35, %v1696_v31 }
 0x36a   :  { %5788 = vmatpush.bf16.msrb.mxu2 %v9377_v34 }
 0x36b   :  { %v4962_v32 = vadd.f32 %v4961_v26, %v4948_v55  ;;  %v4964_v7 = vadd.f32 %v4963_v41, %v4950_v61  ;;  %v5005_v57 = vpop.f32.mrf.mxu0 }
 0x36c   :  { %5801 = vmatpush.bf16.msrb.mxu3 %v9386_v52 }
 0x36d   :  { %v4976_v63 = vadd.f32 %v4975_v62, %v4962_v32  ;;  %v4978_v45 = vadd.f32 %v4977_v25, %v4964_v7 }
 0x36e   :  { %5789 = vmatpush.bf16.msrb.mxu2 %v9376_v33  ;;  %v5045_v29 = vpop.f32.mrf.mxu3  ;;  %v5019_v39 = vpop.f32.mrf.mxu1 }
 0x36f   :  { %v4990_v1 = vadd.f32 %v4989_v8, %v4976_v63  ;;  %v4992_v22 = vadd.f32 %v4991_v18, %v4978_v45 }
 0x370   :  { %v5033_v19 = vpop.f32.mrf.mxu2  ;;  %5802 = vmatpush.bf16.msrb.mxu3 %v9385_v49 }
 0x371   :  { %v5004_v37 = vadd.f32 %v5003_v46, %v4990_v1  ;;  %v5006_v4 = vadd.f32 %v5005_v57, %v4992_v22  ;;  %v9402_v22 = vld [vmem:[#allocation13] ss:$0 sm:$0xff] }
 0x372   :  { %5790 = vmatpush.bf16.msrb.mxu2 %v9375_v9 }
 0x373   :  { %v5018_v28 = vadd.f32 %v5017_v51, %v5004_v37  ;;  %v5020_v10 = vadd.f32 %v5019_v39, %v5006_v4  ;;  %v5059_v30 = vpop.f32.mrf.mxu0 }
 0x374   :  { %5803 = vmatpush.bf16.msrb.mxu3 %v9384_v47  ;;  %v5060_v42 = vadd.f32 %v5059_v30, %v1697_v60 }
 0x375   :  { %v5032_v17 = vadd.f32 %v5031_v5, %v5018_v28  ;;  %v5034_v44 = vadd.f32 %v5033_v19, %v5020_v10 }
 0x376   :  { %5791 = vmatpush.bf16.msrb.mxu2 %v9374_v21  ;;  %v5047_v59 = vpop.f32.mrf.mxu3  ;;  %v5073_v48 = vpop.f32.mrf.mxu1 }
 0x377   :  { %v5046_v6 = vadd.f32 %v5045_v29, %v5032_v17  ;;  %v5048_v36 = vadd.f32 %v5047_v59, %v5034_v44  ;;  %v5074_v0 = vadd.f32 %v5073_v48, %v5060_v42 }
 0x378   :  { %5804 = vmatpush.bf16.msrb.mxu3 %v9383_v13 }
 0x379   :  { %v5168_v27 = vmax.f32 %v5046_v6, 0.0  ;;  %v5176_v12 = vmax.f32 %v5048_v36, 0.0 }
 0x37a   :  { %5792 = vmatpush.bf16.msrb.mxu2 %v9373_v15 }
 0x37b   :  { %v5184_v38 = vpack.c.bf16 %v5176_v12, %v5168_v27  ;;  %v5061_v14 = vpop.f32.mrf.mxu0 }
 0x37c   :  { %5805 = vmatpush.bf16.msrb.mxu3 %v9382_v50  ;;  %v5062_v3 = vadd.f32 %v5061_v14, %v1697_v60 }
 0x37e   :  { %5793 = vmatpush.bf16.msrb.mxu2 %v9372_v11  ;;  %v5075_v56 = vpop.f32.mrf.mxu1 }
 0x37f   :  { %v5076_v34 = vadd.f32 %v5075_v56, %v5062_v3 }
 0x380   :  { %5806 = vmatpush.bf16.msrb.mxu3 %v9381_v16 }
 0x381   :  { %5794 = vmatmul.bf16.vlgmr.msrb.gmra.mxu2 %v5184_v38 }
 0x384   :  { %5807 = vmatpush.bf16.msrb.mxu3 %v9380_v20 }
 0x394   :  { %v5115_v58 = vpop.f32.mrf.mxu0 }
 0x39c   :  { %v5087_v40 = vpop.f32.mrf.mxu2  ;;  %v5117_v11 = vpop.f32.mrf.mxu0 }
 0x39d   :  { %v5088_v33 = vadd.f32 %v5087_v40, %v5074_v0 }
 0x3a3   :  { %v5129_v9 = vpop.f32.mrf.mxu1 }
 0x3a4   :  { %v5089_v54 = vpop.f32.mrf.mxu2 }
 0x3a5   :  { %v5090_v53 = vadd.f32 %v5089_v54, %v5076_v34 }
 0x3a7   :  { %v5101_v43 = vpop.f32.mrf.mxu3 }
 0x3a8   :  { %v5102_v21 = vadd.f32 %v5101_v43, %v5088_v33 }
 0x3aa   :  { %v5116_v62 = vadd.f32 %v5115_v58, %v5102_v21 }
 0x3ab   :  { %v5131_v23 = vpop.f32.mrf.mxu1 }
 0x3ac   :  { %v5130_v31 = vadd.f32 %v5129_v9, %v5116_v62 }
 0x3af   :  { %v5103_v24 = vpop.f32.mrf.mxu3 }
 0x3b0   :  { %v5104_v26 = vadd.f32 %v5103_v24, %v5090_v53 }
 0x3b2   :  { %v5118_v8 = vadd.f32 %v5117_v11, %v5104_v26 }
 0x3b4   :  { %v5132_v55 = vadd.f32 %v5131_v23, %v5118_v8 }
 0x3bc   :  { %v5711_v1 = vpop.f32.mrf.mxu0 }
 0x3bd   :  { %v5712_v29 = vadd.f32 %v9402_v22, %v5711_v1 }
 0x3c3   :  { %v5725_v45 = vpop.f32.mrf.mxu1 }
 0x3c4   :  { %v5143_v15 = vpop.f32.mrf.mxu2  ;;  %v5713_v37 = vpop.f32.mrf.mxu0  ;;  %v5726_v4 = vadd.f32 %v5725_v45, %v5712_v29 }
 0x3c5   :  { %v5144_v25 = vadd.f32 %v5143_v15, %v5130_v31  ;;  %v5714_v6 = vadd.f32 %v9402_v22, %v5713_v37 }
 0x3ca   :  { %v5157_v35 = vpop.f32.mrf.mxu3 }
 0x3cb   :  { %v5158_v46 = vadd.f32 %v5157_v35, %v5144_v25  ;;  %v5727_v28 = vpop.f32.mrf.mxu1 }
 0x3cc   :  { %v5145_v41 = vpop.f32.mrf.mxu2  ;;  %v5728_v59 = vadd.f32 %v5727_v28, %v5714_v6 }
 0x3cd   :  { %v5146_v32 = vadd.f32 %v5145_v41, %v5132_v55  ;;  %v5169_v7 = vmax.f32 %v5158_v46, 0.0 }
 0x3d2   :  { %v5159_v61 = vpop.f32.mrf.mxu3 }
 0x3d3   :  { %v5160_v18 = vadd.f32 %v5159_v61, %v5146_v32 }
 0x3d5   :  { %v5177_v63 = vmax.f32 %v5160_v18, 0.0 }
 0x3d7   :  { %v5185_v51 = vpack.c.bf16 %v5177_v63, %v5169_v7 }
 0x3d9   :  { %5808 = vmatmul.bf16.vlgmr.msrb.gmra.mxu3 %v5185_v51 }
 0x3dc   :  { %v5767_v10 = vpop.f32.mrf.mxu0 }
 0x3e3   :  { %v5781_v36 = vpop.f32.mrf.mxu1 }
 0x3e4   :  { %v5739_v5 = vpop.f32.mrf.mxu2  ;;  %v5769_v47 = vpop.f32.mrf.mxu0 }
 0x3e5   :  { %v5740_v19 = vadd.f32 %v5739_v5, %v5726_v4 }
 0x3ea   :  { %v5753_v57 = vpop.f32.mrf.mxu3 }
 0x3eb   :  { %v5754_v17 = vadd.f32 %v5753_v57, %v5740_v19  ;;  %v5783_v16 = vpop.f32.mrf.mxu1 }
 0x3ec   :  { %v5741_v39 = vpop.f32.mrf.mxu2 }
 0x3ed   :  { %v5768_v2 = vadd.f32 %v5767_v10, %v5754_v17  ;;  %v5742_v12 = vadd.f32 %v5741_v39, %v5728_v59 }
 0x3ef   :  { %v5782_v52 = vadd.f32 %v5781_v36, %v5768_v2 }
 0x3f2   :  { %v5755_v44 = vpop.f32.mrf.mxu3 }
 0x3f3   :  { %v5756_v38 = vadd.f32 %v5755_v44, %v5742_v12 }
 0x3f5   :  { %v5770_v50 = vadd.f32 %v5769_v47, %v5756_v38 }
 0x3f7   :  { %v5784_v40 = vadd.f32 %v5783_v16, %v5770_v50 }
 0x404   :  { %v5795_v27 = vpop.f32.mrf.mxu2 }
 0x405   :  { %v5796_v49 = vadd.f32 %v5795_v27, %v5782_v52 }
 0x40c   :  { %v5797_v48 = vpop.f32.mrf.mxu2 }
 0x40d   :  { %v5798_v20 = vadd.f32 %v5797_v48, %v5784_v40 }
 0x45c   :  { %v5809_v13 = vpop.f32.mrf.mxu3 }
 0x45d   :  { %v5810_v30 = vadd.f32 %v5809_v13, %v5796_v49 }
 0x45f   :  { %5814 = vmax.xlane.f32.xlu0 %v5810_v30 }
 0x464   :  { %v5811_v14 = vpop.f32.mrf.mxu3 }
 0x465   :  { %v5812_v43 = vadd.f32 %v5811_v14, %v5798_v20 }
 0x467   :  { %5816 = vmax.xlane.f32.xlu0 %v5812_v43 }
 0x4d2   :  { %v5815_v60 = vpop.xlane.xlu0 %5814 }
 0x4d3   :  { %v5818_v56 = vsub.f32 %v5810_v30, %v5815_v60 }
 0x4d5   :  { %v5820_v54 = vmul.f32 1.442695, %v5818_v56 }
 0x4d7   :  { %9403 = vpow2.f32 %v5820_v54 }
 0x4da   :  { %v5817_v42 = vpop.xlane.xlu0 %5816 }
 0x4db   :  { %v5819_v58 = vsub.f32 %v5812_v43, %v5817_v42 }
 0x4dd   :  { %v9404_v0 = vpop.eup %9403  ;;  %v5822_v3 = vmul.f32 1.442695, %v5819_v58 }
 0x4de   :  { %5824 = vadd.xlane.f32.xlu1 %v9404_v0 }
 0x4df   :  { %9405 = vpow2.f32 %v5822_v3 }
 0x4e5   :  { %v9406_v24 = vpop.eup %9405 }
 0x4e6   :  { %5826 = vadd.xlane.f32.xlu1 %v9406_v24 }
 0x551   :  { %v5825_v34 = vpop.xlane.xlu1 %5824 }
 0x552   :  { %9407 = vlog2.f32 %v5825_v34 }
 0x558   :  { %v9408_v33 = vpop.eup %9407 }
 0x559   :  { %v5829_v9 = vmul.f32 0.6931472, %v9408_v33  ;;  %v5827_v21 = vpop.xlane.xlu1 %5826 }
 0x55a   :  { %9409 = vlog2.f32 %v5827_v21 }
 0x55b   :  { %v5832_v53 = vsub.f32 %v5818_v56, %v5829_v9 }
 0x55d   :  { %5834 = vst [vmem:[#allocation14] sm:$0xff] %v5832_v53 }
 0x560   :  { %v9410_v15 = vpop.eup %9409 }
 0x561   :  { %v5831_v26 = vmul.f32 0.6931472, %v9410_v15 }
 0x563   :  { %v5833_v62 = vsub.f32 %v5819_v58, %v5831_v26 }
 0x565   :  { %5835 = vst [vmem:[#allocation14 + $0x8] sm:$0xff] %v5833_v62 }
 0x566   :  { %5848 = dma.vmem_to_hbm [thread:$0]  %s5841_s6, 256, %s5843_s1, [#allocation4], %s9623_s23, %s9623_s23, %s9624_s24  }
 0x567   :  { %9613 = dma.done.wait [#allocation4], 256  }
 0x568   :  { %9614 = vsyncadd [#allocation4], 4294967040 }
 0x569   :  { %5853 = vsyncpa [#allocation3], 1 }
 0x56a   :  { %5854 = vsyncpa [#allocation6], 1 }
 0x56b   :  { %5855 = vsyncpa [#allocation9], 1 }
 0x56c   :  { %5856 = vsyncpa [#allocation12], 1 }
 0x56d   :  { %5857 = vsyncpa [#allocation4], 1 }

// kernel: tpu_custom_call.1
= control target key start
LH: loop header
LB: loop body
LE: loop exit
PB: predicated region body
PF: predicated region fallthrough
CT: control target
= control target key end

     0   :  { %12 = vsyncpa [#allocation3], 0  ;;  %s10015_s0 = inlined_call_operand.hbm [shape: bf16[16,256], index: 0, kind: input, shape index: {}]   ;;  %s10016_s1 = inlined_call_operand.hbm [shape: bf16[256,1024], index: 1, kind: input, shape index: {}]   ;;  %s10017_s2 = inlined_call_operand.hbm [shape: f32[1,1024], index: 2, kind: input, shape index: {}]   ;;  %s10018_s3 = inlined_call_operand.hbm [shape: bf16[1024,1024], index: 3, kind: input, shape index: {}]   ;;  %s10019_s4 = inlined_call_operand.hbm [shape: f32[1,1024], index: 4, kind: input, shape index: {}]   ;;  %s10020_s5 = inlined_call_operand.hbm [shape: bf16[1024,128], index: 5, kind: input, shape index: {}]   ;;  %s10021_s6 = inlined_call_operand.hbm [shape: f32[1,128], index: 6, kind: input, shape index: {}]   ;;  %s10022_s7 = inlined_call_operand.hbm [shape: f32[16,128], index: 7, kind: output, shape index: {}]  }
   0x1   :  { %13 = vsyncpa [#allocation6], 0 }
   0x2   :  { %14 = vsyncpa [#allocation9], 0 }
   0x3   :  { %15 = vsyncpa [#allocation12], 0  ;;  %s34_s26 = sshll.u32 %s10016_s1, 4  ;;  %s35_s26 = int_to_ptr.hbm [resolvable:$true] %s34_s26 }
   0x4   :  { %16 = vsyncpa [#allocation4], 0  ;;  %s9615_s27 = smov [#allocation5]   ;;  %s58_s8 = sshll.u32 %s10018_s3, 4  ;;  %s59_s8 = int_to_ptr.hbm [resolvable:$true] %s58_s8 }
   0x5   :  { %s36_s28 = sshll.u32 %s9615_s27, 4  ;;  %s9616_s9 = smov 512   ;;  %s37_s28 = int_to_ptr.vmem [resolvable:$true] %s36_s28 }
   0x6   :  { %s9617_s10 = smov 32   ;;  %s9618_s11 = smov [#allocation8]  }
   0x7   :  { %42 = dma.hbm_to_vmem [thread:$0]  %s35_s26, 16384, %s37_s28, [#allocation6], %s9616_s9, %s9616_s9, %s9617_s10  }
   0x8   :  { %s60_s12 = sshll.u32 %s9618_s11, 4  ;;  %s82_s15 = sshll.u32 %s10020_s5, 4  ;;  %s61_s12 = int_to_ptr.vmem [resolvable:$true] %s60_s12  ;;  %s83_s15 = int_to_ptr.hbm [resolvable:$true] %s82_s15 }
   0x9   :  { %66 = dma.hbm_to_vmem [thread:$0]  %s59_s8, 65536, %s61_s12, [#allocation9], %s9616_s9, %s9616_s9, %s9617_s10  }
   0xa   :  { %s9619_s1 = smov [#allocation11]   ;;  %s21_s3 = sshll.u32 %s10015_s0, 4  ;;  %s22_s3 = int_to_ptr.hbm [resolvable:$true] %s21_s3 }
   0xb   :  { %s84_s16 = sshll.u32 %s9619_s1, 4  ;;  %s9620_s19 = smov 64   ;;  %s85_s16 = int_to_ptr.vmem [resolvable:$true] %s84_s16 }
   0xc   :  { %s9621_s20 = smov 4   ;;  %s9622_s21 = smov [#allocation2]  }
   0xd   :  { %90 = dma.hbm_to_vmem [thread:$0]  %s83_s15, 8192, %s85_s16, [#allocation12], %s9620_s19, %s9620_s19, %s9621_s20  }
   0xe   :  { %s23_s22 = sshll.u32 %s9622_s21, 4  ;;  %s9623_s23 = smov 128   ;;  %s24_s22 = int_to_ptr.vmem [resolvable:$true] %s23_s22 }
   0xf   :  { %s9624_s24 = smov 8   ;;  %s48_s26 = sshll.u32 %s10017_s2, 4  ;;  %s49_s26 = int_to_ptr.hbm [resolvable:$true] %s48_s26 }
  0x10   :  { %29 = dma.hbm_to_vmem [thread:$0]  %s22_s3, 256, %s24_s22, [#allocation3], %s9623_s23, %s9623_s23, %s9624_s24  }
  0x11   :  { %s9625_s27 = smov [#allocation7]   ;;  %s72_s30 = sshll.u32 %s10019_s4, 4  ;;  %s73_s30 = int_to_ptr.hbm [resolvable:$true] %s72_s30 }
  0x12   :  { %s50_s0 = sshll.u32 %s9625_s27, 4  ;;  %s9626_s8 = smov [#allocation10]   ;;  %s51_s0 = int_to_ptr.vmem [resolvable:$true] %s50_s0 }
  0x13   :  { %53 = dma.hbm_to_vmem [thread:$0]  %s49_s26, 128, %s51_s0, [#allocation6]  }
  0x14   :  { %s74_s9 = sshll.u32 %s9626_s8, 4  ;;  %s96_s12 = sshll.u32 %s10021_s6, 4  ;;  %s75_s9 = int_to_ptr.vmem [resolvable:$true] %s74_s9  ;;  %s97_s12 = int_to_ptr.hbm [resolvable:$true] %s96_s12 }
  0x15   :  { %77 = dma.hbm_to_vmem [thread:$0]  %s73_s30, 128, %s75_s9, [#allocation9]  }
  0x16   :  { %s9627_s2 = smov [#allocation13]  }
  0x17   :  { %s98_s13 = sshll.u32 %s9627_s2, 4  ;;  %s99_s13 = int_to_ptr.vmem [resolvable:$true] %s98_s13 }
  0x18   :  { %101 = dma.hbm_to_vmem [thread:$0]  %s97_s12, 16, %s99_s13, [#allocation12]  }
  0x19   :  { %9605 = dma.done.wait [#allocation3], 256  }
  0x1a   :  { %9606 = vsyncadd [#allocation3], 4294967040 }
  0x1b   :  { %9607 = dma.done.wait [#allocation6], 16512  }
  0x1c   :  { %9608 = vsyncadd [#allocation6], 4294950784 }
  0x1d   :  { %9609 = dma.done.wait [#allocation9], 65664  }
  0x1e   :  { %9610 = vsyncadd [#allocation9], 4294901632 }
  0x1f   :  { %9611 = dma.done.wait [#allocation12], 8208  }
  0x20   :  { %9612 = vsyncadd [#allocation12], 4294959088  ;;  %v6092_v0 = vld [vmem:[#allocation5 + $0x1c0] sm:$0xf]  ;;  %v8740_v5 = vld [vmem:[#allocation5 + $0x1c4] sm:$0xf] }
  0x21   :  { %v8744_v1 = vld [vmem:[#allocation5 + $0x1dc] sm:$0xf0]  ;;  %v6094_v6 = vld [vmem:[#allocation5 + $0x1e0] sm:$0xf0]  ;;  %s9628_s4 = smov [#allocation14]   ;;  %s5842_s1 = sshll.u32 %s10022_s7, 4  ;;  %s5843_s1 = int_to_ptr.hbm [resolvable:$true] %s5842_s1 }
  0x22   :  { %v6348_v2 = vld [vmem:[#allocation5 + $0x3c0] sm:$0xf]  ;;  %v6093_v3 = vor.u32 %v8744_v1, %v6092_v0  ;;  %v6097_v8 = vor.u32 %v8740_v5, %v6094_v6  ;;  %v8804_v9 = vld [vmem:[#allocation5 + $0x3c4] sm:$0xf]  ;;  %s5840_s6 = sshll.u32 %s9628_s4, 4  ;;  %s5841_s6 = int_to_ptr.vmem [resolvable:$true] %s5840_s6 }
  0x23   :  { %v8808_v4 = vld [vmem:[#allocation5 + $0x3dc] sm:$0xf0]  ;;  %v6350_v10 = vld [vmem:[#allocation5 + $0x3e0] sm:$0xf0] }
  0x24   :  { %v6349_v7 = vor.u32 %v8808_v4, %v6348_v2  ;;  %v6060_v11 = vld [vmem:[#allocation5 + $0x180] sm:$0xf]  ;;  %928 = vmatpush.bf16.msra.mxu0 %v6093_v3  ;;  %v6353_v12 = vor.u32 %v8804_v9, %v6350_v10  ;;  %956 = vmatpush.bf16.msra.mxu2 %v6097_v8  ;;  %v8732_v18 = vld [vmem:[#allocation5 + $0x184] sm:$0xf] }
  0x25   :  { %v8736_v13 = vld [vmem:[#allocation5 + $0x19c] sm:$0xf0]  ;;  %v6062_v19 = vld [vmem:[#allocation5 + $0x1a0] sm:$0xf0] }
  0x26   :  { %v6316_v14 = vld [vmem:[#allocation5 + $0x380] sm:$0xf]  ;;  %942 = vmatpush.bf16.msra.mxu1 %v6349_v7  ;;  %v6061_v16 = vor.u32 %v8736_v13, %v6060_v11  ;;  %v8796_v20 = vld [vmem:[#allocation5 + $0x384] sm:$0xf]  ;;  %970 = vmatpush.bf16.msra.mxu3 %v6353_v12  ;;  %v6065_v21 = vor.u32 %v8732_v18, %v6062_v19 }
  0x27   :  { %v8800_v15 = vld [vmem:[#allocation5 + $0x39c] sm:$0xf0]  ;;  %v6318_v22 = vld [vmem:[#allocation5 + $0x3a0] sm:$0xf0] }
  0x28   :  { %v6317_v17 = vor.u32 %v8800_v15, %v6316_v14  ;;  %v6028_v23 = vld [vmem:[#allocation5 + $0x140] sm:$0xf]  ;;  %v6321_v25 = vor.u32 %v8796_v20, %v6318_v22  ;;  %v8724_v28 = vld [vmem:[#allocation5 + $0x144] sm:$0xf]  ;;  %929 = vmatpush.bf16.msra.mxu0 %v6061_v16  ;;  %957 = vmatpush.bf16.msra.mxu2 %v6065_v21 }
  0x29   :  { %v8728_v24 = vld [vmem:[#allocation5 + $0x15c] sm:$0xf0]  ;;  %v6030_v30 = vld [vmem:[#allocation5 + $0x160] sm:$0xf0] }
  0x2a   :  { %v6284_v26 = vld [vmem:[#allocation5 + $0x340] sm:$0xf]  ;;  %v6029_v29 = vor.u32 %v8728_v24, %v6028_v23  ;;  %v8788_v31 = vld [vmem:[#allocation5 + $0x344] sm:$0xf]  ;;  %943 = vmatpush.bf16.msra.mxu1 %v6317_v17  ;;  %v6033_v34 = vor.u32 %v8724_v28, %v6030_v30  ;;  %971 = vmatpush.bf16.msra.mxu3 %v6321_v25  ;;  %v6100_v28 = vld [vmem:[#allocation5 + $0x1c8] sm:$0xf] }
  0x2b   :  { %v8792_v27 = vld [vmem:[#allocation5 + $0x35c] sm:$0xf0]  ;;  %v6286_v32 = vld [vmem:[#allocation5 + $0x360] sm:$0xf0]  ;;  %v6356_v30 = vld [vmem:[#allocation5 + $0x3c8] sm:$0xf] }
  0x2c   :  { %v6285_v33 = vor.u32 %v8792_v27, %v6284_v26  ;;  %v5996_v35 = vld [vmem:[#allocation5 + $0x100] sm:$0xf]  ;;  %v6289_v38 = vor.u32 %v8788_v31, %v6286_v32  ;;  %v8716_v40 = vld [vmem:[#allocation5 + $0x104] sm:$0xf]  ;;  %930 = vmatpush.bf16.msra.mxu0 %v6029_v29  ;;  %958 = vmatpush.bf16.msra.mxu2 %v6033_v34  ;;  %v8745_v29 = vld [vmem:[#allocation5 + $0x1e4] sm:$0xf0] }
  0x2d   :  { %v8720_v36 = vld [vmem:[#allocation5 + $0x11c] sm:$0xf0]  ;;  %v5998_v41 = vld [vmem:[#allocation5 + $0x120] sm:$0xf0]  ;;  %v8809_v32 = vld [vmem:[#allocation5 + $0x3e4] sm:$0xf0] }
  0x2e   :  { %v6252_v37 = vld [vmem:[#allocation5 + $0x300] sm:$0xf]  ;;  %v8780_v42 = vld [vmem:[#allocation5 + $0x304] sm:$0xf]  ;;  %v5997_v44 = vor.u32 %v8720_v36, %v5996_v35  ;;  %944 = vmatpush.bf16.msra.mxu1 %v6285_v33  ;;  %v6001_v46 = vor.u32 %v8716_v40, %v5998_v41  ;;  %972 = vmatpush.bf16.msra.mxu3 %v6289_v38  ;;  %v8741_v33 = vld [vmem:[#allocation5 + $0x1cc] sm:$0xf]  ;;  %v6101_v40 = vor.u32 %v8745_v29, %v6100_v28 }
  0x2f   :  { %v8784_v39 = vld [vmem:[#allocation5 + $0x31c] sm:$0xf0]  ;;  %v6254_v43 = vld [vmem:[#allocation5 + $0x320] sm:$0xf0]  ;;  %v6102_v34 = vld [vmem:[#allocation5 + $0x1e8] sm:$0xf0] }
  0x30   :  { %v6253_v45 = vor.u32 %v8784_v39, %v6252_v37  ;;  %v5964_v47 = vld [vmem:[#allocation5 + $0xc0] sm:$0xf]  ;;  %v6257_v50 = vor.u32 %v8780_v42, %v6254_v43  ;;  %v8708_v52 = vld [vmem:[#allocation5 + $0xc4] sm:$0xf]  ;;  %931 = vmatpush.bf16.msra.mxu0 %v5997_v44  ;;  %959 = vmatpush.bf16.msra.mxu2 %v6001_v46  ;;  %v8805_v37 = vld [vmem:[#allocation5 + $0x3cc] sm:$0xf]  ;;  %v6357_v43 = vor.u32 %v8809_v32, %v6356_v30 }
  0x31   :  { %v8712_v48 = vld [vmem:[#allocation5 + $0xdc] sm:$0xf0]  ;;  %v5966_v53 = vld [vmem:[#allocation5 + $0xe0] sm:$0xf0]  ;;  %v6358_v38 = vld [vmem:[#allocation5 + $0x3e8] sm:$0xf0]  ;;  %v6105_v44 = vor.u32 %v8741_v33, %v6102_v34 }
  0x32   :  { %v6220_v49 = vld [vmem:[#allocation5 + $0x2c0] sm:$0xf]  ;;  %v8772_v54 = vld [vmem:[#allocation5 + $0x2c4] sm:$0xf]  ;;  %v5965_v56 = vor.u32 %v8712_v48, %v5964_v47  ;;  %945 = vmatpush.bf16.msra.mxu1 %v6253_v45  ;;  %v5969_v58 = vor.u32 %v8708_v52, %v5966_v53  ;;  %973 = vmatpush.bf16.msra.mxu3 %v6257_v50  ;;  %v6068_v41 = vld [vmem:[#allocation5 + $0x188] sm:$0xf]  ;;  %v6361_v48 = vor.u32 %v8805_v37, %v6358_v38 }
  0x33   :  { %v8776_v51 = vld [vmem:[#allocation5 + $0x2dc] sm:$0xf0]  ;;  %v6222_v55 = vld [vmem:[#allocation5 + $0x2e0] sm:$0xf0]  ;;  %v8737_v42 = vld [vmem:[#allocation5 + $0x1a4] sm:$0xf0] }
  0x34   :  { %v6221_v57 = vor.u32 %v8776_v51, %v6220_v49  ;;  %v5932_v59 = vld [vmem:[#allocation5 + $0x80] sm:$0xf]  ;;  %v6225_v62 = vor.u32 %v8772_v54, %v6222_v55  ;;  %v8700_v0 = vld [vmem:[#allocation5 + $0x84] sm:$0xf]  ;;  %932 = vmatpush.bf16.msra.mxu0 %v5965_v56  ;;  %960 = vmatpush.bf16.msra.mxu2 %v5969_v58  ;;  %v6324_v45 = vld [vmem:[#allocation5 + $0x388] sm:$0xf]  ;;  %v6069_v55 = vor.u32 %v8737_v42, %v6068_v41 }
  0x35   :  { %v8704_v60 = vld [vmem:[#allocation5 + $0x9c] sm:$0xf0]  ;;  %v5934_v1 = vld [vmem:[#allocation5 + $0xa0] sm:$0xf0]  ;;  %v8801_v46 = vld [vmem:[#allocation5 + $0x3a4] sm:$0xf0] }
  0x36   :  { %v6188_v61 = vld [vmem:[#allocation5 + $0x280] sm:$0xf]  ;;  %v8764_v2 = vld [vmem:[#allocation5 + $0x284] sm:$0xf]  ;;  %v5933_v4 = vor.u32 %v8704_v60, %v5932_v59  ;;  %946 = vmatpush.bf16.msra.mxu1 %v6221_v57  ;;  %v5937_v6 = vor.u32 %v8700_v0, %v5934_v1  ;;  %974 = vmatpush.bf16.msra.mxu3 %v6225_v62  ;;  %v8733_v47 = vld [vmem:[#allocation5 + $0x18c] sm:$0xf]  ;;  %v6325_v58 = vor.u32 %v8801_v46, %v6324_v45 }
  0x37   :  { %v8768_v63 = vld [vmem:[#allocation5 + $0x29c] sm:$0xf0]  ;;  %v6190_v3 = vld [vmem:[#allocation5 + $0x2a0] sm:$0xf0]  ;;  %v6070_v49 = vld [vmem:[#allocation5 + $0x1a8] sm:$0xf0] }
  0x38   :  { %v6189_v5 = vor.u32 %v8768_v63, %v6188_v61  ;;  %v5900_v7 = vld [vmem:[#allocation5 + $0x40] sm:$0xf]  ;;  %v6193_v10 = vor.u32 %v8764_v2, %v6190_v3  ;;  %v8692_v12 = vld [vmem:[#allocation5 + $0x44] sm:$0xf]  ;;  %933 = vmatpush.bf16.msra.mxu0 %v5933_v4  ;;  %961 = vmatpush.bf16.msra.mxu2 %v5937_v6  ;;  %v8797_v50 = vld [vmem:[#allocation5 + $0x38c] sm:$0xf]  ;;  %v6073_v59 = vor.u32 %v8733_v47, %v6070_v49 }
  0x39   :  { %v8696_v8 = vld [vmem:[#allocation5 + $0x5c] sm:$0xf0]  ;;  %v5902_v13 = vld [vmem:[#allocation5 + $0x60] sm:$0xf0]  ;;  %v6326_v51 = vld [vmem:[#allocation5 + $0x3a8] sm:$0xf0] }
  0x3a   :  { %v6156_v9 = vld [vmem:[#allocation5 + $0x240] sm:$0xf]  ;;  %v8756_v14 = vld [vmem:[#allocation5 + $0x244] sm:$0xf]  ;;  %v5901_v16 = vor.u32 %v8696_v8, %v5900_v7  ;;  %947 = vmatpush.bf16.msra.mxu1 %v6189_v5  ;;  %v5905_v20 = vor.u32 %v8692_v12, %v5902_v13  ;;  %975 = vmatpush.bf16.msra.mxu3 %v6193_v10  ;;  %v5860_v52 = vld [vmem:[#allocation2] sm:$0xf]  ;;  %v6329_v0 = vor.u32 %v8797_v50, %v6326_v51 }
  0x3b   :  { %v8760_v11 = vld [vmem:[#allocation5 + $0x25c] sm:$0xf0]  ;;  %v6158_v15 = vld [vmem:[#allocation5 + $0x260] sm:$0xf0]  ;;  %v8683_v53 = vld [vmem:[#allocation2 + $0x4] sm:$0xf0] }
  0x3c   :  { %v5868_v17 = vld [vmem:[#allocation5] sm:$0xf]  ;;  %v6157_v19 = vor.u32 %v8760_v11, %v6156_v9  ;;  %v8684_v23 = vld [vmem:[#allocation5 + $0x4] sm:$0xf]  ;;  %v6161_v24 = vor.u32 %v8756_v14, %v6158_v15  ;;  %934 = vmatpush.bf16.msra.mxu0 %v5901_v16  ;;  %962 = vmatpush.bf16.msra.mxu2 %v5905_v20  ;;  %v8682_v54 = vld [vmem:[#allocation2 + $0x4] sm:$0xf]  ;;  %v9693_v56 = vor.u32 %v8683_v53, %v5860_v52 }
  0x3d   :  { %v8688_v18 = vld [vmem:[#allocation5 + $0x1c] sm:$0xf0]  ;;  %v5870_v25 = vld [vmem:[#allocation5 + $0x20] sm:$0xf0]  ;;  %v5862_v57 = vld [vmem:[#allocation2 + $0x8] sm:$0xf0] }
  0x3e   :  { %v6124_v21 = vld [vmem:[#allocation5 + $0x200] sm:$0xf]  ;;  %v8748_v26 = vld [vmem:[#allocation5 + $0x204] sm:$0xf]  ;;  %v5869_v31 = vor.u32 %v8688_v18, %v5868_v17  ;;  %948 = vmatpush.bf16.msra.mxu1 %v6157_v19  ;;  %v5873_v36 = vor.u32 %v8684_v23, %v5870_v25  ;;  %976 = vmatpush.bf16.msra.mxu3 %v6161_v24  ;;  %v6036_v60 = vld [vmem:[#allocation5 + $0x148] sm:$0xf]  ;;  %v9695_v63 = vor.u32 %v8682_v54, %v5862_v57 }
  0x3f   :  { %v8752_v22 = vld [vmem:[#allocation5 + $0x21c] sm:$0xf0]  ;;  %v6126_v27 = vld [vmem:[#allocation5 + $0x220] sm:$0xf0]  ;;  %v8729_v61 = vld [vmem:[#allocation5 + $0x164] sm:$0xf0] }
  0x40   :  { %v6125_v35 = vor.u32 %v8752_v22, %v6124_v21  ;;  %v6129_v39 = vor.u32 %v8748_v26, %v6126_v27  ;;  %935 = vmatpush.bf16.msra.mxu0 %v5869_v31  ;;  %963 = vmatpush.bf16.msra.mxu2 %v5873_v36  ;;  %v6292_v62 = vld [vmem:[#allocation5 + $0x348] sm:$0xf]  ;;  %v8725_v2 = vld [vmem:[#allocation5 + $0x14c] sm:$0xf]  ;;  %v6037_v6 = vor.u32 %v8729_v61, %v6036_v60 }
  0x41   :  { %v8793_v1 = vld [vmem:[#allocation5 + $0x364] sm:$0xf0]  ;;  %v6038_v3 = vld [vmem:[#allocation5 + $0x168] sm:$0xf0] }
  0x42   :  { %949 = vmatpush.bf16.msra.mxu1 %v6125_v35  ;;  %977 = vmatpush.bf16.msra.mxu3 %v6129_v39  ;;  %v8789_v4 = vld [vmem:[#allocation5 + $0x34c] sm:$0xf]  ;;  %v6293_v7 = vor.u32 %v8793_v1, %v6292_v62  ;;  %v6041_v8 = vor.u32 %v8725_v2, %v6038_v3  ;;  %v6004_v9 = vld [vmem:[#allocation5 + $0x108] sm:$0xf] }
  0x43   :  { %964 = vmatmul.bf16.vlgmr.msra.gmra.mxu2 %v9693_v56  ;;  %v6294_v5 = vld [vmem:[#allocation5 + $0x368] sm:$0xf0]  ;;  %936 = vmatmul.bf16.vlgmr.msra.gmra.mxu0 %v9693_v56  ;;  %v8721_v10 = vld [vmem:[#allocation5 + $0x124] sm:$0xf0] }
  0x44   :  { %984 = vmatpush.bf16.msrb.mxu0 %v6101_v40  ;;  %1012 = vmatpush.bf16.msrb.mxu2 %v6105_v44  ;;  %v6260_v11 = vld [vmem:[#allocation5 + $0x308] sm:$0xf]  ;;  %v6297_v12 = vor.u32 %v8789_v4, %v6294_v5  ;;  %v8717_v14 = vld [vmem:[#allocation5 + $0x10c] sm:$0xf]  ;;  %v6005_v18 = vor.u32 %v8721_v10, %v6004_v9  ;;  %v6108_v4 = vld [vmem:[#allocation5 + $0x1d0] sm:$0xf] }
  0x45   :  { %978 = vmatmul.bf16.vlgmr.msra.gmra.mxu3 %v9695_v63  ;;  %950 = vmatmul.bf16.vlgmr.msra.gmra.mxu1 %v9695_v63  ;;  %v8785_v13 = vld [vmem:[#allocation5 + $0x324] sm:$0xf0]  ;;  %v6006_v15 = vld [vmem:[#allocation5 + $0x128] sm:$0xf0]  ;;  %v8746_v5 = vld [vmem:[#allocation5 + $0x1ec] sm:$0xf0] }
  0x46   :  { %998 = vmatpush.bf16.msrb.mxu1 %v6357_v43  ;;  %1026 = vmatpush.bf16.msrb.mxu3 %v6361_v48  ;;  %v8781_v16 = vld [vmem:[#allocation5 + $0x30c] sm:$0xf]  ;;  %v6261_v19 = vor.u32 %v8785_v13, %v6260_v11  ;;  %v6009_v20 = vor.u32 %v8717_v14, %v6006_v15  ;;  %v5972_v21 = vld [vmem:[#allocation5 + $0xc8] sm:$0xf]  ;;  %v8742_v9 = vld [vmem:[#allocation5 + $0x1d4] sm:$0xf] }
  0x47   :  { %v6262_v17 = vld [vmem:[#allocation5 + $0x328] sm:$0xf0]  ;;  %v8713_v22 = vld [vmem:[#allocation5 + $0xe4] sm:$0xf0]  ;;  %v6110_v10 = vld [vmem:[#allocation5 + $0x1f0] sm:$0xf0] }
  0x48   :  { %985 = vmatpush.bf16.msrb.mxu0 %v6069_v55  ;;  %1013 = vmatpush.bf16.msrb.mxu2 %v6073_v59  ;;  %v6228_v23 = vld [vmem:[#allocation5 + $0x2c8] sm:$0xf]  ;;  %v6265_v24 = vor.u32 %v8781_v16, %v6262_v17  ;;  %v8709_v26 = vld [vmem:[#allocation5 + $0xcc] sm:$0xf]  ;;  %v5973_v30 = vor.u32 %v8713_v22, %v5972_v21  ;;  %v8806_v13 = vld [vmem:[#allocation5 + $0x3d4] sm:$0xf]  ;;  %v6109_v16 = vor.u32 %v8746_v5, %v6108_v4 }
  0x49   :  { %v8777_v25 = vld [vmem:[#allocation5 + $0x2e4] sm:$0xf0]  ;;  %v5974_v27 = vld [vmem:[#allocation5 + $0xe8] sm:$0xf0]  ;;  %v6366_v14 = vld [vmem:[#allocation5 + $0x3f0] sm:$0xf0] }
  0x4a   :  { %999 = vmatpush.bf16.msrb.mxu1 %v6325_v58  ;;  %1027 = vmatpush.bf16.msrb.mxu3 %v6329_v0  ;;  %v8773_v28 = vld [vmem:[#allocation5 + $0x2cc] sm:$0xf]  ;;  %v6229_v31 = vor.u32 %v8777_v25, %v6228_v23  ;;  %v5977_v32 = vor.u32 %v8709_v26, %v5974_v27  ;;  %v5940_v33 = vld [vmem:[#allocation5 + $0x88] sm:$0xf]  ;;  %v6332_v21 = vld [vmem:[#allocation5 + $0x390] sm:$0xf]  ;;  %v6369_v22 = vor.u32 %v8806_v13, %v6366_v14 }
  0x4b   :  { %v6230_v29 = vld [vmem:[#allocation5 + $0x2e8] sm:$0xf0]  ;;  %v8705_v34 = vld [vmem:[#allocation5 + $0xa4] sm:$0xf0]  ;;  %v8802_v23 = vld [vmem:[#allocation5 + $0x3ac] sm:$0xf0] }
  0x4c   :  { %986 = vmatpush.bf16.msrb.mxu0 %v6037_v6  ;;  %1014 = vmatpush.bf16.msrb.mxu2 %v6041_v8  ;;  %v6196_v35 = vld [vmem:[#allocation5 + $0x288] sm:$0xf]  ;;  %v6233_v36 = vor.u32 %v8773_v28, %v6230_v29  ;;  %v8701_v38 = vld [vmem:[#allocation5 + $0x8c] sm:$0xf]  ;;  %v5941_v42 = vor.u32 %v8705_v34, %v5940_v33  ;;  %v6364_v6 = vld [vmem:[#allocation5 + $0x3d0] sm:$0xf]  ;;  %v6333_v29 = vor.u32 %v8802_v23, %v6332_v21 }
  0x4d   :  { %v8769_v37 = vld [vmem:[#allocation5 + $0x2a4] sm:$0xf0]  ;;  %v5942_v39 = vld [vmem:[#allocation5 + $0xa8] sm:$0xf0]  ;;  %v8810_v8 = vld [vmem:[#allocation5 + $0x3ec] sm:$0xf0] }
  0x4e   :  { %1000 = vmatpush.bf16.msrb.mxu1 %v6293_v7  ;;  %1028 = vmatpush.bf16.msrb.mxu3 %v6297_v12  ;;  %v8765_v40 = vld [vmem:[#allocation5 + $0x28c] sm:$0xf]  ;;  %v6197_v43 = vor.u32 %v8769_v37, %v6196_v35  ;;  %v5945_v44 = vor.u32 %v8701_v38, %v5942_v39  ;;  %v5908_v45 = vld [vmem:[#allocation5 + $0x48] sm:$0xf]  ;;  %v6365_v17 = vor.u32 %v8810_v8, %v6364_v6  ;;  %v6078_v25 = vld [vmem:[#allocation5 + $0x1b0] sm:$0xf0] }
  0x4f   :  { %v6198_v41 = vld [vmem:[#allocation5 + $0x2a8] sm:$0xf0]  ;;  %v8697_v46 = vld [vmem:[#allocation5 + $0x64] sm:$0xf0]  ;;  %v8798_v26 = vld [vmem:[#allocation5 + $0x394] sm:$0xf] }
  0x50   :  { %987 = vmatpush.bf16.msrb.mxu0 %v6005_v18  ;;  %1015 = vmatpush.bf16.msrb.mxu2 %v6009_v20  ;;  %v6164_v47 = vld [vmem:[#allocation5 + $0x248] sm:$0xf]  ;;  %v6201_v48 = vor.u32 %v8765_v40, %v6198_v41  ;;  %v8693_v50 = vld [vmem:[#allocation5 + $0x4c] sm:$0xf]  ;;  %v5909_v54 = vor.u32 %v8697_v46, %v5908_v45  ;;  %v6113_v18 = vor.u32 %v8742_v9, %v6110_v10  ;;  %v8738_v20 = vld [vmem:[#allocation5 + $0x1ac] sm:$0xf0] }
  0x51   :  { %v8761_v49 = vld [vmem:[#allocation5 + $0x264] sm:$0xf0]  ;;  %v5910_v51 = vld [vmem:[#allocation5 + $0x68] sm:$0xf0]  ;;  %v6334_v27 = vld [vmem:[#allocation5 + $0x3b0] sm:$0xf0] }
  0x52   :  { %1001 = vmatpush.bf16.msrb.mxu1 %v6261_v19  ;;  %1029 = vmatpush.bf16.msrb.mxu3 %v6265_v24  ;;  %v8757_v52 = vld [vmem:[#allocation5 + $0x24c] sm:$0xf]  ;;  %v5876_v55 = vld [vmem:[#allocation5 + $0x8] sm:$0xf]  ;;  %v6165_v58 = vor.u32 %v8761_v49, %v6164_v47  ;;  %v5913_v59 = vor.u32 %v8693_v50, %v5910_v51  ;;  %v6076_v19 = vld [vmem:[#allocation5 + $0x190] sm:$0xf]  ;;  %v6337_v34 = vor.u32 %v8798_v26, %v6334_v27 }
  0x53   :  { %v6166_v53 = vld [vmem:[#allocation5 + $0x268] sm:$0xf0]  ;;  %v8689_v57 = vld [vmem:[#allocation5 + $0x24] sm:$0xf0]  ;;  %v8734_v24 = vld [vmem:[#allocation5 + $0x194] sm:$0xf]  ;;  %v6077_v28 = vor.u32 %v8738_v20, %v6076_v19 }
  0x54   :  { %988 = vmatpush.bf16.msrb.mxu0 %v5973_v30  ;;  %1016 = vmatpush.bf16.msrb.mxu2 %v5977_v32  ;;  %v6132_v60 = vld [vmem:[#allocation5 + $0x208] sm:$0xf]  ;;  %v8685_v62 = vld [vmem:[#allocation5 + $0xc] sm:$0xf]  ;;  %v6169_v0 = vor.u32 %v8757_v52, %v6166_v53  ;;  %v5877_v7 = vor.u32 %v8689_v57, %v5876_v55  ;;  %v6081_v30 = vor.u32 %v8734_v24, %v6078_v25  ;;  %v8730_v32 = vld [vmem:[#allocation5 + $0x16c] sm:$0xf0] }
  0x55   :  { %v8753_v61 = vld [vmem:[#allocation5 + $0x224] sm:$0xf0]  ;;  %v5878_v1 = vld [vmem:[#allocation5 + $0x28] sm:$0xf0]  ;;  %v6300_v33 = vld [vmem:[#allocation5 + $0x350] sm:$0xf] }
  0x56   :  { %1002 = vmatpush.bf16.msrb.mxu1 %v6229_v31  ;;  %1030 = vmatpush.bf16.msrb.mxu3 %v6233_v36  ;;  %v8749_v2 = vld [vmem:[#allocation5 + $0x20c] sm:$0xf]  ;;  %v6133_v11 = vor.u32 %v8753_v61, %v6132_v60  ;;  %v5881_v12 = vor.u32 %v8685_v62, %v5878_v1  ;;  %v6044_v31 = vld [vmem:[#allocation5 + $0x150] sm:$0xf]  ;;  %v8726_v36 = vld [vmem:[#allocation5 + $0x154] sm:$0xf] }
  0x57   :  { %v6134_v3 = vld [vmem:[#allocation5 + $0x228] sm:$0xf0]  ;;  %v8794_v35 = vld [vmem:[#allocation5 + $0x36c] sm:$0xf0]  ;;  %v6046_v37 = vld [vmem:[#allocation5 + $0x170] sm:$0xf0]  ;;  %v6045_v40 = vor.u32 %v8730_v32, %v6044_v31 }
  0x58   :  { %989 = vmatpush.bf16.msrb.mxu0 %v5941_v42  ;;  %1017 = vmatpush.bf16.msrb.mxu2 %v5945_v44  ;;  %v6137_v15 = vor.u32 %v8749_v2, %v6134_v3  ;;  %v8790_v38 = vld [vmem:[#allocation5 + $0x354] sm:$0xf]  ;;  %v6301_v41 = vor.u32 %v8794_v35, %v6300_v33  ;;  %v6049_v42 = vor.u32 %v8726_v36, %v6046_v37  ;;  %v8722_v44 = vld [vmem:[#allocation5 + $0x12c] sm:$0xf0] }
  0x59   :  { %v6302_v39 = vld [vmem:[#allocation5 + $0x370] sm:$0xf0]  ;;  %v6268_v45 = vld [vmem:[#allocation5 + $0x310] sm:$0xf] }
  0x5a   :  { %1003 = vmatpush.bf16.msrb.mxu1 %v6197_v43  ;;  %1031 = vmatpush.bf16.msrb.mxu3 %v6201_v48  ;;  %v6012_v43 = vld [vmem:[#allocation5 + $0x110] sm:$0xf]  ;;  %v6305_v46 = vor.u32 %v8790_v38, %v6302_v39  ;;  %v8718_v48 = vld [vmem:[#allocation5 + $0x114] sm:$0xf]  ;;  %v6116_v38 = vld [vmem:[#allocation5 + $0x1d8] sm:$0xf] }
  0x5b   :  { %v8786_v47 = vld [vmem:[#allocation5 + $0x32c] sm:$0xf0]  ;;  %v6014_v49 = vld [vmem:[#allocation5 + $0x130] sm:$0xf0]  ;;  %v6013_v52 = vor.u32 %v8722_v44, %v6012_v43  ;;  %v8747_v39 = vld [vmem:[#allocation5 + $0x1f4] sm:$0xf0] }
  0x5c   :  { %990 = vmatpush.bf16.msrb.mxu0 %v5909_v54  ;;  %1018 = vmatpush.bf16.msrb.mxu2 %v5913_v59  ;;  %v8782_v50 = vld [vmem:[#allocation5 + $0x314] sm:$0xf]  ;;  %v6269_v53 = vor.u32 %v8786_v47, %v6268_v45  ;;  %v6017_v54 = vor.u32 %v8718_v48, %v6014_v49  ;;  %v5980_v55 = vld [vmem:[#allocation5 + $0xd0] sm:$0xf]  ;;  %v8743_v43 = vld [vmem:[#allocation5 + $0x1dc] sm:$0xf] }
  0x5d   :  { %v6270_v51 = vld [vmem:[#allocation5 + $0x330] sm:$0xf0]  ;;  %v8714_v57 = vld [vmem:[#allocation5 + $0xec] sm:$0xf0]  ;;  %v6118_v44 = vld [vmem:[#allocation5 + $0x1f8] sm:$0xf0] }
  0x5e   :  { %1004 = vmatpush.bf16.msrb.mxu1 %v6165_v58  ;;  %1032 = vmatpush.bf16.msrb.mxu3 %v6169_v0  ;;  %v6236_v58 = vld [vmem:[#allocation5 + $0x2d0] sm:$0xf]  ;;  %v6273_v59 = vor.u32 %v8782_v50, %v6270_v51  ;;  %v8710_v61 = vld [vmem:[#allocation5 + $0xd4] sm:$0xf]  ;;  %v5981_v2 = vor.u32 %v8714_v57, %v5980_v55  ;;  %v8807_v47 = vld [vmem:[#allocation5 + $0x3dc] sm:$0xf]  ;;  %v6117_v50 = vor.u32 %v8747_v39, %v6116_v38 }
  0x5f   :  { %v8778_v60 = vld [vmem:[#allocation5 + $0x2ec] sm:$0xf0]  ;;  %v5982_v62 = vld [vmem:[#allocation5 + $0xf0] sm:$0xf0]  ;;  %v6374_v48 = vld [vmem:[#allocation5 + $0x3f8] sm:$0xf0] }
  0x60   :  { %991 = vmatpush.bf16.msrb.mxu0 %v5877_v7  ;;  %1019 = vmatpush.bf16.msrb.mxu2 %v5881_v12  ;;  %v8774_v0 = vld [vmem:[#allocation5 + $0x2d4] sm:$0xf]  ;;  %v6237_v3 = vor.u32 %v8778_v60, %v6236_v58  ;;  %v5985_v4 = vor.u32 %v8710_v61, %v5982_v62  ;;  %v5948_v5 = vld [vmem:[#allocation5 + $0x90] sm:$0xf]  ;;  %v6340_v55 = vld [vmem:[#allocation5 + $0x398] sm:$0xf]  ;;  %v6377_v57 = vor.u32 %v8807_v47, %v6374_v48 }
  0x61   :  { %v6238_v1 = vld [vmem:[#allocation5 + $0x2f0] sm:$0xf0]  ;;  %v8706_v6 = vld [vmem:[#allocation5 + $0xac] sm:$0xf0]  ;;  %v8803_v58 = vld [vmem:[#allocation5 + $0x3b4] sm:$0xf0] }
  0x62   :  { %1005 = vmatpush.bf16.msrb.mxu1 %v6133_v11  ;;  %1033 = vmatpush.bf16.msrb.mxu3 %v6137_v15  ;;  %v6204_v7 = vld [vmem:[#allocation5 + $0x290] sm:$0xf]  ;;  %v6241_v8 = vor.u32 %v8774_v0, %v6238_v1  ;;  %v8702_v10 = vld [vmem:[#allocation5 + $0x94] sm:$0xf]  ;;  %v5949_v14 = vor.u32 %v8706_v6, %v5948_v5  ;;  %v6086_v60 = vld [vmem:[#allocation5 + $0x1b8] sm:$0xf0]  ;;  %v6341_v1 = vor.u32 %v8803_v58, %v6340_v55 }
  0x63   :  { %992 = vmatmul.bf16.vlgmr.msrb.gmra.mxu0 %v9693_v56  ;;  %1020 = vmatmul.bf16.vlgmr.msrb.gmra.mxu2 %v9693_v56  ;;  %v8770_v9 = vld [vmem:[#allocation5 + $0x2ac] sm:$0xf0]  ;;  %v5950_v11 = vld [vmem:[#allocation5 + $0xb0] sm:$0xf0]  ;;  %v8799_v61 = vld [vmem:[#allocation5 + $0x39c] sm:$0xf] }
  0x64   :  { %1040 = vmatpush.bf16.msra.mxu0 %v6109_v16  ;;  %1068 = vmatpush.bf16.msra.mxu2 %v6113_v18  ;;  %v8766_v12 = vld [vmem:[#allocation5 + $0x294] sm:$0xf]  ;;  %v6205_v15 = vor.u32 %v8770_v9, %v6204_v7  ;;  %v5953_v16 = vor.u32 %v8702_v10, %v5950_v11  ;;  %v8698_v18 = vld [vmem:[#allocation5 + $0x6c] sm:$0xf0]  ;;  %v6342_v62 = vld [vmem:[#allocation5 + $0x3b8] sm:$0xf0] }
  0x65   :  { %1006 = vmatmul.bf16.vlgmr.msrb.gmra.mxu1 %v9695_v63  ;;  %1034 = vmatmul.bf16.vlgmr.msrb.gmra.mxu3 %v9695_v63  ;;  %v6206_v13 = vld [vmem:[#allocation5 + $0x2b0] sm:$0xf0]  ;;  %v6172_v19 = vld [vmem:[#allocation5 + $0x250] sm:$0xf]  ;;  %v6308_v5 = vld [vmem:[#allocation5 + $0x358] sm:$0xf]  ;;  %v6345_v6 = vor.u32 %v8799_v61, %v6342_v62 }
  0x66   :  { %1054 = vmatpush.bf16.msra.mxu1 %v6365_v17  ;;  %1082 = vmatpush.bf16.msra.mxu3 %v6369_v22  ;;  %v5916_v17 = vld [vmem:[#allocation5 + $0x50] sm:$0xf]  ;;  %v6209_v20 = vor.u32 %v8766_v12, %v6206_v13  ;;  %v8694_v22 = vld [vmem:[#allocation5 + $0x54] sm:$0xf]  ;;  %v8795_v7 = vld [vmem:[#allocation5 + $0x374] sm:$0xf0] }
  0x67   :  { %v8762_v21 = vld [vmem:[#allocation5 + $0x26c] sm:$0xf0]  ;;  %v5918_v23 = vld [vmem:[#allocation5 + $0x70] sm:$0xf0]  ;;  %v5917_v26 = vor.u32 %v8698_v18, %v5916_v17  ;;  %v6054_v9 = vld [vmem:[#allocation5 + $0x178] sm:$0xf0]  ;;  %v6309_v13 = vor.u32 %v8795_v7, %v6308_v5 }
  0x68   :  { %1041 = vmatpush.bf16.msra.mxu0 %v6077_v28  ;;  %1069 = vmatpush.bf16.msra.mxu2 %v6081_v30  ;;  %v8758_v24 = vld [vmem:[#allocation5 + $0x254] sm:$0xf]  ;;  %v5884_v27 = vld [vmem:[#allocation5 + $0x10] sm:$0xf]  ;;  %v5921_v30 = vor.u32 %v8694_v22, %v5918_v23  ;;  %v8791_v10 = vld [vmem:[#allocation5 + $0x35c] sm:$0xf] }
  0x69   :  { %v6174_v25 = vld [vmem:[#allocation5 + $0x270] sm:$0xf0]  ;;  %v8690_v28 = vld [vmem:[#allocation5 + $0x2c] sm:$0xf0]  ;;  %v6310_v11 = vld [vmem:[#allocation5 + $0x378] sm:$0xf0] }
  0x6a   :  { %1055 = vmatpush.bf16.msra.mxu1 %v6333_v29  ;;  %1083 = vmatpush.bf16.msra.mxu3 %v6337_v34  ;;  %v6173_v29 = vor.u32 %v8762_v21, %v6172_v19  ;;  %v6140_v31 = vld [vmem:[#allocation5 + $0x210] sm:$0xf]  ;;  %v8686_v33 = vld [vmem:[#allocation5 + $0x14] sm:$0xf]  ;;  %v6177_v34 = vor.u32 %v8758_v24, %v6174_v25  ;;  %v6276_v17 = vld [vmem:[#allocation5 + $0x318] sm:$0xf]  ;;  %v6313_v18 = vor.u32 %v8791_v10, %v6310_v11 }
  0x6b   :  { %v8754_v32 = vld [vmem:[#allocation5 + $0x22c] sm:$0xf0]  ;;  %v5886_v35 = vld [vmem:[#allocation5 + $0x30] sm:$0xf0]  ;;  %v8787_v19 = vld [vmem:[#allocation5 + $0x334] sm:$0xf0] }
  0x6c   :  { %1042 = vmatpush.bf16.msra.mxu0 %v6045_v40  ;;  %1070 = vmatpush.bf16.msra.mxu2 %v6049_v42  ;;  %v8750_v36 = vld [vmem:[#allocation5 + $0x214] sm:$0xf]  ;;  %v6372_v40 = vld [vmem:[#allocation5 + $0x3d8] sm:$0xf]  ;;  %v6141_v45 = vor.u32 %v8754_v32, %v6140_v31  ;;  %v6022_v21 = vld [vmem:[#allocation5 + $0x138] sm:$0xf0]  ;;  %v6277_v25 = vor.u32 %v8787_v19, %v6276_v17 }
  0x6d   :  { %v6142_v37 = vld [vmem:[#allocation5 + $0x230] sm:$0xf0]  ;;  %v8811_v42 = vld [vmem:[#allocation5 + $0x3f4] sm:$0xf0]  ;;  %v8783_v22 = vld [vmem:[#allocation5 + $0x31c] sm:$0xf] }
  0x6e   :  { %1056 = vmatpush.bf16.msra.mxu1 %v6301_v41  ;;  %1084 = vmatpush.bf16.msra.mxu3 %v6305_v46  ;;  %v5885_v41 = vor.u32 %v8690_v28, %v5884_v27  ;;  %v5889_v46 = vor.u32 %v8686_v33, %v5886_v35  ;;  %v6145_v49 = vor.u32 %v8750_v36, %v6142_v37  ;;  %v6278_v23 = vld [vmem:[#allocation5 + $0x338] sm:$0xf0]  ;;  %v5988_v27 = vld [vmem:[#allocation5 + $0xd8] sm:$0xf]  ;;  %v6604_v10 = vld [vmem:[#allocation8 + $0x1c0] sm:$0xf] }
  0x6f   :  { %v6373_v51 = vor.u32 %v8811_v42, %v6372_v40  ;;  %v8715_v28 = vld [vmem:[#allocation5 + $0xf4] sm:$0xf0]  ;;  %v8711_v32 = vld [vmem:[#allocation5 + $0xdc] sm:$0xf]  ;;  %v8872_v11 = vld [vmem:[#allocation8 + $0x1dc] sm:$0xf0] }
  0x70   :  { %1043 = vmatpush.bf16.msra.mxu0 %v6013_v52  ;;  %1071 = vmatpush.bf16.msra.mxu2 %v6017_v54  ;;  %v6121_v52 = vor.u32 %v8743_v43, %v6118_v44  ;;  %v8739_v54 = vld [vmem:[#allocation5 + $0x1b4] sm:$0xf0]  ;;  %v5990_v33 = vld [vmem:[#allocation5 + $0xf8] sm:$0xf0]  ;;  %v5989_v36 = vor.u32 %v8715_v28, %v5988_v27  ;;  %v6572_v19 = vld [vmem:[#allocation8 + $0x180] sm:$0xf] }
  0x71   :  { %v8779_v31 = vld [vmem:[#allocation5 + $0x2f4] sm:$0xf0]  ;;  %v6246_v35 = vld [vmem:[#allocation5 + $0x2f8] sm:$0xf0]  ;;  %v5993_v38 = vor.u32 %v8711_v32, %v5990_v33  ;;  %v6796_v28 = vld [vmem:[#allocation8 + $0x340] sm:$0xf] }
  0x72   :  { %1057 = vmatpush.bf16.msra.mxu1 %v6269_v53  ;;  %1085 = vmatpush.bf16.msra.mxu3 %v6273_v59  ;;  %v6084_v53 = vld [vmem:[#allocation5 + $0x198] sm:$0xf]  ;;  %v8735_v59 = vld [vmem:[#allocation5 + $0x19c] sm:$0xf]  ;;  %v8848_v32 = vld [vmem:[#allocation8 + $0x11c] sm:$0xf0] }
  0x73   :  { %v6085_v0 = vor.u32 %v8739_v54, %v6084_v53  ;;  %v5956_v39 = vld [vmem:[#allocation5 + $0x98] sm:$0xf]  ;;  %v8703_v44 = vld [vmem:[#allocation5 + $0x9c] sm:$0xf] }
  0x74   :  { %1044 = vmatpush.bf16.msra.mxu0 %v5981_v2  ;;  %1072 = vmatpush.bf16.msra.mxu2 %v5985_v4  ;;  %v6089_v2 = vor.u32 %v8735_v59, %v6086_v60  ;;  %v8731_v4 = vld [vmem:[#allocation5 + $0x174] sm:$0xf0]  ;;  %v6214_v47 = vld [vmem:[#allocation5 + $0x2b8] sm:$0xf0] }
  0x75   :  { %v8707_v40 = vld [vmem:[#allocation5 + $0xb4] sm:$0xf0]  ;;  %v5926_v58 = vld [vmem:[#allocation5 + $0x78] sm:$0xf0] }
  0x76   :  { %1058 = vmatpush.bf16.msra.mxu1 %v6237_v3  ;;  %1086 = vmatpush.bf16.msra.mxu3 %v6241_v8  ;;  %v6052_v3 = vld [vmem:[#allocation5 + $0x158] sm:$0xf]  ;;  %v8727_v8 = vld [vmem:[#allocation5 + $0x15c] sm:$0xf]  ;;  %v5957_v48 = vor.u32 %v8707_v40, %v5956_v39  ;;  %v6732_v40 = vld [vmem:[#allocation8 + $0x2c0] sm:$0xf] }
  0x77   :  { %v6053_v12 = vor.u32 %v8731_v4, %v6052_v3  ;;  %v8771_v43 = vld [vmem:[#allocation5 + $0x2b4] sm:$0xf0]  ;;  %v8759_v59 = vld [vmem:[#allocation5 + $0x25c] sm:$0xf] }
  0x78   :  { %1045 = vmatpush.bf16.msra.mxu0 %v5949_v14  ;;  %1073 = vmatpush.bf16.msra.mxu2 %v5953_v16  ;;  %v6057_v14 = vor.u32 %v8727_v8, %v6054_v9  ;;  %v8723_v16 = vld [vmem:[#allocation5 + $0x134] sm:$0xf0]  ;;  %v6182_v60 = vld [vmem:[#allocation5 + $0x278] sm:$0xf0] }
  0x79   :  { %v6180_v53 = vld [vmem:[#allocation5 + $0x258] sm:$0xf]  ;;  %v6185_v5 = vor.u32 %v8759_v59, %v6182_v60  ;;  %v5894_v7 = vld [vmem:[#allocation5 + $0x38] sm:$0xf0]  ;;  %v6668_v59 = vld [vmem:[#allocation8 + $0x240] sm:$0xf] }
  0x7a   :  { %1059 = vmatpush.bf16.msra.mxu1 %v6205_v15  ;;  %1087 = vmatpush.bf16.msra.mxu3 %v6209_v20  ;;  %v6020_v15 = vld [vmem:[#allocation5 + $0x118] sm:$0xf]  ;;  %v8719_v20 = vld [vmem:[#allocation5 + $0x11c] sm:$0xf]  ;;  %v8888_v60 = vld [vmem:[#allocation8 + $0x25c] sm:$0xf0] }
  0x7b   :  { %v6021_v24 = vor.u32 %v8723_v16, %v6020_v15  ;;  %v8763_v55 = vld [vmem:[#allocation5 + $0x274] sm:$0xf0]  ;;  %v8751_v8 = vld [vmem:[#allocation5 + $0x21c] sm:$0xf] }
  0x7c   :  { %1046 = vmatpush.bf16.msra.mxu0 %v5917_v26  ;;  %1074 = vmatpush.bf16.msra.mxu2 %v5921_v30  ;;  %v6025_v26 = vor.u32 %v8719_v20, %v6022_v21  ;;  %v6281_v30 = vor.u32 %v8783_v22, %v6278_v23  ;;  %v5892_v62 = vld [vmem:[#allocation5 + $0x18] sm:$0xf]  ;;  %v6150_v9 = vld [vmem:[#allocation5 + $0x238] sm:$0xf0]  ;;  %v8864_v20 = vld [vmem:[#allocation8 + $0x19c] sm:$0xf0] }
  0x7d   :  { %v6148_v3 = vld [vmem:[#allocation5 + $0x218] sm:$0xf]  ;;  %v6153_v17 = vor.u32 %v8751_v8, %v6150_v9  ;;  %v6828_v22 = vld [vmem:[#allocation8 + $0x380] sm:$0xf] }
  0x7e   :  { %1060 = vmatpush.bf16.msra.mxu1 %v6173_v29  ;;  %1088 = vmatpush.bf16.msra.mxu3 %v6177_v34  ;;  %v6244_v29 = vld [vmem:[#allocation5 + $0x2d8] sm:$0xf]  ;;  %v8775_v34 = vld [vmem:[#allocation5 + $0x2dc] sm:$0xf]  ;;  %v8928_v23 = vld [vmem:[#allocation8 + $0x39c] sm:$0xf0] }
  0x7f   :  { %v6245_v37 = vor.u32 %v8779_v31, %v6244_v29  ;;  %v6249_v42 = vor.u32 %v8775_v34, %v6246_v35  ;;  %v8755_v4 = vld [vmem:[#allocation5 + $0x234] sm:$0xf0]  ;;  %v6829_v27 = vor.u32 %v8928_v23, %v6828_v22  ;;  %v8920_v29 = vld [vmem:[#allocation8 + $0x35c] sm:$0xf0] }
  0x80   :  { %1047 = vmatpush.bf16.msra.mxu0 %v5885_v41  ;;  %1075 = vmatpush.bf16.msra.mxu2 %v5889_v46  ;;  %v6212_v41 = vld [vmem:[#allocation5 + $0x298] sm:$0xf]  ;;  %v8767_v46 = vld [vmem:[#allocation5 + $0x29c] sm:$0xf]  ;;  %v6149_v15 = vor.u32 %v8755_v4, %v6148_v3  ;;  %v6508_v31 = vld [vmem:[#allocation8 + $0x100] sm:$0xf]  ;;  %v6797_v33 = vor.u32 %v8920_v29, %v6796_v28  ;;  %v6669_v4 = vor.u32 %v8888_v60, %v6668_v59 }
  0x81   :  { %v6217_v54 = vor.u32 %v8767_v46, %v6214_v47  ;;  %v6764_v34 = vld [vmem:[#allocation8 + $0x300] sm:$0xf] }
  0x82   :  { %1061 = vmatpush.bf16.msra.mxu1 %v6141_v45  ;;  %1089 = vmatpush.bf16.msra.mxu3 %v6145_v49  ;;  %v5958_v45 = vld [vmem:[#allocation5 + $0xb8] sm:$0xf0]  ;;  %v6213_v49 = vor.u32 %v8771_v43, %v6212_v41  ;;  %v8912_v35 = vld [vmem:[#allocation8 + $0x31c] sm:$0xf0] }
  0x83   :  { %1048 = vmatmul.bf16.vlgmr.msra.gmra.mxu0 %v9693_v56  ;;  %1076 = vmatmul.bf16.vlgmr.msra.gmra.mxu2 %v9693_v56  ;;  %v6765_v39 = vor.u32 %v8912_v35, %v6764_v34  ;;  %v7116_v41 = vld [vmem:[#allocation8 + $0x5c0] sm:$0xf] }
  0x84   :  { %1096 = vmatpush.bf16.msrb.mxu0 %v6117_v50  ;;  %1124 = vmatpush.bf16.msrb.mxu2 %v6121_v52  ;;  %v5961_v50 = vor.u32 %v8703_v44, %v5958_v45  ;;  %v8699_v52 = vld [vmem:[#allocation5 + $0x74] sm:$0xf0]  ;;  %v6444_v44 = vld [vmem:[#allocation8 + $0x80] sm:$0xf] }
  0x85   :  { %1062 = vmatmul.bf16.vlgmr.msra.gmra.mxu1 %v9695_v63  ;;  %1090 = vmatmul.bf16.vlgmr.msra.gmra.mxu3 %v9695_v63  ;;  %v8832_v45 = vld [vmem:[#allocation8 + $0x9c] sm:$0xf0] }
  0x86   :  { %1110 = vmatpush.bf16.msrb.mxu1 %v6373_v51  ;;  %1138 = vmatpush.bf16.msrb.mxu3 %v6377_v57  ;;  %v5924_v51 = vld [vmem:[#allocation5 + $0x58] sm:$0xf]  ;;  %v8695_v57 = vld [vmem:[#allocation5 + $0x5c] sm:$0xf]  ;;  %v6700_v47 = vld [vmem:[#allocation8 + $0x280] sm:$0xf] }
  0x87   :  { %v5925_v61 = vor.u32 %v8699_v52, %v5924_v51  ;;  %v8992_v51 = vld [vmem:[#allocation8 + $0x59c] sm:$0xf0] }
  0x88   :  { %1097 = vmatpush.bf16.msrb.mxu0 %v6085_v0  ;;  %1125 = vmatpush.bf16.msrb.mxu2 %v6089_v2  ;;  %v6181_v0 = vor.u32 %v8763_v55, %v6180_v53  ;;  %v8691_v2 = vld [vmem:[#allocation5 + $0x34] sm:$0xf0]  ;;  %v7372_v52 = vld [vmem:[#allocation8 + $0x7c0] sm:$0xf] }
  0x89   :  { %v6412_v53 = vld [vmem:[#allocation8 + $0x40] sm:$0xf] }
  0x8a   :  { %1111 = vmatpush.bf16.msrb.mxu1 %v6341_v1  ;;  %1139 = vmatpush.bf16.msrb.mxu3 %v6345_v6  ;;  %v5929_v1 = vor.u32 %v8695_v57, %v5926_v58  ;;  %v8687_v6 = vld [vmem:[#allocation5 + $0x1c] sm:$0xf]  ;;  %v9064_v58 = vld [vmem:[#allocation8 + $0x7dc] sm:$0xf0] }
  0x8b   :  { %v5897_v16 = vor.u32 %v8687_v6, %v5894_v7  ;;  %v9128_v3 = vld [vmem:[#allocation8 + $0x9dc] sm:$0xf0] }
  0x8c   :  { %1098 = vmatpush.bf16.msrb.mxu0 %v6053_v12  ;;  %1126 = vmatpush.bf16.msrb.mxu2 %v6057_v14  ;;  %v5893_v12 = vor.u32 %v8691_v2, %v5892_v62  ;;  %v8936_v14 = vld [vmem:[#allocation8 + $0x3dc] sm:$0xf0] }
  0x8d   :  { %v6380_v62 = vld [vmem:[#allocation8] sm:$0xf] }
  0x8e   :  { %1112 = vmatpush.bf16.msrb.mxu1 %v6309_v13  ;;  %1140 = vmatpush.bf16.msrb.mxu3 %v6313_v18  ;;  %v6860_v13 = vld [vmem:[#allocation8 + $0x3c0] sm:$0xf]  ;;  %v6605_v18 = vor.u32 %v8872_v11, %v6604_v10 }
  0x8f   :  { %v6861_v21 = vor.u32 %v8936_v14, %v6860_v13  ;;  %v7628_v2 = vld [vmem:[#allocation8 + $0x9c0] sm:$0xf] }
  0x90   :  { %1099 = vmatpush.bf16.msrb.mxu0 %v6021_v24  ;;  %1127 = vmatpush.bf16.msrb.mxu2 %v6025_v26  ;;  %v6573_v24 = vor.u32 %v8864_v20, %v6572_v19  ;;  %v8856_v26 = vld [vmem:[#allocation8 + $0x15c] sm:$0xf0] }
  0x91   :  { %v7052_v6 = vld [vmem:[#allocation8 + $0x540] sm:$0xf] }
  0x92   :  { %1113 = vmatpush.bf16.msrb.mxu1 %v6277_v25  ;;  %1141 = vmatpush.bf16.msrb.mxu3 %v6281_v30  ;;  %v6540_v25 = vld [vmem:[#allocation8 + $0x140] sm:$0xf] }
  0x93   :  { %v6541_v30 = vor.u32 %v8856_v26, %v6540_v25  ;;  %v8984_v7 = vld [vmem:[#allocation8 + $0x55c] sm:$0xf0] }
  0x94   :  { %1100 = vmatpush.bf16.msrb.mxu0 %v5989_v36  ;;  %1128 = vmatpush.bf16.msrb.mxu2 %v5993_v38  ;;  %v6509_v36 = vor.u32 %v8848_v32, %v6508_v31  ;;  %v8840_v38 = vld [vmem:[#allocation8 + $0xdc] sm:$0xf0]  ;;  %v7053_v9 = vor.u32 %v8984_v7, %v7052_v6 }
  0x95   :  { %v8880_v8 = vld [vmem:[#allocation8 + $0x21c] sm:$0xf0] }
  0x96   :  { %1114 = vmatpush.bf16.msrb.mxu1 %v6245_v37  ;;  %1142 = vmatpush.bf16.msrb.mxu3 %v6249_v42  ;;  %v6476_v37 = vld [vmem:[#allocation8 + $0xc0] sm:$0xf] }
  0x97   :  { %v9000_v42 = vld [vmem:[#allocation8 + $0x5dc] sm:$0xf0] }
  0x98   :  { %1101 = vmatpush.bf16.msrb.mxu0 %v5957_v48  ;;  %1129 = vmatpush.bf16.msrb.mxu2 %v5961_v50  ;;  %v7117_v43 = vor.u32 %v9000_v42, %v7116_v41  ;;  %v8896_v48 = vld [vmem:[#allocation8 + $0x29c] sm:$0xf0] }
  0x99   :  { %v7084_v50 = vld [vmem:[#allocation8 + $0x580] sm:$0xf]  ;;  %v6701_v55 = vor.u32 %v8896_v48, %v6700_v47 }
  0x9a   :  { %1115 = vmatpush.bf16.msrb.mxu1 %v6213_v49  ;;  %1143 = vmatpush.bf16.msrb.mxu3 %v6217_v54  ;;  %v6445_v49 = vor.u32 %v8832_v45, %v6444_v44  ;;  %v8824_v54 = vld [vmem:[#allocation8 + $0x5c] sm:$0xf0]  ;;  %v7085_v57 = vor.u32 %v8992_v51, %v7084_v50 }
  0x9b   :  { %v7340_v10 = vld [vmem:[#allocation8 + $0x780] sm:$0xf] }
  0x9c   :  { %1102 = vmatpush.bf16.msrb.mxu0 %v5925_v61  ;;  %1130 = vmatpush.bf16.msrb.mxu2 %v5929_v1  ;;  %v7373_v61 = vor.u32 %v9064_v58, %v7372_v52  ;;  %v8816_v1 = vld [vmem:[#allocation8 + $0x1c] sm:$0xf0] }
  0x9d   :  { %v9056_v11 = vld [vmem:[#allocation8 + $0x79c] sm:$0xf0] }
  0x9e   :  { %1116 = vmatpush.bf16.msrb.mxu1 %v6181_v0  ;;  %1144 = vmatpush.bf16.msrb.mxu3 %v6185_v5  ;;  %v6413_v0 = vor.u32 %v8824_v54, %v6412_v53  ;;  %v6636_v5 = vld [vmem:[#allocation8 + $0x200] sm:$0xf]  ;;  %v7341_v14 = vor.u32 %v9056_v11, %v7340_v10 }
  0x9f   :  { %v9192_v13 = vld [vmem:[#allocation8 + $0xbdc] sm:$0xf0] }
  0xa0   :  { %1103 = vmatpush.bf16.msrb.mxu0 %v5893_v12  ;;  %1131 = vmatpush.bf16.msrb.mxu2 %v5897_v16  ;;  %v7884_v12 = vld [vmem:[#allocation8 + $0xbc0] sm:$0xf]  ;;  %v7629_v16 = vor.u32 %v9128_v3, %v7628_v2 }
  0xa1   :  { %v9120_v19 = vld [vmem:[#allocation8 + $0x99c] sm:$0xf0]  ;;  %v7885_v20 = vor.u32 %v9192_v13, %v7884_v12 }
  0xa2   :  { %1117 = vmatpush.bf16.msrb.mxu1 %v6149_v15  ;;  %1145 = vmatpush.bf16.msrb.mxu3 %v6153_v17  ;;  %v6381_v15 = vor.u32 %v8816_v1, %v6380_v62  ;;  %v7596_v17 = vld [vmem:[#allocation8 + $0x980] sm:$0xf] }
  0xa3   :  { %1104 = vmatmul.bf16.vlgmr.msrb.gmra.mxu0 %v9693_v56  ;;  %1132 = vmatmul.bf16.vlgmr.msrb.gmra.mxu2 %v9693_v56  ;;  %v8904_v56 = vld [vmem:[#allocation8 + $0x2dc] sm:$0xf0]  ;;  %v7597_v26 = vor.u32 %v9120_v19, %v7596_v17 }
  0xa4   :  { %4266 = vmatpush.bf16.msra.mxu0 %v6605_v18  ;;  %v6733_v46 = vor.u32 %v8904_v56, %v6732_v40  ;;  %4294 = vmatpush.bf16.msra.mxu2 %v7117_v43  ;;  %v6637_v18 = vor.u32 %v8880_v8, %v6636_v5  ;;  %v8976_v22 = vld [vmem:[#allocation8 + $0x51c] sm:$0xf0] }
  0xa5   :  { %1118 = vmatmul.bf16.vlgmr.msrb.gmra.mxu1 %v9695_v63  ;;  %1146 = vmatmul.bf16.vlgmr.msrb.gmra.mxu3 %v9695_v63  ;;  %v6477_v63 = vor.u32 %v8840_v38, %v6476_v37  ;;  %v9184_v25 = vld [vmem:[#allocation8 + $0xb9c] sm:$0xf0] }
  0xa6   :  { %4280 = vmatpush.bf16.msra.mxu1 %v6861_v21  ;;  %4308 = vmatpush.bf16.msra.mxu3 %v7373_v61  ;;  %v7020_v21 = vld [vmem:[#allocation8 + $0x500] sm:$0xf] }
  0xa7   :  { %v7021_v23 = vor.u32 %v8976_v22, %v7020_v21  ;;  %v9112_v28 = vld [vmem:[#allocation8 + $0x95c] sm:$0xf0] }
  0xa8   :  { %4267 = vmatpush.bf16.msra.mxu0 %v6573_v24  ;;  %4295 = vmatpush.bf16.msra.mxu2 %v7085_v57  ;;  %v7852_v24 = vld [vmem:[#allocation8 + $0xb80] sm:$0xf] }
  0xa9   :  { %v7853_v29 = vor.u32 %v9184_v25, %v7852_v24  ;;  %v7308_v32 = vld [vmem:[#allocation8 + $0x740] sm:$0xf] }
  0xaa   :  { %4281 = vmatpush.bf16.msra.mxu1 %v6829_v27  ;;  %4309 = vmatpush.bf16.msra.mxu3 %v7341_v14  ;;  %v7564_v27 = vld [vmem:[#allocation8 + $0x940] sm:$0xf] }
  0xab   :  { %v7565_v31 = vor.u32 %v9112_v28, %v7564_v27  ;;  %v7532_v34 = vld [vmem:[#allocation8 + $0x900] sm:$0xf] }
  0xac   :  { %4268 = vmatpush.bf16.msra.mxu0 %v6541_v30  ;;  %4296 = vmatpush.bf16.msra.mxu2 %v7053_v9  ;;  %v9713_v30 = vld [vmem:[#allocation7] sm:$0xff]  ;;  %v9104_v37 = vld [vmem:[#allocation8 + $0x91c] sm:$0xf0] }
  0xad   :  { %v262_v35 = vperm.slane %v9713_v30, 0  ;;  %v7533_v38 = vor.u32 %v9104_v37, %v7532_v34  ;;  %v8968_v40 = vld [vmem:[#allocation8 + $0x4dc] sm:$0xf0] }
  0xae   :  { %4282 = vmatpush.bf16.msra.mxu1 %v6797_v33  ;;  %v9048_v33 = vld [vmem:[#allocation8 + $0x75c] sm:$0xf0] }
  0xaf   :  { %v7820_v56 = vld [vmem:[#allocation8 + $0xb40] sm:$0xf] }
  0xb0   :  { %4269 = vmatpush.bf16.msra.mxu0 %v6509_v36  ;;  %4297 = vmatpush.bf16.msra.mxu2 %v7021_v23  ;;  %v7309_v36 = vor.u32 %v9048_v33, %v7308_v32  ;;  %v7276_v45 = vld [vmem:[#allocation8 + $0x700] sm:$0xf] }
  0xb1   :  { %v7500_v47 = vld [vmem:[#allocation8 + $0x8c0] sm:$0xf] }
  0xb2   :  { %4283 = vmatpush.bf16.msra.mxu1 %v6765_v39  ;;  %v6988_v39 = vld [vmem:[#allocation8 + $0x4c0] sm:$0xf]  ;;  %4310 = vmatpush.bf16.msra.mxu3 %v7309_v36 }
  0xb3   :  { %v6989_v42 = vor.u32 %v8968_v40, %v6988_v39  ;;  %v9096_v50 = vld [vmem:[#allocation8 + $0x8dc] sm:$0xf0] }
  0xb4   :  { %4270 = vmatpush.bf16.msra.mxu0 %v6477_v63  ;;  %v9176_v63 = vld [vmem:[#allocation8 + $0xb5c] sm:$0xf0]  ;;  %v7501_v51 = vor.u32 %v9096_v50, %v7500_v47 }
  0xb5   :  { %v7821_v44 = vor.u32 %v9176_v63, %v7820_v56  ;;  %4298 = vmatpush.bf16.msra.mxu2 %v6989_v42  ;;  %v6956_v52 = vld [vmem:[#allocation8 + $0x480] sm:$0xf] }
  0xb6   :  { %4284 = vmatpush.bf16.msra.mxu1 %v6733_v46  ;;  %v9040_v46 = vld [vmem:[#allocation8 + $0x71c] sm:$0xf0] }
  0xb7   :  { %v8960_v53 = vld [vmem:[#allocation8 + $0x49c] sm:$0xf0] }
  0xb8   :  { %4271 = vmatpush.bf16.msra.mxu0 %v6445_v49  ;;  %v7277_v49 = vor.u32 %v9040_v46, %v7276_v45  ;;  %v7788_v54 = vld [vmem:[#allocation8 + $0xb00] sm:$0xf]  ;;  %v6957_v57 = vor.u32 %v8960_v53, %v6956_v52 }
  0xb9   :  { %v9168_v58 = vld [vmem:[#allocation8 + $0xb1c] sm:$0xf0] }
  0xba   :  { %4285 = vmatpush.bf16.msra.mxu1 %v6701_v55  ;;  %v263_v55 = vperm.slane %v9713_v30, 1  ;;  %4311 = vmatpush.bf16.msra.mxu3 %v7277_v49  ;;  %v7789_v60 = vor.u32 %v9168_v58, %v7788_v54  ;;  %v7244_v61 = vld [vmem:[#allocation8 + $0x6c0] sm:$0xf] }
  0xbb   :  { %v9032_v62 = vld [vmem:[#allocation8 + $0x6dc] sm:$0xf0]  ;;  %4299 = vmatpush.bf16.msra.mxu2 %v6957_v57 }
  0xbc   :  { %4272 = vmatpush.bf16.msra.mxu0 %v6413_v0  ;;  %v7245_v2 = vor.u32 %v9032_v62, %v7244_v61  ;;  %v7468_v3 = vld [vmem:[#allocation8 + $0x880] sm:$0xf]  ;;  %v6574_v61 = vld [vmem:[#allocation8 + $0x1a0] sm:$0xf0] }
  0xbd   :  { %v6924_v6 = vld [vmem:[#allocation8 + $0x440] sm:$0xf] }
  0xbe   :  { %4286 = vmatpush.bf16.msra.mxu1 %v6669_v4  ;;  %v9088_v4 = vld [vmem:[#allocation8 + $0x89c] sm:$0xf0]  ;;  %4312 = vmatpush.bf16.msra.mxu3 %v7245_v2 }
  0xbf   :  { %v7469_v5 = vor.u32 %v9088_v4, %v7468_v3  ;;  %v8952_v7 = vld [vmem:[#allocation8 + $0x45c] sm:$0xf0] }
  0xc0   :  { %4273 = vmatpush.bf16.msra.mxu0 %v6381_v15  ;;  %v937_v41 = vpop.f32.mrf.mxu0  ;;  %v7756_v8 = vld [vmem:[#allocation8 + $0xac0] sm:$0xf]  ;;  %v6925_v11 = vor.u32 %v8952_v7, %v6924_v6  ;;  %v8932_v7 = vld [vmem:[#allocation8 + $0x3c4] sm:$0xf] }
  0xc1   :  { %v938_v48 = vadd.f32 %v937_v41, %v262_v35  ;;  %v9160_v12 = vld [vmem:[#allocation8 + $0xadc] sm:$0xf0] }
  0xc2   :  { %4287 = vmatpush.bf16.msra.mxu1 %v6637_v18  ;;  %v951_v43 = vpop.f32.mrf.mxu1  ;;  %v7757_v14 = vor.u32 %v9160_v12, %v7756_v8  ;;  %v7212_v15 = vld [vmem:[#allocation8 + $0x680] sm:$0xf]  ;;  %4300 = vmatpush.bf16.msra.mxu2 %v6925_v11  ;;  %v6862_v8 = vld [vmem:[#allocation8 + $0x3e0] sm:$0xf0] }
  0xc3   :  { %v952_v0 = vadd.f32 %v951_v43, %v938_v48  ;;  %v7436_v17 = vld [vmem:[#allocation8 + $0x840] sm:$0xf]  ;;  %v8868_v43 = vld [vmem:[#allocation8 + $0x1c4] sm:$0xf] }
  0xc4   :  { %4322 = vmatpush.bf16.msrb.mxu0 %v7629_v16  ;;  %v9024_v16 = vld [vmem:[#allocation8 + $0x69c] sm:$0xf0]  ;;  %v8852_v12 = vld [vmem:[#allocation8 + $0x144] sm:$0xf] }
  0xc5   :  { %v1152_v18 = vmax.f32 %v952_v0, 0.0  ;;  %v9080_v21 = vld [vmem:[#allocation8 + $0x85c] sm:$0xf0] }
  0xc6   :  { %4336 = vmatpush.bf16.msrb.mxu1 %v7885_v20  ;;  %v965_v59 = vpop.f32.mrf.mxu2  ;;  %v7213_v20 = vor.u32 %v9024_v16, %v7212_v15  ;;  %v7437_v23 = vor.u32 %v9080_v21, %v7436_v17  ;;  %v6892_v24 = vld [vmem:[#allocation8 + $0x400] sm:$0xf]  ;;  %v8924_v17 = vld [vmem:[#allocation8 + $0x384] sm:$0xf] }
  0xc7   :  { %v966_v9 = vadd.f32 %v965_v59, %v263_v55  ;;  %v8944_v25 = vld [vmem:[#allocation8 + $0x41c] sm:$0xf0] }
  0xc8   :  { %4323 = vmatpush.bf16.msrb.mxu0 %v7597_v26  ;;  %v979_v1 = vpop.f32.mrf.mxu3  ;;  %v939_v10 = vpop.f32.mrf.mxu0  ;;  %v7724_v26 = vld [vmem:[#allocation8 + $0xa80] sm:$0xf]  ;;  %4313 = vmatpush.bf16.msra.mxu3 %v7213_v20  ;;  %v6893_v28 = vor.u32 %v8944_v25, %v6892_v24  ;;  %v6830_v20 = vld [vmem:[#allocation8 + $0x3a0] sm:$0xf0]  ;;  %v264_v25 = vperm.slane %v9713_v30, 2 }
  0xc9   :  { %v940_v13 = vadd.f32 %v939_v10, %v262_v35  ;;  %v980_v27 = vadd.f32 %v979_v1, %v966_v9  ;;  %v7180_v34 = vld [vmem:[#allocation8 + $0x640] sm:$0xf]  ;;  %v6865_v10 = vor.u32 %v8932_v7, %v6862_v8  ;;  %v6833_v21 = vor.u32 %v8924_v17, %v6830_v20  ;;  %v8844_v24 = vld [vmem:[#allocation8 + $0x104] sm:$0xf] }
  0xca   :  { %4337 = vmatpush.bf16.msrb.mxu1 %v7853_v29  ;;  %v953_v19 = vpop.f32.mrf.mxu1  ;;  %v9152_v29 = vld [vmem:[#allocation8 + $0xa9c] sm:$0xf0]  ;;  %4301 = vmatpush.bf16.msra.mxu2 %v6893_v28 }
  0xcb   :  { %v954_v22 = vadd.f32 %v953_v19, %v940_v13  ;;  %v7725_v33 = vor.u32 %v9152_v29, %v7724_v26  ;;  %v9016_v35 = vld [vmem:[#allocation8 + $0x65c] sm:$0xf0]  ;;  %v1153_v45 = vmax.f32 %v980_v27, 0.0  ;;  %v6542_v13 = vld [vmem:[#allocation8 + $0x160] sm:$0xf0] }
  0xcc   :  { %4324 = vmatpush.bf16.msrb.mxu0 %v7565_v31  ;;  %v7404_v39 = vld [vmem:[#allocation8 + $0x800] sm:$0xf]  ;;  %v6510_v27 = vld [vmem:[#allocation8 + $0x120] sm:$0xf0] }
  0xcd   :  { %v1160_v31 = vmax.f32 %v954_v22, 0.0  ;;  %v9072_v40 = vld [vmem:[#allocation8 + $0x81c] sm:$0xf0]  ;;  %v6513_v28 = vor.u32 %v8844_v24, %v6510_v27 }
  0xce   :  { %4338 = vmatpush.bf16.msrb.mxu1 %v7821_v44  ;;  %v967_v32 = vpop.f32.mrf.mxu2  ;;  %v8140_v56 = vld [vmem:[#allocation8 + $0xdc0] sm:$0xf]  ;;  %v7405_v42 = vor.u32 %v9072_v40, %v7404_v39  ;;  %v6606_v44 = vld [vmem:[#allocation8 + $0x1e0] sm:$0xf0] }
  0xcf   :  { %v968_v36 = vadd.f32 %v967_v32, %v263_v55  ;;  %v9717_v41 = vpack.c.bf16 %v1160_v31, %v1152_v18  ;;  %v9256_v63 = vld [vmem:[#allocation8 + $0xddc] sm:$0xf0]  ;;  %v6609_v48 = vor.u32 %v8868_v43, %v6606_v44  ;;  %v6545_v18 = vor.u32 %v8852_v12, %v6542_v13  ;;  %v8916_v32 = vld [vmem:[#allocation8 + $0x344] sm:$0xf] }
  0xd0   :  { %4325 = vmatpush.bf16.msrb.mxu0 %v7533_v38  ;;  %v981_v37 = vpop.f32.mrf.mxu3  ;;  %v7181_v38 = vor.u32 %v9016_v35, %v7180_v34  ;;  %v8141_v47 = vor.u32 %v9256_v63, %v8140_v56  ;;  %v7692_v49 = vld [vmem:[#allocation8 + $0xa40] sm:$0xf]  ;;  %v6798_v35 = vld [vmem:[#allocation8 + $0x360] sm:$0xf0] }
  0xd1   :  { %v982_v46 = vadd.f32 %v981_v37, %v968_v36  ;;  %v9144_v50 = vld [vmem:[#allocation8 + $0xa5c] sm:$0xf0]  ;;  %4274 = vmatmul.bf16.vlgmr.msra.gmra.mxu0 %v9717_v41  ;;  %v6801_v37 = vor.u32 %v8916_v32, %v6798_v35  ;;  %v8836_v40 = vld [vmem:[#allocation8 + $0xc4] sm:$0xf] }
  0xd2   :  { %4339 = vmatpush.bf16.msrb.mxu1 %v7789_v60  ;;  %4314 = vmatpush.bf16.msra.mxu3 %v7181_v38  ;;  %v7148_v52 = vld [vmem:[#allocation8 + $0x600] sm:$0xf]  ;;  %v8860_v60 = vld [vmem:[#allocation8 + $0x184] sm:$0xf] }
  0xd3   :  { %v9008_v53 = vld [vmem:[#allocation8 + $0x61c] sm:$0xf0]  ;;  %v1161_v54 = vmax.f32 %v982_v46, 0.0  ;;  %4350 = vmatpush.bf16.msrb.mxu2 %v8141_v47  ;;  %v6577_v1 = vor.u32 %v8860_v60, %v6574_v61  ;;  %v6478_v63 = vld [vmem:[#allocation8 + $0xe0] sm:$0xf0] }
  0xd4   :  { %4326 = vmatpush.bf16.msrb.mxu0 %v7501_v51  ;;  %v7693_v51 = vor.u32 %v9144_v50, %v7692_v49  ;;  %v7149_v55 = vor.u32 %v9008_v53, %v7148_v52  ;;  %v8108_v57 = vld [vmem:[#allocation8 + $0xd80] sm:$0xf]  ;;  %v6481_v43 = vor.u32 %v8836_v40, %v6478_v63  ;;  %v8908_v47 = vld [vmem:[#allocation8 + $0x304] sm:$0xf]  ;;  %v265_v53 = vperm.slane %v9713_v30, 3 }
  0xd5   :  { %v9248_v58 = vld [vmem:[#allocation8 + $0xd9c] sm:$0xf0]  ;;  %v9720_v0 = vpack.c.bf16 %v1161_v54, %v1153_v45  ;;  %v7118_v35 = vld [vmem:[#allocation8 + $0x5e0] sm:$0xf0] }
  0xd6   :  { %4340 = vmatpush.bf16.msrb.mxu1 %v7757_v14  ;;  %v8109_v59 = vor.u32 %v9248_v58, %v8108_v57  ;;  %v7660_v62 = vld [vmem:[#allocation8 + $0xa00] sm:$0xf]  ;;  %4315 = vmatpush.bf16.msra.mxu3 %v7149_v55  ;;  %v8828_v55 = vld [vmem:[#allocation8 + $0x84] sm:$0xf] }
  0xd7   :  { %v9136_v2 = vld [vmem:[#allocation8 + $0xa1c] sm:$0xf0]  ;;  %4288 = vmatmul.bf16.vlgmr.msra.gmra.mxu1 %v9720_v0  ;;  %v6446_v57 = vld [vmem:[#allocation8 + $0xa0] sm:$0xf0] }
  0xd8   :  { %4327 = vmatpush.bf16.msrb.mxu0 %v7469_v5  ;;  %v8396_v3 = vld [vmem:[#allocation8 + $0xfc0] sm:$0xf]  ;;  %v7661_v5 = vor.u32 %v9136_v2, %v7660_v62  ;;  %4351 = vmatpush.bf16.msrb.mxu2 %v8109_v59  ;;  %v6449_v59 = vor.u32 %v8828_v55, %v6446_v57  ;;  %v8900_v62 = vld [vmem:[#allocation8 + $0x2c4] sm:$0xf] }
  0xd9   :  { %v9320_v4 = vld [vmem:[#allocation8 + $0xfdc] sm:$0xf0]  ;;  %v6670_v63 = vld [vmem:[#allocation8 + $0x260] sm:$0xf0] }
  0xda   :  { %4341 = vmatpush.bf16.msrb.mxu1 %v7725_v33  ;;  %v8397_v6 = vor.u32 %v9320_v4, %v8396_v3  ;;  %v8076_v9 = vld [vmem:[#allocation8 + $0xd40] sm:$0xf]  ;;  %v6734_v4 = vld [vmem:[#allocation8 + $0x2e0] sm:$0xf0] }
  0xdb   :  { %v9240_v11 = vld [vmem:[#allocation8 + $0xd5c] sm:$0xf0]  ;;  %v6737_v7 = vor.u32 %v8900_v62, %v6734_v4  ;;  %v9060_v57 = vld [vmem:[#allocation8 + $0x7c4] sm:$0xf] }
  0xdc   :  { %4328 = vmatpush.bf16.msrb.mxu0 %v7437_v23  ;;  %4364 = vmatpush.bf16.msrb.mxu3 %v8397_v6  ;;  %v8077_v14 = vor.u32 %v9240_v11, %v8076_v9  ;;  %v8364_v15 = vld [vmem:[#allocation8 + $0xf80] sm:$0xf]  ;;  %v7054_v62 = vld [vmem:[#allocation8 + $0x560] sm:$0xf0] }
  0xdd   :  { %v9312_v16 = vld [vmem:[#allocation8 + $0xf9c] sm:$0xf0] }
  0xde   :  { %4342 = vmatpush.bf16.msrb.mxu1 %v7693_v51  ;;  %v8365_v19 = vor.u32 %v9312_v16, %v8364_v15  ;;  %4352 = vmatpush.bf16.msrb.mxu2 %v8077_v14  ;;  %v8044_v22 = vld [vmem:[#allocation8 + $0xd00] sm:$0xf]  ;;  %v6414_v14 = vld [vmem:[#allocation8 + $0x60] sm:$0xf0] }
  0xdf   :  { %v9232_v23 = vld [vmem:[#allocation8 + $0xd1c] sm:$0xf0] }
  0xe0   :  { %4329 = vmatpush.bf16.msrb.mxu0 %v7405_v42  ;;  %4365 = vmatpush.bf16.msrb.mxu3 %v8365_v19  ;;  %v8045_v26 = vor.u32 %v9232_v23, %v8044_v22  ;;  %v8332_v29 = vld [vmem:[#allocation8 + $0xf40] sm:$0xf]  ;;  %v993_v33 = vpop.f32.mrf.mxu0  ;;  %v8892_v19 = vld [vmem:[#allocation8 + $0x284] sm:$0xf] }
  0xe1   :  { %v9304_v31 = vld [vmem:[#allocation8 + $0xf5c] sm:$0xf0]  ;;  %v994_v56 = vadd.f32 %v993_v33, %v264_v25 }
  0xe2   :  { %4343 = vmatpush.bf16.msrb.mxu1 %v7661_v5  ;;  %v8333_v34 = vor.u32 %v9304_v31, %v8332_v29  ;;  %v1007_v36 = vpop.f32.mrf.mxu1  ;;  %4353 = vmatpush.bf16.msrb.mxu2 %v8045_v26  ;;  %v8012_v38 = vld [vmem:[#allocation8 + $0xcc0] sm:$0xf]  ;;  %v6382_v29 = vld [vmem:[#allocation8 + $0x20] sm:$0xf0] }
  0xe3   :  { %v9224_v39 = vld [vmem:[#allocation8 + $0xcdc] sm:$0xf0]  ;;  %v1008_v52 = vadd.f32 %v1007_v36, %v994_v56  ;;  %v8996_v31 = vld [vmem:[#allocation8 + $0x5c4] sm:$0xf] }
  0xe4   :  { %4378 = vmatpush.bf16.msra.mxu0 %v6609_v48  ;;  %4366 = vmatpush.bf16.msrb.mxu3 %v8333_v34  ;;  %v8013_v42 = vor.u32 %v9224_v39, %v8012_v38  ;;  %v8300_v44 = vld [vmem:[#allocation8 + $0xf00] sm:$0xf]  ;;  %v6766_v48 = vld [vmem:[#allocation8 + $0x320] sm:$0xf0]  ;;  %v7121_v38 = vor.u32 %v8996_v31, %v7118_v35 }
  0xe5   :  { %v9296_v45 = vld [vmem:[#allocation8 + $0xf1c] sm:$0xf0]  ;;  %v6769_v49 = vor.u32 %v8908_v47, %v6766_v48  ;;  %v1154_v11 = vmax.f32 %v1008_v52, 0.0  ;;  %v8884_v56 = vld [vmem:[#allocation8 + $0x244] sm:$0xf] }
  0xe6   :  { %4392 = vmatpush.bf16.msra.mxu1 %v6865_v10  ;;  %v8301_v46 = vor.u32 %v9296_v45, %v8300_v44  ;;  %4354 = vmatpush.bf16.msrb.mxu2 %v8013_v42  ;;  %v7980_v50 = vld [vmem:[#allocation8 + $0xc80] sm:$0xf]  ;;  %v1021_v58 = vpop.f32.mrf.mxu2  ;;  %v8820_v10 = vld [vmem:[#allocation8 + $0x44] sm:$0xf]  ;;  %v6673_v45 = vor.u32 %v8884_v56, %v6670_v63 }
  0xe7   :  { %v9216_v51 = vld [vmem:[#allocation8 + $0xc9c] sm:$0xf0]  ;;  %v1022_v12 = vadd.f32 %v1021_v58, %v265_v53  ;;  %v6417_v16 = vor.u32 %v8820_v10, %v6414_v14  ;;  %v7086_v47 = vld [vmem:[#allocation8 + $0x5a0] sm:$0xf0]  ;;  %v266_v10 = vperm.slane %v9713_v30, 4 }
  0xe8   :  { %4379 = vmatpush.bf16.msra.mxu0 %v6577_v1  ;;  %4367 = vmatpush.bf16.msrb.mxu3 %v8301_v46  ;;  %v7981_v54 = vor.u32 %v9216_v51, %v7980_v50  ;;  %v8268_v60 = vld [vmem:[#allocation8 + $0xec0] sm:$0xf]  ;;  %v995_v1 = vpop.f32.mrf.mxu0  ;;  %v1035_v2 = vpop.f32.mrf.mxu3  ;;  %v8988_v46 = vld [vmem:[#allocation8 + $0x584] sm:$0xf] }
  0xe9   :  { %v9288_v61 = vld [vmem:[#allocation8 + $0xedc] sm:$0xf0]  ;;  %v996_v5 = vadd.f32 %v995_v1, %v264_v25  ;;  %v1036_v26 = vadd.f32 %v1035_v2, %v1022_v12  ;;  %v7089_v48 = vor.u32 %v8988_v46, %v7086_v47  ;;  %v8876_v52 = vld [vmem:[#allocation8 + $0x204] sm:$0xf] }
  0xea   :  { %4393 = vmatpush.bf16.msra.mxu1 %v6833_v21  ;;  %v8269_v3 = vor.u32 %v9288_v61, %v8268_v60  ;;  %v1009_v6 = vpop.f32.mrf.mxu1  ;;  %4355 = vmatpush.bf16.msrb.mxu2 %v7981_v54  ;;  %v7948_v8 = vld [vmem:[#allocation8 + $0xc40] sm:$0xf]  ;;  %v6702_v21 = vld [vmem:[#allocation8 + $0x2a0] sm:$0xf0] }
  0xeb   :  { %v9208_v9 = vld [vmem:[#allocation8 + $0xc5c] sm:$0xf0]  ;;  %v1010_v15 = vadd.f32 %v1009_v6, %v996_v5  ;;  %v6705_v23 = vor.u32 %v8892_v19, %v6702_v21  ;;  %v7374_v58 = vld [vmem:[#allocation8 + $0x7e0] sm:$0xf0] }
  0xec   :  { %4380 = vmatpush.bf16.msra.mxu0 %v6545_v18  ;;  %4368 = vmatpush.bf16.msrb.mxu3 %v8269_v3  ;;  %v7949_v13 = vor.u32 %v9208_v9, %v7948_v8  ;;  %v8236_v17 = vld [vmem:[#allocation8 + $0xe80] sm:$0xf]  ;;  %v7377_v60 = vor.u32 %v9060_v57, %v7374_v58  ;;  %v8980_v61 = vld [vmem:[#allocation8 + $0x544] sm:$0xf] }
  0xed   :  { %v9280_v18 = vld [vmem:[#allocation8 + $0xe9c] sm:$0xf0]  ;;  %v1162_v22 = vmax.f32 %v1010_v15, 0.0  ;;  %v7057_v1 = vor.u32 %v8980_v61, %v7054_v62  ;;  %v9052_v2 = vld [vmem:[#allocation8 + $0x784] sm:$0xf] }
  0xee   :  { %4394 = vmatpush.bf16.msra.mxu1 %v6801_v37  ;;  %v8237_v20 = vor.u32 %v9280_v18, %v8236_v17  ;;  %4356 = vmatpush.bf16.msrb.mxu2 %v7949_v13  ;;  %v7916_v24 = vld [vmem:[#allocation8 + $0xc00] sm:$0xf]  ;;  %v1023_v33 = vpop.f32.mrf.mxu2  ;;  %v7342_v3 = vld [vmem:[#allocation8 + $0x7a0] sm:$0xf0] }
  0xef   :  { %v9200_v25 = vld [vmem:[#allocation8 + $0xc1c] sm:$0xf0]  ;;  %v9725_v32 = vpack.c.bf16 %v1162_v22, %v1154_v11  ;;  %v1024_v36 = vadd.f32 %v1023_v33, %v265_v53  ;;  %v6638_v53 = vld [vmem:[#allocation8 + $0x220] sm:$0xf0]  ;;  %v7345_v4 = vor.u32 %v9052_v2, %v7342_v3 }
  0xf0   :  { %4381 = vmatpush.bf16.msra.mxu0 %v6513_v28  ;;  %4369 = vmatpush.bf16.msrb.mxu3 %v8237_v20  ;;  %v7917_v27 = vor.u32 %v9200_v25, %v7916_v24  ;;  %v8812_v28 = vld [vmem:[#allocation8 + $0x4] sm:$0xf]  ;;  %v1037_v37 = vpop.f32.mrf.mxu3  ;;  %v8204_v39 = vld [vmem:[#allocation8 + $0xe40] sm:$0xf]  ;;  %v6641_v55 = vor.u32 %v8876_v52, %v6638_v53  ;;  %v267_v24 = vperm.slane %v9713_v30, 5 }
  0xf1   :  { %v6385_v34 = vor.u32 %v8812_v28, %v6382_v29  ;;  %v9272_v40 = vld [vmem:[#allocation8 + $0xe5c] sm:$0xf0]  ;;  %4302 = vmatmul.bf16.vlgmr.msra.gmra.mxu2 %v9725_v32  ;;  %v1038_v44 = vadd.f32 %v1037_v37, %v1024_v36  ;;  %v8972_v5 = vld [vmem:[#allocation8 + $0x504] sm:$0xf] }
  0xf2   :  { %4395 = vmatpush.bf16.msra.mxu1 %v6769_v49  ;;  %v8205_v42 = vor.u32 %v9272_v40, %v8204_v39  ;;  %4357 = vmatpush.bf16.msrb.mxu2 %v7917_v27  ;;  %v8172_v49 = vld [vmem:[#allocation8 + $0xe00] sm:$0xf]  ;;  %v7022_v6 = vld [vmem:[#allocation8 + $0x520] sm:$0xf0] }
  0xf3   :  { %v9264_v50 = vld [vmem:[#allocation8 + $0xe1c] sm:$0xf0]  ;;  %v1163_v51 = vmax.f32 %v1038_v44, 0.0  ;;  %v9044_v8 = vld [vmem:[#allocation8 + $0x744] sm:$0xf] }
  0xf4   :  { %4382 = vmatpush.bf16.msra.mxu0 %v6481_v43  ;;  %v1155_v43 = vmax.f32 %v1036_v26, 0.0  ;;  %4370 = vmatpush.bf16.msrb.mxu3 %v8205_v42  ;;  %v8173_v54 = vor.u32 %v9264_v50, %v8172_v49  ;;  %v7310_v9 = vld [vmem:[#allocation8 + $0x760] sm:$0xf0] }
  0xf5   :  { %v7313_v12 = vor.u32 %v9044_v8, %v7310_v9  ;;  %v8964_v13 = vld [vmem:[#allocation8 + $0x4c4] sm:$0xf] }
  0xf6   :  { %4396 = vmatpush.bf16.msra.mxu1 %v6737_v7  ;;  %4406 = vmatpush.bf16.msra.mxu2 %v7121_v38  ;;  %v7025_v7 = vor.u32 %v8972_v5, %v7022_v6  ;;  %v6990_v14 = vld [vmem:[#allocation8 + $0x4e0] sm:$0xf0] }
  0xf7   :  { %v9036_v17 = vld [vmem:[#allocation8 + $0x704] sm:$0xf] }
  0xf8   :  { %4383 = vmatpush.bf16.msra.mxu0 %v6449_v59  ;;  %v9728_v59 = vpack.c.bf16 %v1163_v51, %v1155_v43  ;;  %4371 = vmatpush.bf16.msrb.mxu3 %v8173_v54  ;;  %v7278_v18 = vld [vmem:[#allocation8 + $0x720] sm:$0xf0] }
  0xf9   :  { %v7281_v20 = vor.u32 %v9036_v17, %v7278_v18  ;;  %v8956_v21 = vld [vmem:[#allocation8 + $0x484] sm:$0xf] }
  0xfa   :  { %4397 = vmatpush.bf16.msra.mxu1 %v6705_v23  ;;  %4407 = vmatpush.bf16.msra.mxu2 %v7089_v48  ;;  %v6958_v22 = vld [vmem:[#allocation8 + $0x4a0] sm:$0xf0] }
  0xfb   :  { %4316 = vmatmul.bf16.vlgmr.msra.gmra.mxu3 %v9728_v59  ;;  %v6961_v23 = vor.u32 %v8956_v21, %v6958_v22  ;;  %v9028_v25 = vld [vmem:[#allocation8 + $0x6c4] sm:$0xf] }
  0xfc   :  { %4384 = vmatpush.bf16.msra.mxu0 %v6417_v16  ;;  %4420 = vmatpush.bf16.msra.mxu3 %v7377_v60  ;;  %v6993_v16 = vor.u32 %v8964_v13, %v6990_v14  ;;  %v7246_v26 = vld [vmem:[#allocation8 + $0x6e0] sm:$0xf0] }
  0xfd   :  { %v7249_v33 = vor.u32 %v9028_v25, %v7246_v26  ;;  %v6926_v35 = vld [vmem:[#allocation8 + $0x460] sm:$0xf0] }
  0xfe   :  { %4398 = vmatpush.bf16.msra.mxu1 %v6673_v45  ;;  %4408 = vmatpush.bf16.msra.mxu2 %v7057_v1  ;;  %v9020_v40 = vld [vmem:[#allocation8 + $0x684] sm:$0xf] }
  0xff   :  { %v7214_v56 = vld [vmem:[#allocation8 + $0x6a0] sm:$0xf0] }
 0x100   :  { %4385 = vmatpush.bf16.msra.mxu0 %v6385_v34  ;;  %v1049_v11 = vpop.f32.mrf.mxu0  ;;  %4421 = vmatpush.bf16.msra.mxu3 %v7345_v4  ;;  %v8948_v34 = vld [vmem:[#allocation8 + $0x444] sm:$0xf]  ;;  %v7217_v45 = vor.u32 %v9020_v40, %v7214_v56 }
 0x101   :  { %v1050_v19 = vadd.f32 %v1049_v11, %v266_v10  ;;  %v6929_v38 = vor.u32 %v8948_v34, %v6926_v35  ;;  %v9124_v43 = vld [vmem:[#allocation8 + $0x9c4] sm:$0xf] }
 0x102   :  { %4399 = vmatpush.bf16.msra.mxu1 %v6641_v55  ;;  %v1063_v15 = vpop.f32.mrf.mxu1  ;;  %4409 = vmatpush.bf16.msra.mxu2 %v7025_v7  ;;  %v7630_v44 = vld [vmem:[#allocation8 + $0x9e0] sm:$0xf0] }
 0x103   :  { %v1064_v27 = vadd.f32 %v1063_v15, %v1050_v19  ;;  %v8940_v46 = vld [vmem:[#allocation8 + $0x404] sm:$0xf]  ;;  %v7633_v51 = vor.u32 %v9124_v43, %v7630_v44  ;;  %v269_v43 = vperm.slane %v9713_v30, 7 }
 0x104   :  { %4422 = vmatpush.bf16.msra.mxu3 %v7313_v12  ;;  %v6894_v47 = vld [vmem:[#allocation8 + $0x420] sm:$0xf0] }
 0x105   :  { %v1156_v42 = vmax.f32 %v1064_v27, 0.0  ;;  %v6897_v49 = vor.u32 %v8940_v46, %v6894_v47  ;;  %v9116_v52 = vld [vmem:[#allocation8 + $0x984] sm:$0xf]  ;;  %v268_v27 = vperm.slane %v9713_v30, 6  ;;  %v8873_v30 = vld [vmem:[#allocation8 + $0x1e4] sm:$0xf0] }
 0x106   :  { %4410 = vmatpush.bf16.msra.mxu2 %v6993_v16  ;;  %v1077_v28 = vpop.f32.mrf.mxu2  ;;  %v7598_v55 = vld [vmem:[#allocation8 + $0x9a0] sm:$0xf0] }
 0x107   :  { %v1078_v39 = vadd.f32 %v1077_v28, %v267_v24  ;;  %v9012_v57 = vld [vmem:[#allocation8 + $0x644] sm:$0xf]  ;;  %v7601_v5 = vor.u32 %v9116_v52, %v7598_v55 }
 0x108   :  { %v1051_v29 = vpop.f32.mrf.mxu0  ;;  %v1091_v31 = vpop.f32.mrf.mxu3  ;;  %4423 = vmatpush.bf16.msra.mxu3 %v7281_v20  ;;  %v7182_v58 = vld [vmem:[#allocation8 + $0x660] sm:$0xf0] }
 0x109   :  { %v1052_v36 = vadd.f32 %v1051_v29, %v266_v10  ;;  %v1092_v50 = vadd.f32 %v1091_v31, %v1078_v39  ;;  %v7185_v62 = vor.u32 %v9012_v57, %v7182_v58  ;;  %v9188_v1 = vld [vmem:[#allocation8 + $0xbc4] sm:$0xf] }
 0x10a   :  { %v1065_v37 = vpop.f32.mrf.mxu1  ;;  %4411 = vmatpush.bf16.msra.mxu2 %v6961_v23  ;;  %v7886_v2 = vld [vmem:[#allocation8 + $0xbe0] sm:$0xf0] }
 0x10b   :  { %v1066_v63 = vadd.f32 %v1065_v37, %v1052_v36  ;;  %v1157_v3 = vmax.f32 %v1092_v50, 0.0  ;;  %v9004_v6 = vld [vmem:[#allocation8 + $0x604] sm:$0xf]  ;;  %v7889_v12 = vor.u32 %v9188_v1, %v7886_v2 }
 0x10c   :  { %4424 = vmatpush.bf16.msra.mxu3 %v7249_v33  ;;  %v7150_v7 = vld [vmem:[#allocation8 + $0x620] sm:$0xf0] }
 0x10d   :  { %v1164_v48 = vmax.f32 %v1066_v63, 0.0  ;;  %v9108_v8 = vld [vmem:[#allocation8 + $0x944] sm:$0xf]  ;;  %v7153_v11 = vor.u32 %v9004_v6, %v7150_v7 }
 0x10e   :  { %4412 = vmatpush.bf16.msra.mxu2 %v6929_v38  ;;  %v1079_v54 = vpop.f32.mrf.mxu2  ;;  %v7566_v9 = vld [vmem:[#allocation8 + $0x960] sm:$0xf0] }
 0x10f   :  { %v9733_v53 = vpack.c.bf16 %v1164_v48, %v1156_v42  ;;  %v1080_v60 = vadd.f32 %v1079_v54, %v267_v24  ;;  %v7569_v14 = vor.u32 %v9108_v8, %v7566_v9  ;;  %v9180_v15 = vld [vmem:[#allocation8 + $0xb84] sm:$0xf] }
 0x110   :  { %v1093_v61 = vpop.f32.mrf.mxu3  ;;  %4425 = vmatpush.bf16.msra.mxu3 %v7217_v45  ;;  %v7854_v16 = vld [vmem:[#allocation8 + $0xba0] sm:$0xf0] }
 0x111   :  { %4330 = vmatmul.bf16.vlgmr.msrb.gmra.mxu0 %v9733_v53  ;;  %v1094_v4 = vadd.f32 %v1093_v61, %v1080_v60  ;;  %v9100_v17 = vld [vmem:[#allocation8 + $0x904] sm:$0xf]  ;;  %v7857_v19 = vor.u32 %v9180_v15, %v7854_v16  ;;  %v6612_v61 = vld [vmem:[#allocation8 + $0x1c8] sm:$0xf] }
 0x112   :  { %4413 = vmatpush.bf16.msra.mxu2 %v6897_v49  ;;  %4434 = vmatpush.bf16.msrb.mxu0 %v7633_v51  ;;  %v7534_v18 = vld [vmem:[#allocation8 + $0x920] sm:$0xf0]  ;;  %v6613_v8 = vor.u32 %v8873_v30, %v6612_v61  ;;  %v8865_v15 = vld [vmem:[#allocation8 + $0x1a4] sm:$0xf0] }
 0x113   :  { %v1165_v10 = vmax.f32 %v1094_v4, 0.0  ;;  %v7537_v20 = vor.u32 %v9100_v17, %v7534_v18  ;;  %v9172_v21 = vld [vmem:[#allocation8 + $0xb44] sm:$0xf]  ;;  %v6484_v61 = vld [vmem:[#allocation8 + $0xc8] sm:$0xf] }
 0x114   :  { %4426 = vmatpush.bf16.msra.mxu3 %v7185_v62  ;;  %v7822_v22 = vld [vmem:[#allocation8 + $0xb60] sm:$0xf0]  ;;  %v8841_v30 = vld [vmem:[#allocation8 + $0xe4] sm:$0xf0] }
 0x115   :  { %v9736_v13 = vpack.c.bf16 %v1165_v10, %v1157_v3  ;;  %v9092_v23 = vld [vmem:[#allocation8 + $0x8c4] sm:$0xf]  ;;  %v7825_v26 = vor.u32 %v9172_v21, %v7822_v22 }
 0x116   :  { %4435 = vmatpush.bf16.msrb.mxu0 %v7601_v5  ;;  %v7502_v24 = vld [vmem:[#allocation8 + $0x8e0] sm:$0xf0] }
 0x117   :  { %4344 = vmatmul.bf16.vlgmr.msrb.gmra.mxu1 %v9736_v13  ;;  %v7505_v29 = vor.u32 %v9092_v23, %v7502_v24  ;;  %v9164_v31 = vld [vmem:[#allocation8 + $0xb04] sm:$0xf] }
 0x118   :  { %4427 = vmatpush.bf16.msra.mxu3 %v7153_v11  ;;  %4448 = vmatpush.bf16.msrb.mxu1 %v7889_v12  ;;  %v7790_v33 = vld [vmem:[#allocation8 + $0xb20] sm:$0xf0] }
 0x119   :  { %v9084_v34 = vld [vmem:[#allocation8 + $0x884] sm:$0xf]  ;;  %v7793_v36 = vor.u32 %v9164_v31, %v7790_v33  ;;  %v6548_v33 = vld [vmem:[#allocation8 + $0x148] sm:$0xf] }
 0x11a   :  { %4436 = vmatpush.bf16.msrb.mxu0 %v7569_v14  ;;  %v7470_v35 = vld [vmem:[#allocation8 + $0x8a0] sm:$0xf0]  ;;  %v6580_v14 = vld [vmem:[#allocation8 + $0x188] sm:$0xf] }
 0x11b   :  { %v7473_v38 = vor.u32 %v9084_v34, %v7470_v35  ;;  %v9156_v39 = vld [vmem:[#allocation8 + $0xac4] sm:$0xf]  ;;  %v8857_v34 = vld [vmem:[#allocation8 + $0x164] sm:$0xf0] }
 0x11c   :  { %4449 = vmatpush.bf16.msrb.mxu1 %v7857_v19  ;;  %v7758_v40 = vld [vmem:[#allocation8 + $0xae0] sm:$0xf0] }
 0x11d   :  { %v9076_v56 = vld [vmem:[#allocation8 + $0x844] sm:$0xf]  ;;  %v7761_v46 = vor.u32 %v9156_v39, %v7758_v40 }
 0x11e   :  { %4437 = vmatpush.bf16.msrb.mxu0 %v7537_v20  ;;  %v7438_v42 = vld [vmem:[#allocation8 + $0x860] sm:$0xf0] }
 0x11f   :  { %v7441_v49 = vor.u32 %v9076_v56, %v7438_v42  ;;  %v9148_v50 = vld [vmem:[#allocation8 + $0xa84] sm:$0xf] }
 0x120   :  { %v1105_v25 = vpop.f32.mrf.mxu0  ;;  %4450 = vmatpush.bf16.msrb.mxu1 %v7825_v26  ;;  %v7726_v51 = vld [vmem:[#allocation8 + $0xaa0] sm:$0xf0]  ;;  %v6581_v26 = vor.u32 %v8865_v15, %v6580_v14 }
 0x121   :  { %4386 = vmatmul.bf16.vlgmr.msra.gmra.mxu0 %v9717_v41  ;;  %v1106_v37 = vadd.f32 %v1105_v25, %v268_v27  ;;  %v9068_v54 = vld [vmem:[#allocation8 + $0x804] sm:$0xf]  ;;  %v7729_v1 = vor.u32 %v9148_v50, %v7726_v51 }
 0x122   :  { %v1119_v28 = vpop.f32.mrf.mxu1  ;;  %4438 = vmatpush.bf16.msrb.mxu0 %v7505_v29  ;;  %v7406_v55 = vld [vmem:[#allocation8 + $0x820] sm:$0xf0] }
 0x123   :  { %v1120_v47 = vadd.f32 %v1119_v28, %v1106_v37  ;;  %v9252_v57 = vld [vmem:[#allocation8 + $0xdc4] sm:$0xf]  ;;  %v7409_v4 = vor.u32 %v9068_v54, %v7406_v55  ;;  %v8937_v28 = vld [vmem:[#allocation8 + $0x3e4] sm:$0xf0] }
 0x124   :  { %4451 = vmatpush.bf16.msrb.mxu1 %v7793_v36  ;;  %v8142_v60 = vld [vmem:[#allocation8 + $0xde0] sm:$0xf0] }
 0x125   :  { %v1158_v2 = vmax.f32 %v1120_v47, 0.0  ;;  %v9140_v5 = vld [vmem:[#allocation8 + $0xa44] sm:$0xf]  ;;  %v8145_v7 = vor.u32 %v9252_v57, %v8142_v60  ;;  %v8921_v60 = vld [vmem:[#allocation8 + $0x364] sm:$0xf0] }
 0x126   :  { %v1133_v63 = vpop.f32.mrf.mxu2  ;;  %4439 = vmatpush.bf16.msrb.mxu0 %v7473_v38  ;;  %v7694_v6 = vld [vmem:[#allocation8 + $0xa60] sm:$0xf0] }
 0x127   :  { %4400 = vmatmul.bf16.vlgmr.msra.gmra.mxu1 %v9720_v0  ;;  %v1134_v62 = vadd.f32 %v1133_v63, %v269_v43  ;;  %v9244_v9 = vld [vmem:[#allocation8 + $0xd84] sm:$0xf]  ;;  %v7697_v18 = vor.u32 %v9140_v5, %v7694_v6  ;;  %v6485_v5 = vor.u32 %v8841_v30, %v6484_v61  ;;  %v9121_v61 = vld [vmem:[#allocation8 + $0x9a4] sm:$0xf0] }
 0x128   :  { %v1147_v44 = vpop.f32.mrf.mxu3  ;;  %v1107_v45 = vpop.f32.mrf.mxu0  ;;  %4452 = vmatpush.bf16.msrb.mxu1 %v7761_v46  ;;  %v8110_v12 = vld [vmem:[#allocation8 + $0xda0] sm:$0xf0] }
 0x129   :  { %v1108_v48 = vadd.f32 %v1107_v45, %v268_v27  ;;  %v1148_v16 = vadd.f32 %v1147_v44, %v1134_v62  ;;  %v9132_v19 = vld [vmem:[#allocation8 + $0xa04] sm:$0xf]  ;;  %v8113_v25 = vor.u32 %v9244_v9, %v8110_v12  ;;  %v6868_v27 = vld [vmem:[#allocation8 + $0x3c8] sm:$0xf] }
 0x12a   :  { %v1121_v52 = vpop.f32.mrf.mxu1  ;;  %4440 = vmatpush.bf16.msrb.mxu0 %v7441_v49  ;;  %v7662_v21 = vld [vmem:[#allocation8 + $0xa20] sm:$0xf0]  ;;  %v6869_v39 = vor.u32 %v8937_v28, %v6868_v27  ;;  %v6836_v44 = vld [vmem:[#allocation8 + $0x388] sm:$0xf] }
 0x12b   :  { %v1122_v58 = vadd.f32 %v1121_v52, %v1108_v48  ;;  %v9316_v22 = vld [vmem:[#allocation8 + $0xfc4] sm:$0xf]  ;;  %v1159_v35 = vmax.f32 %v1148_v16, 0.0  ;;  %v7665_v37 = vor.u32 %v9132_v19, %v7662_v21  ;;  %v8929_v45 = vld [vmem:[#allocation8 + $0x3a4] sm:$0xf0] }
 0x12c   :  { %4453 = vmatpush.bf16.msrb.mxu1 %v7729_v1  ;;  %v8398_v23 = vld [vmem:[#allocation8 + $0xfe0] sm:$0xf0]  ;;  %v6516_v48 = vld [vmem:[#allocation8 + $0x108] sm:$0xf]  ;;  %v6837_v51 = vor.u32 %v8929_v45, %v6836_v44 }
 0x12d   :  { %v1166_v3 = vmax.f32 %v1122_v58, 0.0  ;;  %v9236_v29 = vld [vmem:[#allocation8 + $0xd44] sm:$0xf]  ;;  %v8401_v38 = vor.u32 %v9316_v22, %v8398_v23  ;;  %v8849_v49 = vld [vmem:[#allocation8 + $0x124] sm:$0xf0] }
 0x12e   :  { %v1135_v11 = vpop.f32.mrf.mxu2  ;;  %4441 = vmatpush.bf16.msrb.mxu0 %v7409_v4  ;;  %v8078_v31 = vld [vmem:[#allocation8 + $0xd60] sm:$0xf0]  ;;  %v6517_v55 = vor.u32 %v8849_v49, %v6516_v48  ;;  %v6804_v58 = vld [vmem:[#allocation8 + $0x348] sm:$0xf] }
 0x12f   :  { %v9743_v10 = vpack.c.bf16 %v1166_v3, %v1158_v2  ;;  %v1136_v17 = vadd.f32 %v1135_v11, %v269_v43  ;;  %v9308_v40 = vld [vmem:[#allocation8 + $0xf84] sm:$0xf]  ;;  %v8081_v63 = vor.u32 %v9236_v29, %v8078_v31  ;;  %v6549_v43 = vor.u32 %v8857_v34, %v6548_v33  ;;  %v6452_v11 = vld [vmem:[#allocation8 + $0x88] sm:$0xf] }
 0x130   :  { %v1149_v20 = vpop.f32.mrf.mxu3  ;;  %4454 = vmatpush.bf16.msrb.mxu1 %v7697_v18  ;;  %v8366_v56 = vld [vmem:[#allocation8 + $0xfa0] sm:$0xf0]  ;;  %v6805_v3 = vor.u32 %v8921_v60, %v6804_v58  ;;  %v8833_v12 = vld [vmem:[#allocation8 + $0xa4] sm:$0xf0] }
 0x131   :  { %4358 = vmatmul.bf16.vlgmr.msrb.gmra.mxu2 %v9743_v10  ;;  %v1150_v24 = vadd.f32 %v1149_v20, %v1136_v17  ;;  %4442 = vmatmul.bf16.vlgmr.msrb.gmra.mxu0 %v9733_v53  ;;  %v9228_v46 = vld [vmem:[#allocation8 + $0xd04] sm:$0xf]  ;;  %v8369_v50 = vor.u32 %v9308_v40, %v8366_v56  ;;  %v6453_v19 = vor.u32 %v8833_v12, %v6452_v11  ;;  %v6740_v21 = vld [vmem:[#allocation8 + $0x2c8] sm:$0xf] }
 0x132   :  { %4462 = vmatpush.bf16.msrb.mxu2 %v8145_v7  ;;  %4490 = vmatpush.bf16.msra.mxu0 %v6613_v8  ;;  %v8046_v47 = vld [vmem:[#allocation8 + $0xd20] sm:$0xf0]  ;;  %v6772_v7 = vld [vmem:[#allocation8 + $0x308] sm:$0xf] }
 0x133   :  { %v1167_v36 = vmax.f32 %v1150_v24, 0.0  ;;  %v9300_v52 = vld [vmem:[#allocation8 + $0xf44] sm:$0xf]  ;;  %v8049_v54 = vor.u32 %v9228_v46, %v8046_v47  ;;  %v8913_v8 = vld [vmem:[#allocation8 + $0x324] sm:$0xf0] }
 0x134   :  { %4455 = vmatpush.bf16.msrb.mxu1 %v7665_v37  ;;  %v8334_v57 = vld [vmem:[#allocation8 + $0xf60] sm:$0xf0]  ;;  %v6773_v17 = vor.u32 %v8913_v8, %v6772_v7  ;;  %v8905_v22 = vld [vmem:[#allocation8 + $0x2e4] sm:$0xf0] }
 0x135   :  { %v9747_v42 = vpack.c.bf16 %v1167_v36, %v1159_v35  ;;  %v9220_v62 = vld [vmem:[#allocation8 + $0xcc4] sm:$0xf]  ;;  %v8337_v2 = vor.u32 %v9300_v52, %v8334_v57  ;;  %v6420_v24 = vld [vmem:[#allocation8 + $0x48] sm:$0xf]  ;;  %v6741_v29 = vor.u32 %v8905_v22, %v6740_v21 }
 0x136   :  { %4463 = vmatpush.bf16.msrb.mxu2 %v8113_v25  ;;  %4491 = vmatpush.bf16.msra.mxu0 %v6581_v26  ;;  %v8014_v1 = vld [vmem:[#allocation8 + $0xce0] sm:$0xf0]  ;;  %v8825_v25 = vld [vmem:[#allocation8 + $0x64] sm:$0xf0] }
 0x137   :  { %4372 = vmatmul.bf16.vlgmr.msrb.gmra.mxu3 %v9747_v42  ;;  %4456 = vmatmul.bf16.vlgmr.msrb.gmra.mxu1 %v9736_v13  ;;  %v9292_v4 = vld [vmem:[#allocation8 + $0xf04] sm:$0xf]  ;;  %v8017_v9 = vor.u32 %v9220_v62, %v8014_v1  ;;  %v6421_v33 = vor.u32 %v8825_v25, %v6420_v24  ;;  %v6708_v35 = vld [vmem:[#allocation8 + $0x288] sm:$0xf] }
 0x138   :  { %4476 = vmatpush.bf16.msrb.mxu3 %v8401_v38  ;;  %4504 = vmatpush.bf16.msra.mxu1 %v6869_v39  ;;  %v8302_v6 = vld [vmem:[#allocation8 + $0xf20] sm:$0xf0]  ;;  %v8897_v36 = vld [vmem:[#allocation8 + $0x2a4] sm:$0xf0] }
 0x139   :  { %v9212_v14 = vld [vmem:[#allocation8 + $0xc84] sm:$0xf]  ;;  %v8305_v16 = vor.u32 %v9292_v4, %v8302_v6  ;;  %v6388_v39 = vld [vmem:[#allocation8 + $0x8] sm:$0xf]  ;;  %v6709_v45 = vor.u32 %v8897_v36, %v6708_v35 }
 0x13a   :  { %4464 = vmatpush.bf16.msrb.mxu2 %v8081_v63  ;;  %4492 = vmatpush.bf16.msra.mxu0 %v6549_v43  ;;  %v7982_v15 = vld [vmem:[#allocation8 + $0xca0] sm:$0xf0]  ;;  %v8817_v40 = vld [vmem:[#allocation8 + $0x24] sm:$0xf0] }
 0x13b   :  { %v9284_v18 = vld [vmem:[#allocation8 + $0xec4] sm:$0xf]  ;;  %v7985_v23 = vor.u32 %v9212_v14, %v7982_v15  ;;  %v7636_v63 = vld [vmem:[#allocation8 + $0x9c8] sm:$0xf]  ;;  %v6389_v49 = vor.u32 %v8817_v40, %v6388_v39 }
 0x13c   :  { %4477 = vmatpush.bf16.msrb.mxu3 %v8369_v50  ;;  %4505 = vmatpush.bf16.msra.mxu1 %v6837_v51  ;;  %v8270_v20 = vld [vmem:[#allocation8 + $0xee0] sm:$0xf0]  ;;  %v9129_v43 = vld [vmem:[#allocation8 + $0x9e4] sm:$0xf0] }
 0x13d   :  { %v9204_v26 = vld [vmem:[#allocation8 + $0xc44] sm:$0xf]  ;;  %v8273_v28 = vor.u32 %v9284_v18, %v8270_v20  ;;  %v7124_v46 = vld [vmem:[#allocation8 + $0x5c8] sm:$0xf] }
 0x13e   :  { %4465 = vmatpush.bf16.msrb.mxu2 %v8049_v54  ;;  %4493 = vmatpush.bf16.msra.mxu0 %v6517_v55  ;;  %v7950_v27 = vld [vmem:[#allocation8 + $0xc60] sm:$0xf0]  ;;  %v9001_v47 = vld [vmem:[#allocation8 + $0x5e4] sm:$0xf0]  ;;  %v7637_v55 = vor.u32 %v9129_v43, %v7636_v63 }
 0x13f   :  { %v9276_v31 = vld [vmem:[#allocation8 + $0xe84] sm:$0xf]  ;;  %v7953_v37 = vor.u32 %v9204_v26, %v7950_v27  ;;  %v6676_v51 = vld [vmem:[#allocation8 + $0x248] sm:$0xf]  ;;  %v7125_v57 = vor.u32 %v9001_v47, %v7124_v46 }
 0x140   :  { %4478 = vmatpush.bf16.msrb.mxu3 %v8337_v2  ;;  %4506 = vmatpush.bf16.msra.mxu1 %v6805_v3  ;;  %v8238_v34 = vld [vmem:[#allocation8 + $0xea0] sm:$0xf0]  ;;  %v8889_v52 = vld [vmem:[#allocation8 + $0x264] sm:$0xf0] }
 0x141   :  { %4414 = vmatmul.bf16.vlgmr.msra.gmra.mxu2 %v9725_v32  ;;  %v9196_v38 = vld [vmem:[#allocation8 + $0xc04] sm:$0xf]  ;;  %v8241_v44 = vor.u32 %v9276_v31, %v8238_v34  ;;  %v7092_v58 = vld [vmem:[#allocation8 + $0x588] sm:$0xf]  ;;  %v6677_v62 = vor.u32 %v8889_v52, %v6676_v51 }
 0x142   :  { %4494 = vmatpush.bf16.msra.mxu0 %v6485_v5  ;;  %4466 = vmatpush.bf16.msrb.mxu2 %v8017_v9  ;;  %v7918_v56 = vld [vmem:[#allocation8 + $0xc20] sm:$0xf0]  ;;  %v7604_v60 = vld [vmem:[#allocation8 + $0x988] sm:$0xf] }
 0x143   :  { %v9268_v48 = vld [vmem:[#allocation8 + $0xe44] sm:$0xf]  ;;  %v7921_v54 = vor.u32 %v9196_v38, %v7918_v56  ;;  %v8993_v1 = vld [vmem:[#allocation8 + $0x5a4] sm:$0xf0]  ;;  %v7605_v7 = vor.u32 %v9121_v61, %v7604_v60 }
 0x144   :  { %4479 = vmatpush.bf16.msrb.mxu3 %v8305_v16  ;;  %4507 = vmatpush.bf16.msra.mxu1 %v6773_v17  ;;  %v8206_v50 = vld [vmem:[#allocation8 + $0xe60] sm:$0xf0]  ;;  %v6644_v4 = vld [vmem:[#allocation8 + $0x208] sm:$0xf]  ;;  %v7093_v12 = vor.u32 %v8993_v1, %v7092_v58 }
 0x145   :  { %v8209_v30 = vor.u32 %v9268_v48, %v8206_v50  ;;  %v9260_v2 = vld [vmem:[#allocation8 + $0xe04] sm:$0xf]  ;;  %v8881_v5 = vld [vmem:[#allocation8 + $0x224] sm:$0xf0] }
 0x146   :  { %4495 = vmatpush.bf16.msra.mxu0 %v6453_v19  ;;  %4467 = vmatpush.bf16.msrb.mxu2 %v7985_v23  ;;  %v8174_v3 = vld [vmem:[#allocation8 + $0xe20] sm:$0xf0]  ;;  %v7380_v6 = vld [vmem:[#allocation8 + $0x7c8] sm:$0xf]  ;;  %v6645_v17 = vor.u32 %v8881_v5, %v6644_v4 }
 0x147   :  { %4428 = vmatmul.bf16.vlgmr.msra.gmra.mxu3 %v9728_v59  ;;  %v9065_v8 = vld [vmem:[#allocation8 + $0x7e4] sm:$0xf0]  ;;  %v8177_v16 = vor.u32 %v9260_v2, %v8174_v3  ;;  %v9753_v20 = vld [vmem:[#allocation10] sm:$0xff] }
 0x148   :  { %4480 = vmatpush.bf16.msrb.mxu3 %v8273_v28  ;;  %4508 = vmatpush.bf16.msra.mxu1 %v6741_v29  ;;  %v7892_v9 = vld [vmem:[#allocation8 + $0xbc8] sm:$0xf]  ;;  %v7381_v21 = vor.u32 %v9065_v8, %v7380_v6 }
 0x149   :  { %v9193_v11 = vld [vmem:[#allocation8 + $0xbe4] sm:$0xf0] }
 0x14a   :  { %4496 = vmatpush.bf16.msra.mxu0 %v6421_v33  ;;  %4468 = vmatpush.bf16.msrb.mxu2 %v7953_v37  ;;  %v7572_v14 = vld [vmem:[#allocation8 + $0x948] sm:$0xf]  ;;  %v7893_v22 = vor.u32 %v9193_v11, %v7892_v9  ;;  %v10025_v33 = vperm.slane %v9753_v20, 0 }
 0x14b   :  { %v9113_v15 = vld [vmem:[#allocation8 + $0x964] sm:$0xf0] }
 0x14c   :  { %4481 = vmatpush.bf16.msrb.mxu3 %v8241_v44  ;;  %4509 = vmatpush.bf16.msra.mxu1 %v6709_v45  ;;  %v7060_v18 = vld [vmem:[#allocation8 + $0x548] sm:$0xf]  ;;  %v7573_v24 = vor.u32 %v9113_v15, %v7572_v14 }
 0x14d   :  { %v8985_v19 = vld [vmem:[#allocation8 + $0x564] sm:$0xf0] }
 0x14e   :  { %4497 = vmatpush.bf16.msra.mxu0 %v6389_v49  ;;  %4469 = vmatpush.bf16.msrb.mxu2 %v7921_v54  ;;  %v7348_v23 = vld [vmem:[#allocation8 + $0x788] sm:$0xf]  ;;  %v7061_v28 = vor.u32 %v8985_v19, %v7060_v18  ;;  %v4275_v43 = vpop.f32.mrf.mxu0 }
 0x14f   :  { %v9057_v25 = vld [vmem:[#allocation8 + $0x7a4] sm:$0xf0]  ;;  %v4276_v47 = vadd.f32 %v4275_v43, %v10025_v33 }
 0x150   :  { %4482 = vmatpush.bf16.msrb.mxu3 %v8209_v30  ;;  %4510 = vmatpush.bf16.msra.mxu1 %v6677_v62  ;;  %v7860_v26 = vld [vmem:[#allocation8 + $0xb88] sm:$0xf]  ;;  %v7349_v36 = vor.u32 %v9057_v25, %v7348_v23 }
 0x151   :  { %4498 = vmatmul.bf16.vlgmr.msra.gmra.mxu0 %v9717_v41  ;;  %4470 = vmatmul.bf16.vlgmr.msrb.gmra.mxu2 %v9743_v10  ;;  %v9185_v27 = vld [vmem:[#allocation8 + $0xba4] sm:$0xf0] }
 0x152   :  { %4546 = vmatpush.bf16.msrb.mxu0 %v7637_v55  ;;  %4518 = vmatpush.bf16.msra.mxu2 %v7125_v57  ;;  %v7540_v29 = vld [vmem:[#allocation8 + $0x908] sm:$0xf]  ;;  %v7861_v37 = vor.u32 %v9185_v27, %v7860_v26 }
 0x153   :  { %v9105_v31 = vld [vmem:[#allocation8 + $0x924] sm:$0xf0] }
 0x154   :  { %4483 = vmatpush.bf16.msrb.mxu3 %v8177_v16  ;;  %4511 = vmatpush.bf16.msra.mxu1 %v6645_v17  ;;  %v7028_v34 = vld [vmem:[#allocation8 + $0x508] sm:$0xf]  ;;  %v7541_v39 = vor.u32 %v9105_v31, %v7540_v29  ;;  %v4289_v60 = vpop.f32.mrf.mxu1 }
 0x155   :  { %v8977_v35 = vld [vmem:[#allocation8 + $0x524] sm:$0xf0]  ;;  %v9762_v1 = vadd.f32 %v4289_v60, %v4276_v47 }
 0x156   :  { %4547 = vmatpush.bf16.msrb.mxu0 %v7605_v7  ;;  %4519 = vmatpush.bf16.msra.mxu2 %v7093_v12  ;;  %v7316_v38 = vld [vmem:[#allocation8 + $0x748] sm:$0xf]  ;;  %v7029_v44 = vor.u32 %v8977_v35, %v7028_v34  ;;  %v8869_v34 = vld [vmem:[#allocation8 + $0x1cc] sm:$0xf] }
 0x157   :  { %v9049_v40 = vld [vmem:[#allocation8 + $0x764] sm:$0xf0]  ;;  %4512 = vmatmul.bf16.vlgmr.msra.gmra.mxu1 %v9720_v0  ;;  %4484 = vmatmul.bf16.vlgmr.msrb.gmra.mxu3 %v9747_v42  ;;  %v6614_v35 = vld [vmem:[#allocation8 + $0x1e8] sm:$0xf0] }
 0x158   :  { %4532 = vmatpush.bf16.msra.mxu3 %v7381_v21  ;;  %4560 = vmatpush.bf16.msrb.mxu1 %v7893_v22  ;;  %v7828_v56 = vld [vmem:[#allocation8 + $0xb48] sm:$0xf]  ;;  %v7317_v50 = vor.u32 %v9049_v40, %v7316_v38 }
 0x159   :  { %v9177_v63 = vld [vmem:[#allocation8 + $0xb64] sm:$0xf0] }
 0x15a   :  { %4548 = vmatpush.bf16.msrb.mxu0 %v7573_v24  ;;  %4520 = vmatpush.bf16.msra.mxu2 %v7061_v28  ;;  %v7508_v45 = vld [vmem:[#allocation8 + $0x8c8] sm:$0xf]  ;;  %v7829_v51 = vor.u32 %v9177_v63, %v7828_v56 }
 0x15b   :  { %v9097_v46 = vld [vmem:[#allocation8 + $0x8e4] sm:$0xf0] }
 0x15c   :  { %v6996_v48 = vld [vmem:[#allocation8 + $0x4c8] sm:$0xf]  ;;  %4533 = vmatpush.bf16.msra.mxu3 %v7349_v36  ;;  %4561 = vmatpush.bf16.msrb.mxu1 %v7861_v37  ;;  %v7509_v54 = vor.u32 %v9097_v46, %v7508_v45  ;;  %v6617_v46 = vor.u32 %v8869_v34, %v6614_v35  ;;  %v8917_v34 = vld [vmem:[#allocation8 + $0x34c] sm:$0xf] }
 0x15d   :  { %v8969_v49 = vld [vmem:[#allocation8 + $0x4e4] sm:$0xf0]  ;;  %v6806_v35 = vld [vmem:[#allocation8 + $0x368] sm:$0xf0] }
 0x15e   :  { %v7284_v52 = vld [vmem:[#allocation8 + $0x708] sm:$0xf]  ;;  %4549 = vmatpush.bf16.msrb.mxu0 %v7541_v39  ;;  %4521 = vmatpush.bf16.msra.mxu2 %v7029_v44  ;;  %v6997_v61 = vor.u32 %v8969_v49, %v6996_v48  ;;  %v8861_v49 = vld [vmem:[#allocation8 + $0x18c] sm:$0xf] }
 0x15f   :  { %v9041_v55 = vld [vmem:[#allocation8 + $0x724] sm:$0xf0] }
 0x160   :  { %v7796_v57 = vld [vmem:[#allocation8 + $0xb08] sm:$0xf]  ;;  %4534 = vmatpush.bf16.msra.mxu3 %v7317_v50  ;;  %4562 = vmatpush.bf16.msrb.mxu1 %v7829_v51  ;;  %v7285_v4 = vor.u32 %v9041_v55, %v7284_v52  ;;  %v6582_v50 = vld [vmem:[#allocation8 + $0x1a8] sm:$0xf0] }
 0x161   :  { %v9169_v58 = vld [vmem:[#allocation8 + $0xb24] sm:$0xf0] }
 0x162   :  { %v7476_v30 = vld [vmem:[#allocation8 + $0x888] sm:$0xf]  ;;  %v7797_v5 = vor.u32 %v9169_v58, %v7796_v57  ;;  %4550 = vmatpush.bf16.msrb.mxu0 %v7509_v54  ;;  %4522 = vmatpush.bf16.msra.mxu2 %v6997_v61 }
 0x163   :  { %v9089_v62 = vld [vmem:[#allocation8 + $0x8a4] sm:$0xf0] }
 0x164   :  { %v6964_v2 = vld [vmem:[#allocation8 + $0x488] sm:$0xf]  ;;  %v7477_v7 = vor.u32 %v9089_v62, %v7476_v30  ;;  %4535 = vmatpush.bf16.msra.mxu3 %v7285_v4  ;;  %4563 = vmatpush.bf16.msrb.mxu1 %v7797_v5  ;;  %v6585_v30 = vor.u32 %v8861_v49, %v6582_v50  ;;  %v8853_v5 = vld [vmem:[#allocation8 + $0x14c] sm:$0xf] }
 0x165   :  { %v8961_v3 = vld [vmem:[#allocation8 + $0x4a4] sm:$0xf0]  ;;  %v8829_v49 = vld [vmem:[#allocation8 + $0x8c] sm:$0xf] }
 0x166   :  { %v7252_v6 = vld [vmem:[#allocation8 + $0x6c8] sm:$0xf]  ;;  %v6965_v12 = vor.u32 %v8961_v3, %v6964_v2  ;;  %4551 = vmatpush.bf16.msrb.mxu0 %v7477_v7  ;;  %v8933_v2 = vld [vmem:[#allocation8 + $0x3cc] sm:$0xf] }
 0x167   :  { %v9033_v8 = vld [vmem:[#allocation8 + $0x6e4] sm:$0xf0]  ;;  %v6870_v3 = vld [vmem:[#allocation8 + $0x3e8] sm:$0xf0] }
 0x168   :  { %v7764_v9 = vld [vmem:[#allocation8 + $0xac8] sm:$0xf]  ;;  %v7253_v18 = vor.u32 %v9033_v8, %v7252_v6  ;;  %4523 = vmatpush.bf16.msra.mxu2 %v6965_v12  ;;  %v6550_v6 = vld [vmem:[#allocation8 + $0x168] sm:$0xf0] }
 0x169   :  { %v9161_v11 = vld [vmem:[#allocation8 + $0xae4] sm:$0xf0]  ;;  %v6454_v50 = vld [vmem:[#allocation8 + $0xa8] sm:$0xf0] }
 0x16a   :  { %v7444_v14 = vld [vmem:[#allocation8 + $0x848] sm:$0xf]  ;;  %v7765_v19 = vor.u32 %v9161_v11, %v7764_v9  ;;  %4536 = vmatpush.bf16.msra.mxu3 %v7253_v18  ;;  %v6873_v11 = vor.u32 %v8933_v2, %v6870_v3  ;;  %v8925_v18 = vld [vmem:[#allocation8 + $0x38c] sm:$0xf] }
 0x16b   :  { %v9081_v15 = vld [vmem:[#allocation8 + $0x864] sm:$0xf0]  ;;  %v6742_v2 = vld [vmem:[#allocation8 + $0x2e8] sm:$0xf0] }
 0x16c   :  { %v6932_v16 = vld [vmem:[#allocation8 + $0x448] sm:$0xf]  ;;  %v7445_v22 = vor.u32 %v9081_v15, %v7444_v14  ;;  %4564 = vmatpush.bf16.msrb.mxu1 %v7765_v19  ;;  %v6838_v19 = vld [vmem:[#allocation8 + $0x3a8] sm:$0xf0] }
 0x16d   :  { %v8953_v17 = vld [vmem:[#allocation8 + $0x464] sm:$0xf0]  ;;  %v8821_v3 = vld [vmem:[#allocation8 + $0x4c] sm:$0xf] }
 0x16e   :  { %v7220_v21 = vld [vmem:[#allocation8 + $0x688] sm:$0xf]  ;;  %v6933_v26 = vor.u32 %v8953_v17, %v6932_v16  ;;  %4552 = vmatpush.bf16.msrb.mxu0 %v7445_v22  ;;  %v6553_v16 = vor.u32 %v8853_v5, %v6550_v6  ;;  %v6518_v22 = vld [vmem:[#allocation8 + $0x128] sm:$0xf0] }
 0x16f   :  { %v9025_v23 = vld [vmem:[#allocation8 + $0x6a4] sm:$0xf0] }
 0x170   :  { %v7732_v24 = vld [vmem:[#allocation8 + $0xa88] sm:$0xf]  ;;  %v7221_v36 = vor.u32 %v9025_v23, %v7220_v21  ;;  %4524 = vmatpush.bf16.msra.mxu2 %v6933_v26  ;;  %v8845_v21 = vld [vmem:[#allocation8 + $0x10c] sm:$0xf] }
 0x171   :  { %v9153_v25 = vld [vmem:[#allocation8 + $0xaa4] sm:$0xf0] }
 0x172   :  { %v6900_v27 = vld [vmem:[#allocation8 + $0x408] sm:$0xf]  ;;  %v7733_v37 = vor.u32 %v9153_v25, %v7732_v24  ;;  %4537 = vmatpush.bf16.msra.mxu3 %v7221_v36  ;;  %v6841_v25 = vor.u32 %v8925_v18, %v6838_v19  ;;  %v8837_v36 = vld [vmem:[#allocation8 + $0xcc] sm:$0xf] }
 0x173   :  { %v7412_v28 = vld [vmem:[#allocation8 + $0x808] sm:$0xf]  ;;  %v8813_v18 = vld [vmem:[#allocation8 + $0xc] sm:$0xf] }
 0x174   :  { %v9073_v29 = vld [vmem:[#allocation8 + $0x824] sm:$0xf0]  ;;  %4565 = vmatpush.bf16.msrb.mxu1 %v7733_v37  ;;  %v6486_v37 = vld [vmem:[#allocation8 + $0xe8] sm:$0xf0] }
 0x175   :  { %v8945_v31 = vld [vmem:[#allocation8 + $0x424] sm:$0xf0]  ;;  %v7413_v56 = vor.u32 %v9073_v29, %v7412_v28  ;;  %v6521_v29 = vor.u32 %v8845_v21, %v6518_v22  ;;  %v6390_v19 = vld [vmem:[#allocation8 + $0x28] sm:$0xf0] }
 0x176   :  { %v8148_v38 = vld [vmem:[#allocation8 + $0xdc8] sm:$0xf]  ;;  %v6901_v45 = vor.u32 %v8945_v31, %v6900_v27  ;;  %v9125_v22 = vld [vmem:[#allocation8 + $0x9cc] sm:$0xf] }
 0x177   :  { %v9257_v39 = vld [vmem:[#allocation8 + $0xde4] sm:$0xf0]  ;;  %4553 = vmatpush.bf16.msrb.mxu0 %v7413_v56 }
 0x178   :  { %v7188_v40 = vld [vmem:[#allocation8 + $0x648] sm:$0xf]  ;;  %v8149_v47 = vor.u32 %v9257_v39, %v8148_v38  ;;  %4525 = vmatpush.bf16.msra.mxu2 %v6901_v45 }
 0x179   :  { %v9017_v63 = vld [vmem:[#allocation8 + $0x664] sm:$0xf0] }
 0x17a   :  { %v7700_v43 = vld [vmem:[#allocation8 + $0xa48] sm:$0xf]  ;;  %v7189_v51 = vor.u32 %v9017_v63, %v7188_v40  ;;  %4554 = vmatmul.bf16.vlgmr.msrb.gmra.mxu0 %v9733_v53  ;;  %v6809_v40 = vor.u32 %v8917_v34, %v6806_v35 }
 0x17b   :  { %v9145_v44 = vld [vmem:[#allocation8 + $0xa64] sm:$0xf0]  ;;  %4602 = vmatpush.bf16.msra.mxu0 %v6617_v46  ;;  %4526 = vmatmul.bf16.vlgmr.msra.gmra.mxu2 %v9725_v32  ;;  %v8909_v46 = vld [vmem:[#allocation8 + $0x30c] sm:$0xf] }
 0x17c   :  { %v8116_v48 = vld [vmem:[#allocation8 + $0xd88] sm:$0xf]  ;;  %v7701_v52 = vor.u32 %v9145_v44, %v7700_v43  ;;  %4574 = vmatpush.bf16.msrb.mxu2 %v8149_v47  ;;  %4538 = vmatpush.bf16.msra.mxu3 %v7189_v51  ;;  %v6489_v44 = vor.u32 %v8837_v36, %v6486_v37  ;;  %v6774_v47 = vld [vmem:[#allocation8 + $0x328] sm:$0xf0] }
 0x17d   :  { %v9249_v54 = vld [vmem:[#allocation8 + $0xda4] sm:$0xf0]  ;;  %v8885_v37 = vld [vmem:[#allocation8 + $0x24c] sm:$0xf] }
 0x17e   :  { %v7156_v55 = vld [vmem:[#allocation8 + $0x608] sm:$0xf]  ;;  %v8117_v4 = vor.u32 %v9249_v54, %v8116_v48  ;;  %4566 = vmatpush.bf16.msrb.mxu1 %v7701_v52  ;;  %v4303_v48 = vpop.f32.mrf.mxu2 }
 0x17f   :  { %v9009_v57 = vld [vmem:[#allocation8 + $0x624] sm:$0xf0]  ;;  %4603 = vmatpush.bf16.msra.mxu0 %v6585_v30  ;;  %v4304_v51 = vadd.f32 %v4303_v48, %v9762_v1 }
 0x180   :  { %v7668_v58 = vld [vmem:[#allocation8 + $0xa08] sm:$0xf]  ;;  %v7157_v7 = vor.u32 %v9009_v57, %v7156_v55  ;;  %4575 = vmatpush.bf16.msrb.mxu2 %v8117_v4  ;;  %v6777_v55 = vor.u32 %v8909_v46, %v6774_v47  ;;  %v6422_v4 = vld [vmem:[#allocation8 + $0x68] sm:$0xf0] }
 0x181   :  { %v9137_v60 = vld [vmem:[#allocation8 + $0xa24] sm:$0xf0] }
 0x182   :  { %v8404_v61 = vld [vmem:[#allocation8 + $0xfc8] sm:$0xf]  ;;  %v7669_v8 = vor.u32 %v9137_v60, %v7668_v58  ;;  %4539 = vmatpush.bf16.msra.mxu3 %v7157_v7 }
 0x183   :  { %v9321_v62 = vld [vmem:[#allocation8 + $0xfe4] sm:$0xf0]  ;;  %4604 = vmatpush.bf16.msra.mxu0 %v6553_v16  ;;  %v6710_v16 = vld [vmem:[#allocation8 + $0x2a8] sm:$0xf0] }
 0x184   :  { %v8405_v9 = vor.u32 %v9321_v62, %v8404_v61  ;;  %v8084_v12 = vld [vmem:[#allocation8 + $0xd48] sm:$0xf]  ;;  %4567 = vmatpush.bf16.msrb.mxu1 %v7669_v8  ;;  %v6457_v61 = vor.u32 %v8829_v49, %v6454_v50  ;;  %v8901_v62 = vld [vmem:[#allocation8 + $0x2cc] sm:$0xf] }
 0x185   :  { %v9241_v14 = vld [vmem:[#allocation8 + $0xd64] sm:$0xf0]  ;;  %4540 = vmatmul.bf16.vlgmr.msra.gmra.mxu3 %v9728_v59  ;;  %v6745_v6 = vor.u32 %v8901_v62, %v6742_v2  ;;  %v8877_v49 = vld [vmem:[#allocation8 + $0x20c] sm:$0xf] }
 0x186   :  { %v8372_v15 = vld [vmem:[#allocation8 + $0xf88] sm:$0xf]  ;;  %v8085_v23 = vor.u32 %v9241_v14, %v8084_v12  ;;  %4588 = vmatpush.bf16.msrb.mxu3 %v8405_v9  ;;  %v6425_v12 = vor.u32 %v8821_v3, %v6422_v4  ;;  %v6646_v50 = vld [vmem:[#allocation8 + $0x228] sm:$0xf0] }
 0x187   :  { %v9313_v17 = vld [vmem:[#allocation8 + $0xfa4] sm:$0xf0]  ;;  %4568 = vmatmul.bf16.vlgmr.msrb.gmra.mxu1 %v9736_v13  ;;  %4605 = vmatpush.bf16.msra.mxu0 %v6521_v29  ;;  %v6393_v29 = vor.u32 %v8813_v18, %v6390_v19  ;;  %v6649_v2 = vor.u32 %v8877_v49, %v6646_v50  ;;  %v8981_v4 = vld [vmem:[#allocation8 + $0x54c] sm:$0xf] }
 0x188   :  { %4616 = vmatpush.bf16.msra.mxu1 %v6873_v11  ;;  %v8373_v24 = vor.u32 %v9313_v17, %v8372_v15  ;;  %v8052_v26 = vld [vmem:[#allocation8 + $0xd08] sm:$0xf]  ;;  %4576 = vmatpush.bf16.msrb.mxu2 %v8085_v23  ;;  %v4317_v11 = vpop.f32.mrf.mxu3  ;;  %v8893_v15 = vld [vmem:[#allocation8 + $0x28c] sm:$0xf] }
 0x189   :  { %v9233_v27 = vld [vmem:[#allocation8 + $0xd24] sm:$0xf0]  ;;  %v9769_v17 = vadd.f32 %v4317_v11, %v4304_v51  ;;  %v7638_v23 = vld [vmem:[#allocation8 + $0x9e8] sm:$0xf0]  ;;  %v9771_v51 = vpop.f32.mrf.mxu0 }
 0x18a   :  { %v8340_v28 = vld [vmem:[#allocation8 + $0xf48] sm:$0xf]  ;;  %v8053_v38 = vor.u32 %v9233_v27, %v8052_v26  ;;  %4589 = vmatpush.bf16.msrb.mxu3 %v8373_v24  ;;  %v7641_v36 = vor.u32 %v9125_v22, %v7638_v23  ;;  %v7862_v11 = vld [vmem:[#allocation8 + $0xba8] sm:$0xf0] }
 0x18b   :  { %v9305_v31 = vld [vmem:[#allocation8 + $0xf64] sm:$0xf0]  ;;  %4606 = vmatpush.bf16.msra.mxu0 %v6489_v44  ;;  %v8989_v44 = vld [vmem:[#allocation8 + $0x58c] sm:$0xf] }
 0x18c   :  { %4617 = vmatpush.bf16.msra.mxu1 %v6841_v25  ;;  %v8341_v39 = vor.u32 %v9305_v31, %v8340_v28  ;;  %v8020_v56 = vld [vmem:[#allocation8 + $0xcc8] sm:$0xf]  ;;  %4577 = vmatpush.bf16.msrb.mxu2 %v8053_v38  ;;  %v6713_v25 = vor.u32 %v8893_v15, %v6710_v16  ;;  %v8997_v28 = vld [vmem:[#allocation8 + $0x5cc] sm:$0xf]  ;;  %v9775_v16 = vpop.f32.mrf.mxu1 }
 0x18d   :  { %v9225_v63 = vld [vmem:[#allocation8 + $0xce4] sm:$0xf0]  ;;  %v7126_v31 = vld [vmem:[#allocation8 + $0x5e8] sm:$0xf0] }
 0x18e   :  { %v8308_v43 = vld [vmem:[#allocation8 + $0xf08] sm:$0xf]  ;;  %v8021_v52 = vor.u32 %v9225_v63, %v8020_v56  ;;  %4590 = vmatpush.bf16.msrb.mxu3 %v8341_v39  ;;  %v6678_v38 = vld [vmem:[#allocation8 + $0x268] sm:$0xf0]  ;;  %v7129_v63 = vor.u32 %v8997_v28, %v7126_v31 }
 0x18f   :  { %v9297_v45 = vld [vmem:[#allocation8 + $0xf24] sm:$0xf0]  ;;  %4607 = vmatpush.bf16.msra.mxu0 %v6457_v61  ;;  %v7606_v56 = vld [vmem:[#allocation8 + $0x9a8] sm:$0xf0]  ;;  %v6681_v47 = vor.u32 %v8885_v37, %v6678_v38 }
 0x190   :  { %4618 = vmatpush.bf16.msra.mxu1 %v6809_v40  ;;  %v8309_v54 = vor.u32 %v9297_v45, %v8308_v43  ;;  %v7988_v57 = vld [vmem:[#allocation8 + $0xc88] sm:$0xf]  ;;  %4578 = vmatpush.bf16.msrb.mxu2 %v8021_v52  ;;  %v9117_v40 = vld [vmem:[#allocation8 + $0x98c] sm:$0xf] }
 0x191   :  { %v9217_v58 = vld [vmem:[#allocation8 + $0xca4] sm:$0xf0]  ;;  %v7094_v45 = vld [vmem:[#allocation8 + $0x5a8] sm:$0xf0]  ;;  %v7609_v52 = vor.u32 %v9117_v40, %v7606_v56  ;;  %v4331_v22 = vpop.f32.mrf.mxu0 }
 0x192   :  { %v8276_v60 = vld [vmem:[#allocation8 + $0xec8] sm:$0xf]  ;;  %v7989_v5 = vor.u32 %v9217_v58, %v7988_v57  ;;  %4591 = vmatpush.bf16.msrb.mxu3 %v8309_v54  ;;  %v9061_v54 = vld [vmem:[#allocation8 + $0x7cc] sm:$0xf]  ;;  %v4332_v28 = vadd.f32 %v4331_v22, %v9769_v17 }
 0x193   :  { %v9289_v30 = vld [vmem:[#allocation8 + $0xee4] sm:$0xf0]  ;;  %4608 = vmatpush.bf16.msra.mxu0 %v6425_v12  ;;  %v9189_v57 = vld [vmem:[#allocation8 + $0xbcc] sm:$0xf] }
 0x194   :  { %4619 = vmatpush.bf16.msra.mxu1 %v6777_v55  ;;  %v8277_v1 = vor.u32 %v9289_v30, %v8276_v60  ;;  %v7956_v7 = vld [vmem:[#allocation8 + $0xc48] sm:$0xf]  ;;  %4579 = vmatpush.bf16.msrb.mxu2 %v7989_v5  ;;  %v7382_v55 = vld [vmem:[#allocation8 + $0x7e8] sm:$0xf0]  ;;  %v7097_v30 = vor.u32 %v8989_v44, %v7094_v45 }
 0x195   :  { %v9209_v8 = vld [vmem:[#allocation8 + $0xc64] sm:$0xf0]  ;;  %v7894_v58 = vld [vmem:[#allocation8 + $0xbe8] sm:$0xf0]  ;;  %v7385_v3 = vor.u32 %v9061_v54, %v7382_v55 }
 0x196   :  { %v8244_v9 = vld [vmem:[#allocation8 + $0xe88] sm:$0xf]  ;;  %v7957_v21 = vor.u32 %v9209_v8, %v7956_v7  ;;  %4592 = vmatpush.bf16.msrb.mxu3 %v8277_v1  ;;  %v9109_v60 = vld [vmem:[#allocation8 + $0x94c] sm:$0xf]  ;;  %v7897_v1 = vor.u32 %v9189_v57, %v7894_v58 }
 0x197   :  { %v9281_v14 = vld [vmem:[#allocation8 + $0xea4] sm:$0xf0]  ;;  %4609 = vmatpush.bf16.msra.mxu0 %v6393_v29  ;;  %v7574_v61 = vld [vmem:[#allocation8 + $0x968] sm:$0xf0] }
 0x198   :  { %4620 = vmatpush.bf16.msra.mxu1 %v6745_v6  ;;  %v8245_v24 = vor.u32 %v9281_v14, %v8244_v9  ;;  %v7924_v26 = vld [vmem:[#allocation8 + $0xc08] sm:$0xf]  ;;  %4580 = vmatpush.bf16.msrb.mxu2 %v7957_v21  ;;  %v7062_v5 = vld [vmem:[#allocation8 + $0x568] sm:$0xf0]  ;;  %v7577_v6 = vor.u32 %v9109_v60, %v7574_v61 }
 0x199   :  { %v9201_v27 = vld [vmem:[#allocation8 + $0xc24] sm:$0xf0]  ;;  %v9053_v7 = vld [vmem:[#allocation8 + $0x78c] sm:$0xf]  ;;  %v7065_v15 = vor.u32 %v8981_v4, %v7062_v5  ;;  %v9782_v61 = vpop.f32.mrf.mxu0 }
 0x19a   :  { %v8212_v34 = vld [vmem:[#allocation8 + $0xe48] sm:$0xf]  ;;  %v7925_v39 = vor.u32 %v9201_v27, %v7924_v26  ;;  %4593 = vmatpush.bf16.msrb.mxu3 %v8245_v24  ;;  %4610 = vmatmul.bf16.vlgmr.msra.gmra.mxu0 %v9717_v41  ;;  %v7350_v8 = vld [vmem:[#allocation8 + $0x7a8] sm:$0xf0] }
 0x19b   :  { %v9273_v35 = vld [vmem:[#allocation8 + $0xe64] sm:$0xf0]  ;;  %4658 = vmatpush.bf16.msrb.mxu0 %v7641_v36  ;;  %v9181_v9 = vld [vmem:[#allocation8 + $0xb8c] sm:$0xf]  ;;  %v7353_v18 = vor.u32 %v9053_v7, %v7350_v8 }
 0x19c   :  { %4621 = vmatpush.bf16.msra.mxu1 %v6713_v25  ;;  %v8213_v43 = vor.u32 %v9273_v35, %v8212_v34  ;;  %v8180_v46 = vld [vmem:[#allocation8 + $0xe08] sm:$0xf]  ;;  %4581 = vmatpush.bf16.msrb.mxu2 %v7925_v39  ;;  %v9101_v12 = vld [vmem:[#allocation8 + $0x90c] sm:$0xf]  ;;  %v7865_v23 = vor.u32 %v9181_v9, %v7862_v11 }
 0x19d   :  { %v9265_v48 = vld [vmem:[#allocation8 + $0xe24] sm:$0xf0]  ;;  %v7542_v14 = vld [vmem:[#allocation8 + $0x928] sm:$0xf0] }
 0x19e   :  { %4594 = vmatpush.bf16.msrb.mxu3 %v8213_v43  ;;  %v8181_v62 = vor.u32 %v9265_v48, %v8180_v46  ;;  %v8973_v19 = vld [vmem:[#allocation8 + $0x50c] sm:$0xf]  ;;  %v7545_v24 = vor.u32 %v9101_v12, %v7542_v14 }
 0x19f   :  { %4582 = vmatmul.bf16.vlgmr.msrb.gmra.mxu2 %v9743_v10  ;;  %4659 = vmatpush.bf16.msrb.mxu0 %v7609_v52  ;;  %v7030_v21 = vld [vmem:[#allocation8 + $0x528] sm:$0xf0] }
 0x1a0   :  { %4630 = vmatpush.bf16.msra.mxu2 %v7129_v63  ;;  %4622 = vmatpush.bf16.msra.mxu1 %v6681_v47  ;;  %v9045_v25 = vld [vmem:[#allocation8 + $0x74c] sm:$0xf]  ;;  %v7033_v35 = vor.u32 %v8973_v19, %v7030_v21  ;;  %v4345_v47 = vpop.f32.mrf.mxu1  ;;  %v6620_v19 = vld [vmem:[#allocation8 + $0x1d0] sm:$0xf] }
 0x1a1   :  { %v7318_v26 = vld [vmem:[#allocation8 + $0x768] sm:$0xf0]  ;;  %v9780_v52 = vadd.f32 %v4345_v47, %v4332_v28  ;;  %v8874_v21 = vld [vmem:[#allocation8 + $0x1ec] sm:$0xf0] }
 0x1a2   :  { %4595 = vmatpush.bf16.msrb.mxu3 %v8181_v62  ;;  %v9173_v27 = vld [vmem:[#allocation8 + $0xb4c] sm:$0xf]  ;;  %v7321_v36 = vor.u32 %v9045_v25, %v7318_v26 }
 0x1a3   :  { %4660 = vmatpush.bf16.msrb.mxu0 %v7577_v6  ;;  %v7830_v29 = vld [vmem:[#allocation8 + $0xb68] sm:$0xf0] }
 0x1a4   :  { %4631 = vmatpush.bf16.msra.mxu2 %v7097_v30  ;;  %4623 = vmatpush.bf16.msra.mxu1 %v6649_v2  ;;  %v9093_v31 = vld [vmem:[#allocation8 + $0x8cc] sm:$0xf]  ;;  %v7833_v39 = vor.u32 %v9173_v27, %v7830_v29 }
 0x1a5   :  { %4596 = vmatmul.bf16.vlgmr.msrb.gmra.mxu3 %v9747_v42  ;;  %v7510_v34 = vld [vmem:[#allocation8 + $0x8e8] sm:$0xf0] }
 0x1a6   :  { %4644 = vmatpush.bf16.msra.mxu3 %v7385_v3  ;;  %v8965_v37 = vld [vmem:[#allocation8 + $0x4cc] sm:$0xf]  ;;  %v7513_v40 = vor.u32 %v9093_v31, %v7510_v34 }
 0x1a7   :  { %4624 = vmatmul.bf16.vlgmr.msra.gmra.mxu1 %v9720_v0  ;;  %v6998_v38 = vld [vmem:[#allocation8 + $0x4e8] sm:$0xf0]  ;;  %4661 = vmatpush.bf16.msrb.mxu0 %v7545_v24 }
 0x1a8   :  { %4672 = vmatpush.bf16.msrb.mxu1 %v7897_v1  ;;  %4632 = vmatpush.bf16.msra.mxu2 %v7065_v15  ;;  %v9037_v56 = vld [vmem:[#allocation8 + $0x70c] sm:$0xf]  ;;  %v7001_v46 = vor.u32 %v8965_v37, %v6998_v38  ;;  %v9784_v22 = vpop.f32.mrf.mxu1  ;;  %v10024_v38 = vperm.slane %v9753_v20, 1 }
 0x1a9   :  { %v7286_v63 = vld [vmem:[#allocation8 + $0x728] sm:$0xf0] }
 0x1aa   :  { %4645 = vmatpush.bf16.msra.mxu3 %v7353_v18  ;;  %v9165_v43 = vld [vmem:[#allocation8 + $0xb0c] sm:$0xf]  ;;  %v7289_v48 = vor.u32 %v9037_v56, %v7286_v63  ;;  %v8866_v56 = vld [vmem:[#allocation8 + $0x1ac] sm:$0xf0]  ;;  %v4387_v63 = vpop.f32.mrf.mxu0 }
 0x1ab   :  { %v7798_v44 = vld [vmem:[#allocation8 + $0xb28] sm:$0xf0]  ;;  %4662 = vmatpush.bf16.msrb.mxu0 %v7513_v40  ;;  %v6588_v40 = vld [vmem:[#allocation8 + $0x190] sm:$0xf] }
 0x1ac   :  { %4673 = vmatpush.bf16.msrb.mxu1 %v7865_v23  ;;  %v9085_v17 = vld [vmem:[#allocation8 + $0x88c] sm:$0xf]  ;;  %4633 = vmatpush.bf16.msra.mxu2 %v7033_v35  ;;  %v7801_v54 = vor.u32 %v9165_v43, %v7798_v44  ;;  %v6621_v35 = vor.u32 %v8874_v21, %v6620_v19  ;;  %v8930_v19 = vld [vmem:[#allocation8 + $0x3ac] sm:$0xf0] }
 0x1ad   :  { %v7478_v45 = vld [vmem:[#allocation8 + $0x8a8] sm:$0xf0]  ;;  %v6524_v21 = vld [vmem:[#allocation8 + $0x110] sm:$0xf] }
 0x1ae   :  { %4646 = vmatpush.bf16.msra.mxu3 %v7321_v36  ;;  %v8957_v49 = vld [vmem:[#allocation8 + $0x48c] sm:$0xf]  ;;  %v7481_v55 = vor.u32 %v9085_v17, %v7478_v45 }
 0x1af   :  { %v6966_v50 = vld [vmem:[#allocation8 + $0x4a8] sm:$0xf0] }
 0x1b0   :  { %4674 = vmatpush.bf16.msrb.mxu1 %v7833_v39  ;;  %v9029_v57 = vld [vmem:[#allocation8 + $0x6cc] sm:$0xf]  ;;  %4634 = vmatpush.bf16.msra.mxu2 %v7001_v46  ;;  %v6969_v3 = vor.u32 %v8957_v49, %v6966_v50 }
 0x1b1   :  { %v7254_v58 = vld [vmem:[#allocation8 + $0x6e8] sm:$0xf0]  ;;  %4663 = vmatpush.bf16.msrb.mxu0 %v7481_v55 }
 0x1b2   :  { %v9157_v60 = vld [vmem:[#allocation8 + $0xacc] sm:$0xf]  ;;  %4647 = vmatpush.bf16.msra.mxu3 %v7289_v48  ;;  %v7257_v4 = vor.u32 %v9029_v57, %v7254_v58  ;;  %v6876_v58 = vld [vmem:[#allocation8 + $0x3d0] sm:$0xf] }
 0x1b3   :  { %v7766_v30 = vld [vmem:[#allocation8 + $0xae8] sm:$0xf0] }
 0x1b4   :  { %v9077_v62 = vld [vmem:[#allocation8 + $0x84c] sm:$0xf]  ;;  %4675 = vmatpush.bf16.msrb.mxu1 %v7801_v54  ;;  %v7769_v6 = vor.u32 %v9157_v60, %v7766_v30  ;;  %4635 = vmatpush.bf16.msra.mxu2 %v6969_v3  ;;  %v6589_v54 = vor.u32 %v8866_v56, %v6588_v40  ;;  %v4388_v60 = vadd.f32 %v4387_v63, %v10024_v38  ;;  %v8938_v30 = vld [vmem:[#allocation8 + $0x3ec] sm:$0xf0]  ;;  %v4401_v3 = vpop.f32.mrf.mxu1  ;;  %v6942_v38 = vld [vmem:[#allocation8 + $0x470] sm:$0xf0] }
 0x1b5   :  { %v7446_v2 = vld [vmem:[#allocation8 + $0x868] sm:$0xf0]  ;;  %v8842_v40 = vld [vmem:[#allocation8 + $0xec] sm:$0xf0] }
 0x1b6   :  { %v8949_v5 = vld [vmem:[#allocation8 + $0x44c] sm:$0xf]  ;;  %v7449_v7 = vor.u32 %v9077_v62, %v7446_v2  ;;  %4648 = vmatpush.bf16.msra.mxu3 %v7257_v4  ;;  %v6556_v62 = vld [vmem:[#allocation8 + $0x150] sm:$0xf] }
 0x1b7   :  { %v6934_v1 = vld [vmem:[#allocation8 + $0x468] sm:$0xf0]  ;;  %v8858_v2 = vld [vmem:[#allocation8 + $0x16c] sm:$0xf0] }
 0x1b8   :  { %v9021_v8 = vld [vmem:[#allocation8 + $0x68c] sm:$0xf]  ;;  %v6937_v18 = vor.u32 %v8949_v5, %v6934_v1  ;;  %4676 = vmatpush.bf16.msrb.mxu1 %v7769_v6  ;;  %4664 = vmatpush.bf16.msrb.mxu0 %v7449_v7  ;;  %v9789_v1 = vadd.f32 %v4401_v3, %v4388_v60  ;;  %v9799_v60 = vpop.f32.mrf.mxu0 }
 0x1b9   :  { %v7222_v9 = vld [vmem:[#allocation8 + $0x6a8] sm:$0xf0] }
 0x1ba   :  { %v9149_v11 = vld [vmem:[#allocation8 + $0xa8c] sm:$0xf]  ;;  %v7225_v23 = vor.u32 %v9021_v8, %v7222_v9  ;;  %4636 = vmatpush.bf16.msra.mxu2 %v6937_v18  ;;  %v6844_v18 = vld [vmem:[#allocation8 + $0x390] sm:$0xf] }
 0x1bb   :  { %v7734_v12 = vld [vmem:[#allocation8 + $0xaa8] sm:$0xf0] }
 0x1bc   :  { %v9069_v14 = vld [vmem:[#allocation8 + $0x80c] sm:$0xf]  ;;  %v7737_v27 = vor.u32 %v9149_v11, %v7734_v12  ;;  %4649 = vmatpush.bf16.msra.mxu3 %v7225_v23  ;;  %v6877_v11 = vor.u32 %v8938_v30, %v6876_v58  ;;  %v6557_v12 = vor.u32 %v8858_v2, %v6556_v62  ;;  %v8850_v23 = vld [vmem:[#allocation8 + $0x12c] sm:$0xf0] }
 0x1bd   :  { %v7414_v15 = vld [vmem:[#allocation8 + $0x828] sm:$0xf0] }
 0x1be   :  { %v8941_v24 = vld [vmem:[#allocation8 + $0x40c] sm:$0xf]  ;;  %v7417_v28 = vor.u32 %v9069_v14, %v7414_v15  ;;  %4677 = vmatpush.bf16.msrb.mxu1 %v7737_v27 }
 0x1bf   :  { %v6902_v25 = vld [vmem:[#allocation8 + $0x428] sm:$0xf0] }
 0x1c0   :  { %v9253_v26 = vld [vmem:[#allocation8 + $0xdcc] sm:$0xf]  ;;  %v6905_v39 = vor.u32 %v8941_v24, %v6902_v25  ;;  %4665 = vmatpush.bf16.msrb.mxu0 %v7417_v28  ;;  %v9793_v24 = vpop.f32.mrf.mxu2 }
 0x1c1   :  { %v8150_v29 = vld [vmem:[#allocation8 + $0xde8] sm:$0xf0] }
 0x1c2   :  { %v9013_v31 = vld [vmem:[#allocation8 + $0x64c] sm:$0xf]  ;;  %v8153_v43 = vor.u32 %v9253_v26, %v8150_v29  ;;  %4637 = vmatpush.bf16.msra.mxu2 %v6905_v39  ;;  %v6845_v29 = vor.u32 %v8930_v19, %v6844_v18  ;;  %v6492_v39 = vld [vmem:[#allocation8 + $0xd0] sm:$0xf] }
 0x1c3   :  { %v7190_v34 = vld [vmem:[#allocation8 + $0x668] sm:$0xf0]  ;;  %4666 = vmatmul.bf16.vlgmr.msrb.gmra.mxu0 %v9733_v53 }
 0x1c4   :  { %v9141_v36 = vld [vmem:[#allocation8 + $0xa4c] sm:$0xf]  ;;  %v7193_v44 = vor.u32 %v9013_v31, %v7190_v34  ;;  %4714 = vmatpush.bf16.msra.mxu0 %v6621_v35  ;;  %v6525_v31 = vor.u32 %v8850_v23, %v6524_v21 }
 0x1c5   :  { %v7702_v37 = vld [vmem:[#allocation8 + $0xa68] sm:$0xf0]  ;;  %4638 = vmatmul.bf16.vlgmr.msra.gmra.mxu2 %v9725_v32 }
 0x1c6   :  { %v9245_v17 = vld [vmem:[#allocation8 + $0xd8c] sm:$0xf]  ;;  %v7705_v47 = vor.u32 %v9141_v36, %v7702_v37  ;;  %4686 = vmatpush.bf16.msrb.mxu2 %v8153_v43  ;;  %4650 = vmatpush.bf16.msra.mxu3 %v7193_v44  ;;  %v6812_v36 = vld [vmem:[#allocation8 + $0x350] sm:$0xf] }
 0x1c7   :  { %v8118_v45 = vld [vmem:[#allocation8 + $0xda8] sm:$0xf0]  ;;  %v8922_v37 = vld [vmem:[#allocation8 + $0x36c] sm:$0xf0] }
 0x1c8   :  { %v9005_v46 = vld [vmem:[#allocation8 + $0x60c] sm:$0xf]  ;;  %v8121_v4 = vor.u32 %v9245_v17, %v8118_v45  ;;  %4678 = vmatpush.bf16.msrb.mxu1 %v7705_v47  ;;  %4715 = vmatpush.bf16.msra.mxu0 %v6589_v54  ;;  %v6813_v17 = vor.u32 %v8922_v37, %v6812_v36  ;;  %v6493_v45 = vor.u32 %v8842_v40, %v6492_v39  ;;  %v6460_v54 = vld [vmem:[#allocation8 + $0x90] sm:$0xf] }
 0x1c9   :  { %v7158_v48 = vld [vmem:[#allocation8 + $0x628] sm:$0xf0]  ;;  %v7644_v39 = vld [vmem:[#allocation8 + $0x9d0] sm:$0xf] }
 0x1ca   :  { %v9133_v49 = vld [vmem:[#allocation8 + $0xa0c] sm:$0xf]  ;;  %v7161_v5 = vor.u32 %v9005_v46, %v7158_v48  ;;  %4687 = vmatpush.bf16.msrb.mxu2 %v8121_v4  ;;  %v6780_v48 = vld [vmem:[#allocation8 + $0x310] sm:$0xf] }
 0x1cb   :  { %v7670_v50 = vld [vmem:[#allocation8 + $0xa28] sm:$0xf0]  ;;  %v9130_v40 = vld [vmem:[#allocation8 + $0x9ec] sm:$0xf0] }
 0x1cc   :  { %v9317_v55 = vld [vmem:[#allocation8 + $0xfcc] sm:$0xf]  ;;  %v7673_v6 = vor.u32 %v9133_v49, %v7670_v50  ;;  %4651 = vmatpush.bf16.msra.mxu3 %v7161_v5  ;;  %4716 = vmatpush.bf16.msra.mxu0 %v6557_v12  ;;  %v9797_v49 = vpop.f32.mrf.mxu3  ;;  %v8914_v50 = vld [vmem:[#allocation8 + $0x32c] sm:$0xf0] }
 0x1cd   :  { %v8406_v57 = vld [vmem:[#allocation8 + $0xfe8] sm:$0xf0]  ;;  %v6781_v4 = vor.u32 %v8914_v50, %v6780_v48  ;;  %v8826_v12 = vld [vmem:[#allocation8 + $0x6c] sm:$0xf0]  ;;  %v9808_v50 = vpop.f32.mrf.mxu0 }
 0x1ce   :  { %v8409_v7 = vor.u32 %v9317_v55, %v8406_v57  ;;  %v9237_v8 = vld [vmem:[#allocation8 + $0xd4c] sm:$0xf]  ;;  %4679 = vmatpush.bf16.msrb.mxu1 %v7673_v6  ;;  %v8834_v55 = vld [vmem:[#allocation8 + $0xac] sm:$0xf0]  ;;  %v4359_v57 = vpop.f32.mrf.mxu2 }
 0x1cf   :  { %v8086_v9 = vld [vmem:[#allocation8 + $0xd68] sm:$0xf0]  ;;  %4652 = vmatmul.bf16.vlgmr.msra.gmra.mxu3 %v9728_v59  ;;  %v4360_v30 = vadd.f32 %v4359_v57, %v9780_v52  ;;  %v6461_v5 = vor.u32 %v8834_v55, %v6460_v54  ;;  %v7645_v54 = vor.u32 %v9130_v40, %v7644_v39  ;;  %v6684_v55 = vld [vmem:[#allocation8 + $0x250] sm:$0xf] }
 0x1d0   :  { %v9309_v14 = vld [vmem:[#allocation8 + $0xf8c] sm:$0xf]  ;;  %v8089_v25 = vor.u32 %v9237_v8, %v8086_v9  ;;  %4700 = vmatpush.bf16.msrb.mxu3 %v8409_v7  ;;  %4717 = vmatpush.bf16.msra.mxu0 %v6525_v31  ;;  %v6748_v8 = vld [vmem:[#allocation8 + $0x2d0] sm:$0xf] }
 0x1d1   :  { %v8374_v15 = vld [vmem:[#allocation8 + $0xfa8] sm:$0xf0]  ;;  %4680 = vmatmul.bf16.vlgmr.msrb.gmra.mxu1 %v9736_v13  ;;  %v8906_v9 = vld [vmem:[#allocation8 + $0x2ec] sm:$0xf0] }
 0x1d2   :  { %v8377_v26 = vor.u32 %v9309_v14, %v8374_v15  ;;  %v9229_v27 = vld [vmem:[#allocation8 + $0xd0c] sm:$0xf]  ;;  %4728 = vmatpush.bf16.msra.mxu1 %v6877_v11  ;;  %4688 = vmatpush.bf16.msrb.mxu2 %v8089_v25  ;;  %v6428_v11 = vld [vmem:[#allocation8 + $0x50] sm:$0xf]  ;;  %v9802_v15 = vpop.f32.mrf.mxu1  ;;  %v6749_v21 = vor.u32 %v8906_v9, %v6748_v8 }
 0x1d3   :  { %v8054_v28 = vld [vmem:[#allocation8 + $0xd28] sm:$0xf0]  ;;  %v6429_v23 = vor.u32 %v8826_v12, %v6428_v11  ;;  %v6396_v31 = vld [vmem:[#allocation8 + $0x10] sm:$0xf] }
 0x1d4   :  { %v9301_v34 = vld [vmem:[#allocation8 + $0xf4c] sm:$0xf]  ;;  %v8057_v56 = vor.u32 %v9229_v27, %v8054_v28  ;;  %4701 = vmatpush.bf16.msrb.mxu3 %v8377_v26  ;;  %4718 = vmatpush.bf16.msra.mxu0 %v6493_v45  ;;  %v6716_v27 = vld [vmem:[#allocation8 + $0x290] sm:$0xf]  ;;  %v4373_v28 = vpop.f32.mrf.mxu3 }
 0x1d5   :  { %v8342_v35 = vld [vmem:[#allocation8 + $0xf68] sm:$0xf0]  ;;  %v8890_v57 = vld [vmem:[#allocation8 + $0x26c] sm:$0xf0] }
 0x1d6   :  { %v8345_v63 = vor.u32 %v9301_v34, %v8342_v35  ;;  %v9221_v43 = vld [vmem:[#allocation8 + $0xccc] sm:$0xf]  ;;  %4729 = vmatpush.bf16.msra.mxu1 %v6845_v29  ;;  %4689 = vmatpush.bf16.msrb.mxu2 %v8057_v56  ;;  %v8898_v29 = vld [vmem:[#allocation8 + $0x2ac] sm:$0xf0]  ;;  %v9804_v35 = vadd.f32 %v4373_v28, %v4360_v30  ;;  %v9806_v36 = vpop.f32.mrf.mxu2 }
 0x1d7   :  { %v8022_v44 = vld [vmem:[#allocation8 + $0xce8] sm:$0xf0]  ;;  %v8818_v34 = vld [vmem:[#allocation8 + $0x2c] sm:$0xf0] }
 0x1d8   :  { %v9293_v46 = vld [vmem:[#allocation8 + $0xf0c] sm:$0xf]  ;;  %v8025_v58 = vor.u32 %v9221_v43, %v8022_v44  ;;  %4702 = vmatpush.bf16.msrb.mxu3 %v8345_v63  ;;  %4719 = vmatpush.bf16.msra.mxu0 %v6461_v5  ;;  %v7132_v44 = vld [vmem:[#allocation8 + $0x5d0] sm:$0xf]  ;;  %v6397_v45 = vor.u32 %v8818_v34, %v6396_v31 }
 0x1d9   :  { %v8310_v47 = vld [vmem:[#allocation8 + $0xf28] sm:$0xf0]  ;;  %v7612_v30 = vld [vmem:[#allocation8 + $0x990] sm:$0xf] }
 0x1da   :  { %v8313_v62 = vor.u32 %v9293_v46, %v8310_v47  ;;  %v9213_v2 = vld [vmem:[#allocation8 + $0xc8c] sm:$0xf]  ;;  %4730 = vmatpush.bf16.msra.mxu1 %v6813_v17  ;;  %4690 = vmatpush.bf16.msrb.mxu2 %v8025_v58  ;;  %v6717_v17 = vor.u32 %v8898_v29, %v6716_v27  ;;  %v9002_v46 = vld [vmem:[#allocation8 + $0x5ec] sm:$0xf0]  ;;  %v9810_v12 = vpop.f32.mrf.mxu1 }
 0x1db   :  { %v7990_v3 = vld [vmem:[#allocation8 + $0xca8] sm:$0xf0]  ;;  %v8994_v5 = vld [vmem:[#allocation8 + $0x5ac] sm:$0xf0] }
 0x1dc   :  { %v9285_v6 = vld [vmem:[#allocation8 + $0xecc] sm:$0xf]  ;;  %v7993_v14 = vor.u32 %v9213_v2, %v7990_v3  ;;  %4703 = vmatpush.bf16.msrb.mxu3 %v8313_v62  ;;  %4720 = vmatpush.bf16.msra.mxu0 %v6429_v23  ;;  %v9122_v62 = vld [vmem:[#allocation8 + $0x9ac] sm:$0xf0]  ;;  %v7133_v2 = vor.u32 %v9002_v46, %v7132_v44 }
 0x1dd   :  { %v8278_v7 = vld [vmem:[#allocation8 + $0xee8] sm:$0xf0]  ;;  %v6652_v9 = vld [vmem:[#allocation8 + $0x210] sm:$0xf] }
 0x1de   :  { %v8281_v18 = vor.u32 %v9285_v6, %v8278_v7  ;;  %v9205_v52 = vld [vmem:[#allocation8 + $0xc4c] sm:$0xf]  ;;  %4731 = vmatpush.bf16.msra.mxu1 %v6781_v4  ;;  %4691 = vmatpush.bf16.msrb.mxu2 %v7993_v14  ;;  %v7100_v4 = vld [vmem:[#allocation8 + $0x590] sm:$0xf]  ;;  %v6685_v7 = vor.u32 %v8890_v57, %v6684_v55  ;;  %v9812_v14 = vpop.f32.mrf.mxu3  ;;  %v4415_v27 = vpop.f32.mrf.mxu2 }
 0x1df   :  { %v7958_v19 = vld [vmem:[#allocation8 + $0xc68] sm:$0xf0]  ;;  %v8882_v11 = vld [vmem:[#allocation8 + $0x22c] sm:$0xf0]  ;;  %v7101_v28 = vor.u32 %v8994_v5, %v7100_v4  ;;  %v4416_v31 = vadd.f32 %v4415_v27, %v9789_v1 }
 0x1e0   :  { %v9277_v25 = vld [vmem:[#allocation8 + $0xe8c] sm:$0xf]  ;;  %v7961_v37 = vor.u32 %v9205_v52, %v7958_v19  ;;  %4704 = vmatpush.bf16.msrb.mxu3 %v8281_v18  ;;  %4721 = vmatpush.bf16.msra.mxu0 %v6397_v45  ;;  %v7613_v18 = vor.u32 %v9122_v62, %v7612_v30  ;;  %v7388_v52 = vld [vmem:[#allocation8 + $0x7d0] sm:$0xf]  ;;  %v6653_v34 = vor.u32 %v8882_v11, %v6652_v9 }
 0x1e1   :  { %v8246_v26 = vld [vmem:[#allocation8 + $0xea8] sm:$0xf0]  ;;  %v9066_v19 = vld [vmem:[#allocation8 + $0x7ec] sm:$0xf0] }
 0x1e2   :  { %v8249_v56 = vor.u32 %v9277_v25, %v8246_v26  ;;  %v9197_v63 = vld [vmem:[#allocation8 + $0xc0c] sm:$0xf]  ;;  %4732 = vmatpush.bf16.msra.mxu1 %v6749_v21  ;;  %4692 = vmatpush.bf16.msrb.mxu2 %v7961_v37  ;;  %v7900_v21 = vld [vmem:[#allocation8 + $0xbd0] sm:$0xf]  ;;  %v7389_v37 = vor.u32 %v9066_v19, %v7388_v52  ;;  %v9820_v9 = vpop.f32.mrf.mxu1  ;;  %v9826_v19 = vld [vmem:[#allocation10] sm:$0xff] }
 0x1e3   :  { %v7926_v43 = vld [vmem:[#allocation8 + $0xc28] sm:$0xf0]  ;;  %v9194_v23 = vld [vmem:[#allocation8 + $0xbec] sm:$0xf0]  ;;  %4722 = vmatmul.bf16.vlgmr.msra.gmra.mxu0 %v9717_v41 }
 0x1e4   :  { %v9269_v47 = vld [vmem:[#allocation8 + $0xe4c] sm:$0xf]  ;;  %v7929_v58 = vor.u32 %v9197_v63, %v7926_v43  ;;  %4705 = vmatpush.bf16.msrb.mxu3 %v8249_v56  ;;  %4770 = vmatpush.bf16.msrb.mxu0 %v7645_v54  ;;  %v7580_v25 = vld [vmem:[#allocation8 + $0x950] sm:$0xf]  ;;  %v7901_v56 = vor.u32 %v9194_v23, %v7900_v21  ;;  %v10023_v21 = vperm.slane %v9826_v19, 2 }
 0x1e5   :  { %v8214_v48 = vld [vmem:[#allocation8 + $0xe68] sm:$0xf0]  ;;  %v9114_v26 = vld [vmem:[#allocation8 + $0x96c] sm:$0xf0] }
 0x1e6   :  { %v8217_v3 = vor.u32 %v9269_v47, %v8214_v48  ;;  %v9261_v6 = vld [vmem:[#allocation8 + $0xe0c] sm:$0xf]  ;;  %4733 = vmatpush.bf16.msra.mxu1 %v6717_v17  ;;  %4693 = vmatpush.bf16.msrb.mxu2 %v7929_v58  ;;  %v7068_v39 = vld [vmem:[#allocation8 + $0x550] sm:$0xf]  ;;  %v7581_v63 = vor.u32 %v9114_v26, %v7580_v25  ;;  %v9817_v48 = vpop.f32.mrf.mxu0  ;;  %v4429_v58 = vpop.f32.mrf.mxu3 }
 0x1e7   :  { %v8182_v8 = vld [vmem:[#allocation8 + $0xe28] sm:$0xf0]  ;;  %v8986_v40 = vld [vmem:[#allocation8 + $0x56c] sm:$0xf0]  ;;  %v4430_v5 = vadd.f32 %v4429_v58, %v4416_v31  ;;  %v9823_v11 = vpop.f32.mrf.mxu2 }
 0x1e8   :  { %4706 = vmatpush.bf16.msrb.mxu3 %v8217_v3  ;;  %v8185_v29 = vor.u32 %v9261_v6, %v8182_v8  ;;  %4771 = vmatpush.bf16.msrb.mxu0 %v7613_v18  ;;  %v7356_v43 = vld [vmem:[#allocation8 + $0x790] sm:$0xf]  ;;  %v7069_v1 = vor.u32 %v8986_v40, %v7068_v39 }
 0x1e9   :  { %4694 = vmatmul.bf16.vlgmr.msrb.gmra.mxu2 %v9743_v10  ;;  %v9058_v44 = vld [vmem:[#allocation8 + $0x7ac] sm:$0xf0]  ;;  %v4444_v52 = vadd.f32 %v9808_v50, %v4430_v5 }
 0x1ea   :  { %4742 = vmatpush.bf16.msra.mxu2 %v7133_v2  ;;  %4734 = vmatpush.bf16.msra.mxu1 %v6685_v7  ;;  %v7868_v17 = vld [vmem:[#allocation8 + $0xb90] sm:$0xf]  ;;  %v7357_v54 = vor.u32 %v9058_v44, %v7356_v43 }
 0x1eb   :  { %v9186_v45 = vld [vmem:[#allocation8 + $0xbac] sm:$0xf0] }
 0x1ec   :  { %v7548_v46 = vld [vmem:[#allocation8 + $0x910] sm:$0xf]  ;;  %4707 = vmatpush.bf16.msrb.mxu3 %v8185_v29  ;;  %4772 = vmatpush.bf16.msrb.mxu0 %v7581_v63  ;;  %v7869_v30 = vor.u32 %v9186_v45, %v7868_v17 }
 0x1ed   :  { %v9106_v47 = vld [vmem:[#allocation8 + $0x92c] sm:$0xf0] }
 0x1ee   :  { %4743 = vmatpush.bf16.msra.mxu2 %v7101_v28  ;;  %4735 = vmatpush.bf16.msra.mxu1 %v6653_v34  ;;  %v7036_v55 = vld [vmem:[#allocation8 + $0x510] sm:$0xf]  ;;  %v7549_v62 = vor.u32 %v9106_v47, %v7548_v46  ;;  %v9830_v45 = vpop.f32.mrf.mxu3 }
 0x1ef   :  { %v8978_v57 = vld [vmem:[#allocation8 + $0x52c] sm:$0xf0]  ;;  %4708 = vmatmul.bf16.vlgmr.msrb.gmra.mxu3 %v9747_v42 }
 0x1f0   :  { %4756 = vmatpush.bf16.msra.mxu3 %v7389_v37  ;;  %v7324_v2 = vld [vmem:[#allocation8 + $0x750] sm:$0xf]  ;;  %v7037_v18 = vor.u32 %v8978_v57, %v7036_v55  ;;  %4773 = vmatpush.bf16.msrb.mxu0 %v7549_v62  ;;  %v4458_v37 = vadd.f32 %v9810_v12, %v4444_v52  ;;  %v4513_v62 = vpop.f32.mrf.mxu1 }
 0x1f1   :  { %v9050_v3 = vld [vmem:[#allocation8 + $0x76c] sm:$0xf0]  ;;  %4736 = vmatmul.bf16.vlgmr.msra.gmra.mxu1 %v9720_v0 }
 0x1f2   :  { %4784 = vmatpush.bf16.msrb.mxu1 %v7901_v56  ;;  %v7836_v4 = vld [vmem:[#allocation8 + $0xb50] sm:$0xf]  ;;  %4744 = vmatpush.bf16.msra.mxu2 %v7069_v1  ;;  %v7325_v23 = vor.u32 %v9050_v3, %v7324_v2  ;;  %v4499_v56 = vpop.f32.mrf.mxu0  ;;  %v4471_v2 = vpop.f32.mrf.mxu2 }
 0x1f3   :  { %v9178_v6 = vld [vmem:[#allocation8 + $0xb6c] sm:$0xf0]  ;;  %v4500_v12 = vadd.f32 %v4499_v56, %v10023_v21  ;;  %v4472_v5 = vadd.f32 %v4471_v2, %v4458_v37  ;;  %v7102_v21 = vld [vmem:[#allocation8 + $0x5b0] sm:$0xf0] }
 0x1f4   :  { %v7516_v7 = vld [vmem:[#allocation8 + $0x8d0] sm:$0xf]  ;;  %4757 = vmatpush.bf16.msra.mxu3 %v7357_v54  ;;  %v7837_v27 = vor.u32 %v9178_v6, %v7836_v4 }
 0x1f5   :  { %v9098_v8 = vld [vmem:[#allocation8 + $0x8ec] sm:$0xf0]  ;;  %v9834_v4 = vadd.f32 %v4513_v62, %v4500_v12 }
 0x1f6   :  { %v7004_v25 = vld [vmem:[#allocation8 + $0x4d0] sm:$0xf]  ;;  %4785 = vmatpush.bf16.msrb.mxu1 %v7869_v30  ;;  %v7517_v28 = vor.u32 %v9098_v8, %v7516_v7  ;;  %4745 = vmatpush.bf16.msra.mxu2 %v7037_v18 }
 0x1f7   :  { %v8970_v26 = vld [vmem:[#allocation8 + $0x4ec] sm:$0xf0] }
 0x1f8   :  { %v7292_v29 = vld [vmem:[#allocation8 + $0x710] sm:$0xf]  ;;  %v7005_v63 = vor.u32 %v8970_v26, %v7004_v25  ;;  %4758 = vmatpush.bf16.msra.mxu3 %v7325_v23  ;;  %4774 = vmatpush.bf16.msrb.mxu0 %v7517_v28 }
 0x1f9   :  { %v9042_v31 = vld [vmem:[#allocation8 + $0x72c] sm:$0xf0] }
 0x1fa   :  { %v7804_v34 = vld [vmem:[#allocation8 + $0xb10] sm:$0xf]  ;;  %v7293_v43 = vor.u32 %v9042_v31, %v7292_v29  ;;  %4786 = vmatpush.bf16.msrb.mxu1 %v7837_v27  ;;  %4746 = vmatpush.bf16.msra.mxu2 %v7005_v63 }
 0x1fb   :  { %v9170_v39 = vld [vmem:[#allocation8 + $0xb2c] sm:$0xf0] }
 0x1fc   :  { %v7484_v40 = vld [vmem:[#allocation8 + $0x890] sm:$0xf]  ;;  %v7805_v46 = vor.u32 %v9170_v39, %v7804_v34  ;;  %4759 = vmatpush.bf16.msra.mxu3 %v7293_v43  ;;  %v8870_v34 = vld [vmem:[#allocation8 + $0x1d4] sm:$0xf] }
 0x1fd   :  { %v9090_v50 = vld [vmem:[#allocation8 + $0x8ac] sm:$0xf0]  ;;  %v6622_v39 = vld [vmem:[#allocation8 + $0x1f0] sm:$0xf0] }
 0x1fe   :  { %v6972_v44 = vld [vmem:[#allocation8 + $0x490] sm:$0xf]  ;;  %v7485_v47 = vor.u32 %v9090_v50, %v7484_v40  ;;  %4787 = vmatpush.bf16.msrb.mxu1 %v7805_v46 }
 0x1ff   :  { %v8962_v17 = vld [vmem:[#allocation8 + $0x4ac] sm:$0xf0] }
 0x200   :  { %v7260_v1 = vld [vmem:[#allocation8 + $0x6d0] sm:$0xf]  ;;  %v6973_v3 = vor.u32 %v8962_v17, %v6972_v44  ;;  %4775 = vmatpush.bf16.msrb.mxu0 %v7485_v47  ;;  %v4485_v47 = vpop.f32.mrf.mxu3 }
 0x201   :  { %v9034_v54 = vld [vmem:[#allocation8 + $0x6ec] sm:$0xf0]  ;;  %v9836_v12 = vadd.f32 %v4485_v47, %v4472_v5  ;;  %v6846_v47 = vld [vmem:[#allocation8 + $0x3b0] sm:$0xf0] }
 0x202   :  { %v7772_v55 = vld [vmem:[#allocation8 + $0xad0] sm:$0xf]  ;;  %v7261_v6 = vor.u32 %v9034_v54, %v7260_v1  ;;  %4747 = vmatpush.bf16.msra.mxu2 %v6973_v3  ;;  %v6625_v1 = vor.u32 %v8870_v34, %v6622_v39 }
 0x203   :  { %v9162_v57 = vld [vmem:[#allocation8 + $0xaec] sm:$0xf0] }
 0x204   :  { %v7452_v58 = vld [vmem:[#allocation8 + $0x850] sm:$0xf]  ;;  %v7773_v18 = vor.u32 %v9162_v57, %v7772_v55  ;;  %4760 = vmatpush.bf16.msra.mxu3 %v7261_v6 }
 0x205   :  { %v9082_v30 = vld [vmem:[#allocation8 + $0x86c] sm:$0xf0] }
 0x206   :  { %v6940_v7 = vld [vmem:[#allocation8 + $0x450] sm:$0xf]  ;;  %v7453_v52 = vor.u32 %v9082_v30, %v7452_v58  ;;  %4788 = vmatpush.bf16.msrb.mxu1 %v7773_v18  ;;  %v8862_v58 = vld [vmem:[#allocation8 + $0x194] sm:$0xf] }
 0x207   :  { %v8954_v8 = vld [vmem:[#allocation8 + $0x46c] sm:$0xf0]  ;;  %v6590_v30 = vld [vmem:[#allocation8 + $0x1b0] sm:$0xf0] }
 0x208   :  { %v7228_v23 = vld [vmem:[#allocation8 + $0x690] sm:$0xf]  ;;  %v6941_v31 = vor.u32 %v8954_v8, %v6940_v7  ;;  %4776 = vmatpush.bf16.msrb.mxu0 %v7453_v52 }
 0x209   :  { %v9026_v25 = vld [vmem:[#allocation8 + $0x6ac] sm:$0xf0] }
 0x20a   :  { %v7740_v26 = vld [vmem:[#allocation8 + $0xa90] sm:$0xf]  ;;  %v7229_v37 = vor.u32 %v9026_v25, %v7228_v23  ;;  %4748 = vmatpush.bf16.msra.mxu2 %v6941_v31  ;;  %v6593_v25 = vor.u32 %v8862_v58, %v6590_v30  ;;  %v6558_v31 = vld [vmem:[#allocation8 + $0x170] sm:$0xf0] }
 0x20b   :  { %v9154_v27 = vld [vmem:[#allocation8 + $0xaac] sm:$0xf0] }
 0x20c   :  { %v7420_v28 = vld [vmem:[#allocation8 + $0x810] sm:$0xf]  ;;  %v7741_v63 = vor.u32 %v9154_v27, %v7740_v26  ;;  %4761 = vmatpush.bf16.msra.mxu3 %v7229_v37  ;;  %v8934_v27 = vld [vmem:[#allocation8 + $0x3d4] sm:$0xf] }
 0x20d   :  { %v9074_v29 = vld [vmem:[#allocation8 + $0x82c] sm:$0xf0] }
 0x20e   :  { %v6908_v40 = vld [vmem:[#allocation8 + $0x410] sm:$0xf]  ;;  %v7421_v43 = vor.u32 %v9074_v29, %v7420_v28  ;;  %4789 = vmatpush.bf16.msrb.mxu1 %v7741_v63  ;;  %v6878_v28 = vld [vmem:[#allocation8 + $0x3f0] sm:$0xf0] }
 0x20f   :  { %v8946_v50 = vld [vmem:[#allocation8 + $0x42c] sm:$0xf0]  ;;  %v8854_v29 = vld [vmem:[#allocation8 + $0x154] sm:$0xf]  ;;  %v6881_v63 = vor.u32 %v8934_v27, %v6878_v28 }
 0x210   :  { %v8156_v56 = vld [vmem:[#allocation8 + $0xdd0] sm:$0xf]  ;;  %v6909_v57 = vor.u32 %v8946_v50, %v6908_v40  ;;  %4777 = vmatpush.bf16.msrb.mxu0 %v7421_v43  ;;  %v6561_v43 = vor.u32 %v8854_v29, %v6558_v31 }
 0x211   :  { %v9258_v44 = vld [vmem:[#allocation8 + $0xdec] sm:$0xf0] }
 0x212   :  { %v7196_v17 = vld [vmem:[#allocation8 + $0x650] sm:$0xf]  ;;  %v8157_v62 = vor.u32 %v9258_v44, %v8156_v56  ;;  %4749 = vmatpush.bf16.msra.mxu2 %v6909_v57 }
 0x213   :  { %v9018_v46 = vld [vmem:[#allocation8 + $0x66c] sm:$0xf0]  ;;  %4778 = vmatmul.bf16.vlgmr.msrb.gmra.mxu0 %v9733_v53 }
 0x214   :  { %v7708_v54 = vld [vmem:[#allocation8 + $0xa50] sm:$0xf]  ;;  %v7197_v2 = vor.u32 %v9018_v46, %v7196_v17  ;;  %4826 = vmatpush.bf16.msra.mxu0 %v6625_v1  ;;  %v8926_v46 = vld [vmem:[#allocation8 + $0x394] sm:$0xf] }
 0x215   :  { %v9146_v55 = vld [vmem:[#allocation8 + $0xa6c] sm:$0xf0]  ;;  %4750 = vmatmul.bf16.vlgmr.msra.gmra.mxu2 %v9725_v32  ;;  %v8846_v1 = vld [vmem:[#allocation8 + $0x114] sm:$0xf] }
 0x216   :  { %v8124_v3 = vld [vmem:[#allocation8 + $0xd90] sm:$0xf]  ;;  %v7709_v8 = vor.u32 %v9146_v55, %v7708_v54  ;;  %4798 = vmatpush.bf16.msrb.mxu2 %v8157_v62  ;;  %4762 = vmatpush.bf16.msra.mxu3 %v7197_v2  ;;  %v6526_v54 = vld [vmem:[#allocation8 + $0x130] sm:$0xf0]  ;;  %v6849_v62 = vor.u32 %v8926_v46, %v6846_v47  ;;  %v9846_v46 = vpop.f32.mrf.mxu3 }
 0x217   :  { %v9250_v6 = vld [vmem:[#allocation8 + $0xdac] sm:$0xf0]  ;;  %v6529_v2 = vor.u32 %v8846_v1, %v6526_v54 }
 0x218   :  { %v7164_v7 = vld [vmem:[#allocation8 + $0x610] sm:$0xf]  ;;  %v8125_v34 = vor.u32 %v9250_v6, %v8124_v3  ;;  %4790 = vmatpush.bf16.msrb.mxu1 %v7709_v8  ;;  %4827 = vmatpush.bf16.msra.mxu0 %v6593_v25  ;;  %v6814_v8 = vld [vmem:[#allocation8 + $0x370] sm:$0xf0] }
 0x219   :  { %v9010_v18 = vld [vmem:[#allocation8 + $0x62c] sm:$0xf0] }
 0x21a   :  { %v7676_v52 = vld [vmem:[#allocation8 + $0xa10] sm:$0xf]  ;;  %v7165_v39 = vor.u32 %v9010_v18, %v7164_v7  ;;  %4799 = vmatpush.bf16.msrb.mxu2 %v8125_v34  ;;  %v8918_v7 = vld [vmem:[#allocation8 + $0x354] sm:$0xf] }
 0x21b   :  { %v9138_v23 = vld [vmem:[#allocation8 + $0xa2c] sm:$0xf0]  ;;  %v8838_v18 = vld [vmem:[#allocation8 + $0xd4] sm:$0xf]  ;;  %v6817_v28 = vor.u32 %v8918_v7, %v6814_v8 }
 0x21c   :  { %v8412_v5 = vld [vmem:[#allocation8 + $0xfd0] sm:$0xf]  ;;  %v7677_v37 = vor.u32 %v9138_v23, %v7676_v52  ;;  %4763 = vmatpush.bf16.msra.mxu3 %v7165_v39  ;;  %4828 = vmatpush.bf16.msra.mxu0 %v6561_v43  ;;  %v6494_v52 = vld [vmem:[#allocation8 + $0xf0] sm:$0xf0]  ;;  %v9841_v23 = vpop.f32.mrf.mxu2 }
 0x21d   :  { %v9322_v26 = vld [vmem:[#allocation8 + $0xfec] sm:$0xf0]  ;;  %v6497_v29 = vor.u32 %v8838_v18, %v6494_v52  ;;  %v8910_v39 = vld [vmem:[#allocation8 + $0x314] sm:$0xf]  ;;  %v9849_v52 = vpop.f32.mrf.mxu1 }
 0x21e   :  { %v8413_v40 = vor.u32 %v9322_v26, %v8412_v5  ;;  %v8092_v50 = vld [vmem:[#allocation8 + $0xd50] sm:$0xf]  ;;  %4791 = vmatpush.bf16.msrb.mxu1 %v7677_v37  ;;  %v6782_v37 = vld [vmem:[#allocation8 + $0x330] sm:$0xf0] }
 0x21f   :  { %v9242_v56 = vld [vmem:[#allocation8 + $0xd6c] sm:$0xf0]  ;;  %4764 = vmatmul.bf16.vlgmr.msra.gmra.mxu3 %v9728_v59  ;;  %v6785_v47 = vor.u32 %v8910_v39, %v6782_v37  ;;  %v9126_v37 = vld [vmem:[#allocation8 + $0x9d4] sm:$0xf] }
 0x220   :  { %v8380_v44 = vld [vmem:[#allocation8 + $0xf90] sm:$0xf]  ;;  %v8093_v55 = vor.u32 %v9242_v56, %v8092_v50  ;;  %4812 = vmatpush.bf16.msrb.mxu3 %v8413_v40  ;;  %4829 = vmatpush.bf16.msra.mxu0 %v6529_v2  ;;  %v8830_v40 = vld [vmem:[#allocation8 + $0x94] sm:$0xf] }
 0x221   :  { %v9314_v17 = vld [vmem:[#allocation8 + $0xfac] sm:$0xf0]  ;;  %4792 = vmatmul.bf16.vlgmr.msrb.gmra.mxu1 %v9736_v13  ;;  %v6462_v50 = vld [vmem:[#allocation8 + $0xb0] sm:$0xf0] }
 0x222   :  { %v8381_v57 = vor.u32 %v9314_v17, %v8380_v44  ;;  %v8060_v58 = vld [vmem:[#allocation8 + $0xd10] sm:$0xf]  ;;  %4840 = vmatpush.bf16.msra.mxu1 %v6881_v63  ;;  %4800 = vmatpush.bf16.msrb.mxu2 %v8093_v55  ;;  %v9844_v17 = vpop.f32.mrf.mxu0  ;;  %v6465_v1 = vor.u32 %v8830_v40, %v6462_v50 }
 0x223   :  { %v9234_v30 = vld [vmem:[#allocation8 + $0xd2c] sm:$0xf0] }
 0x224   :  { %v8348_v3 = vld [vmem:[#allocation8 + $0xf50] sm:$0xf]  ;;  %v8061_v25 = vor.u32 %v9234_v30, %v8060_v58  ;;  %4813 = vmatpush.bf16.msrb.mxu3 %v8381_v57  ;;  %4830 = vmatpush.bf16.msra.mxu0 %v6497_v29  ;;  %v8902_v57 = vld [vmem:[#allocation8 + $0x2d4] sm:$0xf]  ;;  %v4527_v2 = vpop.f32.mrf.mxu2 }
 0x225   :  { %v9306_v6 = vld [vmem:[#allocation8 + $0xf6c] sm:$0xf0]  ;;  %v6750_v58 = vld [vmem:[#allocation8 + $0x2f0] sm:$0xf0] }
 0x226   :  { %v8349_v5 = vor.u32 %v9306_v6, %v8348_v3  ;;  %v8028_v26 = vld [vmem:[#allocation8 + $0xcd0] sm:$0xf]  ;;  %4841 = vmatpush.bf16.msra.mxu1 %v6849_v62  ;;  %4801 = vmatpush.bf16.msrb.mxu2 %v8061_v25  ;;  %v8822_v30 = vld [vmem:[#allocation8 + $0x54] sm:$0xf]  ;;  %v4528_v6 = vadd.f32 %v4527_v2, %v9834_v4  ;;  %v6753_v25 = vor.u32 %v8902_v57, %v6750_v58 }
 0x227   :  { %v9226_v27 = vld [vmem:[#allocation8 + $0xcec] sm:$0xf0]  ;;  %v6430_v62 = vld [vmem:[#allocation8 + $0x70] sm:$0xf0] }
 0x228   :  { %v8316_v31 = vld [vmem:[#allocation8 + $0xf10] sm:$0xf]  ;;  %v8029_v56 = vor.u32 %v9226_v27, %v8028_v26  ;;  %4814 = vmatpush.bf16.msrb.mxu3 %v8349_v5  ;;  %4831 = vmatpush.bf16.msra.mxu0 %v6465_v1  ;;  %v6433_v5 = vor.u32 %v8822_v30, %v6430_v62  ;;  %v6718_v29 = vld [vmem:[#allocation8 + $0x2b0] sm:$0xf0] }
 0x229   :  { %v9298_v34 = vld [vmem:[#allocation8 + $0xf2c] sm:$0xf0]  ;;  %v7646_v4 = vld [vmem:[#allocation8 + $0x9f0] sm:$0xf0] }
 0x22a   :  { %v8317_v63 = vor.u32 %v9298_v34, %v8316_v31  ;;  %v7996_v43 = vld [vmem:[#allocation8 + $0xc90] sm:$0xf]  ;;  %4842 = vmatpush.bf16.msra.mxu1 %v6817_v28  ;;  %4802 = vmatpush.bf16.msrb.mxu2 %v8029_v56  ;;  %v8894_v28 = vld [vmem:[#allocation8 + $0x294] sm:$0xf]  ;;  %v7649_v30 = vor.u32 %v9126_v37, %v7646_v4 }
 0x22b   :  { %v9218_v44 = vld [vmem:[#allocation8 + $0xcac] sm:$0xf0]  ;;  %v8814_v31 = vld [vmem:[#allocation8 + $0x14] sm:$0xf] }
 0x22c   :  { %v8284_v54 = vld [vmem:[#allocation8 + $0xed0] sm:$0xf]  ;;  %v7997_v3 = vor.u32 %v9218_v44, %v7996_v43  ;;  %4815 = vmatpush.bf16.msrb.mxu3 %v8317_v63  ;;  %v6398_v34 = vld [vmem:[#allocation8 + $0x30] sm:$0xf0]  ;;  %v4555_v43 = vpop.f32.mrf.mxu0  ;;  %v4541_v44 = vpop.f32.mrf.mxu3  ;;  %4832 = vmatpush.bf16.msra.mxu0 %v6433_v5 }
 0x22d   :  { %v9290_v55 = vld [vmem:[#allocation8 + $0xeec] sm:$0xf0]  ;;  %v8998_v63 = vld [vmem:[#allocation8 + $0x5d4] sm:$0xf]  ;;  %v6401_v1 = vor.u32 %v8814_v31, %v6398_v34  ;;  %v4542_v58 = vadd.f32 %v4541_v44, %v4528_v6 }
 0x22e   :  { %v8285_v7 = vor.u32 %v9290_v55, %v8284_v54  ;;  %v7964_v8 = vld [vmem:[#allocation8 + $0xc50] sm:$0xf]  ;;  %4843 = vmatpush.bf16.msra.mxu1 %v6785_v47  ;;  %4803 = vmatpush.bf16.msrb.mxu2 %v7997_v3  ;;  %v6721_v47 = vor.u32 %v8894_v28, %v6718_v29  ;;  %v7134_v54 = vld [vmem:[#allocation8 + $0x5f0] sm:$0xf0]  ;;  %v4569_v28 = vpop.f32.mrf.mxu1 }
 0x22f   :  { %v9210_v18 = vld [vmem:[#allocation8 + $0xc6c] sm:$0xf0]  ;;  %v8886_v62 = vld [vmem:[#allocation8 + $0x254] sm:$0xf] }
 0x230   :  { %v8252_v26 = vld [vmem:[#allocation8 + $0xe90] sm:$0xf]  ;;  %v7965_v39 = vor.u32 %v9210_v18, %v7964_v8  ;;  %4816 = vmatpush.bf16.msrb.mxu3 %v8285_v7  ;;  %v6686_v2 = vld [vmem:[#allocation8 + $0x270] sm:$0xf0]  ;;  %v4556_v18 = vadd.f32 %v4555_v43, %v4542_v58  ;;  %4833 = vmatpush.bf16.msra.mxu0 %v6401_v1 }
 0x231   :  { %v9282_v27 = vld [vmem:[#allocation8 + $0xeac] sm:$0xf0]  ;;  %v9118_v7 = vld [vmem:[#allocation8 + $0x994] sm:$0xf]  ;;  %v6689_v29 = vor.u32 %v8886_v62, %v6686_v2 }
 0x232   :  { %v8253_v40 = vor.u32 %v9282_v27, %v8252_v26  ;;  %v7932_v50 = vld [vmem:[#allocation8 + $0xc10] sm:$0xf]  ;;  %4844 = vmatpush.bf16.msra.mxu1 %v6753_v25  ;;  %4804 = vmatpush.bf16.msrb.mxu2 %v7965_v39  ;;  %v7614_v8 = vld [vmem:[#allocation8 + $0x9b0] sm:$0xf0]  ;;  %v7137_v26 = vor.u32 %v8998_v63, %v7134_v54 }
 0x233   :  { %v9202_v56 = vld [vmem:[#allocation8 + $0xc2c] sm:$0xf0]  ;;  %v8990_v25 = vld [vmem:[#allocation8 + $0x594] sm:$0xf]  ;;  %v7617_v37 = vor.u32 %v9118_v7, %v7614_v8  ;;  %4834 = vmatmul.bf16.vlgmr.msra.gmra.mxu0 %v9717_v41 }
 0x234   :  { %v8220_v55 = vld [vmem:[#allocation8 + $0xe50] sm:$0xf]  ;;  %v7933_v3 = vor.u32 %v9202_v56, %v7932_v50  ;;  %4817 = vmatpush.bf16.msrb.mxu3 %v8253_v40  ;;  %v8878_v6 = vld [vmem:[#allocation8 + $0x214] sm:$0xf]  ;;  %4882 = vmatpush.bf16.msrb.mxu0 %v7649_v30  ;;  %v9851_v56 = vadd.f32 %v4569_v28, %v4556_v18  ;;  %v7105_v44 = vor.u32 %v8990_v25, %v7102_v21  ;;  %v9855_v7 = vpop.f32.mrf.mxu0 }
 0x235   :  { %v9274_v57 = vld [vmem:[#allocation8 + $0xe6c] sm:$0xf0]  ;;  %v6654_v34 = vld [vmem:[#allocation8 + $0x230] sm:$0xf0]  ;;  %10026 = vst [vmem:[#allocation20_spill] sm:$0xff] %v9855_v7 }
 0x236   :  { %v8221_v27 = vor.u32 %v9274_v57, %v8220_v55  ;;  %v8188_v5 = vld [vmem:[#allocation8 + $0xe10] sm:$0xf]  ;;  %4845 = vmatpush.bf16.msra.mxu1 %v6721_v47  ;;  %v9062_v39 = vld [vmem:[#allocation8 + $0x7d4] sm:$0xf]  ;;  %4805 = vmatpush.bf16.msrb.mxu2 %v7933_v3  ;;  %v6657_v1 = vor.u32 %v8878_v6, %v6654_v34 }
 0x237   :  { %v9266_v31 = vld [vmem:[#allocation8 + $0xe2c] sm:$0xf0]  ;;  %v7390_v4 = vld [vmem:[#allocation8 + $0x7f0] sm:$0xf0] }
 0x238   :  { %v9190_v50 = vld [vmem:[#allocation8 + $0xbd4] sm:$0xf]  ;;  %4818 = vmatpush.bf16.msrb.mxu3 %v8221_v27  ;;  %v8189_v47 = vor.u32 %v9266_v31, %v8188_v5  ;;  %v7393_v54 = vor.u32 %v9062_v39, %v7390_v4  ;;  %4883 = vmatpush.bf16.msrb.mxu0 %v7617_v37 }
 0x239   :  { %v7902_v40 = vld [vmem:[#allocation8 + $0xbf0] sm:$0xf0]  ;;  %4806 = vmatmul.bf16.vlgmr.msrb.gmra.mxu2 %v9743_v10 }
 0x23a   :  { %v9110_v63 = vld [vmem:[#allocation8 + $0x954] sm:$0xf]  ;;  %4854 = vmatpush.bf16.msra.mxu2 %v7137_v26  ;;  %4846 = vmatpush.bf16.msra.mxu1 %v6689_v29  ;;  %v7905_v58 = vor.u32 %v9190_v50, %v7902_v40  ;;  %v9859_v40 = vpop.f32.mrf.mxu2 }
 0x23b   :  { %v7582_v43 = vld [vmem:[#allocation8 + $0x970] sm:$0xf0] }
 0x23c   :  { %v8982_v55 = vld [vmem:[#allocation8 + $0x554] sm:$0xf]  ;;  %v7585_v30 = vor.u32 %v9110_v63, %v7582_v43  ;;  %4819 = vmatpush.bf16.msrb.mxu3 %v8189_v47  ;;  %v9861_v63 = vpop.f32.mrf.mxu1 }
 0x23d   :  { %v7070_v57 = vld [vmem:[#allocation8 + $0x570] sm:$0xf0]  ;;  %10027 = vst [vmem:[#allocation21_spill] sm:$0xff] %v9861_v63 }
 0x23e   :  { %v9054_v62 = vld [vmem:[#allocation8 + $0x794] sm:$0xf]  ;;  %4855 = vmatpush.bf16.msra.mxu2 %v7105_v44  ;;  %v7073_v26 = vor.u32 %v8982_v55, %v7070_v57  ;;  %4847 = vmatpush.bf16.msra.mxu1 %v6657_v1 }
 0x23f   :  { %v7358_v2 = vld [vmem:[#allocation8 + $0x7b0] sm:$0xf0]  ;;  %4884 = vmatpush.bf16.msrb.mxu0 %v7585_v30  ;;  %4820 = vmatmul.bf16.vlgmr.msrb.gmra.mxu3 %v9747_v42  ;;  %v4611_v30 = vpop.f32.mrf.mxu0 }
 0x240   :  { %v9182_v3 = vld [vmem:[#allocation8 + $0xb94] sm:$0xf]  ;;  %4868 = vmatpush.bf16.msra.mxu3 %v7393_v54  ;;  %v7361_v27 = vor.u32 %v9054_v62, %v7358_v2 }
 0x241   :  { %v7870_v8 = vld [vmem:[#allocation8 + $0xbb0] sm:$0xf0]  ;;  %4848 = vmatmul.bf16.vlgmr.msra.gmra.mxu1 %v9720_v0 }
 0x242   :  { %v9102_v21 = vld [vmem:[#allocation8 + $0x914] sm:$0xf]  ;;  %4896 = vmatpush.bf16.msrb.mxu1 %v7905_v58  ;;  %v7873_v28 = vor.u32 %v9182_v3, %v7870_v8  ;;  %4856 = vmatpush.bf16.msra.mxu2 %v7073_v26  ;;  %v1693_v8 = vperm.slane %v9826_v19, 3 }
 0x243   :  { %v7550_v18 = vld [vmem:[#allocation8 + $0x930] sm:$0xf0] }
 0x244   :  { %v8974_v25 = vld [vmem:[#allocation8 + $0x514] sm:$0xf]  ;;  %v7553_v29 = vor.u32 %v9102_v21, %v7550_v18  ;;  %4869 = vmatpush.bf16.msra.mxu3 %v7361_v27 }
 0x245   :  { %v7038_v5 = vld [vmem:[#allocation8 + $0x530] sm:$0xf0] }
 0x246   :  { %v9046_v31 = vld [vmem:[#allocation8 + $0x754] sm:$0xf]  ;;  %v7041_v50 = vor.u32 %v8974_v25, %v7038_v5  ;;  %4897 = vmatpush.bf16.msrb.mxu1 %v7873_v28  ;;  %4885 = vmatpush.bf16.msrb.mxu0 %v7553_v29  ;;  %v9864_v5 = vpop.f32.mrf.mxu3 }
 0x247   :  { %v7326_v6 = vld [vmem:[#allocation8 + $0x770] sm:$0xf0]  ;;  %10028 = vst [vmem:[#allocation22_spill] sm:$0xff] %v9864_v5 }
 0x248   :  { %v9174_v34 = vld [vmem:[#allocation8 + $0xb54] sm:$0xf]  ;;  %v7329_v43 = vor.u32 %v9046_v31, %v7326_v6  ;;  %4857 = vmatpush.bf16.msra.mxu2 %v7041_v50 }
 0x249   :  { %v7838_v37 = vld [vmem:[#allocation8 + $0xb70] sm:$0xf0] }
 0x24a   :  { %v9094_v39 = vld [vmem:[#allocation8 + $0x8d4] sm:$0xf]  ;;  %v7841_v1 = vor.u32 %v9174_v34, %v7838_v37  ;;  %4870 = vmatpush.bf16.msra.mxu3 %v7329_v43  ;;  %v4625_v43 = vpop.f32.mrf.mxu1 }
 0x24b   :  { %v7518_v4 = vld [vmem:[#allocation8 + $0x8f0] sm:$0xf0] }
 0x24c   :  { %v8966_v44 = vld [vmem:[#allocation8 + $0x4d4] sm:$0xf]  ;;  %v7521_v54 = vor.u32 %v9094_v39, %v7518_v4  ;;  %4898 = vmatpush.bf16.msrb.mxu1 %v7841_v1  ;;  %v4612_v4 = vadd.f32 %v4611_v30, %v1693_v8 }
 0x24d   :  { %v7006_v47 = vld [vmem:[#allocation8 + $0x4f0] sm:$0xf0] }
 0x24e   :  { %v9038_v55 = vld [vmem:[#allocation8 + $0x714] sm:$0xf]  ;;  %v7009_v21 = vor.u32 %v8966_v44, %v7006_v47  ;;  %4886 = vmatpush.bf16.msrb.mxu0 %v7521_v54  ;;  %v4583_v44 = vpop.f32.mrf.mxu2  ;;  %v9867_v54 = vadd.f32 %v4625_v43, %v4612_v4 }
 0x24f   :  { %v7294_v57 = vld [vmem:[#allocation8 + $0x730] sm:$0xf0]  ;;  %v4584_v1 = vadd.f32 %v4583_v44, %v9851_v56 }
 0x250   :  { %v9166_v58 = vld [vmem:[#allocation8 + $0xb14] sm:$0xf]  ;;  %v7297_v18 = vor.u32 %v9038_v55, %v7294_v57  ;;  %4858 = vmatpush.bf16.msra.mxu2 %v7009_v21 }
 0x251   :  { %v7806_v62 = vld [vmem:[#allocation8 + $0xb30] sm:$0xf0] }
 0x252   :  { %v9086_v2 = vld [vmem:[#allocation8 + $0x894] sm:$0xf]  ;;  %v7809_v28 = vor.u32 %v9166_v58, %v7806_v62  ;;  %4871 = vmatpush.bf16.msra.mxu3 %v7297_v18  ;;  %v6628_v18 = vld [vmem:[#allocation8 + $0x1d8] sm:$0xf]  ;;  %v4627_v7 = vpop.f32.mrf.mxu1 }
 0x253   :  { %v7486_v3 = vld [vmem:[#allocation8 + $0x8b0] sm:$0xf0] }
 0x254   :  { %v8958_v26 = vld [vmem:[#allocation8 + $0x494] sm:$0xf]  ;;  %v7489_v29 = vor.u32 %v9086_v2, %v7486_v3  ;;  %4899 = vmatpush.bf16.msrb.mxu1 %v7809_v28  ;;  %v4597_v28 = vpop.f32.mrf.mxu3 }
 0x255   :  { %v6974_v27 = vld [vmem:[#allocation8 + $0x4b0] sm:$0xf0]  ;;  %v9869_v33 = vadd.f32 %v4597_v28, %v4584_v1 }
 0x256   :  { %v9030_v25 = vld [vmem:[#allocation8 + $0x6d4] sm:$0xf]  ;;  %v6977_v50 = vor.u32 %v8958_v26, %v6974_v27  ;;  %4887 = vmatpush.bf16.msrb.mxu0 %v7489_v29 }
 0x257   :  { %v7262_v31 = vld [vmem:[#allocation8 + $0x6f0] sm:$0xf0]  ;;  %10029 = vst [vmem:[#allocation23_spill] sm:$0xff] %v9869_v33 }
 0x258   :  { %v9158_v6 = vld [vmem:[#allocation8 + $0xad4] sm:$0xf]  ;;  %v7265_v47 = vor.u32 %v9030_v25, %v7262_v31  ;;  %4859 = vmatpush.bf16.msra.mxu2 %v6977_v50  ;;  %v8875_v25 = vld [vmem:[#allocation8 + $0x1f4] sm:$0xf0]  ;;  %v4613_v31 = vpop.f32.mrf.mxu0 }
 0x259   :  { %v7774_v34 = vld [vmem:[#allocation8 + $0xaf0] sm:$0xf0]  ;;  %v6629_v50 = vor.u32 %v8875_v25, %v6628_v18  ;;  %v4614_v63 = vadd.f32 %v4613_v31, %v1693_v8 }
 0x25a   :  { %v9078_v37 = vld [vmem:[#allocation8 + $0x854] sm:$0xf]  ;;  %v7777_v55 = vor.u32 %v9158_v6, %v7774_v34  ;;  %4872 = vmatpush.bf16.msra.mxu3 %v7265_v47 }
 0x25b   :  { %v7454_v39 = vld [vmem:[#allocation8 + $0x870] sm:$0xf0] }
 0x25c   :  { %v8950_v57 = vld [vmem:[#allocation8 + $0x454] sm:$0xf]  ;;  %v7457_v58 = vor.u32 %v9078_v37, %v7454_v39  ;;  %4900 = vmatpush.bf16.msrb.mxu1 %v7777_v55 }
 0x25d   :  { %v9022_v62 = vld [vmem:[#allocation8 + $0x694] sm:$0xf]  ;;  %v6945_v27 = vor.u32 %v8950_v57, %v6942_v38 }
 0x25e   :  { %v7230_v2 = vld [vmem:[#allocation8 + $0x6b0] sm:$0xf0]  ;;  %4888 = vmatpush.bf16.msrb.mxu0 %v7457_v58 }
 0x25f   :  { %v9150_v3 = vld [vmem:[#allocation8 + $0xa94] sm:$0xf]  ;;  %v7233_v6 = vor.u32 %v9022_v62, %v7230_v2  ;;  %4860 = vmatpush.bf16.msra.mxu2 %v6945_v27  ;;  %v6596_v62 = vld [vmem:[#allocation8 + $0x198] sm:$0xf] }
 0x260   :  { %v7742_v30 = vld [vmem:[#allocation8 + $0xab0] sm:$0xf0]  ;;  %v8867_v2 = vld [vmem:[#allocation8 + $0x1b4] sm:$0xf0] }
 0x261   :  { %v9070_v21 = vld [vmem:[#allocation8 + $0x814] sm:$0xf]  ;;  %v7745_v29 = vor.u32 %v9150_v3, %v7742_v30  ;;  %4873 = vmatpush.bf16.msra.mxu3 %v7233_v6  ;;  %v6597_v8 = vor.u32 %v8867_v2, %v6596_v62  ;;  %v8939_v6 = vld [vmem:[#allocation8 + $0x3f4] sm:$0xf0] }
 0x262   :  { %v7422_v26 = vld [vmem:[#allocation8 + $0x830] sm:$0xf0]  ;;  %v6532_v62 = vld [vmem:[#allocation8 + $0x118] sm:$0xf] }
 0x263   :  { %v8942_v34 = vld [vmem:[#allocation8 + $0x414] sm:$0xf]  ;;  %v7425_v37 = vor.u32 %v9070_v21, %v7422_v26  ;;  %v9871_v21 = vadd.f32 %v4627_v7, %v4614_v63  ;;  %4901 = vmatpush.bf16.msrb.mxu1 %v7745_v29 }
 0x264   :  { %v6910_v56 = vld [vmem:[#allocation8 + $0x430] sm:$0xf0] }
 0x265   :  { %v9254_v4 = vld [vmem:[#allocation8 + $0xdd4] sm:$0xf]  ;;  %v6913_v47 = vor.u32 %v8942_v34, %v6910_v56  ;;  %4889 = vmatpush.bf16.msrb.mxu0 %v7425_v37  ;;  %v6884_v34 = vld [vmem:[#allocation8 + $0x3d8] sm:$0xf] }
 0x266   :  { %v8158_v39 = vld [vmem:[#allocation8 + $0xdf0] sm:$0xf0]  ;;  %v6564_v56 = vld [vmem:[#allocation8 + $0x158] sm:$0xf] }
 0x267   :  { %v9014_v44 = vld [vmem:[#allocation8 + $0x654] sm:$0xf]  ;;  %v8161_v55 = vor.u32 %v9254_v4, %v8158_v39  ;;  %4861 = vmatpush.bf16.msra.mxu2 %v6913_v47  ;;  %v8859_v4 = vld [vmem:[#allocation8 + $0x174] sm:$0xf0] }
 0x268   :  { %v7198_v43 = vld [vmem:[#allocation8 + $0x670] sm:$0xf0]  ;;  %4890 = vmatmul.bf16.vlgmr.msrb.gmra.mxu0 %v9733_v53  ;;  %v8931_v47 = vld [vmem:[#allocation8 + $0x3b4] sm:$0xf0] }
 0x269   :  { %v9142_v38 = vld [vmem:[#allocation8 + $0xa54] sm:$0xf]  ;;  %v7201_v5 = vor.u32 %v9014_v44, %v7198_v43  ;;  %4938 = vmatpush.bf16.msra.mxu0 %v6629_v50  ;;  %v6885_v44 = vor.u32 %v8939_v6, %v6884_v34  ;;  %v6565_v43 = vor.u32 %v8859_v4, %v6564_v56  ;;  %v9877_v6 = vpop.f32.mrf.mxu2 }
 0x26a   :  { %v7710_v57 = vld [vmem:[#allocation8 + $0xa70] sm:$0xf0]  ;;  %4862 = vmatmul.bf16.vlgmr.msra.gmra.mxu2 %v9725_v32 }
 0x26b   :  { %v9246_v58 = vld [vmem:[#allocation8 + $0xd94] sm:$0xf]  ;;  %v7713_v1 = vor.u32 %v9142_v38, %v7710_v57  ;;  %4910 = vmatpush.bf16.msrb.mxu2 %v8161_v55  ;;  %4874 = vmatpush.bf16.msra.mxu3 %v7201_v5  ;;  %v6852_v57 = vld [vmem:[#allocation8 + $0x398] sm:$0xf] }
 0x26c   :  { %v8126_v3 = vld [vmem:[#allocation8 + $0xdb0] sm:$0xf0]  ;;  %v8851_v5 = vld [vmem:[#allocation8 + $0x134] sm:$0xf0] }
 0x26d   :  { %v9006_v30 = vld [vmem:[#allocation8 + $0x614] sm:$0xf]  ;;  %v8129_v28 = vor.u32 %v9246_v58, %v8126_v3  ;;  %4902 = vmatpush.bf16.msrb.mxu1 %v7713_v1  ;;  %4939 = vmatpush.bf16.msra.mxu0 %v6597_v8  ;;  %v6533_v1 = vor.u32 %v8851_v5, %v6532_v62  ;;  %v8923_v8 = vld [vmem:[#allocation8 + $0x374] sm:$0xf0]  ;;  %v9879_v5 = vpop.f32.mrf.mxu3 }
 0x26e   :  { %v7166_v26 = vld [vmem:[#allocation8 + $0x630] sm:$0xf0]  ;;  %10030 = vst [vmem:[#allocation24_spill] sm:$0xff] %v9879_v5 }
 0x26f   :  { %v9134_v18 = vld [vmem:[#allocation8 + $0xa14] sm:$0xf]  ;;  %v7169_v7 = vor.u32 %v9006_v30, %v7166_v26  ;;  %4911 = vmatpush.bf16.msrb.mxu2 %v8129_v28  ;;  %v6853_v30 = vor.u32 %v8931_v47, %v6852_v57 }
 0x270   :  { %v7678_v25 = vld [vmem:[#allocation8 + $0xa30] sm:$0xf0] }
 0x271   :  { %v9318_v27 = vld [vmem:[#allocation8 + $0xfd4] sm:$0xf]  ;;  %v7681_v63 = vor.u32 %v9134_v18, %v7678_v25  ;;  %4875 = vmatpush.bf16.msra.mxu3 %v7169_v7  ;;  %4940 = vmatpush.bf16.msra.mxu0 %v6565_v43  ;;  %v6820_v25 = vld [vmem:[#allocation8 + $0x358] sm:$0xf] }
 0x272   :  { %v8414_v31 = vld [vmem:[#allocation8 + $0xff0] sm:$0xf0]  ;;  %v6821_v7 = vor.u32 %v8923_v8, %v6820_v25  ;;  %v6468_v43 = vld [vmem:[#allocation8 + $0x98] sm:$0xf]  ;;  %v4639_v8 = vpop.f32.mrf.mxu2 }
 0x273   :  { %v8417_v29 = vor.u32 %v9318_v27, %v8414_v31  ;;  %v9238_v37 = vld [vmem:[#allocation8 + $0xd54] sm:$0xf]  ;;  %4903 = vmatpush.bf16.msrb.mxu1 %v7681_v63  ;;  %v6500_v27 = vld [vmem:[#allocation8 + $0xd8] sm:$0xf] }
 0x274   :  { %v8094_v39 = vld [vmem:[#allocation8 + $0xd70] sm:$0xf0]  ;;  %4876 = vmatmul.bf16.vlgmr.msra.gmra.mxu3 %v9728_v59  ;;  %v8843_v31 = vld [vmem:[#allocation8 + $0xf4] sm:$0xf0] }
 0x275   :  { %v9310_v50 = vld [vmem:[#allocation8 + $0xf94] sm:$0xf]  ;;  %v8097_v2 = vor.u32 %v9238_v37, %v8094_v39  ;;  %4924 = vmatpush.bf16.msrb.mxu3 %v8417_v29  ;;  %4941 = vmatpush.bf16.msra.mxu0 %v6533_v1  ;;  %v6501_v63 = vor.u32 %v8843_v31, %v6500_v27  ;;  %v6788_v39 = vld [vmem:[#allocation8 + $0x318] sm:$0xf] }
 0x276   :  { %v8382_v38 = vld [vmem:[#allocation8 + $0xfb0] sm:$0xf0]  ;;  %4904 = vmatmul.bf16.vlgmr.msrb.gmra.mxu1 %v9736_v13  ;;  %v8907_v1 = vld [vmem:[#allocation8 + $0x2f4] sm:$0xf0] }
 0x277   :  { %v8385_v55 = vor.u32 %v9310_v50, %v8382_v38  ;;  %v9230_v58 = vld [vmem:[#allocation8 + $0xd14] sm:$0xf]  ;;  %4952 = vmatpush.bf16.msra.mxu1 %v6885_v44  ;;  %4912 = vmatpush.bf16.msrb.mxu2 %v8097_v2  ;;  %v8915_v44 = vld [vmem:[#allocation8 + $0x334] sm:$0xf0] }
 0x278   :  { %v8062_v3 = vld [vmem:[#allocation8 + $0xd30] sm:$0xf0]  ;;  %v8835_v50 = vld [vmem:[#allocation8 + $0xb4] sm:$0xf0]  ;;  %v6789_v2 = vor.u32 %v8915_v44, %v6788_v39 }
 0x279   :  { %v9302_v26 = vld [vmem:[#allocation8 + $0xf54] sm:$0xf]  ;;  %v8065_v34 = vor.u32 %v9230_v58, %v8062_v3  ;;  %4925 = vmatpush.bf16.msrb.mxu3 %v8385_v55  ;;  %4942 = vmatpush.bf16.msra.mxu0 %v6501_v63  ;;  %v6469_v55 = vor.u32 %v8835_v50, %v6468_v43  ;;  %v6404_v39 = vld [vmem:[#allocation8 + $0x18] sm:$0xf] }
 0x27a   :  { %v8350_v18 = vld [vmem:[#allocation8 + $0xf70] sm:$0xf0]  ;;  %v8819_v44 = vld [vmem:[#allocation8 + $0x34] sm:$0xf0]  ;;  %v4641_v33 = vpop.f32.mrf.mxu2 }
 0x27b   :  { %v8353_v56 = vor.u32 %v9302_v26, %v8350_v18  ;;  %v9222_v4 = vld [vmem:[#allocation8 + $0xcd4] sm:$0xf]  ;;  %4953 = vmatpush.bf16.msra.mxu1 %v6853_v30  ;;  %4913 = vmatpush.bf16.msrb.mxu2 %v8065_v34  ;;  %v6756_v30 = vld [vmem:[#allocation8 + $0x2d8] sm:$0xf] }
 0x27c   :  { %v8030_v28 = vld [vmem:[#allocation8 + $0xcf0] sm:$0xf0]  ;;  %v6436_v26 = vld [vmem:[#allocation8 + $0x58] sm:$0xf] }
 0x27d   :  { %v9294_v29 = vld [vmem:[#allocation8 + $0xf14] sm:$0xf]  ;;  %v8033_v38 = vor.u32 %v9222_v4, %v8030_v28  ;;  %4926 = vmatpush.bf16.msrb.mxu3 %v8353_v56  ;;  %v8827_v18 = vld [vmem:[#allocation8 + $0x74] sm:$0xf0]  ;;  %v4640_v56 = vadd.f32 %v4639_v8, %v9867_v54  ;;  %4943 = vmatpush.bf16.msra.mxu0 %v6469_v55  ;;  %v6757_v4 = vor.u32 %v8907_v1, %v6756_v30  ;;  %v4653_v54 = vpop.f32.mrf.mxu3 }
 0x27e   :  { %v8318_v37 = vld [vmem:[#allocation8 + $0xf30] sm:$0xf0]  ;;  %v6437_v28 = vor.u32 %v8827_v18, %v6436_v26  ;;  %v7652_v50 = vld [vmem:[#allocation8 + $0x9d8] sm:$0xf]  ;;  %v6405_v55 = vor.u32 %v8819_v44, %v6404_v39  ;;  %v4681_v39 = vpop.f32.mrf.mxu1  ;;  %v4642_v44 = vadd.f32 %v4641_v33, %v9871_v21 }
 0x27f   :  { %v8321_v57 = vor.u32 %v9294_v29, %v8318_v37  ;;  %v9214_v47 = vld [vmem:[#allocation8 + $0xc94] sm:$0xf]  ;;  %4954 = vmatpush.bf16.msra.mxu1 %v6821_v7  ;;  %4914 = vmatpush.bf16.msrb.mxu2 %v8033_v38  ;;  %v6724_v29 = vld [vmem:[#allocation8 + $0x298] sm:$0xf]  ;;  %v4654_v26 = vadd.f32 %v4653_v54, %v4640_v56 }
 0x280   :  { %v7998_v62 = vld [vmem:[#allocation8 + $0xcb0] sm:$0xf0]  ;;  %v8899_v37 = vld [vmem:[#allocation8 + $0x2b4] sm:$0xf0] }
 0x281   :  { %v9286_v58 = vld [vmem:[#allocation8 + $0xed4] sm:$0xf]  ;;  %v8001_v25 = vor.u32 %v9214_v47, %v7998_v62  ;;  %4927 = vmatpush.bf16.msrb.mxu3 %v8321_v57  ;;  %v9131_v38 = vld [vmem:[#allocation8 + $0x9f4] sm:$0xf0]  ;;  %4944 = vmatpush.bf16.msra.mxu0 %v6437_v28 }
 0x282   :  { %v8286_v3 = vld [vmem:[#allocation8 + $0xef0] sm:$0xf0]  ;;  %v7653_v18 = vor.u32 %v9131_v38, %v7652_v50  ;;  %v6692_v8 = vld [vmem:[#allocation8 + $0x258] sm:$0xf] }
 0x283   :  { %v8289_v27 = vor.u32 %v9286_v58, %v8286_v3  ;;  %v9206_v31 = vld [vmem:[#allocation8 + $0xc54] sm:$0xf]  ;;  %4955 = vmatpush.bf16.msra.mxu1 %v6789_v2  ;;  %4915 = vmatpush.bf16.msrb.mxu2 %v8001_v25  ;;  %v7140_v58 = vld [vmem:[#allocation8 + $0x5d8] sm:$0xf]  ;;  %v6725_v2 = vor.u32 %v8899_v37, %v6724_v29 }
 0x284   :  { %v7966_v34 = vld [vmem:[#allocation8 + $0xc70] sm:$0xf0]  ;;  %v9003_v3 = vld [vmem:[#allocation8 + $0x5f4] sm:$0xf0] }
 0x285   :  { %v9278_v7 = vld [vmem:[#allocation8 + $0xe94] sm:$0xf]  ;;  %v7969_v43 = vor.u32 %v9206_v31, %v7966_v34  ;;  %4928 = vmatpush.bf16.msrb.mxu3 %v8289_v27  ;;  %v8891_v25 = vld [vmem:[#allocation8 + $0x274] sm:$0xf0]  ;;  %v4667_v31 = vpop.f32.mrf.mxu0  ;;  %4945 = vmatpush.bf16.msra.mxu0 %v6405_v55 }
 0x286   :  { %v8254_v63 = vld [vmem:[#allocation8 + $0xeb0] sm:$0xf0]  ;;  %v7620_v27 = vld [vmem:[#allocation8 + $0x998] sm:$0xf]  ;;  %v6693_v56 = vor.u32 %v8891_v25, %v6692_v8 }
 0x287   :  { %v8257_v57 = vor.u32 %v9278_v7, %v8254_v63  ;;  %v9198_v47 = vld [vmem:[#allocation8 + $0xc14] sm:$0xf]  ;;  %4956 = vmatpush.bf16.msra.mxu1 %v6757_v4  ;;  %4916 = vmatpush.bf16.msrb.mxu2 %v7969_v43  ;;  %v9123_v7 = vld [vmem:[#allocation8 + $0x9b4] sm:$0xf0]  ;;  %v4668_v63 = vadd.f32 %v4667_v31, %v4654_v26  ;;  %v7141_v4 = vor.u32 %v9003_v3, %v7140_v58 }
 0x288   :  { %v7934_v62 = vld [vmem:[#allocation8 + $0xc30] sm:$0xf0]  ;;  %v7108_v28 = vld [vmem:[#allocation8 + $0x598] sm:$0xf]  ;;  %4946 = vmatmul.bf16.vlgmr.msra.gmra.mxu0 %v9717_v41 }
 0x289   :  { %v9270_v30 = vld [vmem:[#allocation8 + $0xe54] sm:$0xf]  ;;  %v7937_v34 = vor.u32 %v9198_v47, %v7934_v62  ;;  %4929 = vmatpush.bf16.msrb.mxu3 %v8257_v57  ;;  %v8995_v29 = vld [vmem:[#allocation8 + $0x5b4] sm:$0xf0]  ;;  %4994 = vmatpush.bf16.msrb.mxu0 %v7653_v18  ;;  %v7621_v47 = vor.u32 %v9123_v7, %v7620_v27  ;;  %v9883_v57 = vadd.f32 %v4681_v39, %v4668_v63 }
 0x28a   :  { %v8222_v1 = vld [vmem:[#allocation8 + $0xe70] sm:$0xf0]  ;;  %v6660_v38 = vld [vmem:[#allocation8 + $0x218] sm:$0xf]  ;;  %v7109_v33 = vor.u32 %v8995_v29, %v7108_v28 }
 0x28b   :  { %v8225_v5 = vor.u32 %v9270_v30, %v8222_v1  ;;  %v9262_v37 = vld [vmem:[#allocation8 + $0xe14] sm:$0xf]  ;;  %4957 = vmatpush.bf16.msra.mxu1 %v6725_v2  ;;  %v8883_v43 = vld [vmem:[#allocation8 + $0x234] sm:$0xf0]  ;;  %4917 = vmatpush.bf16.msrb.mxu2 %v7937_v34  ;;  %v4655_v2 = vpop.f32.mrf.mxu3 }
 0x28c   :  { %v8190_v50 = vld [vmem:[#allocation8 + $0xe30] sm:$0xf0]  ;;  %v7396_v62 = vld [vmem:[#allocation8 + $0x7d8] sm:$0xf]  ;;  %v6661_v55 = vor.u32 %v8883_v43, %v6660_v38  ;;  %v9886_v25 = vadd.f32 %v4655_v2, %v4642_v44 }
 0x28d   :  { %v9067_v54 = vld [vmem:[#allocation8 + $0x7f4] sm:$0xf0]  ;;  %4930 = vmatpush.bf16.msrb.mxu3 %v8225_v5  ;;  %v8193_v21 = vor.u32 %v9262_v37, %v8190_v50  ;;  %4995 = vmatpush.bf16.msrb.mxu0 %v7621_v47 }
 0x28e   :  { %v7908_v26 = vld [vmem:[#allocation8 + $0xbd8] sm:$0xf]  ;;  %v7397_v1 = vor.u32 %v9067_v54, %v7396_v62  ;;  %4918 = vmatmul.bf16.vlgmr.msrb.gmra.mxu2 %v9743_v10 }
 0x28f   :  { %v9195_v58 = vld [vmem:[#allocation8 + $0xbf4] sm:$0xf0]  ;;  %4966 = vmatpush.bf16.msra.mxu2 %v7141_v4  ;;  %4958 = vmatpush.bf16.msra.mxu1 %v6693_v56 }
 0x290   :  { %v7588_v3 = vld [vmem:[#allocation8 + $0x958] sm:$0xf]  ;;  %v7909_v31 = vor.u32 %v9195_v58, %v7908_v26 }
 0x291   :  { %v9115_v30 = vld [vmem:[#allocation8 + $0x974] sm:$0xf0]  ;;  %4931 = vmatpush.bf16.msrb.mxu3 %v8193_v21 }
 0x292   :  { %v7076_v18 = vld [vmem:[#allocation8 + $0x558] sm:$0xf]  ;;  %v7589_v34 = vor.u32 %v9115_v30, %v7588_v3 }
 0x293   :  { %v8987_v8 = vld [vmem:[#allocation8 + $0x574] sm:$0xf0]  ;;  %4967 = vmatpush.bf16.msra.mxu2 %v7109_v33  ;;  %4959 = vmatpush.bf16.msra.mxu1 %v6661_v55 }
 0x294   :  { %v7364_v27 = vld [vmem:[#allocation8 + $0x798] sm:$0xf]  ;;  %v7077_v29 = vor.u32 %v8987_v8, %v7076_v18  ;;  %4996 = vmatpush.bf16.msrb.mxu0 %v7589_v34  ;;  %4932 = vmatmul.bf16.vlgmr.msrb.gmra.mxu3 %v9747_v42 }
 0x295   :  { %v9059_v7 = vld [vmem:[#allocation8 + $0x7b4] sm:$0xf0]  ;;  %4980 = vmatpush.bf16.msra.mxu3 %v7397_v1 }
 0x296   :  { %v7876_v5 = vld [vmem:[#allocation8 + $0xb98] sm:$0xf]  ;;  %v7365_v37 = vor.u32 %v9059_v7, %v7364_v27  ;;  %4960 = vmatmul.bf16.vlgmr.msra.gmra.mxu1 %v9720_v0 }
 0x297   :  { %v9187_v63 = vld [vmem:[#allocation8 + $0xbb4] sm:$0xf0]  ;;  %5008 = vmatpush.bf16.msrb.mxu1 %v7909_v31  ;;  %4968 = vmatpush.bf16.msra.mxu2 %v7077_v29 }
 0x298   :  { %v7556_v4 = vld [vmem:[#allocation8 + $0x918] sm:$0xf]  ;;  %v7877_v56 = vor.u32 %v9187_v63, %v7876_v5 }
 0x299   :  { %v9107_v28 = vld [vmem:[#allocation8 + $0x934] sm:$0xf0]  ;;  %4981 = vmatpush.bf16.msra.mxu3 %v7365_v37 }
 0x29a   :  { %v7044_v39 = vld [vmem:[#allocation8 + $0x518] sm:$0xf]  ;;  %v7557_v50 = vor.u32 %v9107_v28, %v7556_v4 }
 0x29b   :  { %v8979_v44 = vld [vmem:[#allocation8 + $0x534] sm:$0xf0]  ;;  %5009 = vmatpush.bf16.msrb.mxu1 %v7877_v56 }
 0x29c   :  { %v7332_v38 = vld [vmem:[#allocation8 + $0x758] sm:$0xf]  ;;  %v7045_v58 = vor.u32 %v8979_v44, %v7044_v39  ;;  %4997 = vmatpush.bf16.msrb.mxu0 %v7557_v50 }
 0x29d   :  { %v9051_v43 = vld [vmem:[#allocation8 + $0x774] sm:$0xf0] }
 0x29e   :  { %v7844_v47 = vld [vmem:[#allocation8 + $0xb58] sm:$0xf]  ;;  %v7333_v3 = vor.u32 %v9051_v43, %v7332_v38  ;;  %4969 = vmatpush.bf16.msra.mxu2 %v7045_v58  ;;  %v4695_v43 = vpop.f32.mrf.mxu2 }
 0x29f   :  { %v9179_v62 = vld [vmem:[#allocation8 + $0xb74] sm:$0xf0] }
 0x2a0   :  { %v7524_v54 = vld [vmem:[#allocation8 + $0x8d8] sm:$0xf]  ;;  %v7845_v21 = vor.u32 %v9179_v62, %v7844_v47  ;;  %4982 = vmatpush.bf16.msra.mxu3 %v7333_v3 }
 0x2a1   :  { %v9099_v26 = vld [vmem:[#allocation8 + $0x8f4] sm:$0xf0] }
 0x2a2   :  { %v7012_v30 = vld [vmem:[#allocation8 + $0x4d8] sm:$0xf]  ;;  %v7525_v2 = vor.u32 %v9099_v26, %v7524_v54  ;;  %5010 = vmatpush.bf16.msrb.mxu1 %v7845_v21  ;;  %v4696_v26 = vadd.f32 %v4695_v43, %v9883_v57  ;;  %v4669_v57 = vpop.f32.mrf.mxu0 }
 0x2a3   :  { %v8971_v33 = vld [vmem:[#allocation8 + $0x4f4] sm:$0xf0] }
 0x2a4   :  { %v7300_v55 = vld [vmem:[#allocation8 + $0x718] sm:$0xf]  ;;  %v7013_v27 = vor.u32 %v8971_v33, %v7012_v30  ;;  %4998 = vmatpush.bf16.msrb.mxu0 %v7525_v2 }
 0x2a5   :  { %v9043_v1 = vld [vmem:[#allocation8 + $0x734] sm:$0xf0] }
 0x2a6   :  { %v7812_v18 = vld [vmem:[#allocation8 + $0xb18] sm:$0xf]  ;;  %v7301_v7 = vor.u32 %v9043_v1, %v7300_v55  ;;  %4970 = vmatpush.bf16.msra.mxu2 %v7013_v27 }
 0x2a7   :  { %v9171_v8 = vld [vmem:[#allocation8 + $0xb34] sm:$0xf0] }
 0x2a8   :  { %v7492_v31 = vld [vmem:[#allocation8 + $0x898] sm:$0xf]  ;;  %v7813_v4 = vor.u32 %v9171_v8, %v7812_v18  ;;  %4983 = vmatpush.bf16.msra.mxu3 %v7301_v7  ;;  %v8871_v8 = vld [vmem:[#allocation8 + $0x1dc] sm:$0xf] }
 0x2a9   :  { %v9091_v34 = vld [vmem:[#allocation8 + $0x8b4] sm:$0xf0] }
 0x2aa   :  { %v6980_v5 = vld [vmem:[#allocation8 + $0x498] sm:$0xf]  ;;  %v7493_v28 = vor.u32 %v9091_v34, %v7492_v31  ;;  %5011 = vmatpush.bf16.msrb.mxu1 %v7813_v4  ;;  %v6630_v31 = vld [vmem:[#allocation8 + $0x1f8] sm:$0xf0] }
 0x2ab   :  { %v8963_v63 = vld [vmem:[#allocation8 + $0x4b4] sm:$0xf0] }
 0x2ac   :  { %v7268_v29 = vld [vmem:[#allocation8 + $0x6d8] sm:$0xf]  ;;  %v6981_v38 = vor.u32 %v8963_v63, %v6980_v5  ;;  %4999 = vmatpush.bf16.msrb.mxu0 %v7493_v28  ;;  %v4709_v63 = vpop.f32.mrf.mxu3 }
 0x2ad   :  { %v9035_v37 = vld [vmem:[#allocation8 + $0x6f4] sm:$0xf0] }
 0x2ae   :  { %v7780_v39 = vld [vmem:[#allocation8 + $0xad8] sm:$0xf]  ;;  %v7269_v47 = vor.u32 %v9035_v37, %v7268_v29  ;;  %4971 = vmatpush.bf16.msra.mxu2 %v6981_v38 }
 0x2af   :  { %v9163_v44 = vld [vmem:[#allocation8 + $0xaf4] sm:$0xf0] }
 0x2b0   :  { %v7460_v56 = vld [vmem:[#allocation8 + $0x858] sm:$0xf]  ;;  %v7781_v58 = vor.u32 %v9163_v44, %v7780_v39  ;;  %4984 = vmatpush.bf16.msra.mxu3 %v7269_v47  ;;  %v4670_v44 = vadd.f32 %v4669_v57, %v9886_v25  ;;  %v8935_v57 = vld [vmem:[#allocation8 + $0x3dc] sm:$0xf] }
 0x2b1   :  { %v9083_v50 = vld [vmem:[#allocation8 + $0x874] sm:$0xf0] }
 0x2b2   :  { %v6948_v62 = vld [vmem:[#allocation8 + $0x458] sm:$0xf]  ;;  %v7461_v3 = vor.u32 %v9083_v50, %v7460_v56  ;;  %5012 = vmatpush.bf16.msrb.mxu1 %v7781_v58  ;;  %v9893_v56 = vadd.f32 %v4709_v63, %v4696_v26  ;;  %v6633_v50 = vor.u32 %v8871_v8, %v6630_v31  ;;  %v6566_v63 = vld [vmem:[#allocation8 + $0x178] sm:$0xf0] }
 0x2b3   :  { %v8955_v54 = vld [vmem:[#allocation8 + $0x474] sm:$0xf0] }
 0x2b4   :  { %v7236_v30 = vld [vmem:[#allocation8 + $0x698] sm:$0xf]  ;;  %v6949_v18 = vor.u32 %v8955_v54, %v6948_v62  ;;  %5000 = vmatpush.bf16.msrb.mxu0 %v7461_v3  ;;  %v8863_v62 = vld [vmem:[#allocation8 + $0x19c] sm:$0xf] }
 0x2b5   :  { %v9027_v33 = vld [vmem:[#allocation8 + $0x6b4] sm:$0xf0]  ;;  %v6598_v54 = vld [vmem:[#allocation8 + $0x1b8] sm:$0xf0] }
 0x2b6   :  { %v7748_v21 = vld [vmem:[#allocation8 + $0xa98] sm:$0xf]  ;;  %v7237_v34 = vor.u32 %v9027_v33, %v7236_v30  ;;  %4972 = vmatpush.bf16.msra.mxu2 %v6949_v18  ;;  %v6601_v18 = vor.u32 %v8863_v62, %v6598_v54 }
 0x2b7   :  { %v9155_v2 = vld [vmem:[#allocation8 + $0xab4] sm:$0xf0] }
 0x2b8   :  { %v7428_v55 = vld [vmem:[#allocation8 + $0x818] sm:$0xf]  ;;  %v7749_v4 = vor.u32 %v9155_v2, %v7748_v21  ;;  %4985 = vmatpush.bf16.msra.mxu3 %v7237_v34  ;;  %v4683_v2 = vpop.f32.mrf.mxu1  ;;  %v6886_v34 = vld [vmem:[#allocation8 + $0x3f8] sm:$0xf0] }
 0x2b9   :  { %v9075_v1 = vld [vmem:[#allocation8 + $0x834] sm:$0xf0]  ;;  %v4684_v31 = vadd.f32 %v4683_v2, %v4670_v44 }
 0x2ba   :  { %v6916_v27 = vld [vmem:[#allocation8 + $0x418] sm:$0xf]  ;;  %v7429_v28 = vor.u32 %v9075_v1, %v7428_v55  ;;  %v4697_v55 = vpop.f32.mrf.mxu2  ;;  %5013 = vmatpush.bf16.msrb.mxu1 %v7749_v4 }
 0x2bb   :  { %v8947_v7 = vld [vmem:[#allocation8 + $0x434] sm:$0xf0] }
 0x2bc   :  { %v8164_v5 = vld [vmem:[#allocation8 + $0xdd8] sm:$0xf]  ;;  %v6917_v47 = vor.u32 %v8947_v7, %v6916_v27  ;;  %5001 = vmatpush.bf16.msrb.mxu0 %v7429_v28  ;;  %v4711_v28 = vpop.f32.mrf.mxu3 }
 0x2bd   :  { %v9259_v29 = vld [vmem:[#allocation8 + $0xdf4] sm:$0xf0] }
 0x2be   :  { %v7204_v37 = vld [vmem:[#allocation8 + $0x658] sm:$0xf]  ;;  %v8165_v58 = vor.u32 %v9259_v29, %v8164_v5  ;;  %4973 = vmatpush.bf16.msra.mxu2 %v6917_v47  ;;  %v8855_v5 = vld [vmem:[#allocation8 + $0x15c] sm:$0xf]  ;;  %v4698_v29 = vadd.f32 %v4697_v55, %v4684_v31  ;;  %v6889_v47 = vor.u32 %v8935_v57, %v6886_v34 }
 0x2bf   :  { %v9019_v39 = vld [vmem:[#allocation8 + $0x674] sm:$0xf0]  ;;  %5002 = vmatmul.bf16.vlgmr.msrb.gmra.mxu0 %v9733_v53  ;;  %v6569_v62 = vor.u32 %v8855_v5, %v6566_v63  ;;  %v8919_v34 = vld [vmem:[#allocation8 + $0x35c] sm:$0xf] }
 0x2c0   :  { %v7716_v38 = vld [vmem:[#allocation8 + $0xa58] sm:$0xf]  ;;  %v7205_v30 = vor.u32 %v9019_v39, %v7204_v37  ;;  %5050 = vmatpush.bf16.msra.mxu0 %v6633_v50  ;;  %v8839_v5 = vld [vmem:[#allocation8 + $0xdc] sm:$0xf] }
 0x2c1   :  { %v9147_v43 = vld [vmem:[#allocation8 + $0xa74] sm:$0xf0]  ;;  %4974 = vmatmul.bf16.vlgmr.msra.gmra.mxu2 %v9725_v32  ;;  %v6502_v63 = vld [vmem:[#allocation8 + $0xf8] sm:$0xf0] }
 0x2c2   :  { %v8132_v3 = vld [vmem:[#allocation8 + $0xd98] sm:$0xf]  ;;  %v7717_v25 = vor.u32 %v9147_v43, %v7716_v38  ;;  %5022 = vmatpush.bf16.msrb.mxu2 %v8165_v58  ;;  %4986 = vmatpush.bf16.msra.mxu3 %v7205_v30  ;;  %v4712_v43 = vadd.f32 %v4711_v28, %v4698_v29  ;;  %v8927_v58 = vld [vmem:[#allocation8 + $0x39c] sm:$0xf] }
 0x2c3   :  { %v9251_v33 = vld [vmem:[#allocation8 + $0xdb4] sm:$0xf0]  ;;  %v6854_v30 = vld [vmem:[#allocation8 + $0x3b8] sm:$0xf0] }
 0x2c4   :  { %v7172_v21 = vld [vmem:[#allocation8 + $0x618] sm:$0xf]  ;;  %v8133_v37 = vor.u32 %v9251_v33, %v8132_v3  ;;  %5014 = vmatpush.bf16.msrb.mxu1 %v7717_v25  ;;  %5051 = vmatpush.bf16.msra.mxu0 %v6601_v18  ;;  %v8847_v3 = vld [vmem:[#allocation8 + $0x11c] sm:$0xf]  ;;  %v5173_v55 = vmax.f32 %v4712_v43, 0.0  ;;  %v6857_v18 = vor.u32 %v8927_v58, %v6854_v30 }
 0x2c5   :  { %v9011_v26 = vld [vmem:[#allocation8 + $0x634] sm:$0xf0]  ;;  %v6534_v33 = vld [vmem:[#allocation8 + $0x138] sm:$0xf0] }
 0x2c6   :  { %v7684_v1 = vld [vmem:[#allocation8 + $0xa18] sm:$0xf]  ;;  %v7173_v4 = vor.u32 %v9011_v26, %v7172_v21  ;;  %v5165_v21 = vmax.f32 %v9893_v56, 0.0  ;;  %5023 = vmatpush.bf16.msrb.mxu2 %v8133_v37  ;;  %v6822_v56 = vld [vmem:[#allocation8 + $0x378] sm:$0xf0] }
 0x2c7   :  { %v9139_v8 = vld [vmem:[#allocation8 + $0xa34] sm:$0xf0]  ;;  %v8911_v43 = vld [vmem:[#allocation8 + $0x31c] sm:$0xf] }
 0x2c8   :  { %v8420_v27 = vld [vmem:[#allocation8 + $0xfd8] sm:$0xf]  ;;  %v7685_v39 = vor.u32 %v9139_v8, %v7684_v1  ;;  %4987 = vmatpush.bf16.msra.mxu3 %v7173_v4  ;;  %v9898_v31 = vpack.c.bf16 %v5173_v55, %v5165_v21  ;;  %5052 = vmatpush.bf16.msra.mxu0 %v6569_v62  ;;  %v8831_v62 = vld [vmem:[#allocation8 + $0x9c] sm:$0xf] }
 0x2c9   :  { %v9323_v7 = vld [vmem:[#allocation8 + $0xff4] sm:$0xf0] }
 0x2ca   :  { %v8421_v44 = vor.u32 %v9323_v7, %v8420_v27  ;;  %v8100_v50 = vld [vmem:[#allocation8 + $0xd58] sm:$0xf]  ;;  %5015 = vmatpush.bf16.msrb.mxu1 %v7685_v39  ;;  %v6537_v27 = vor.u32 %v8847_v3, %v6534_v33  ;;  %v6825_v39 = vor.u32 %v8919_v34, %v6822_v56 }
 0x2cb   :  { %v9243_v38 = vld [vmem:[#allocation8 + $0xd74] sm:$0xf0]  ;;  %4988 = vmatmul.bf16.vlgmr.msra.gmra.mxu3 %v9728_v59 }
 0x2cc   :  { %v8388_v54 = vld [vmem:[#allocation8 + $0xf98] sm:$0xf]  ;;  %v8101_v25 = vor.u32 %v9243_v38, %v8100_v50  ;;  %5036 = vmatpush.bf16.msrb.mxu3 %v8421_v44  ;;  %5053 = vmatpush.bf16.msra.mxu0 %v6537_v27  ;;  %v6505_v44 = vor.u32 %v8839_v5, %v6502_v63 }
 0x2cd   :  { %v9315_v2 = vld [vmem:[#allocation8 + $0xfb4] sm:$0xf0]  ;;  %5016 = vmatmul.bf16.vlgmr.msrb.gmra.mxu1 %v9736_v13 }
 0x2ce   :  { %v8389_v26 = vor.u32 %v9315_v2, %v8388_v54  ;;  %v8068_v1 = vld [vmem:[#allocation8 + $0xd18] sm:$0xf]  ;;  %5064 = vmatpush.bf16.msra.mxu1 %v6889_v47  ;;  %5024 = vmatpush.bf16.msrb.mxu2 %v8101_v25  ;;  %v6790_v47 = vld [vmem:[#allocation8 + $0x338] sm:$0xf0] }
 0x2cf   :  { %v9235_v8 = vld [vmem:[#allocation8 + $0xd34] sm:$0xf0]  ;;  %v6470_v54 = vld [vmem:[#allocation8 + $0xb8] sm:$0xf0]  ;;  %v6793_v33 = vor.u32 %v8911_v43, %v6790_v47 }
 0x2d0   :  { %v8356_v7 = vld [vmem:[#allocation8 + $0xf58] sm:$0xf]  ;;  %v8069_v29 = vor.u32 %v9235_v8, %v8068_v1  ;;  %5037 = vmatpush.bf16.msrb.mxu3 %v8389_v26  ;;  %5054 = vmatpush.bf16.msra.mxu0 %v6505_v44  ;;  %v6473_v21 = vor.u32 %v8831_v62, %v6470_v54  ;;  %v8903_v26 = vld [vmem:[#allocation8 + $0x2dc] sm:$0xf] }
 0x2d1   :  { %v9307_v57 = vld [vmem:[#allocation8 + $0xf74] sm:$0xf0]  ;;  %v6758_v1 = vld [vmem:[#allocation8 + $0x2f8] sm:$0xf0] }
 0x2d2   :  { %v8357_v37 = vor.u32 %v9307_v57, %v8356_v7  ;;  %v8036_v4 = vld [vmem:[#allocation8 + $0xcd8] sm:$0xf]  ;;  %5065 = vmatpush.bf16.msra.mxu1 %v6857_v18  ;;  %5025 = vmatpush.bf16.msrb.mxu2 %v8069_v29  ;;  %v8823_v8 = vld [vmem:[#allocation8 + $0x5c] sm:$0xf]  ;;  %v6761_v56 = vor.u32 %v8903_v26, %v6758_v1 }
 0x2d3   :  { %v9227_v28 = vld [vmem:[#allocation8 + $0xcf4] sm:$0xf0]  ;;  %v6438_v18 = vld [vmem:[#allocation8 + $0x78] sm:$0xf0] }
 0x2d4   :  { %v8324_v50 = vld [vmem:[#allocation8 + $0xf18] sm:$0xf]  ;;  %v8037_v2 = vor.u32 %v9227_v28, %v8036_v4  ;;  %5038 = vmatpush.bf16.msrb.mxu3 %v8357_v37  ;;  %5055 = vmatpush.bf16.msra.mxu0 %v6473_v21  ;;  %v6441_v5 = vor.u32 %v8823_v8, %v6438_v18  ;;  %v8895_v37 = vld [vmem:[#allocation8 + $0x29c] sm:$0xf] }
 0x2d5   :  { %v9299_v38 = vld [vmem:[#allocation8 + $0xf34] sm:$0xf0]  ;;  %v6726_v4 = vld [vmem:[#allocation8 + $0x2b8] sm:$0xf0] }
 0x2d6   :  { %v8325_v58 = vor.u32 %v9299_v38, %v8324_v50  ;;  %v8004_v30 = vld [vmem:[#allocation8 + $0xc98] sm:$0xf]  ;;  %5066 = vmatpush.bf16.msra.mxu1 %v6825_v39  ;;  %5026 = vmatpush.bf16.msrb.mxu2 %v8037_v2  ;;  %v8815_v28 = vld [vmem:[#allocation8 + $0x1c] sm:$0xf]  ;;  %v6729_v2 = vor.u32 %v8895_v37, %v6726_v4 }
 0x2d7   :  { %v9219_v3 = vld [vmem:[#allocation8 + $0xcb4] sm:$0xf0]  ;;  %v6406_v39 = vld [vmem:[#allocation8 + $0x38] sm:$0xf0] }
 0x2d8   :  { %v8292_v55 = vld [vmem:[#allocation8 + $0xed8] sm:$0xf]  ;;  %v8005_v27 = vor.u32 %v9219_v3, %v8004_v30  ;;  %5039 = vmatpush.bf16.msrb.mxu3 %v8325_v58  ;;  %v9127_v50 = vld [vmem:[#allocation8 + $0x9dc] sm:$0xf]  ;;  %5056 = vmatpush.bf16.msra.mxu0 %v6441_v5  ;;  %v6409_v58 = vor.u32 %v8815_v28, %v6406_v39 }
 0x2d9   :  { %v9291_v25 = vld [vmem:[#allocation8 + $0xef4] sm:$0xf0]  ;;  %v7654_v38 = vld [vmem:[#allocation8 + $0x9f8] sm:$0xf0] }
 0x2da   :  { %v8293_v7 = vor.u32 %v9291_v25, %v8292_v55  ;;  %v7972_v57 = vld [vmem:[#allocation8 + $0xc58] sm:$0xf]  ;;  %5067 = vmatpush.bf16.msra.mxu1 %v6793_v33  ;;  %5027 = vmatpush.bf16.msrb.mxu2 %v8005_v27  ;;  %v8999_v54 = vld [vmem:[#allocation8 + $0x5dc] sm:$0xf]  ;;  %v7657_v21 = vor.u32 %v9127_v50, %v7654_v38 }
 0x2db   :  { %v9211_v34 = vld [vmem:[#allocation8 + $0xc74] sm:$0xf0]  ;;  %v7142_v30 = vld [vmem:[#allocation8 + $0x5f8] sm:$0xf0] }
 0x2dc   :  { %v8260_v63 = vld [vmem:[#allocation8 + $0xe98] sm:$0xf]  ;;  %v7973_v44 = vor.u32 %v9211_v34, %v7972_v57  ;;  %5040 = vmatpush.bf16.msrb.mxu3 %v8293_v7  ;;  %v8887_v55 = vld [vmem:[#allocation8 + $0x25c] sm:$0xf]  ;;  %v7145_v18 = vor.u32 %v8999_v54, %v7142_v30  ;;  %5057 = vmatpush.bf16.msra.mxu0 %v6409_v58 }
 0x2dd   :  { %v9283_v29 = vld [vmem:[#allocation8 + $0xeb4] sm:$0xf0]  ;;  %v6694_v25 = vld [vmem:[#allocation8 + $0x278] sm:$0xf0] }
 0x2de   :  { %v8261_v43 = vor.u32 %v9283_v29, %v8260_v63  ;;  %v7940_v47 = vld [vmem:[#allocation8 + $0xc18] sm:$0xf]  ;;  %5068 = vmatpush.bf16.msra.mxu1 %v6761_v56  ;;  %5028 = vmatpush.bf16.msrb.mxu2 %v7973_v44  ;;  %v9119_v1 = vld [vmem:[#allocation8 + $0x99c] sm:$0xf]  ;;  %v6697_v56 = vor.u32 %v8887_v55, %v6694_v25 }
 0x2df   :  { %v9203_v62 = vld [vmem:[#allocation8 + $0xc34] sm:$0xf0]  ;;  %v7622_v8 = vld [vmem:[#allocation8 + $0x9b8] sm:$0xf0]  ;;  %5058 = vmatmul.bf16.vlgmr.msra.gmra.mxu0 %v9717_v41 }
 0x2e0   :  { %v8228_v3 = vld [vmem:[#allocation8 + $0xe58] sm:$0xf]  ;;  %v7941_v26 = vor.u32 %v9203_v62, %v7940_v47  ;;  %5041 = vmatpush.bf16.msrb.mxu3 %v8261_v43  ;;  %v8991_v7 = vld [vmem:[#allocation8 + $0x59c] sm:$0xf]  ;;  %5106 = vmatpush.bf16.msrb.mxu0 %v7657_v21  ;;  %v7625_v37 = vor.u32 %v9119_v1, %v7622_v8 }
 0x2e1   :  { %v9275_v33 = vld [vmem:[#allocation8 + $0xe74] sm:$0xf0]  ;;  %v7110_v57 = vld [vmem:[#allocation8 + $0x5b8] sm:$0xf0] }
 0x2e2   :  { %v8229_v27 = vor.u32 %v9275_v33, %v8228_v3  ;;  %v8196_v34 = vld [vmem:[#allocation8 + $0xe18] sm:$0xf]  ;;  %5069 = vmatpush.bf16.msra.mxu1 %v6729_v2  ;;  %v8879_v63 = vld [vmem:[#allocation8 + $0x21c] sm:$0xf]  ;;  %5029 = vmatpush.bf16.msrb.mxu2 %v7941_v26  ;;  %v7113_v43 = vor.u32 %v8991_v7, %v7110_v57 }
 0x2e3   :  { %v9267_v5 = vld [vmem:[#allocation8 + $0xe34] sm:$0xf0]  ;;  %v6662_v29 = vld [vmem:[#allocation8 + $0x238] sm:$0xf0] }
 0x2e4   :  { %v9063_v4 = vld [vmem:[#allocation8 + $0x7dc] sm:$0xf]  ;;  %5042 = vmatpush.bf16.msrb.mxu3 %v8229_v27  ;;  %v8197_v47 = vor.u32 %v9267_v5, %v8196_v34  ;;  %v6665_v62 = vor.u32 %v8879_v63, %v6662_v29  ;;  %5107 = vmatpush.bf16.msrb.mxu0 %v7625_v37 }
 0x2e5   :  { %v7398_v28 = vld [vmem:[#allocation8 + $0x7f8] sm:$0xf0]  ;;  %5030 = vmatmul.bf16.vlgmr.msrb.gmra.mxu2 %v9743_v10 }
 0x2e6   :  { %v9191_v39 = vld [vmem:[#allocation8 + $0xbdc] sm:$0xf]  ;;  %5078 = vmatpush.bf16.msra.mxu2 %v7145_v18  ;;  %5070 = vmatpush.bf16.msra.mxu1 %v6697_v56  ;;  %v7401_v54 = vor.u32 %v9063_v4, %v7398_v28 }
 0x2e7   :  { %v7910_v44 = vld [vmem:[#allocation8 + $0xbf8] sm:$0xf0] }
 0x2e8   :  { %v9111_v50 = vld [vmem:[#allocation8 + $0x95c] sm:$0xf]  ;;  %v7913_v30 = vor.u32 %v9191_v39, %v7910_v44  ;;  %5043 = vmatpush.bf16.msrb.mxu3 %v8197_v47 }
 0x2e9   :  { %v7590_v38 = vld [vmem:[#allocation8 + $0x978] sm:$0xf0] }
 0x2ea   :  { %v8983_v2 = vld [vmem:[#allocation8 + $0x55c] sm:$0xf]  ;;  %v7593_v3 = vor.u32 %v9111_v50, %v7590_v38  ;;  %5079 = vmatpush.bf16.msra.mxu2 %v7113_v43  ;;  %5071 = vmatpush.bf16.msra.mxu1 %v6665_v62 }
 0x2eb   :  { %v7078_v58 = vld [vmem:[#allocation8 + $0x578] sm:$0xf0]  ;;  %5044 = vmatmul.bf16.vlgmr.msrb.gmra.mxu3 %v9747_v42 }
 0x2ec   :  { %v9055_v33 = vld [vmem:[#allocation8 + $0x79c] sm:$0xf]  ;;  %v7081_v8 = vor.u32 %v8983_v2, %v7078_v58  ;;  %5092 = vmatpush.bf16.msra.mxu3 %v7401_v54  ;;  %5108 = vmatpush.bf16.msrb.mxu0 %v7593_v3 }
 0x2ed   :  { %v7366_v21 = vld [vmem:[#allocation8 + $0x7b8] sm:$0xf0]  ;;  %5072 = vmatmul.bf16.vlgmr.msra.gmra.mxu1 %v9720_v0 }
 0x2ee   :  { %v9183_v55 = vld [vmem:[#allocation8 + $0xb9c] sm:$0xf]  ;;  %v7369_v41 = vor.u32 %v9055_v33, %v7366_v21  ;;  %5120 = vmatpush.bf16.msrb.mxu1 %v7913_v30  ;;  %5080 = vmatpush.bf16.msra.mxu2 %v7081_v8 }
 0x2ef   :  { %v7878_v25 = vld [vmem:[#allocation8 + $0xbb8] sm:$0xf0] }
 0x2f0   :  { %v9103_v26 = vld [vmem:[#allocation8 + $0x91c] sm:$0xf]  ;;  %v7881_v7 = vor.u32 %v9183_v55, %v7878_v25  ;;  %5093 = vmatpush.bf16.msra.mxu3 %v7369_v41 }
 0x2f1   :  { %v7558_v1 = vld [vmem:[#allocation8 + $0x938] sm:$0xf0] }
 0x2f2   :  { %v8975_v18 = vld [vmem:[#allocation8 + $0x51c] sm:$0xf]  ;;  %v7561_v57 = vor.u32 %v9103_v26, %v7558_v1  ;;  %5121 = vmatpush.bf16.msrb.mxu1 %v7881_v7 }
 0x2f3   :  { %v7046_v27 = vld [vmem:[#allocation8 + $0x538] sm:$0xf0] }
 0x2f4   :  { %v9047_v34 = vld [vmem:[#allocation8 + $0x75c] sm:$0xf]  ;;  %v7049_v4 = vor.u32 %v8975_v18, %v7046_v27  ;;  %5109 = vmatpush.bf16.msrb.mxu0 %v7561_v57  ;;  %v9906_v27 = vpop.f32.mrf.mxu0 }
 0x2f5   :  { %v7334_v56 = vld [vmem:[#allocation8 + $0x778] sm:$0xf0] }
 0x2f6   :  { %v9175_v5 = vld [vmem:[#allocation8 + $0xb5c] sm:$0xf]  ;;  %v7337_v28 = vor.u32 %v9047_v34, %v7334_v56  ;;  %5081 = vmatpush.bf16.msra.mxu2 %v7049_v4 }
 0x2f7   :  { %v7846_v63 = vld [vmem:[#allocation8 + $0xb78] sm:$0xf0] }
 0x2f8   :  { %v9095_v29 = vld [vmem:[#allocation8 + $0x8dc] sm:$0xf]  ;;  %v7849_v50 = vor.u32 %v9175_v5, %v7846_v63  ;;  %5094 = vmatpush.bf16.msra.mxu3 %v7337_v28 }
 0x2f9   :  { %v7526_v37 = vld [vmem:[#allocation8 + $0x8f8] sm:$0xf0] }
 0x2fa   :  { %v8967_v39 = vld [vmem:[#allocation8 + $0x4dc] sm:$0xf]  ;;  %v7529_v38 = vor.u32 %v9095_v29, %v7526_v37  ;;  %5122 = vmatpush.bf16.msrb.mxu1 %v7849_v50  ;;  %v9908_v50 = vpop.f32.mrf.mxu1 }
 0x2fb   :  { %v7014_v44 = vld [vmem:[#allocation8 + $0x4f8] sm:$0xf0] }
 0x2fc   :  { %v9039_v43 = vld [vmem:[#allocation8 + $0x71c] sm:$0xf]  ;;  %v7017_v30 = vor.u32 %v8967_v39, %v7014_v44  ;;  %5110 = vmatpush.bf16.msrb.mxu0 %v7529_v38 }
 0x2fd   :  { %v7302_v47 = vld [vmem:[#allocation8 + $0x738] sm:$0xf0] }
 0x2fe   :  { %v9167_v62 = vld [vmem:[#allocation8 + $0xb1c] sm:$0xf]  ;;  %v7305_v0 = vor.u32 %v9039_v43, %v7302_v47  ;;  %5082 = vmatpush.bf16.msra.mxu2 %v7017_v30  ;;  %v9910_v43 = vpop.f32.mrf.mxu2 }
 0x2ff   :  { %v7814_v54 = vld [vmem:[#allocation8 + $0xb38] sm:$0xf0] }
 0x300   :  { %v9087_v2 = vld [vmem:[#allocation8 + $0x89c] sm:$0xf]  ;;  %v7817_v21 = vor.u32 %v9167_v62, %v7814_v54  ;;  %5095 = vmatpush.bf16.msra.mxu3 %v7305_v0 }
 0x301   :  { %v7494_v58 = vld [vmem:[#allocation8 + $0x8b8] sm:$0xf0] }
 0x302   :  { %v8959_v3 = vld [vmem:[#allocation8 + $0x49c] sm:$0xf]  ;;  %v7497_v55 = vor.u32 %v9087_v2, %v7494_v58  ;;  %5123 = vmatpush.bf16.msrb.mxu1 %v7817_v21  ;;  %v9331_v21 = vld [vmem:[#allocation11 + $0x38] sm:$0xff] }
 0x303   :  { %v6982_v33 = vld [vmem:[#allocation8 + $0x4b8] sm:$0xf0] }
 0x304   :  { %v9031_v25 = vld [vmem:[#allocation8 + $0x6dc] sm:$0xf]  ;;  %v6985_v7 = vor.u32 %v8959_v3, %v6982_v33  ;;  %5111 = vmatpush.bf16.msrb.mxu0 %v7497_v55 }
 0x305   :  { %v7270_v26 = vld [vmem:[#allocation8 + $0x6f8] sm:$0xf0] }
 0x306   :  { %v9159_v1 = vld [vmem:[#allocation8 + $0xadc] sm:$0xf]  ;;  %v7273_v57 = vor.u32 %v9031_v25, %v7270_v26  ;;  %5083 = vmatpush.bf16.msra.mxu2 %v6985_v7 }
 0x307   :  { %v7782_v8 = vld [vmem:[#allocation8 + $0xaf8] sm:$0xf0] }
 0x308   :  { %v9079_v41 = vld [vmem:[#allocation8 + $0x85c] sm:$0xf]  ;;  %v7785_v5 = vor.u32 %v9159_v1, %v7782_v8  ;;  %5096 = vmatpush.bf16.msra.mxu3 %v7273_v57  ;;  %v9912_v57 = vpop.f32.mrf.mxu0 }
 0x309   :  { %v7462_v18 = vld [vmem:[#allocation8 + $0x878] sm:$0xf0] }
 0x30a   :  { %v8951_v34 = vld [vmem:[#allocation8 + $0x45c] sm:$0xf]  ;;  %v7465_v63 = vor.u32 %v9079_v41, %v7462_v18  ;;  %5124 = vmatpush.bf16.msrb.mxu1 %v7785_v5 }
 0x30b   :  { %v6950_v56 = vld [vmem:[#allocation8 + $0x478] sm:$0xf0] }
 0x30c   :  { %v9023_v29 = vld [vmem:[#allocation8 + $0x69c] sm:$0xf]  ;;  %v6953_v38 = vor.u32 %v8951_v34, %v6950_v56  ;;  %5112 = vmatpush.bf16.msrb.mxu0 %v7465_v63  ;;  %v9914_v34 = vpop.f32.mrf.mxu3 }
 0x30d   :  { %v7238_v37 = vld [vmem:[#allocation8 + $0x6b8] sm:$0xf0] }
 0x30e   :  { %v9151_v4 = vld [vmem:[#allocation8 + $0xa9c] sm:$0xf]  ;;  %v7241_v47 = vor.u32 %v9023_v29, %v7238_v37  ;;  %5084 = vmatpush.bf16.msra.mxu2 %v6953_v38  ;;  %v9916_v38 = vpop.f32.mrf.mxu1 }
 0x30f   :  { %v7750_v28 = vld [vmem:[#allocation8 + $0xab8] sm:$0xf0] }
 0x310   :  { %v9071_v39 = vld [vmem:[#allocation8 + $0x81c] sm:$0xf]  ;;  %v7753_v58 = vor.u32 %v9151_v4, %v7750_v28  ;;  %5097 = vmatpush.bf16.msra.mxu3 %v7241_v47 }
 0x311   :  { %v7430_v44 = vld [vmem:[#allocation8 + $0x838] sm:$0xf0] }
 0x312   :  { %v8943_v62 = vld [vmem:[#allocation8 + $0x41c] sm:$0xf]  ;;  %v7433_v30 = vor.u32 %v9071_v39, %v7430_v44  ;;  %5125 = vmatpush.bf16.msrb.mxu1 %v7753_v58 }
 0x313   :  { %v6918_v54 = vld [vmem:[#allocation8 + $0x438] sm:$0xf0] }
 0x314   :  { %v9255_v2 = vld [vmem:[#allocation8 + $0xddc] sm:$0xf]  ;;  %v6921_v26 = vor.u32 %v8943_v62, %v6918_v54  ;;  %5113 = vmatpush.bf16.msrb.mxu0 %v7433_v30  ;;  %v9339_v54 = vld [vmem:[#allocation11 + $0x78] sm:$0xff]  ;;  %v9919_v30 = vpop.f32.mrf.mxu2 }
 0x315   :  { %v8166_v0 = vld [vmem:[#allocation8 + $0xdf8] sm:$0xf0] }
 0x316   :  { %v9015_v3 = vld [vmem:[#allocation8 + $0x65c] sm:$0xf]  ;;  %v8169_v1 = vor.u32 %v9255_v2, %v8166_v0  ;;  %5085 = vmatpush.bf16.msra.mxu2 %v6921_v26  ;;  %v9329_v0 = vld [vmem:[#allocation11 + $0x28] sm:$0xff] }
 0x317   :  { %v7206_v33 = vld [vmem:[#allocation8 + $0x678] sm:$0xf0]  ;;  %5114 = vmatmul.bf16.vlgmr.msrb.gmra.mxu0 %v9733_v53 }
 0x318   :  { %v9143_v55 = vld [vmem:[#allocation8 + $0xa5c] sm:$0xf]  ;;  %v7209_v8 = vor.u32 %v9015_v3, %v7206_v33  ;;  %5702 = vmatpush.bf16.msra.mxu0 %v9331_v21  ;;  %v10031_v21 = vperm.slane %v9753_v20, 0 }
 0x319   :  { %v7718_v25 = vld [vmem:[#allocation8 + $0xa78] sm:$0xf0]  ;;  %5086 = vmatmul.bf16.vlgmr.msra.gmra.mxu2 %v9725_v32  ;;  %v9328_v32 = vld [vmem:[#allocation11 + $0x20] sm:$0xff] }
 0x31a   :  { %v9247_v41 = vld [vmem:[#allocation8 + $0xd9c] sm:$0xf]  ;;  %v7721_v56 = vor.u32 %v9143_v55, %v7718_v25  ;;  %5134 = vmatpush.bf16.msrb.mxu2 %v8169_v1  ;;  %5098 = vmatpush.bf16.msra.mxu3 %v7209_v8  ;;  %v4278_v55 = vadd.f32 %v9771_v51, %v10031_v21  ;;  %v9925_v25 = vpop.f32.mrf.mxu0 }
 0x31b   :  { %v8134_v18 = vld [vmem:[#allocation8 + $0xdb8] sm:$0xf0] }
 0x31c   :  { %v9330_v7 = vld [vmem:[#allocation11 + $0x30] sm:$0xff]  ;;  %v8137_v39 = vor.u32 %v9247_v41, %v8134_v18  ;;  %5126 = vmatpush.bf16.msrb.mxu1 %v7721_v56  ;;  %v9927_v56 = vpop.f32.mrf.mxu3  ;;  %v4292_v51 = vadd.f32 %v9775_v16, %v4278_v55 }
 0x31d   :  { %v9007_v5 = vld [vmem:[#allocation8 + $0x61c] sm:$0xf]  ;;  %5703 = vmatpush.bf16.msra.mxu0 %v9330_v7 }
 0x31e   :  { %v7174_v63 = vld [vmem:[#allocation8 + $0x638] sm:$0xf0]  ;;  %5135 = vmatpush.bf16.msrb.mxu2 %v8137_v39 }
 0x31f   :  { %v9135_v29 = vld [vmem:[#allocation8 + $0xa1c] sm:$0xf]  ;;  %v7177_v44 = vor.u32 %v9007_v5, %v7174_v63  ;;  %v10032_v63 = vperm.slane %v9753_v20, 1 }
 0x320   :  { %v7686_v37 = vld [vmem:[#allocation8 + $0xa38] sm:$0xf0] }
 0x321   :  { %v9319_v4 = vld [vmem:[#allocation8 + $0xfdc] sm:$0xf]  ;;  %v7689_v47 = vor.u32 %v9135_v29, %v7686_v37  ;;  %5099 = vmatpush.bf16.msra.mxu3 %v7177_v44  ;;  %5704 = vmatpush.bf16.msra.mxu0 %v9329_v0  ;;  %v4390_v29 = vadd.f32 %v9799_v60, %v10032_v63  ;;  %v9935_v37 = vpop.f32.mrf.mxu1  ;;  %v9336_v0 = vld [vmem:[#allocation11 + $0x60] sm:$0xff] }
 0x322   :  { %v8422_v28 = vld [vmem:[#allocation8 + $0xff8] sm:$0xf0] }
 0x323   :  { %v8425_v62 = vor.u32 %v9319_v4, %v8422_v28  ;;  %v9239_v2 = vld [vmem:[#allocation8 + $0xd5c] sm:$0xf]  ;;  %5127 = vmatpush.bf16.msrb.mxu1 %v7689_v47  ;;  %v9337_v28 = vld [vmem:[#allocation11 + $0x68] sm:$0xff]  ;;  %v4306_v47 = vadd.f32 %v9793_v24, %v4292_v51  ;;  %v4404_v20 = vadd.f32 %v9802_v15, %v4390_v29 }
 0x324   :  { %v8102_v58 = vld [vmem:[#allocation8 + $0xd78] sm:$0xf0]  ;;  %5100 = vmatmul.bf16.vlgmr.msra.gmra.mxu3 %v9728_v59  ;;  %v9938_v59 = vpop.f32.mrf.mxu2 }
 0x325   :  { %v9311_v3 = vld [vmem:[#allocation8 + $0xf9c] sm:$0xf]  ;;  %v8105_v53 = vor.u32 %v9239_v2, %v8102_v58  ;;  %5148 = vmatpush.bf16.msrb.mxu3 %v8425_v62  ;;  %5705 = vmatpush.bf16.msra.mxu0 %v9328_v32  ;;  %v4320_v60 = vadd.f32 %v9797_v49, %v4306_v47  ;;  %v4418_v2 = vadd.f32 %v9823_v11, %v4404_v20  ;;  %v9947_v49 = vpop.f32.mrf.mxu3  ;;  %v9324_v47 = vld [vmem:[#allocation11] sm:$0xff]  ;;  %v9363_v20 = vld [vmem:[#allocation11 + $0x138] sm:$0xff] }
 0x326   :  { %v8390_v33 = vld [vmem:[#allocation8 + $0xfb8] sm:$0xf0]  ;;  %5128 = vmatmul.bf16.vlgmr.msrb.gmra.mxu1 %v9736_v13  ;;  %v9327_v13 = vld [vmem:[#allocation11 + $0x18] sm:$0xff] }
 0x327   :  { %v8393_v26 = vor.u32 %v9311_v3, %v8390_v33  ;;  %v9338_v1 = vld [vmem:[#allocation11 + $0x70] sm:$0xff]  ;;  %5716 = vmatpush.bf16.msra.mxu1 %v9339_v54  ;;  %5136 = vmatpush.bf16.msrb.mxu2 %v8105_v53  ;;  %v4334_v33 = vadd.f32 %v9782_v61, %v4320_v60  ;;  %v4432_v15 = vadd.f32 %v9830_v45, %v4418_v2 }
 0x328   :  { %v9231_v8 = vld [vmem:[#allocation8 + $0xd1c] sm:$0xf] }
 0x329   :  { %v8070_v41 = vld [vmem:[#allocation8 + $0xd38] sm:$0xf0]  ;;  %5149 = vmatpush.bf16.msrb.mxu3 %v8393_v26  ;;  %5706 = vmatpush.bf16.msra.mxu0 %v9327_v13  ;;  %v9945_v26 = vpop.f32.mrf.mxu0  ;;  %v4348_v11 = vadd.f32 %v9784_v22, %v4334_v33  ;;  %v9952_v63 = vpop.f32.mrf.mxu1 }
 0x32a   :  { %v9303_v18 = vld [vmem:[#allocation8 + $0xf5c] sm:$0xf]  ;;  %v8073_v5 = vor.u32 %v9231_v8, %v8070_v41  ;;  %v9335_v41 = vld [vmem:[#allocation11 + $0x58] sm:$0xff] }
 0x32b   :  { %v8358_v7 = vld [vmem:[#allocation8 + $0xf78] sm:$0xf0]  ;;  %5717 = vmatpush.bf16.msra.mxu1 %v9338_v1 }
 0x32c   :  { %v8361_v4 = vor.u32 %v9303_v18, %v8358_v7  ;;  %v9223_v39 = vld [vmem:[#allocation8 + $0xcdc] sm:$0xf]  ;;  %5137 = vmatpush.bf16.msrb.mxu2 %v8073_v5  ;;  %v4362_v18 = vadd.f32 %v9806_v36, %v4348_v11  ;;  %v9325_v7 = vld [vmem:[#allocation11 + $0x8] sm:$0xff]  ;;  %v4446_v5 = vadd.f32 %v9817_v48, %v4432_v15  ;;  %v9955_v29 = vpop.f32.mrf.mxu2 }
 0x32d   :  { %v8038_v44 = vld [vmem:[#allocation8 + $0xcf8] sm:$0xf0]  ;;  %v9961_v2 = vpop.f32.mrf.mxu3 }
 0x32e   :  { %v9295_v16 = vld [vmem:[#allocation8 + $0xf1c] sm:$0xf]  ;;  %v8041_v54 = vor.u32 %v9223_v39, %v8038_v44  ;;  %5150 = vmatpush.bf16.msrb.mxu3 %v8361_v4  ;;  %v4376_v22 = vadd.f32 %v9812_v14, %v4362_v18  ;;  %v4460_v48 = vadd.f32 %v9820_v9, %v4446_v5 }
 0x32f   :  { %v8326_v62 = vld [vmem:[#allocation8 + $0xf38] sm:$0xf0]  ;;  %5718 = vmatpush.bf16.msra.mxu1 %v9337_v28 }
 0x330   :  { %v8329_v58 = vor.u32 %v9295_v16, %v8326_v62  ;;  %v9215_v3 = vld [vmem:[#allocation8 + $0xc9c] sm:$0xf]  ;;  %5138 = vmatpush.bf16.msrb.mxu2 %v8041_v54  ;;  %v5170_v14 = vmax.f32 %v4376_v22, 0.0  ;;  %v4474_v54 = vadd.f32 %v9841_v23, %v4460_v48  ;;  %v9967_v23 = vld [vmem:[#allocation10] sm:$0xff]  ;;  %v9344_v48 = vld [vmem:[#allocation11 + $0xa0] sm:$0xff] }
 0x331   :  { %v8006_v24 = vld [vmem:[#allocation8 + $0xcb8] sm:$0xf0]  ;;  %v9958_v62 = vpop.f32.mrf.mxu0  ;;  %v1694_v11 = vperm.slane %v9967_v23, 4 }
 0x332   :  { %v9326_v21 = vld [vmem:[#allocation11 + $0x10] sm:$0xff]  ;;  %v8009_v1 = vor.u32 %v9215_v3, %v8006_v24  ;;  %5151 = vmatpush.bf16.msrb.mxu3 %v8329_v58  ;;  %v9347_v58 = vld [vmem:[#allocation11 + $0xb8] sm:$0xff]  ;;  %v5162_v3 = vmax.f32 %v9804_v35, 0.0  ;;  %v9333_v24 = vld [vmem:[#allocation11 + $0x48] sm:$0xff] }
 0x333   :  { %v9287_v55 = vld [vmem:[#allocation8 + $0xedc] sm:$0xf]  ;;  %5719 = vmatpush.bf16.msra.mxu1 %v9336_v0  ;;  %5707 = vmatpush.bf16.msra.mxu0 %v9326_v21  ;;  %v4488_v21 = vadd.f32 %v9846_v46, %v4474_v54  ;;  %v9332_v46 = vld [vmem:[#allocation11 + $0x40] sm:$0xff]  ;;  %v4724_v5 = vadd.f32 %v9906_v27, %v1694_v11 }
 0x334   :  { %v8294_v53 = vld [vmem:[#allocation8 + $0xef8] sm:$0xf0]  ;;  %5139 = vmatpush.bf16.msrb.mxu2 %v8009_v1  ;;  %v5178_v15 = vpack.c.bf16 %v5170_v14, %v5162_v3  ;;  %v9970_v1 = vpop.f32.mrf.mxu2  ;;  %v9353_v14 = vld [vmem:[#allocation11 + $0xe8] sm:$0xff]  ;;  %v9343_v3 = vld [vmem:[#allocation11 + $0x98] sm:$0xff] }
 0x335   :  { %v8297_v8 = vor.u32 %v9287_v55, %v8294_v53  ;;  %v9207_v32 = vld [vmem:[#allocation8 + $0xc5c] sm:$0xf]  ;;  %v9965_v55 = vpop.f32.mrf.mxu1 }
 0x336   :  { %v7974_v61 = vld [vmem:[#allocation8 + $0xc78] sm:$0xf0] }
 0x337   :  { %v9279_v51 = vld [vmem:[#allocation8 + $0xe9c] sm:$0xf]  ;;  %v7977_v4 = vor.u32 %v9207_v32, %v7974_v61  ;;  %5152 = vmatpush.bf16.msrb.mxu3 %v8297_v8  ;;  %5720 = vmatpush.bf16.msra.mxu1 %v9335_v41  ;;  %v4726_v41 = vadd.f32 %v9912_v57, %v1694_v11  ;;  %v9355_v32 = vld [vmem:[#allocation11 + $0xf8] sm:$0xff]  ;;  %v10033_v61 = vperm.slane %v9826_v19, 2  ;;  %v5163_v57 = vmax.f32 %v9836_v12, 0.0  ;;  %v9345_v19 = vld [vmem:[#allocation11 + $0xa8] sm:$0xff] }
 0x338   :  { %v8262_v45 = vld [vmem:[#allocation8 + $0xeb8] sm:$0xf0]  ;;  %5708 = vmatpush.bf16.msra.mxu0 %v9325_v7  ;;  %v5171_v7 = vmax.f32 %v4488_v21, 0.0 }
 0x339   :  { %v8265_v28 = vor.u32 %v9279_v51, %v8262_v45  ;;  %v9334_v39 = vld [vmem:[#allocation11 + $0x50] sm:$0xff]  ;;  %5140 = vmatpush.bf16.msrb.mxu2 %v7977_v4  ;;  %v4502_v18 = vadd.f32 %v9844_v17, %v10033_v61  ;;  %v9371_v51 = vld [vmem:[#allocation11 + $0x178] sm:$0xff]  ;;  %v9361_v45 = vld [vmem:[#allocation11 + $0x128] sm:$0xff]  ;;  %v4740_v22 = vadd.f32 %v9916_v38, %v4726_v41  ;;  %v4738_v17 = vadd.f32 %v9908_v50, %v4724_v5 }
 0x33a   :  { %v9199_v44 = vld [vmem:[#allocation8 + $0xc1c] sm:$0xf]  ;;  %v9360_v38 = vld [vmem:[#allocation11 + $0x120] sm:$0xff] }
 0x33b   :  { %v7942_v36 = vld [vmem:[#allocation8 + $0xc38] sm:$0xf0]  ;;  %5153 = vmatpush.bf16.msrb.mxu3 %v8265_v28  ;;  %5721 = vmatpush.bf16.msra.mxu1 %v9334_v39  ;;  %v4516_v4 = vadd.f32 %v9849_v52, %v4502_v18  ;;  %v4837_v28 = vpop.f32.mrf.mxu0  ;;  %v4877_v39 = vpop.f32.mrf.mxu3  ;;  %v4752_v52 = vadd.f32 %v9910_v43, %v4738_v17  ;;  %v10034_v50 = vld [vmem:[#allocation22_spill] sm:$0xff] }
 0x33c   :  { %v9271_v13 = vld [vmem:[#allocation8 + $0xe5c] sm:$0xf]  ;;  %v7945_v60 = vor.u32 %v9199_v44, %v7942_v36  ;;  %5709 = vmatpush.bf16.msra.mxu0 %v9324_v47  ;;  %v5179_v36 = vpack.c.bf16 %v5171_v7, %v5163_v57  ;;  %v9369_v43 = vld [vmem:[#allocation11 + $0x168] sm:$0xff]  ;;  %v9351_v7 = vld [vmem:[#allocation11 + $0xd8] sm:$0xff] }
 0x33d   :  { %v8230_v16 = vld [vmem:[#allocation8 + $0xe78] sm:$0xf0]  ;;  %v4530_v27 = vadd.f32 %v9859_v40, %v4516_v4  ;;  %v4766_v40 = vadd.f32 %v9914_v34, %v4752_v52 }
 0x33e   :  { %v8233_v0 = vor.u32 %v9271_v13, %v8230_v16  ;;  %v9263_v33 = vld [vmem:[#allocation8 + $0xe1c] sm:$0xf]  ;;  %5141 = vmatpush.bf16.msrb.mxu2 %v7945_v60  ;;  %v1695_v13 = vperm.slane %v9967_v23, 5  ;;  %v4851_v16 = vpop.f32.mrf.mxu1  ;;  %v9359_v60 = vld [vmem:[#allocation11 + $0x118] sm:$0xff] }
 0x33f   :  { %v8198_v9 = vld [vmem:[#allocation8 + $0xe38] sm:$0xf0]  ;;  %5722 = vmatpush.bf16.msra.mxu1 %v9333_v24  ;;  %5710 = vmatmul.bf16.vlgmr.msra.gmra.mxu0 %v5178_v15  ;;  %v4780_v24 = vadd.f32 %v9925_v25, %v4766_v40 }
 0x340   :  { %5758 = vmatpush.bf16.msrb.mxu0 %v9363_v20  ;;  %v9362_v53 = vld [vmem:[#allocation11 + $0x130] sm:$0xff]  ;;  %5154 = vmatpush.bf16.msrb.mxu3 %v8233_v0  ;;  %v8201_v8 = vor.u32 %v9263_v33, %v8198_v9  ;;  %v4865_v20 = vpop.f32.mrf.mxu2  ;;  %v4836_v54 = vadd.f32 %v9958_v62, %v1695_v13  ;;  %v4838_v33 = vadd.f32 %v4837_v28, %v1695_v13  ;;  %v9352_v9 = vld [vmem:[#allocation11 + $0xe0] sm:$0xff] }
 0x341   :  { %v9346_v35 = vld [vmem:[#allocation11 + $0xb0] sm:$0xff]  ;;  %5142 = vmatmul.bf16.vlgmr.msrb.gmra.mxu2 %v9743_v10  ;;  %v4754_v10 = vadd.f32 %v9919_v30, %v4740_v22  ;;  %v4544_v30 = vadd.f32 %v10034_v50, %v4530_v27 }
 0x342   :  { %5730 = vmatpush.bf16.msra.mxu2 %v9347_v58  ;;  %v9354_v44 = vld [vmem:[#allocation11 + $0xf0] sm:$0xff]  ;;  %v4850_v34 = vadd.f32 %v9965_v55, %v4836_v54  ;;  %v4852_v62 = vadd.f32 %v4851_v16, %v4838_v33  ;;  %v4794_v55 = vadd.f32 %v9935_v37, %v4780_v24  ;;  %v9341_v37 = vld [vmem:[#allocation11 + $0x88] sm:$0xff]  ;;  %v9379_v54 = vld [vmem:[#allocation11 + $0x1b8] sm:$0xff] }
 0x343   :  { %5723 = vmatpush.bf16.msra.mxu1 %v9332_v46  ;;  %v9370_v12 = vld [vmem:[#allocation11 + $0x170] sm:$0xff]  ;;  %v4768_v47 = vadd.f32 %v9927_v56, %v4754_v10  ;;  %v4891_v0 = vpop.f32.mrf.mxu0  ;;  %v4879_v21 = vpop.f32.mrf.mxu3  ;;  %v9376_v33 = vld [vmem:[#allocation11 + $0x1a0] sm:$0xff] }
 0x344   :  { %5759 = vmatpush.bf16.msrb.mxu0 %v9362_v53  ;;  %5155 = vmatpush.bf16.msrb.mxu3 %v8201_v8  ;;  %v9368_v53 = vld [vmem:[#allocation11 + $0x160] sm:$0xff]  ;;  %v9358_v15 = vld [vmem:[#allocation11 + $0x110] sm:$0xff]  ;;  %v4864_v11 = vadd.f32 %v9970_v1, %v4850_v34  ;;  %v4866_v61 = vadd.f32 %v4865_v20, %v4852_v62  ;;  %v9377_v34 = vld [vmem:[#allocation11 + $0x1a8] sm:$0xff] }
 0x345   :  { %v4782_v56 = vadd.f32 %v9945_v26, %v4768_v47  ;;  %v9342_v25 = vld [vmem:[#allocation11 + $0x90] sm:$0xff]  ;;  %v9365_v47 = vld [vmem:[#allocation11 + $0x148] sm:$0xff] }
 0x346   :  { %5731 = vmatpush.bf16.msra.mxu2 %v9346_v35  ;;  %5724 = vmatmul.bf16.vlgmr.msra.gmra.mxu1 %v5179_v36  ;;  %v10036_v35 = vld [vmem:[#allocation21_spill] sm:$0xff]  ;;  %v4905_v41 = vpop.f32.mrf.mxu1  ;;  %v4880_v22 = vadd.f32 %v4879_v21, %v4866_v61  ;;  %v10037_v57 = vld [vmem:[#allocation24_spill] sm:$0xff]  ;;  %v10038_v13 = vld [vmem:[#allocation23_spill] sm:$0xff] }
 0x347   :  { %5772 = vmatpush.bf16.msrb.mxu1 %v9371_v51  ;;  %5156 = vmatmul.bf16.vlgmr.msrb.gmra.mxu3 %v9747_v42  ;;  %v10035_v42 = vld [vmem:[#allocation20_spill] sm:$0xff]  ;;  %v4796_v26 = vadd.f32 %v9952_v63, %v4782_v56  ;;  %v9357_v51 = vld [vmem:[#allocation11 + $0x108] sm:$0xff]  ;;  %v5164_v50 = vmax.f32 %v10038_v13, 0.0  ;;  %v9364_v56 = vld [vmem:[#allocation11 + $0x140] sm:$0xff] }
 0x348   :  { %5744 = vmatpush.bf16.msra.mxu3 %v9355_v32  ;;  %5760 = vmatpush.bf16.msrb.mxu0 %v9361_v45  ;;  %v4558_v58 = vadd.f32 %v10035_v42, %v4544_v30  ;;  %v4878_v32 = vadd.f32 %v4877_v39, %v4864_v11  ;;  %v4919_v18 = vpop.f32.mrf.mxu2  ;;  %v9367_v63 = vld [vmem:[#allocation11 + $0x158] sm:$0xff]  ;;  %v4808_v45 = vadd.f32 %v9938_v59, %v4794_v55  ;;  %v9350_v39 = vld [vmem:[#allocation11 + $0xd0] sm:$0xff]  ;;  %v9372_v11 = vld [vmem:[#allocation11 + $0x180] sm:$0xff] }
 0x349   :  { %v4810_v46 = vadd.f32 %v9955_v29, %v4796_v26  ;;  %v9366_v10 = vld [vmem:[#allocation11 + $0x150] sm:$0xff]  ;;  %v9383_v13 = vld [vmem:[#allocation11 + $0x1d8] sm:$0xff] }
 0x34a   :  { %5732 = vmatpush.bf16.msra.mxu2 %v9345_v19  ;;  %v4572_v8 = vadd.f32 %v10036_v35, %v4558_v58  ;;  %v4822_v4 = vadd.f32 %v9947_v49, %v4808_v45  ;;  %v4892_v28 = vadd.f32 %v4891_v0, %v4878_v32  ;;  %v9378_v24 = vld [vmem:[#allocation11 + $0x1b0] sm:$0xff] }
 0x34b   :  { %5773 = vmatpush.bf16.msrb.mxu1 %v9370_v12  ;;  %v4824_v5 = vadd.f32 %v9961_v2, %v4810_v46  ;;  %v4893_v19 = vpop.f32.mrf.mxu0  ;;  %v4933_v17 = vpop.f32.mrf.mxu3  ;;  %v9340_v2 = vld [vmem:[#allocation11 + $0x80] sm:$0xff]  ;;  %v9374_v21 = vld [vmem:[#allocation11 + $0x190] sm:$0xff] }
 0x34c   :  { %5745 = vmatpush.bf16.msra.mxu3 %v9354_v44  ;;  %5761 = vmatpush.bf16.msrb.mxu0 %v9360_v38  ;;  %v4586_v1 = vadd.f32 %v9877_v6, %v4572_v8  ;;  %v9356_v6 = vld [vmem:[#allocation11 + $0x100] sm:$0xff]  ;;  %v4894_v59 = vadd.f32 %v4893_v19, %v4880_v22  ;;  %v5166_v27 = vmax.f32 %v4822_v4, 0.0  ;;  %v4906_v12 = vadd.f32 %v4905_v41, %v4892_v28  ;;  %v9349_v38 = vld [vmem:[#allocation11 + $0xc8] sm:$0xff] }
 0x34d   :  { %v5174_v44 = vmax.f32 %v4824_v5, 0.0 }
 0x34e   :  { %5733 = vmatpush.bf16.msra.mxu2 %v9344_v48  ;;  %v4600_v29 = vadd.f32 %v10037_v57, %v4586_v1  ;;  %v4907_v52 = vpop.f32.mrf.mxu1  ;;  %v4920_v16 = vadd.f32 %v4919_v18, %v4906_v12 }
 0x34f   :  { %5774 = vmatpush.bf16.msrb.mxu1 %v9369_v43  ;;  %v5182_v30 = vpack.c.bf16 %v5174_v44, %v5166_v27  ;;  %v4908_v48 = vadd.f32 %v4907_v52, %v4894_v59  ;;  %v9348_v43 = vld [vmem:[#allocation11 + $0xc0] sm:$0xff]  ;;  %v9386_v52 = vld [vmem:[#allocation11 + $0x1f0] sm:$0xff] }
 0x350   :  { %5746 = vmatpush.bf16.msra.mxu3 %v9353_v14  ;;  %5762 = vmatpush.bf16.msrb.mxu0 %v9359_v60  ;;  %v5172_v36 = vmax.f32 %v4600_v29, 0.0  ;;  %v4921_v49 = vpop.f32.mrf.mxu2  ;;  %v4934_v20 = vadd.f32 %v4933_v17, %v4920_v16  ;;  %v9381_v16 = vld [vmem:[#allocation11 + $0x1c8] sm:$0xff] }
 0x351   :  { %v4922_v14 = vadd.f32 %v4921_v49, %v4908_v48  ;;  %v9385_v49 = vld [vmem:[#allocation11 + $0x1e8] sm:$0xff] }
 0x352   :  { %5734 = vmatpush.bf16.msra.mxu2 %v9343_v3  ;;  %v5180_v40 = vpack.c.bf16 %v5172_v36, %v5164_v50  ;;  %v5167_v58 = vmax.f32 %v4934_v20, 0.0  ;;  %v9382_v50 = vld [vmem:[#allocation11 + $0x1d0] sm:$0xff]  ;;  %v9380_v20 = vld [vmem:[#allocation11 + $0x1c0] sm:$0xff] }
 0x353   :  { %5775 = vmatpush.bf16.msrb.mxu1 %v9368_v53  ;;  %v4935_v60 = vpop.f32.mrf.mxu3  ;;  %v4947_v53 = vpop.f32.mrf.mxu0 }
 0x354   :  { %5747 = vmatpush.bf16.msra.mxu3 %v9352_v9  ;;  %5763 = vmatpush.bf16.msrb.mxu0 %v9358_v15  ;;  %v4936_v42 = vadd.f32 %v4935_v60, %v4922_v14  ;;  %v9375_v9 = vld [vmem:[#allocation11 + $0x198] sm:$0xff]  ;;  %v9373_v15 = vld [vmem:[#allocation11 + $0x188] sm:$0xff]  ;;  %v1697_v60 = vperm.slane %v9967_v23, 7 }
 0x356   :  { %5735 = vmatpush.bf16.msra.mxu2 %v9342_v25  ;;  %v5175_v0 = vmax.f32 %v4936_v42, 0.0  ;;  %v4961_v26 = vpop.f32.mrf.mxu1 }
 0x357   :  { %5776 = vmatpush.bf16.msrb.mxu1 %v9367_v63 }
 0x358   :  { %5748 = vmatpush.bf16.msra.mxu3 %v9351_v7  ;;  %5764 = vmatpush.bf16.msrb.mxu0 %v9357_v51  ;;  %v5183_v3 = vpack.c.bf16 %v5175_v0, %v5167_v58  ;;  %v4975_v62 = vpop.f32.mrf.mxu2 }
 0x35a   :  { %5736 = vmatpush.bf16.msra.mxu2 %v9341_v37 }
 0x35b   :  { %5777 = vmatpush.bf16.msrb.mxu1 %v9366_v10  ;;  %v4949_v35 = vpop.f32.mrf.mxu0  ;;  %v4989_v8 = vpop.f32.mrf.mxu3 }
 0x35c   :  { %5749 = vmatpush.bf16.msra.mxu3 %v9350_v39  ;;  %5765 = vmatpush.bf16.msrb.mxu0 %v9356_v6 }
 0x35e   :  { %5737 = vmatpush.bf16.msra.mxu2 %v9340_v2  ;;  %v4963_v41 = vpop.f32.mrf.mxu1  ;;  %v9387_v2 = vld [vmem:[#allocation11 + $0x1f8] sm:$0xff] }
 0x35f   :  { %5766 = vmatmul.bf16.vlgmr.msrb.gmra.mxu0 %v5182_v30  ;;  %5778 = vmatpush.bf16.msrb.mxu1 %v9365_v47  ;;  %v9384_v47 = vld [vmem:[#allocation11 + $0x1e0] sm:$0xff] }
 0x360   :  { %5750 = vmatpush.bf16.msra.mxu3 %v9349_v38  ;;  %v4977_v25 = vpop.f32.mrf.mxu2 }
 0x361   :  { %5738 = vmatmul.bf16.vlgmr.msra.gmra.mxu2 %v5180_v40 }
 0x362   :  { %5786 = vmatpush.bf16.msrb.mxu2 %v9379_v54 }
 0x363   :  { %5779 = vmatpush.bf16.msrb.mxu1 %v9364_v56  ;;  %v5003_v46 = vpop.f32.mrf.mxu0  ;;  %v4991_v18 = vpop.f32.mrf.mxu3 }
 0x364   :  { %5751 = vmatpush.bf16.msra.mxu3 %v9348_v43 }
 0x366   :  { %5780 = vmatmul.bf16.vlgmr.msrb.gmra.mxu1 %v5183_v3  ;;  %5787 = vmatpush.bf16.msrb.mxu2 %v9378_v24  ;;  %v5017_v51 = vpop.f32.mrf.mxu1 }
 0x367   :  { %5752 = vmatmul.bf16.vlgmr.msra.gmra.mxu3 %v9898_v31  ;;  %v1696_v31 = vperm.slane %v9967_v23, 6 }
 0x368   :  { %v5031_v5 = vpop.f32.mrf.mxu2  ;;  %5800 = vmatpush.bf16.msrb.mxu3 %v9387_v2 }
 0x369   :  { %v4948_v55 = vadd.f32 %v4947_v53, %v1696_v31  ;;  %v4950_v61 = vadd.f32 %v4949_v35, %v1696_v31 }
 0x36a   :  { %5788 = vmatpush.bf16.msrb.mxu2 %v9377_v34 }
 0x36b   :  { %v4962_v32 = vadd.f32 %v4961_v26, %v4948_v55  ;;  %v4964_v7 = vadd.f32 %v4963_v41, %v4950_v61  ;;  %v5005_v57 = vpop.f32.mrf.mxu0 }
 0x36c   :  { %5801 = vmatpush.bf16.msrb.mxu3 %v9386_v52 }
 0x36d   :  { %v4976_v63 = vadd.f32 %v4975_v62, %v4962_v32  ;;  %v4978_v45 = vadd.f32 %v4977_v25, %v4964_v7 }
 0x36e   :  { %5789 = vmatpush.bf16.msrb.mxu2 %v9376_v33  ;;  %v5045_v29 = vpop.f32.mrf.mxu3  ;;  %v5019_v39 = vpop.f32.mrf.mxu1 }
 0x36f   :  { %v4990_v1 = vadd.f32 %v4989_v8, %v4976_v63  ;;  %v4992_v22 = vadd.f32 %v4991_v18, %v4978_v45 }
 0x370   :  { %v5033_v19 = vpop.f32.mrf.mxu2  ;;  %5802 = vmatpush.bf16.msrb.mxu3 %v9385_v49 }
 0x371   :  { %v5004_v37 = vadd.f32 %v5003_v46, %v4990_v1  ;;  %v5006_v4 = vadd.f32 %v5005_v57, %v4992_v22  ;;  %v9402_v22 = vld [vmem:[#allocation13] ss:$0 sm:$0xff] }
 0x372   :  { %5790 = vmatpush.bf16.msrb.mxu2 %v9375_v9 }
 0x373   :  { %v5018_v28 = vadd.f32 %v5017_v51, %v5004_v37  ;;  %v5020_v10 = vadd.f32 %v5019_v39, %v5006_v4  ;;  %v5059_v30 = vpop.f32.mrf.mxu0 }
 0x374   :  { %5803 = vmatpush.bf16.msrb.mxu3 %v9384_v47  ;;  %v5060_v42 = vadd.f32 %v5059_v30, %v1697_v60 }
 0x375   :  { %v5032_v17 = vadd.f32 %v5031_v5, %v5018_v28  ;;  %v5034_v44 = vadd.f32 %v5033_v19, %v5020_v10 }
 0x376   :  { %5791 = vmatpush.bf16.msrb.mxu2 %v9374_v21  ;;  %v5047_v59 = vpop.f32.mrf.mxu3  ;;  %v5073_v48 = vpop.f32.mrf.mxu1 }
 0x377   :  { %v5046_v6 = vadd.f32 %v5045_v29, %v5032_v17  ;;  %v5048_v36 = vadd.f32 %v5047_v59, %v5034_v44  ;;  %v5074_v0 = vadd.f32 %v5073_v48, %v5060_v42 }
 0x378   :  { %5804 = vmatpush.bf16.msrb.mxu3 %v9383_v13 }
 0x379   :  { %v5168_v27 = vmax.f32 %v5046_v6, 0.0  ;;  %v5176_v12 = vmax.f32 %v5048_v36, 0.0 }
 0x37a   :  { %5792 = vmatpush.bf16.msrb.mxu2 %v9373_v15 }
 0x37b   :  { %v5184_v38 = vpack.c.bf16 %v5176_v12, %v5168_v27  ;;  %v5061_v14 = vpop.f32.mrf.mxu0 }
 0x37c   :  { %5805 = vmatpush.bf16.msrb.mxu3 %v9382_v50  ;;  %v5062_v3 = vadd.f32 %v5061_v14, %v1697_v60 }
 0x37e   :  { %5793 = vmatpush.bf16.msrb.mxu2 %v9372_v11  ;;  %v5075_v56 = vpop.f32.mrf.mxu1 }
 0x37f   :  { %v5076_v34 = vadd.f32 %v5075_v56, %v5062_v3 }
 0x380   :  { %5806 = vmatpush.bf16.msrb.mxu3 %v9381_v16 }
 0x381   :  { %5794 = vmatmul.bf16.vlgmr.msrb.gmra.mxu2 %v5184_v38 }
 0x384   :  { %5807 = vmatpush.bf16.msrb.mxu3 %v9380_v20 }
 0x394   :  { %v5115_v58 = vpop.f32.mrf.mxu0 }
 0x39c   :  { %v5087_v40 = vpop.f32.mrf.mxu2  ;;  %v5117_v11 = vpop.f32.mrf.mxu0 }
 0x39d   :  { %v5088_v33 = vadd.f32 %v5087_v40, %v5074_v0 }
 0x3a3   :  { %v5129_v9 = vpop.f32.mrf.mxu1 }
 0x3a4   :  { %v5089_v54 = vpop.f32.mrf.mxu2 }
 0x3a5   :  { %v5090_v53 = vadd.f32 %v5089_v54, %v5076_v34 }
 0x3a7   :  { %v5101_v43 = vpop.f32.mrf.mxu3 }
 0x3a8   :  { %v5102_v21 = vadd.f32 %v5101_v43, %v5088_v33 }
 0x3aa   :  { %v5116_v62 = vadd.f32 %v5115_v58, %v5102_v21 }
 0x3ab   :  { %v5131_v23 = vpop.f32.mrf.mxu1 }
 0x3ac   :  { %v5130_v31 = vadd.f32 %v5129_v9, %v5116_v62 }
 0x3af   :  { %v5103_v24 = vpop.f32.mrf.mxu3 }
 0x3b0   :  { %v5104_v26 = vadd.f32 %v5103_v24, %v5090_v53 }
 0x3b2   :  { %v5118_v8 = vadd.f32 %v5117_v11, %v5104_v26 }
 0x3b4   :  { %v5132_v55 = vadd.f32 %v5131_v23, %v5118_v8 }
 0x3bc   :  { %v5711_v1 = vpop.f32.mrf.mxu0 }
 0x3bd   :  { %v5712_v29 = vadd.f32 %v9402_v22, %v5711_v1 }
 0x3c3   :  { %v5725_v45 = vpop.f32.mrf.mxu1 }
 0x3c4   :  { %v5143_v15 = vpop.f32.mrf.mxu2  ;;  %v5713_v37 = vpop.f32.mrf.mxu0  ;;  %v5726_v4 = vadd.f32 %v5725_v45, %v5712_v29 }
 0x3c5   :  { %v5144_v25 = vadd.f32 %v5143_v15, %v5130_v31  ;;  %v5714_v6 = vadd.f32 %v9402_v22, %v5713_v37 }
 0x3ca   :  { %v5157_v35 = vpop.f32.mrf.mxu3 }
 0x3cb   :  { %v5158_v46 = vadd.f32 %v5157_v35, %v5144_v25  ;;  %v5727_v28 = vpop.f32.mrf.mxu1 }
 0x3cc   :  { %v5145_v41 = vpop.f32.mrf.mxu2  ;;  %v5728_v59 = vadd.f32 %v5727_v28, %v5714_v6 }
 0x3cd   :  { %v5146_v32 = vadd.f32 %v5145_v41, %v5132_v55  ;;  %v5169_v7 = vmax.f32 %v5158_v46, 0.0 }
 0x3d2   :  { %v5159_v61 = vpop.f32.mrf.mxu3 }
 0x3d3   :  { %v5160_v18 = vadd.f32 %v5159_v61, %v5146_v32 }
 0x3d5   :  { %v5177_v63 = vmax.f32 %v5160_v18, 0.0 }
 0x3d7   :  { %v5185_v51 = vpack.c.bf16 %v5177_v63, %v5169_v7 }
 0x3d9   :  { %5808 = vmatmul.bf16.vlgmr.msrb.gmra.mxu3 %v5185_v51 }
 0x3dc   :  { %v5767_v10 = vpop.f32.mrf.mxu0 }
 0x3e3   :  { %v5781_v36 = vpop.f32.mrf.mxu1 }
 0x3e4   :  { %v5739_v5 = vpop.f32.mrf.mxu2  ;;  %v5769_v47 = vpop.f32.mrf.mxu0 }
 0x3e5   :  { %v5740_v19 = vadd.f32 %v5739_v5, %v5726_v4 }
 0x3ea   :  { %v5753_v57 = vpop.f32.mrf.mxu3 }
 0x3eb   :  { %v5754_v17 = vadd.f32 %v5753_v57, %v5740_v19  ;;  %v5783_v16 = vpop.f32.mrf.mxu1 }
 0x3ec   :  { %v5741_v39 = vpop.f32.mrf.mxu2 }
 0x3ed   :  { %v5768_v2 = vadd.f32 %v5767_v10, %v5754_v17  ;;  %v5742_v12 = vadd.f32 %v5741_v39, %v5728_v59 }
 0x3ef   :  { %v5782_v52 = vadd.f32 %v5781_v36, %v5768_v2 }
 0x3f2   :  { %v5755_v44 = vpop.f32.mrf.mxu3 }
 0x3f3   :  { %v5756_v38 = vadd.f32 %v5755_v44, %v5742_v12 }
 0x3f5   :  { %v5770_v50 = vadd.f32 %v5769_v47, %v5756_v38 }
 0x3f7   :  { %v5784_v40 = vadd.f32 %v5783_v16, %v5770_v50 }
 0x404   :  { %v5795_v27 = vpop.f32.mrf.mxu2 }
 0x405   :  { %v5796_v49 = vadd.f32 %v5795_v27, %v5782_v52 }
 0x40c   :  { %v5797_v48 = vpop.f32.mrf.mxu2 }
 0x40d   :  { %v5798_v20 = vadd.f32 %v5797_v48, %v5784_v40 }
 0x45c   :  { %v5809_v13 = vpop.f32.mrf.mxu3 }
 0x45d   :  { %v5810_v30 = vadd.f32 %v5809_v13, %v5796_v49 }
 0x45f   :  { %5814 = vmax.xlane.f32.xlu0 %v5810_v30 }
 0x464   :  { %v5811_v14 = vpop.f32.mrf.mxu3 }
 0x465   :  { %v5812_v43 = vadd.f32 %v5811_v14, %v5798_v20 }
 0x467   :  { %5816 = vmax.xlane.f32.xlu0 %v5812_v43 }
 0x4d2   :  { %v5815_v60 = vpop.xlane.xlu0 %5814 }
 0x4d3   :  { %v5818_v56 = vsub.f32 %v5810_v30, %v5815_v60 }
 0x4d5   :  { %v5820_v54 = vmul.f32 1.442695, %v5818_v56 }
 0x4d7   :  { %9403 = vpow2.f32 %v5820_v54 }
 0x4da   :  { %v5817_v42 = vpop.xlane.xlu0 %5816 }
 0x4db   :  { %v5819_v58 = vsub.f32 %v5812_v43, %v5817_v42 }
 0x4dd   :  { %v9404_v0 = vpop.eup %9403  ;;  %v5822_v3 = vmul.f32 1.442695, %v5819_v58 }
 0x4de   :  { %5824 = vadd.xlane.f32.xlu1 %v9404_v0 }
 0x4df   :  { %9405 = vpow2.f32 %v5822_v3 }
 0x4e5   :  { %v9406_v24 = vpop.eup %9405 }
 0x4e6   :  { %5826 = vadd.xlane.f32.xlu1 %v9406_v24 }
 0x551   :  { %v5825_v34 = vpop.xlane.xlu1 %5824 }
 0x552   :  { %9407 = vlog2.f32 %v5825_v34 }
 0x558   :  { %v9408_v33 = vpop.eup %9407 }
 0x559   :  { %v5829_v9 = vmul.f32 0.6931472, %v9408_v33  ;;  %v5827_v21 = vpop.xlane.xlu1 %5826 }
 0x55a   :  { %9409 = vlog2.f32 %v5827_v21 }
 0x55b   :  { %v5832_v53 = vsub.f32 %v5818_v56, %v5829_v9 }
 0x55d   :  { %5834 = vst [vmem:[#allocation14] sm:$0xff] %v5832_v53 }
 0x560   :  { %v9410_v15 = vpop.eup %9409 }
 0x561   :  { %v5831_v26 = vmul.f32 0.6931472, %v9410_v15 }
 0x563   :  { %v5833_v62 = vsub.f32 %v5819_v58, %v5831_v26 }
 0x565   :  { %5835 = vst [vmem:[#allocation14 + $0x8] sm:$0xff] %v5833_v62 }
 0x566   :  { %5848 = dma.vmem_to_hbm [thread:$0]  %s5841_s6, 256, %s5843_s1, [#allocation4], %s9623_s23, %s9623_s23, %s9624_s24  }
 0x567   :  { %9613 = dma.done.wait [#allocation4], 256  }
 0x568   :  { %9614 = vsyncadd [#allocation4], 4294967040 }
 0x569   :  { %5853 = vsyncpa [#allocation3], 1 }
 0x56a   :  { %5854 = vsyncpa [#allocation6], 1 }
 0x56b   :  { %5855 = vsyncpa [#allocation9], 1 }
 0x56c   :  { %5856 = vsyncpa [#allocation12], 1 }
 0x56d   :  { %5857 = vsyncpa [#allocation4], 1 }

</bundles_post_ra>
